<compile_context>
chip_gen: v7x
topology: tpu7x:2x2x1
jax: 0.10.0
libtpu: 0.0.40
codegen_flags: <defaults>
</compile_context>

<pallas_src>
import functools

import jax
import jax.numpy as jnp
from jax.experimental import pallas as pl
from jax.experimental.pallas import tpu as pltpu


_VMEM_LIMIT = 32 * 1024 * 1024       # v7x-safe scoped VMEM budget
_TILE_M = 512                        # rows per matmul grid step (when M is large)


def _cparams(n_axes=1):
    return pltpu.CompilerParams(
        dimension_semantics=("parallel",) * n_axes,
        vmem_limit_bytes=_VMEM_LIMIT,
    )


# ----------------------------------------------------------------------------
# Pallas kernels
# ----------------------------------------------------------------------------
def _matmul_bias_act_kernel(x_ref, w_ref, b_ref, o_ref, *, relu):
    # y = maybe_relu(x @ w + bias); x/w bf16, accumulate f32, bias f32.
    y = jnp.dot(x_ref[...], w_ref[...], preferred_element_type=jnp.float32)
    y = y + b_ref[...]
    if relu:
        y = jnp.maximum(y, 0.0)
    o_ref[...] = y.astype(o_ref.dtype)


def _dwconv_bias_kernel(x_ref, w_ref, b_ref, o_ref, *, relu):
    # x_ref: (1, H+2, W+2, C) padded plane, w_ref: (9, 1, C), b_ref: (1, C).
    xp = x_ref[0].astype(jnp.float32)            # (Hp, Wp, C)
    hp, wp, _ = xp.shape
    h, w = hp - 2, wp - 2
    acc = xp[0:h, 0:w, :] * w_ref[0]
    for k in range(1, 9):
        kh, kw = divmod(k, 3)
        acc = acc + xp[kh:kh + h, kw:kw + w, :] * w_ref[k]
    y = acc + b_ref[...]
    if relu:
        y = jnp.maximum(y, 0.0)
    o_ref[0] = y.astype(o_ref.dtype)


def _maxpool_kernel(x_ref, o_ref):
    # 3x3 max over a -inf padded plane, stride-1 output (subsampled outside).
    xp = x_ref[0]                                 # (Hp, Wp, C)
    hp, wp, _ = xp.shape
    h, w = hp - 2, wp - 2
    m = xp[0:h, 0:w, :]
    for k in range(1, 9):
        kh, kw = divmod(k, 3)
        m = jnp.maximum(m, xp[kh:kh + h, kw:kw + w, :])
    o_ref[0] = m


def _global_avgpool_kernel(x_ref, o_ref, *, inv_hw):
    x = x_ref[0].astype(jnp.float32)              # (H, W, C)
    s = jnp.sum(x, axis=0)                        # (W, C)
    s = jnp.sum(s, axis=0, keepdims=True)         # (1, C)
    o_ref[0] = s * inv_hw


# ----------------------------------------------------------------------------
# Pallas wrappers
# ----------------------------------------------------------------------------
def matmul_bias_act(x2d, w, b, relu=True, tile_m=_TILE_M):
    # x2d: (M, K) bf16, w: (K, N) bf16 (BN scale folded), b: (1, N) f32.
    M, K = x2d.shape
    Nout = w.shape[1]
    tm = M if M <= tile_m else tile_m
    grid_m = pl.cdiv(M, tm)
    return pl.pallas_call(
        functools.partial(_matmul_bias_act_kernel, relu=relu),
        out_shape=jax.ShapeDtypeStruct((M, Nout), jnp.bfloat16),
        grid=(grid_m,),
        in_specs=[
            pl.BlockSpec((tm, K), lambda i: (i, 0)),
            pl.BlockSpec((K, Nout), lambda i: (0, 0)),   # resident weight
            pl.BlockSpec((1, Nout), lambda i: (0, 0)),   # resident bias
        ],
        out_specs=pl.BlockSpec((tm, Nout), lambda i: (i, 0)),
        compiler_params=_cparams(1),
    )(x2d, w, b)


def conv1x1_bn_act(x, w, b, relu=True):
    N, H, W, C = x.shape
    y = matmul_bias_act(x.reshape(N * H * W, C), w, b, relu=relu)
    return y.reshape(N, H, W, -1)


def conv3x3_bn_relu_s2(x, w, b):
    # Stem: 3x3 stride-2 conv via tiny XLA im2col (K = 9*Cin, unpadded) + matmul.
    N, H, W, C = x.shape
    Ho = (H + 2 - 3) // 2 + 1
    Wo = (W + 2 - 3) // 2 + 1
    xp = jnp.pad(x, ((0, 0), (1, 1), (1, 1), (0, 0)))
    cols = []
    for kh in range(3):
        for kw in range(3):
            cols.append(xp[:, kh:kh + 2 * (Ho - 1) + 1:2,
                              kw:kw + 2 * (Wo - 1) + 1:2, :])
    patches = jnp.stack(cols, axis=3).reshape(N * Ho * Wo, 9 * C)
    y = matmul_bias_act(patches, w, b, relu=True)
    return y.reshape(N, Ho, Wo, -1)


def dwconv_bn(x, w9, b, stride, relu=False):
    # Depthwise 3x3 conv + BN.  w9: (9, 1, C) (scale folded), b: (1, C).
    N, H, W, C = x.shape
    xp = jnp.pad(x, ((0, 0), (1, 1), (1, 1), (0, 0)))
    y = pl.pallas_call(
        functools.partial(_dwconv_bias_kernel, relu=relu),
        out_shape=jax.ShapeDtypeStruct((N, H, W, C), jnp.bfloat16),
        grid=(N,),
        in_specs=[
            pl.BlockSpec((1, H + 2, W + 2, C), lambda n: (n, 0, 0, 0)),
            pl.BlockSpec((9, 1, C), lambda n: (0, 0, 0)),
            pl.BlockSpec((1, C), lambda n: (0, 0)),
        ],
        out_specs=pl.BlockSpec((1, H, W, C), lambda n: (n, 0, 0, 0)),
        compiler_params=_cparams(1),
    )(xp, w9, b)
    if stride == 2:
        # TODO(synk): compute the strided taps directly in-kernel instead of
        # subsampling the stride-1 output (only hit by the 3 stage-entry blocks).
        y = y[:, ::2, ::2, :]
    return y


def maxpool3x3_s2(x):
    N, H, W, C = x.shape
    xp = jnp.pad(x, ((0, 0), (1, 1), (1, 1), (0, 0)), constant_values=-jnp.inf)
    y = pl.pallas_call(
        _maxpool_kernel,
        out_shape=jax.ShapeDtypeStruct((N, H, W, C), x.dtype),
        grid=(N,),
        in_specs=[pl.BlockSpec((1, H + 2, W + 2, C), lambda n: (n, 0, 0, 0))],
        out_specs=pl.BlockSpec((1, H, W, C), lambda n: (n, 0, 0, 0)),
        compiler_params=_cparams(1),
    )(xp)
    return y[:, ::2, ::2, :]


def global_avgpool(x):
    N, H, W, C = x.shape
    y = pl.pallas_call(
        functools.partial(_global_avgpool_kernel, inv_hw=1.0 / (H * W)),
        out_shape=jax.ShapeDtypeStruct((N, 1, C), jnp.float32),
        grid=(N,),
        in_specs=[pl.BlockSpec((1, H, W, C), lambda n: (n, 0, 0, 0))],
        out_specs=pl.BlockSpec((1, 1, C), lambda n: (n, 0, 0)),
        compiler_params=_cparams(1),
    )(x)
    return y.reshape(N, C)


# ----------------------------------------------------------------------------
# ShuffleNetV2 building blocks (layout glue in XLA, compute in kernels above)
# ----------------------------------------------------------------------------
def channel_shuffle(x, groups=2):
    N, H, W, C = x.shape
    return x.reshape(N, H, W, groups, C // groups).swapaxes(3, 4).reshape(N, H, W, C)


def _branch2(x, p, stride):
    # TODO(synk): fuse the 1x1 -> dw3x3 -> 1x1 chain into one VMEM-resident kernel.
    x = conv1x1_bn_act(x, p['w1'], p['b1'], relu=True)
    x = dwconv_bn(x, p['wdw'], p['bdw'], stride, relu=False)
    x = conv1x1_bn_act(x, p['w2'], p['b2'], relu=True)
    return x


def _branch1(x, p, stride):
    x = dwconv_bn(x, p['wdw'], p['bdw'], stride, relu=False)
    x = conv1x1_bn_act(x, p['w1'], p['b1'], relu=True)
    return x


def inverted_residual(x, blk, stride):
    if stride == 1:
        c = x.shape[-1]
        x1, x2 = x[..., :c // 2], x[..., c // 2:]
        out = jnp.concatenate([x1, _branch2(x2, blk['branch2'], 1)], axis=-1)
    else:
        out = jnp.concatenate(
            [_branch1(x, blk['branch1'], stride),
             _branch2(x, blk['branch2'], stride)], axis=-1)
    return channel_shuffle(out, 2)


def shufflenet_forward(params, x_nchw):
    x = jnp.transpose(x_nchw, (0, 2, 3, 1)).astype(jnp.bfloat16)   # NCHW -> NHWC
    x = conv3x3_bn_relu_s2(x, params['conv1_w'], params['conv1_b'])
    x = maxpool3x3_s2(x)
    for blocks in params['stages']:
        for i, blk in enumerate(blocks):
            x = inverted_residual(x, blk, 2 if i == 0 else 1)
    x = conv1x1_bn_act(x, params['conv5_w'], params['conv5_b'], relu=True)
    x = global_avgpool(x)          # (N, 2048), f32
    return x                       # fc == nn.Identity (out_channels=None)


# ----------------------------------------------------------------------------
# Deterministic parameter init (synthetic; BN folded: w <- w*scale, bias kept f32)
# ----------------------------------------------------------------------------
class _KeyGen:
    def __init__(self, key):
        self.key, self.i = key, 0

    def __call__(self):
        self.i += 1
        return jax.random.fold_in(self.key, self.i)


def init_params(key, in_channels):
    kg = _KeyGen(key)

    def conv_w(shape, fan_in):
        return jax.random.normal(kg(), shape, jnp.float32) * (2.0 / fan_in) ** 0.5

    def bn(c):
        s = jax.random.uniform(kg(), (c,), jnp.float32, 0.8, 1.2)
        b = jax.random.normal(kg(), (c,), jnp.float32) * 0.05
        return s, b

    def fold_1x1(cin, cout):
        w = conv_w((cin, cout), cin)
        s, b = bn(cout)
        return (w * s[None, :]).astype(jnp.bfloat16), b.reshape(1, cout)

    def fold_dw(c):
        w = conv_w((3, 3, c), 9.0)
        s, b = bn(c)
        return (w * s).reshape(9, 1, c), b.reshape(1, c)

    params = {}
    # stem: Conv2d(in_channels, 24, 3, stride=2, padding=1, bias=False) + BN + ReLU
    w = conv_w((3, 3, in_channels, 24), 9 * in_channels)
    s, b = bn(24)
    params['conv1_w'] = (w * s).reshape(9 * in_channels, 24).astype(jnp.bfloat16)
    params['conv1_b'] = b.reshape(1, 24)

    # shufflenet_v2_x2_0: stages_out_channels = [24, 244, 488, 976, 2048]
    stage_cfg = [(24, 244, 4), (244, 488, 8), (488, 976, 4)]
    stages = []
    for inp, oup, repeats in stage_cfg:
        blocks = []
        for i in range(repeats):
            stride = 2 if i == 0 else 1
            bf = oup // 2
            blk = {}
            if stride == 2:
                wdw, bdw = fold_dw(inp)
                w1, b1 = fold_1x1(inp, bf)
                blk['branch1'] = {'wdw': wdw, 'bdw': bdw, 'w1': w1, 'b1': b1}
                in2 = inp
            else:
                in2 = oup // 2
            w1, b1 = fold_1x1(in2, bf)
            wdw, bdw = fold_dw(bf)
            w2, b2 = fold_1x1(bf, bf)
            blk['branch2'] = {'w1': w1, 'b1': b1, 'wdw': wdw, 'bdw': bdw,
                              'w2': w2, 'b2': b2}
            blocks.append(blk)
        stages.append(blocks)
    params['stages'] = stages

    # conv5: Conv2d(976, 2048, 1, bias=False) + BN + ReLU
    params['conv5_w'], params['conv5_b'] = fold_1x1(976, 2048)
    return params


# ----------------------------------------------------------------------------
if __name__ == "__main__":
    key = jax.random.PRNGKey(0)
    in_channels = 4
    params = init_params(jax.random.fold_in(key, 1), in_channels)
    x = jax.random.normal(jax.random.fold_in(key, 2),
                          (2, in_channels, 16, 16), jnp.float32)

    fwd = jax.jit(shufflenet_forward)
    out = jax.block_until_ready(fwd(params, x))

    assert out.shape == (2, 2048), out.shape
    assert bool(jnp.all(jnp.isfinite(out)))
    print("KERNEL_OK")
</pallas_src>

<mosaic_0001>
module attributes {stable_mosaic.version = 11 : i64} {
  func.func @_maxpool_kernel(%arg0: i32, %arg1: memref<1x10x10x24xbf16, #tpu.memory_space<vmem>>, %arg2: memref<1x8x8x24xbf16, #tpu.memory_space<vmem>>) attributes {dimension_semantics = [#tpu.dimension_semantics<parallel>], iteration_bounds = array<i64: 2>, scalar_prefetch = 0 : i64, scratch_operands = 0 : i64, tpu.core_type = #tpu.core_type<tc>, window_params = [{transform_indices = @transform_0, window_bounds = array<i64: 1, 10, 10, 24>}, {transform_indices = @transform_1, window_bounds = array<i64: 1, 8, 8, 24>}]} {
    %c0 = arith.constant 0 : index
    %c0_0 = arith.constant 0 : index
    %c0_1 = arith.constant 0 : index
    %c0_2 = arith.constant 0 : index
    %0 = vector.load %arg1[%c0, %c0_0, %c0_1, %c0_2] : memref<1x10x10x24xbf16, #tpu.memory_space<vmem>>, vector<1x10x10x24xbf16>
    %1 = vector.shape_cast %0 : vector<1x10x10x24xbf16> to vector<10x10x24xbf16>
    %2 = vector.extract_strided_slice %1 {offsets = [0, 0, 0], sizes = [8, 8, 24], strides = [1, 1, 1]} : vector<10x10x24xbf16> to vector<8x8x24xbf16>
    %3 = vector.extract_strided_slice %1 {offsets = [0, 1, 0], sizes = [8, 8, 24], strides = [1, 1, 1]} : vector<10x10x24xbf16> to vector<8x8x24xbf16>
    %4 = arith.maximumf %2, %3 : vector<8x8x24xbf16>
    %5 = vector.extract_strided_slice %1 {offsets = [0, 2, 0], sizes = [8, 8, 24], strides = [1, 1, 1]} : vector<10x10x24xbf16> to vector<8x8x24xbf16>
    %6 = arith.maximumf %4, %5 : vector<8x8x24xbf16>
    %7 = vector.extract_strided_slice %1 {offsets = [1, 0, 0], sizes = [8, 8, 24], strides = [1, 1, 1]} : vector<10x10x24xbf16> to vector<8x8x24xbf16>
    %8 = arith.maximumf %6, %7 : vector<8x8x24xbf16>
    %9 = vector.extract_strided_slice %1 {offsets = [1, 1, 0], sizes = [8, 8, 24], strides = [1, 1, 1]} : vector<10x10x24xbf16> to vector<8x8x24xbf16>
    %10 = arith.maximumf %8, %9 : vector<8x8x24xbf16>
    %11 = vector.extract_strided_slice %1 {offsets = [1, 2, 0], sizes = [8, 8, 24], strides = [1, 1, 1]} : vector<10x10x24xbf16> to vector<8x8x24xbf16>
    %12 = arith.maximumf %10, %11 : vector<8x8x24xbf16>
    %13 = vector.extract_strided_slice %1 {offsets = [2, 0, 0], sizes = [8, 8, 24], strides = [1, 1, 1]} : vector<10x10x24xbf16> to vector<8x8x24xbf16>
    %14 = arith.maximumf %12, %13 : vector<8x8x24xbf16>
    %15 = vector.extract_strided_slice %1 {offsets = [2, 1, 0], sizes = [8, 8, 24], strides = [1, 1, 1]} : vector<10x10x24xbf16> to vector<8x8x24xbf16>
    %16 = arith.maximumf %14, %15 : vector<8x8x24xbf16>
    %17 = vector.extract_strided_slice %1 {offsets = [2, 2, 0], sizes = [8, 8, 24], strides = [1, 1, 1]} : vector<10x10x24xbf16> to vector<8x8x24xbf16>
    %18 = arith.maximumf %16, %17 : vector<8x8x24xbf16>
    %c0_3 = arith.constant 0 : index
    %c0_4 = arith.constant 0 : index
    %c0_5 = arith.constant 0 : index
    %c0_6 = arith.constant 0 : index
    %19 = vector.load %arg2[%c0_3, %c0_4, %c0_5, %c0_6] : memref<1x8x8x24xbf16, #tpu.memory_space<vmem>>, vector<1x8x8x24xbf16>
    %20 = vector.shape_cast %19 : vector<1x8x8x24xbf16> to vector<8x8x24xbf16>
    %21 = vector.shape_cast %18 : vector<8x8x24xbf16> to vector<1x8x8x24xbf16>
    tpu.vector_store %arg2[%c0_3, %c0_4, %c0_5, %c0_6], %21 {strides = array<i32>} : memref<1x8x8x24xbf16, #tpu.memory_space<vmem>>, vector<1x8x8x24xbf16>,
    return
  }
  func.func @transform_0(%arg0: i32) -> (i32, i32, i32, i32) {
    %c0_i32 = arith.constant 0 : i32
    %c0_i32_0 = arith.constant 0 : i32
    %c0_i32_1 = arith.constant 0 : i32
    %c0_i32_2 = arith.constant 0 : i32
    return %arg0, %c0_i32, %c0_i32_0, %c0_i32_1 : i32, i32, i32, i32
  }
  func.func @transform_1(%arg0: i32) -> (i32, i32, i32, i32) {
    %c0_i32 = arith.constant 0 : i32
    %c0_i32_0 = arith.constant 0 : i32
    %c0_i32_1 = arith.constant 0 : i32
    %c0_i32_2 = arith.constant 0 : i32
    return %arg0, %c0_i32, %c0_i32_0, %c0_i32_1 : i32, i32, i32, i32
  }
}

module attributes {stable_mosaic.version = 11 : i64} {
  func.func @_matmul_bias_act_kernel(%arg0: i32, %arg1: memref<128x36xbf16, #tpu.memory_space<vmem>>, %arg2: memref<36x24xbf16, #tpu.memory_space<vmem>>, %arg3: memref<1x24xf32, #tpu.memory_space<vmem>>, %arg4: memref<128x24xbf16, #tpu.memory_space<vmem>>) attributes {dimension_semantics = [#tpu.dimension_semantics<parallel>], iteration_bounds = array<i64: 1>, scalar_prefetch = 0 : i64, scratch_operands = 0 : i64, tpu.core_type = #tpu.core_type<tc>, window_params = [{transform_indices = @transform_0, window_bounds = array<i64: 128, 36>}, {pipeline_mode = #tpu.pipeline_mode<synchronous>, transform_indices = @transform_1, window_bounds = array<i64: 36, 24>}, {pipeline_mode = #tpu.pipeline_mode<synchronous>, transform_indices = @transform_2, window_bounds = array<i64: 1, 24>}, {transform_indices = @transform_3, window_bounds = array<i64: 128, 24>}]} {
    %c0 = arith.constant 0 : index
    %c0_0 = arith.constant 0 : index
    %0 = vector.load %arg1[%c0, %c0_0] : memref<128x36xbf16, #tpu.memory_space<vmem>>, vector<128x36xbf16>
    %c0_1 = arith.constant 0 : index
    %c0_2 = arith.constant 0 : index
    %1 = vector.load %arg2[%c0_1, %c0_2] : memref<36x24xbf16, #tpu.memory_space<vmem>>, vector<36x24xbf16>
    %cst = arith.constant dense<0.000000e+00> : vector<128x24xf32>
    %2 = tpu.matmul %0, %1, %cst {dimension_numbers = #tpu.dot_dimension_numbers<[1], [0], [0], [1], [0, 0, 1, 1], [], []>} : vector<128x36xbf16>, vector<36x24xbf16>, vector<128x24xf32> -> vector<128x24xf32>
    %c0_3 = arith.constant 0 : index
    %c0_4 = arith.constant 0 : index
    %3 = vector.load %arg3[%c0_3, %c0_4] : memref<1x24xf32, #tpu.memory_space<vmem>>, vector<1x24xf32>
    %4 = vector.broadcast %3 : vector<1x24xf32> to vector<128x24xf32>
    %5 = arith.addf %2, %4 : vector<128x24xf32>
    %cst_5 = arith.constant 0.000000e+00 : f32
    %6 = vector.broadcast %cst_5 : f32 to vector<128x24xf32>
    %7 = arith.maximumf %5, %6 : vector<128x24xf32>
    %8 = arith.truncf %7 : vector<128x24xf32> to vector<128x24xbf16>
    %c0_6 = arith.constant 0 : index
    %c0_7 = arith.constant 0 : index
    %9 = vector.load %arg4[%c0_6, %c0_7] : memref<128x24xbf16, #tpu.memory_space<vmem>>, vector<128x24xbf16>
    tpu.vector_store %arg4[%c0_6, %c0_7], %8 {strides = array<i32>} : memref<128x24xbf16, #tpu.memory_space<vmem>>, vector<128x24xbf16>,
    return
  }
  func.func @transform_0(%arg0: i32) -> (i32, i32) {
    %c0_i32 = arith.constant 0 : i32
    %c0_i32_0 = arith.constant 0 : i32
    return %arg0, %c0_i32 : i32, i32
  }
  func.func @transform_1(%arg0: i32) -> (i32, i32) {
    %c0_i32 = arith.constant 0 : i32
    %c0_i32_0 = arith.constant 0 : i32
    %c0_i32_1 = arith.constant 0 : i32
    return %c0_i32, %c0_i32_0 : i32, i32
  }
  func.func @transform_2(%arg0: i32) -> (i32, i32) {
    %c0_i32 = arith.constant 0 : i32
    %c0_i32_0 = arith.constant 0 : i32
    %c0_i32_1 = arith.constant 0 : i32
    return %c0_i32, %c0_i32_0 : i32, i32
  }
  func.func @transform_3(%arg0: i32) -> (i32, i32) {
    %c0_i32 = arith.constant 0 : i32
    %c0_i32_0 = arith.constant 0 : i32
    return %arg0, %c0_i32 : i32, i32
  }
}

module attributes {stable_mosaic.version = 11 : i64} {
  func.func @_matmul_bias_act_kernel(%arg0: i32, %arg1: memref<32x24xbf16, #tpu.memory_space<vmem>>, %arg2: memref<24x122xbf16, #tpu.memory_space<vmem>>, %arg3: memref<1x122xf32, #tpu.memory_space<vmem>>, %arg4: memref<32x122xbf16, #tpu.memory_space<vmem>>) attributes {dimension_semantics = [#tpu.dimension_semantics<parallel>], iteration_bounds = array<i64: 1>, scalar_prefetch = 0 : i64, scratch_operands = 0 : i64, tpu.core_type = #tpu.core_type<tc>, window_params = [{transform_indices = @transform_0, window_bounds = array<i64: 32, 24>}, {pipeline_mode = #tpu.pipeline_mode<synchronous>, transform_indices = @transform_1, window_bounds = array<i64: 24, 122>}, {pipeline_mode = #tpu.pipeline_mode<synchronous>, transform_indices = @transform_2, window_bounds = array<i64: 1, 122>}, {transform_indices = @transform_3, window_bounds = array<i64: 32, 122>}]} {
    %c0 = arith.constant 0 : index
    %c0_0 = arith.constant 0 : index
    %0 = vector.load %arg1[%c0, %c0_0] : memref<32x24xbf16, #tpu.memory_space<vmem>>, vector<32x24xbf16>
    %c0_1 = arith.constant 0 : index
    %c0_2 = arith.constant 0 : index
    %1 = vector.load %arg2[%c0_1, %c0_2] : memref<24x122xbf16, #tpu.memory_space<vmem>>, vector<24x122xbf16>
    %cst = arith.constant dense<0.000000e+00> : vector<32x122xf32>
    %2 = tpu.matmul %0, %1, %cst {dimension_numbers = #tpu.dot_dimension_numbers<[1], [0], [0], [1], [0, 0, 1, 1], [], []>} : vector<32x24xbf16>, vector<24x122xbf16>, vector<32x122xf32> -> vector<32x122xf32>
    %c0_3 = arith.constant 0 : index
    %c0_4 = arith.constant 0 : index
    %3 = vector.load %arg3[%c0_3, %c0_4] : memref<1x122xf32, #tpu.memory_space<vmem>>, vector<1x122xf32>
    %4 = vector.broadcast %3 : vector<1x122xf32> to vector<32x122xf32>
    %5 = arith.addf %2, %4 : vector<32x122xf32>
    %cst_5 = arith.constant 0.000000e+00 : f32
    %6 = vector.broadcast %cst_5 : f32 to vector<32x122xf32>
    %7 = arith.maximumf %5, %6 : vector<32x122xf32>
    %8 = arith.truncf %7 : vector<32x122xf32> to vector<32x122xbf16>
    %c0_6 = arith.constant 0 : index
    %c0_7 = arith.constant 0 : index
    %9 = vector.load %arg4[%c0_6, %c0_7] : memref<32x122xbf16, #tpu.memory_space<vmem>>, vector<32x122xbf16>
    tpu.vector_store %arg4[%c0_6, %c0_7], %8 {strides = array<i32>} : memref<32x122xbf16, #tpu.memory_space<vmem>>, vector<32x122xbf16>,
    return
  }
  func.func @transform_0(%arg0: i32) -> (i32, i32) {
    %c0_i32 = arith.constant 0 : i32
    %c0_i32_0 = arith.constant 0 : i32
    return %arg0, %c0_i32 : i32, i32
  }
  func.func @transform_1(%arg0: i32) -> (i32, i32) {
    %c0_i32 = arith.constant 0 : i32
    %c0_i32_0 = arith.constant 0 : i32
    %c0_i32_1 = arith.constant 0 : i32
    return %c0_i32, %c0_i32_0 : i32, i32
  }
  func.func @transform_2(%arg0: i32) -> (i32, i32) {
    %c0_i32 = arith.constant 0 : i32
    %c0_i32_0 = arith.constant 0 : i32
    %c0_i32_1 = arith.constant 0 : i32
    return %c0_i32, %c0_i32_0 : i32, i32
  }
  func.func @transform_3(%arg0: i32) -> (i32, i32) {
    %c0_i32 = arith.constant 0 : i32
    %c0_i32_0 = arith.constant 0 : i32
    return %arg0, %c0_i32 : i32, i32
  }
}

module attributes {stable_mosaic.version = 11 : i64} {
  func.func @_dwconv_bias_kernel(%arg0: i32, %arg1: memref<1x6x6x122xbf16, #tpu.memory_space<vmem>>, %arg2: memref<9x1x122xf32, #tpu.memory_space<vmem>>, %arg3: memref<1x122xf32, #tpu.memory_space<vmem>>, %arg4: memref<1x4x4x122xbf16, #tpu.memory_space<vmem>>) attributes {dimension_semantics = [#tpu.dimension_semantics<parallel>], iteration_bounds = array<i64: 2>, scalar_prefetch = 0 : i64, scratch_operands = 0 : i64, tpu.core_type = #tpu.core_type<tc>, window_params = [{transform_indices = @transform_0, window_bounds = array<i64: 1, 6, 6, 122>}, {pipeline_mode = #tpu.pipeline_mode<synchronous>, transform_indices = @transform_1, window_bounds = array<i64: 9, 1, 122>}, {pipeline_mode = #tpu.pipeline_mode<synchronous>, transform_indices = @transform_2, window_bounds = array<i64: 1, 122>}, {transform_indices = @transform_3, window_bounds = array<i64: 1, 4, 4, 122>}]} {
    %c0 = arith.constant 0 : index
    %c0_0 = arith.constant 0 : index
    %c0_1 = arith.constant 0 : index
    %c0_2 = arith.constant 0 : index
    %0 = vector.load %arg1[%c0, %c0_0, %c0_1, %c0_2] : memref<1x6x6x122xbf16, #tpu.memory_space<vmem>>, vector<1x6x6x122xbf16>
    %1 = vector.shape_cast %0 : vector<1x6x6x122xbf16> to vector<6x6x122xbf16>
    %2 = arith.extf %1 : vector<6x6x122xbf16> to vector<6x6x122xf32>
    %3 = vector.extract_strided_slice %2 {offsets = [0, 0, 0], sizes = [4, 4, 122], strides = [1, 1, 1]} : vector<6x6x122xf32> to vector<4x4x122xf32>
    %c0_3 = arith.constant 0 : index
    %c0_4 = arith.constant 0 : index
    %c0_5 = arith.constant 0 : index
    %4 = vector.load %arg2[%c0_3, %c0_4, %c0_5] : memref<9x1x122xf32, #tpu.memory_space<vmem>>, vector<1x1x122xf32>
    %5 = vector.shape_cast %4 : vector<1x1x122xf32> to vector<1x122xf32>
    %6 = vector.shape_cast %5 : vector<1x122xf32> to vector<1x1x122xf32>
    %7 = vector.broadcast %6 : vector<1x1x122xf32> to vector<4x4x122xf32>
    %8 = arith.mulf %3, %7 : vector<4x4x122xf32>
    %9 = vector.extract_strided_slice %2 {offsets = [0, 1, 0], sizes = [4, 4, 122], strides = [1, 1, 1]} : vector<6x6x122xf32> to vector<4x4x122xf32>
    %c1 = arith.constant 1 : index
    %c0_6 = arith.constant 0 : index
    %c0_7 = arith.constant 0 : index
    %10 = vector.load %arg2[%c1, %c0_6, %c0_7] : memref<9x1x122xf32, #tpu.memory_space<vmem>>, vector<1x1x122xf32>
    %11 = vector.shape_cast %10 : vector<1x1x122xf32> to vector<1x122xf32>
    %12 = vector.shape_cast %11 : vector<1x122xf32> to vector<1x1x122xf32>
    %13 = vector.broadcast %12 : vector<1x1x122xf32> to vector<4x4x122xf32>
    %14 = arith.mulf %9, %13 : vector<4x4x122xf32>
    %15 = arith.addf %8, %14 : vector<4x4x122xf32>
    %16 = vector.extract_strided_slice %2 {offsets = [0, 2, 0], sizes = [4, 4, 122], strides = [1, 1, 1]} : vector<6x6x122xf32> to vector<4x4x122xf32>
    %c2 = arith.constant 2 : index
    %c0_8 = arith.constant 0 : index
    %c0_9 = arith.constant 0 : index
    %17 = vector.load %arg2[%c2, %c0_8, %c0_9] : memref<9x1x122xf32, #tpu.memory_space<vmem>>, vector<1x1x122xf32>
    %18 = vector.shape_cast %17 : vector<1x1x122xf32> to vector<1x122xf32>
    %19 = vector.shape_cast %18 : vector<1x122xf32> to vector<1x1x122xf32>
    %20 = vector.broadcast %19 : vector<1x1x122xf32> to vector<4x4x122xf32>
    %21 = arith.mulf %16, %20 : vector<4x4x122xf32>
    %22 = arith.addf %15, %21 : vector<4x4x122xf32>
    %23 = vector.extract_strided_slice %2 {offsets = [1, 0, 0], sizes = [4, 4, 122], strides = [1, 1, 1]} : vector<6x6x122xf32> to vector<4x4x122xf32>
    %c3 = arith.constant 3 : index
    %c0_10 = arith.constant 0 : index
    %c0_11 = arith.constant 0 : index
    %24 = vector.load %arg2[%c3, %c0_10, %c0_11] : memref<9x1x122xf32, #tpu.memory_space<vmem>>, vector<1x1x122xf32>
    %25 = vector.shape_cast %24 : vector<1x1x122xf32> to vector<1x122xf32>
    %26 = vector.shape_cast %25 : vector<1x122xf32> to vector<1x1x122xf32>
    %27 = vector.broadcast %26 : vector<1x1x122xf32> to vector<4x4x122xf32>
    %28 = arith.mulf %23, %27 : vector<4x4x122xf32>
    %29 = arith.addf %22, %28 : vector<4x4x122xf32>
    %30 = vector.extract_strided_slice %2 {offsets = [1, 1, 0], sizes = [4, 4, 122], strides = [1, 1, 1]} : vector<6x6x122xf32> to vector<4x4x122xf32>
    %c4 = arith.constant 4 : index
    %c0_12 = arith.constant 0 : index
    %c0_13 = arith.constant 0 : index
    %31 = vector.load %arg2[%c4, %c0_12, %c0_13] : memref<9x1x122xf32, #tpu.memory_space<vmem>>, vector<1x1x122xf32>
    %32 = vector.shape_cast %31 : vector<1x1x122xf32> to vector<1x122xf32>
    %33 = vector.shape_cast %32 : vector<1x122xf32> to vector<1x1x122xf32>
    %34 = vector.broadcast %33 : vector<1x1x122xf32> to vector<4x4x122xf32>
    %35 = arith.mulf %30, %34 : vector<4x4x122xf32>
    %36 = arith.addf %29, %35 : vector<4x4x122xf32>
    %37 = vector.extract_strided_slice %2 {offsets = [1, 2, 0], sizes = [4, 4, 122], strides = [1, 1, 1]} : vector<6x6x122xf32> to vector<4x4x122xf32>
    %c5 = arith.constant 5 : index
    %c0_14 = arith.constant 0 : index
    %c0_15 = arith.constant 0 : index
    %38 = vector.load %arg2[%c5, %c0_14, %c0_15] : memref<9x1x122xf32, #tpu.memory_space<vmem>>, vector<1x1x122xf32>
    %39 = vector.shape_cast %38 : vector<1x1x122xf32> to vector<1x122xf32>
    %40 = vector.shape_cast %39 : vector<1x122xf32> to vector<1x1x122xf32>
    %41 = vector.broadcast %40 : vector<1x1x122xf32> to vector<4x4x122xf32>
    %42 = arith.mulf %37, %41 : vector<4x4x122xf32>
    %43 = arith.addf %36, %42 : vector<4x4x122xf32>
    %44 = vector.extract_strided_slice %2 {offsets = [2, 0, 0], sizes = [4, 4, 122], strides = [1, 1, 1]} : vector<6x6x122xf32> to vector<4x4x122xf32>
    %c6 = arith.constant 6 : index
    %c0_16 = arith.constant 0 : index
    %c0_17 = arith.constant 0 : index
    %45 = vector.load %arg2[%c6, %c0_16, %c0_17] : memref<9x1x122xf32, #tpu.memory_space<vmem>>, vector<1x1x122xf32>
    %46 = vector.shape_cast %45 : vector<1x1x122xf32> to vector<1x122xf32>
    %47 = vector.shape_cast %46 : vector<1x122xf32> to vector<1x1x122xf32>
    %48 = vector.broadcast %47 : vector<1x1x122xf32> to vector<4x4x122xf32>
    %49 = arith.mulf %44, %48 : vector<4x4x122xf32>
    %50 = arith.addf %43, %49 : vector<4x4x122xf32>
    %51 = vector.extract_strided_slice %2 {offsets = [2, 1, 0], sizes = [4, 4, 122], strides = [1, 1, 1]} : vector<6x6x122xf32> to vector<4x4x122xf32>
    %c7 = arith.constant 7 : index
    %c0_18 = arith.constant 0 : index
    %c0_19 = arith.constant 0 : index
    %52 = vector.load %arg2[%c7, %c0_18, %c0_19] : memref<9x1x122xf32, #tpu.memory_space<vmem>>, vector<1x1x122xf32>
    %53 = vector.shape_cast %52 : vector<1x1x122xf32> to vector<1x122xf32>
    %54 = vector.shape_cast %53 : vector<1x122xf32> to vector<1x1x122xf32>
    %55 = vector.broadcast %54 : vector<1x1x122xf32> to vector<4x4x122xf32>
    %56 = arith.mulf %51, %55 : vector<4x4x122xf32>
    %57 = arith.addf %50, %56 : vector<4x4x122xf32>
    %58 = vector.extract_strided_slice %2 {offsets = [2, 2, 0], sizes = [4, 4, 122], strides = [1, 1, 1]} : vector<6x6x122xf32> to vector<4x4x122xf32>
    %c8 = arith.constant 8 : index
    %c0_20 = arith.constant 0 : index
    %c0_21 = arith.constant 0 : index
    %59 = vector.load %arg2[%c8, %c0_20, %c0_21] : memref<9x1x122xf32, #tpu.memory_space<vmem>>, vector<1x1x122xf32>
    %60 = vector.shape_cast %59 : vector<1x1x122xf32> to vector<1x122xf32>
    %61 = vector.shape_cast %60 : vector<1x122xf32> to vector<1x1x122xf32>
    %62 = vector.broadcast %61 : vector<1x1x122xf32> to vector<4x4x122xf32>
    %63 = arith.mulf %58, %62 : vector<4x4x122xf32>
    %64 = arith.addf %57, %63 : vector<4x4x122xf32>
    %c0_22 = arith.constant 0 : index
    %c0_23 = arith.constant 0 : index
    %65 = vector.load %arg3[%c0_22, %c0_23] : memref<1x122xf32, #tpu.memory_space<vmem>>, vector<1x122xf32>
    %66 = vector.shape_cast %65 : vector<1x122xf32> to vector<1x1x122xf32>
    %67 = vector.broadcast %66 : vector<1x1x122xf32> to vector<4x4x122xf32>
    %68 = arith.addf %64, %67 : vector<4x4x122xf32>
    %69 = arith.truncf %68 : vector<4x4x122xf32> to vector<4x4x122xbf16>
    %c0_24 = arith.constant 0 : index
    %c0_25 = arith.constant 0 : index
    %c0_26 = arith.constant 0 : index
    %c0_27 = arith.constant 0 : index
    %70 = vector.load %arg4[%c0_24, %c0_25, %c0_26, %c0_27] : memref<1x4x4x122xbf16, #tpu.memory_space<vmem>>, vector<1x4x4x122xbf16>
    %71 = vector.shape_cast %70 : vector<1x4x4x122xbf16> to vector<4x4x122xbf16>
    %72 = vector.shape_cast %69 : vector<4x4x122xbf16> to vector<1x4x4x122xbf16>
    tpu.vector_store %arg4[%c0_24, %c0_25, %c0_26, %c0_27], %72 {strides = array<i32>} : memref<1x4x4x122xbf16, #tpu.memory_space<vmem>>, vector<1x4x4x122xbf16>,
    return
  }
  func.func @transform_0(%arg0: i32) -> (i32, i32, i32, i32) {
    %c0_i32 = arith.constant 0 : i32
    %c0_i32_0 = arith.constant 0 : i32
    %c0_i32_1 = arith.constant 0 : i32
    %c0_i32_2 = arith.constant 0 : i32
    return %arg0, %c0_i32, %c0_i32_0, %c0_i32_1 : i32, i32, i32, i32
  }
  func.func @transform_1(%arg0: i32) -> (i32, i32, i32) {
    %c0_i32 = arith.constant 0 : i32
    %c0_i32_0 = arith.constant 0 : i32
    %c0_i32_1 = arith.constant 0 : i32
    %c0_i32_2 = arith.constant 0 : i32
    return %c0_i32, %c0_i32_0, %c0_i32_1 : i32, i32, i32
  }
  func.func @transform_2(%arg0: i32) -> (i32, i32) {
    %c0_i32 = arith.constant 0 : i32
    %c0_i32_0 = arith.constant 0 : i32
    %c0_i32_1 = arith.constant 0 : i32
    return %c0_i32, %c0_i32_0 : i32, i32
  }
  func.func @transform_3(%arg0: i32) -> (i32, i32, i32, i32) {
    %c0_i32 = arith.constant 0 : i32
    %c0_i32_0 = arith.constant 0 : i32
    %c0_i32_1 = arith.constant 0 : i32
    %c0_i32_2 = arith.constant 0 : i32
    return %arg0, %c0_i32, %c0_i32_0, %c0_i32_1 : i32, i32, i32, i32
  }
}

module attributes {stable_mosaic.version = 11 : i64} {
  func.func @_matmul_bias_act_kernel(%arg0: i32, %arg1: memref<8x122xbf16, #tpu.memory_space<vmem>>, %arg2: memref<122x122xbf16, #tpu.memory_space<vmem>>, %arg3: memref<1x122xf32, #tpu.memory_space<vmem>>, %arg4: memref<8x122xbf16, #tpu.memory_space<vmem>>) attributes {dimension_semantics = [#tpu.dimension_semantics<parallel>], iteration_bounds = array<i64: 1>, scalar_prefetch = 0 : i64, scratch_operands = 0 : i64, tpu.core_type = #tpu.core_type<tc>, window_params = [{transform_indices = @transform_0, window_bounds = array<i64: 8, 122>}, {pipeline_mode = #tpu.pipeline_mode<synchronous>, transform_indices = @transform_1, window_bounds = array<i64: 122, 122>}, {pipeline_mode = #tpu.pipeline_mode<synchronous>, transform_indices = @transform_2, window_bounds = array<i64: 1, 122>}, {transform_indices = @transform_3, window_bounds = array<i64: 8, 122>}]} {
    %c0 = arith.constant 0 : index
    %c0_0 = arith.constant 0 : index
    %0 = vector.load %arg1[%c0, %c0_0] : memref<8x122xbf16, #tpu.memory_space<vmem>>, vector<8x122xbf16>
    %c0_1 = arith.constant 0 : index
    %c0_2 = arith.constant 0 : index
    %1 = vector.load %arg2[%c0_1, %c0_2] : memref<122x122xbf16, #tpu.memory_space<vmem>>, vector<122x122xbf16>
    %cst = arith.constant dense<0.000000e+00> : vector<8x122xf32>
    %2 = tpu.matmul %0, %1, %cst {dimension_numbers = #tpu.dot_dimension_numbers<[1], [0], [0], [1], [0, 0, 1, 1], [], []>} : vector<8x122xbf16>, vector<122x122xbf16>, vector<8x122xf32> -> vector<8x122xf32>
    %c0_3 = arith.constant 0 : index
    %c0_4 = arith.constant 0 : index
    %3 = vector.load %arg3[%c0_3, %c0_4] : memref<1x122xf32, #tpu.memory_space<vmem>>, vector<1x122xf32>
    %4 = vector.broadcast %3 : vector<1x122xf32> to vector<8x122xf32>
    %5 = arith.addf %2, %4 : vector<8x122xf32>
    %cst_5 = arith.constant 0.000000e+00 : f32
    %6 = vector.broadcast %cst_5 : f32 to vector<8x122xf32>
    %7 = arith.maximumf %5, %6 : vector<8x122xf32>
    %8 = arith.truncf %7 : vector<8x122xf32> to vector<8x122xbf16>
    %c0_6 = arith.constant 0 : index
    %c0_7 = arith.constant 0 : index
    %9 = vector.load %arg4[%c0_6, %c0_7] : memref<8x122xbf16, #tpu.memory_space<vmem>>, vector<8x122xbf16>
    tpu.vector_store %arg4[%c0_6, %c0_7], %8 {strides = array<i32>} : memref<8x122xbf16, #tpu.memory_space<vmem>>, vector<8x122xbf16>,
    return
  }
  func.func @transform_0(%arg0: i32) -> (i32, i32) {
    %c0_i32 = arith.constant 0 : i32
    %c0_i32_0 = arith.constant 0 : i32
    return %arg0, %c0_i32 : i32, i32
  }
  func.func @transform_1(%arg0: i32) -> (i32, i32) {
    %c0_i32 = arith.constant 0 : i32
    %c0_i32_0 = arith.constant 0 : i32
    %c0_i32_1 = arith.constant 0 : i32
    return %c0_i32, %c0_i32_0 : i32, i32
  }
  func.func @transform_2(%arg0: i32) -> (i32, i32) {
    %c0_i32 = arith.constant 0 : i32
    %c0_i32_0 = arith.constant 0 : i32
    %c0_i32_1 = arith.constant 0 : i32
    return %c0_i32, %c0_i32_0 : i32, i32
  }
  func.func @transform_3(%arg0: i32) -> (i32, i32) {
    %c0_i32 = arith.constant 0 : i32
    %c0_i32_0 = arith.constant 0 : i32
    return %arg0, %c0_i32 : i32, i32
  }
}

module attributes {stable_mosaic.version = 11 : i64} {
  func.func @_dwconv_bias_kernel(%arg0: i32, %arg1: memref<1x6x6x24xbf16, #tpu.memory_space<vmem>>, %arg2: memref<9x1x24xf32, #tpu.memory_space<vmem>>, %arg3: memref<1x24xf32, #tpu.memory_space<vmem>>, %arg4: memref<1x4x4x24xbf16, #tpu.memory_space<vmem>>) attributes {dimension_semantics = [#tpu.dimension_semantics<parallel>], iteration_bounds = array<i64: 2>, scalar_prefetch = 0 : i64, scratch_operands = 0 : i64, tpu.core_type = #tpu.core_type<tc>, window_params = [{transform_indices = @transform_0, window_bounds = array<i64: 1, 6, 6, 24>}, {pipeline_mode = #tpu.pipeline_mode<synchronous>, transform_indices = @transform_1, window_bounds = array<i64: 9, 1, 24>}, {pipeline_mode = #tpu.pipeline_mode<synchronous>, transform_indices = @transform_2, window_bounds = array<i64: 1, 24>}, {transform_indices = @transform_3, window_bounds = array<i64: 1, 4, 4, 24>}]} {
    %c0 = arith.constant 0 : index
    %c0_0 = arith.constant 0 : index
    %c0_1 = arith.constant 0 : index
    %c0_2 = arith.constant 0 : index
    %0 = vector.load %arg1[%c0, %c0_0, %c0_1, %c0_2] : memref<1x6x6x24xbf16, #tpu.memory_space<vmem>>, vector<1x6x6x24xbf16>
    %1 = vector.shape_cast %0 : vector<1x6x6x24xbf16> to vector<6x6x24xbf16>
    %2 = arith.extf %1 : vector<6x6x24xbf16> to vector<6x6x24xf32>
    %3 = vector.extract_strided_slice %2 {offsets = [0, 0, 0], sizes = [4, 4, 24], strides = [1, 1, 1]} : vector<6x6x24xf32> to vector<4x4x24xf32>
    %c0_3 = arith.constant 0 : index
    %c0_4 = arith.constant 0 : index
    %c0_5 = arith.constant 0 : index
    %4 = vector.load %arg2[%c0_3, %c0_4, %c0_5] : memref<9x1x24xf32, #tpu.memory_space<vmem>>, vector<1x1x24xf32>
    %5 = vector.shape_cast %4 : vector<1x1x24xf32> to vector<1x24xf32>
    %6 = vector.shape_cast %5 : vector<1x24xf32> to vector<1x1x24xf32>
    %7 = vector.broadcast %6 : vector<1x1x24xf32> to vector<4x4x24xf32>
    %8 = arith.mulf %3, %7 : vector<4x4x24xf32>
    %9 = vector.extract_strided_slice %2 {offsets = [0, 1, 0], sizes = [4, 4, 24], strides = [1, 1, 1]} : vector<6x6x24xf32> to vector<4x4x24xf32>
    %c1 = arith.constant 1 : index
    %c0_6 = arith.constant 0 : index
    %c0_7 = arith.constant 0 : index
    %10 = vector.load %arg2[%c1, %c0_6, %c0_7] : memref<9x1x24xf32, #tpu.memory_space<vmem>>, vector<1x1x24xf32>
    %11 = vector.shape_cast %10 : vector<1x1x24xf32> to vector<1x24xf32>
    %12 = vector.shape_cast %11 : vector<1x24xf32> to vector<1x1x24xf32>
    %13 = vector.broadcast %12 : vector<1x1x24xf32> to vector<4x4x24xf32>
    %14 = arith.mulf %9, %13 : vector<4x4x24xf32>
    %15 = arith.addf %8, %14 : vector<4x4x24xf32>
    %16 = vector.extract_strided_slice %2 {offsets = [0, 2, 0], sizes = [4, 4, 24], strides = [1, 1, 1]} : vector<6x6x24xf32> to vector<4x4x24xf32>
    %c2 = arith.constant 2 : index
    %c0_8 = arith.constant 0 : index
    %c0_9 = arith.constant 0 : index
    %17 = vector.load %arg2[%c2, %c0_8, %c0_9] : memref<9x1x24xf32, #tpu.memory_space<vmem>>, vector<1x1x24xf32>
    %18 = vector.shape_cast %17 : vector<1x1x24xf32> to vector<1x24xf32>
    %19 = vector.shape_cast %18 : vector<1x24xf32> to vector<1x1x24xf32>
    %20 = vector.broadcast %19 : vector<1x1x24xf32> to vector<4x4x24xf32>
    %21 = arith.mulf %16, %20 : vector<4x4x24xf32>
    %22 = arith.addf %15, %21 : vector<4x4x24xf32>
    %23 = vector.extract_strided_slice %2 {offsets = [1, 0, 0], sizes = [4, 4, 24], strides = [1, 1, 1]} : vector<6x6x24xf32> to vector<4x4x24xf32>
    %c3 = arith.constant 3 : index
    %c0_10 = arith.constant 0 : index
    %c0_11 = arith.constant 0 : index
    %24 = vector.load %arg2[%c3, %c0_10, %c0_11] : memref<9x1x24xf32, #tpu.memory_space<vmem>>, vector<1x1x24xf32>
    %25 = vector.shape_cast %24 : vector<1x1x24xf32> to vector<1x24xf32>
    %26 = vector.shape_cast %25 : vector<1x24xf32> to vector<1x1x24xf32>
    %27 = vector.broadcast %26 : vector<1x1x24xf32> to vector<4x4x24xf32>
    %28 = arith.mulf %23, %27 : vector<4x4x24xf32>
    %29 = arith.addf %22, %28 : vector<4x4x24xf32>
    %30 = vector.extract_strided_slice %2 {offsets = [1, 1, 0], sizes = [4, 4, 24], strides = [1, 1, 1]} : vector<6x6x24xf32> to vector<4x4x24xf32>
    %c4 = arith.constant 4 : index
    %c0_12 = arith.constant 0 : index
    %c0_13 = arith.constant 0 : index
    %31 = vector.load %arg2[%c4, %c0_12, %c0_13] : memref<9x1x24xf32, #tpu.memory_space<vmem>>, vector<1x1x24xf32>
    %32 = vector.shape_cast %31 : vector<1x1x24xf32> to vector<1x24xf32>
    %33 = vector.shape_cast %32 : vector<1x24xf32> to vector<1x1x24xf32>
    %34 = vector.broadcast %33 : vector<1x1x24xf32> to vector<4x4x24xf32>
    %35 = arith.mulf %30, %34 : vector<4x4x24xf32>
    %36 = arith.addf %29, %35 : vector<4x4x24xf32>
    %37 = vector.extract_strided_slice %2 {offsets = [1, 2, 0], sizes = [4, 4, 24], strides = [1, 1, 1]} : vector<6x6x24xf32> to vector<4x4x24xf32>
    %c5 = arith.constant 5 : index
    %c0_14 = arith.constant 0 : index
    %c0_15 = arith.constant 0 : index
    %38 = vector.load %arg2[%c5, %c0_14, %c0_15] : memref<9x1x24xf32, #tpu.memory_space<vmem>>, vector<1x1x24xf32>
    %39 = vector.shape_cast %38 : vector<1x1x24xf32> to vector<1x24xf32>
    %40 = vector.shape_cast %39 : vector<1x24xf32> to vector<1x1x24xf32>
    %41 = vector.broadcast %40 : vector<1x1x24xf32> to vector<4x4x24xf32>
    %42 = arith.mulf %37, %41 : vector<4x4x24xf32>
    %43 = arith.addf %36, %42 : vector<4x4x24xf32>
    %44 = vector.extract_strided_slice %2 {offsets = [2, 0, 0], sizes = [4, 4, 24], strides = [1, 1, 1]} : vector<6x6x24xf32> to vector<4x4x24xf32>
    %c6 = arith.constant 6 : index
    %c0_16 = arith.constant 0 : index
    %c0_17 = arith.constant 0 : index
    %45 = vector.load %arg2[%c6, %c0_16, %c0_17] : memref<9x1x24xf32, #tpu.memory_space<vmem>>, vector<1x1x24xf32>
    %46 = vector.shape_cast %45 : vector<1x1x24xf32> to vector<1x24xf32>
    %47 = vector.shape_cast %46 : vector<1x24xf32> to vector<1x1x24xf32>
    %48 = vector.broadcast %47 : vector<1x1x24xf32> to vector<4x4x24xf32>
    %49 = arith.mulf %44, %48 : vector<4x4x24xf32>
    %50 = arith.addf %43, %49 : vector<4x4x24xf32>
    %51 = vector.extract_strided_slice %2 {offsets = [2, 1, 0], sizes = [4, 4, 24], strides = [1, 1, 1]} : vector<6x6x24xf32> to vector<4x4x24xf32>
    %c7 = arith.constant 7 : index
    %c0_18 = arith.constant 0 : index
    %c0_19 = arith.constant 0 : index
    %52 = vector.load %arg2[%c7, %c0_18, %c0_19] : memref<9x1x24xf32, #tpu.memory_space<vmem>>, vector<1x1x24xf32>
    %53 = vector.shape_cast %52 : vector<1x1x24xf32> to vector<1x24xf32>
    %54 = vector.shape_cast %53 : vector<1x24xf32> to vector<1x1x24xf32>
    %55 = vector.broadcast %54 : vector<1x1x24xf32> to vector<4x4x24xf32>
    %56 = arith.mulf %51, %55 : vector<4x4x24xf32>
    %57 = arith.addf %50, %56 : vector<4x4x24xf32>
    %58 = vector.extract_strided_slice %2 {offsets = [2, 2, 0], sizes = [4, 4, 24], strides = [1, 1, 1]} : vector<6x6x24xf32> to vector<4x4x24xf32>
    %c8 = arith.constant 8 : index
    %c0_20 = arith.constant 0 : index
    %c0_21 = arith.constant 0 : index
    %59 = vector.load %arg2[%c8, %c0_20, %c0_21] : memref<9x1x24xf32, #tpu.memory_space<vmem>>, vector<1x1x24xf32>
    %60 = vector.shape_cast %59 : vector<1x1x24xf32> to vector<1x24xf32>
    %61 = vector.shape_cast %60 : vector<1x24xf32> to vector<1x1x24xf32>
    %62 = vector.broadcast %61 : vector<1x1x24xf32> to vector<4x4x24xf32>
    %63 = arith.mulf %58, %62 : vector<4x4x24xf32>
    %64 = arith.addf %57, %63 : vector<4x4x24xf32>
    %c0_22 = arith.constant 0 : index
    %c0_23 = arith.constant 0 : index
    %65 = vector.load %arg3[%c0_22, %c0_23] : memref<1x24xf32, #tpu.memory_space<vmem>>, vector<1x24xf32>
    %66 = vector.shape_cast %65 : vector<1x24xf32> to vector<1x1x24xf32>
    %67 = vector.broadcast %66 : vector<1x1x24xf32> to vector<4x4x24xf32>
    %68 = arith.addf %64, %67 : vector<4x4x24xf32>
    %69 = arith.truncf %68 : vector<4x4x24xf32> to vector<4x4x24xbf16>
    %c0_24 = arith.constant 0 : index
    %c0_25 = arith.constant 0 : index
    %c0_26 = arith.constant 0 : index
    %c0_27 = arith.constant 0 : index
    %70 = vector.load %arg4[%c0_24, %c0_25, %c0_26, %c0_27] : memref<1x4x4x24xbf16, #tpu.memory_space<vmem>>, vector<1x4x4x24xbf16>
    %71 = vector.shape_cast %70 : vector<1x4x4x24xbf16> to vector<4x4x24xbf16>
    %72 = vector.shape_cast %69 : vector<4x4x24xbf16> to vector<1x4x4x24xbf16>
    tpu.vector_store %arg4[%c0_24, %c0_25, %c0_26, %c0_27], %72 {strides = array<i32>} : memref<1x4x4x24xbf16, #tpu.memory_space<vmem>>, vector<1x4x4x24xbf16>,
    return
  }
  func.func @transform_0(%arg0: i32) -> (i32, i32, i32, i32) {
    %c0_i32 = arith.constant 0 : i32
    %c0_i32_0 = arith.constant 0 : i32
    %c0_i32_1 = arith.constant 0 : i32
    %c0_i32_2 = arith.constant 0 : i32
    return %arg0, %c0_i32, %c0_i32_0, %c0_i32_1 : i32, i32, i32, i32
  }
  func.func @transform_1(%arg0: i32) -> (i32, i32, i32) {
    %c0_i32 = arith.constant 0 : i32
    %c0_i32_0 = arith.constant 0 : i32
    %c0_i32_1 = arith.constant 0 : i32
    %c0_i32_2 = arith.constant 0 : i32
    return %c0_i32, %c0_i32_0, %c0_i32_1 : i32, i32, i32
  }
  func.func @transform_2(%arg0: i32) -> (i32, i32) {
    %c0_i32 = arith.constant 0 : i32
    %c0_i32_0 = arith.constant 0 : i32
    %c0_i32_1 = arith.constant 0 : i32
    return %c0_i32, %c0_i32_0 : i32, i32
  }
  func.func @transform_3(%arg0: i32) -> (i32, i32, i32, i32) {
    %c0_i32 = arith.constant 0 : i32
    %c0_i32_0 = arith.constant 0 : i32
    %c0_i32_1 = arith.constant 0 : i32
    %c0_i32_2 = arith.constant 0 : i32
    return %arg0, %c0_i32, %c0_i32_0, %c0_i32_1 : i32, i32, i32, i32
  }
}

module attributes {stable_mosaic.version = 11 : i64} {
  func.func @_matmul_bias_act_kernel(%arg0: i32, %arg1: memref<8x24xbf16, #tpu.memory_space<vmem>>, %arg2: memref<24x122xbf16, #tpu.memory_space<vmem>>, %arg3: memref<1x122xf32, #tpu.memory_space<vmem>>, %arg4: memref<8x122xbf16, #tpu.memory_space<vmem>>) attributes {dimension_semantics = [#tpu.dimension_semantics<parallel>], iteration_bounds = array<i64: 1>, scalar_prefetch = 0 : i64, scratch_operands = 0 : i64, tpu.core_type = #tpu.core_type<tc>, window_params = [{transform_indices = @transform_0, window_bounds = array<i64: 8, 24>}, {pipeline_mode = #tpu.pipeline_mode<synchronous>, transform_indices = @transform_1, window_bounds = array<i64: 24, 122>}, {pipeline_mode = #tpu.pipeline_mode<synchronous>, transform_indices = @transform_2, window_bounds = array<i64: 1, 122>}, {transform_indices = @transform_3, window_bounds = array<i64: 8, 122>}]} {
    %c0 = arith.constant 0 : index
    %c0_0 = arith.constant 0 : index
    %0 = vector.load %arg1[%c0, %c0_0] : memref<8x24xbf16, #tpu.memory_space<vmem>>, vector<8x24xbf16>
    %c0_1 = arith.constant 0 : index
    %c0_2 = arith.constant 0 : index
    %1 = vector.load %arg2[%c0_1, %c0_2] : memref<24x122xbf16, #tpu.memory_space<vmem>>, vector<24x122xbf16>
    %cst = arith.constant dense<0.000000e+00> : vector<8x122xf32>
    %2 = tpu.matmul %0, %1, %cst {dimension_numbers = #tpu.dot_dimension_numbers<[1], [0], [0], [1], [0, 0, 1, 1], [], []>} : vector<8x24xbf16>, vector<24x122xbf16>, vector<8x122xf32> -> vector<8x122xf32>
    %c0_3 = arith.constant 0 : index
    %c0_4 = arith.constant 0 : index
    %3 = vector.load %arg3[%c0_3, %c0_4] : memref<1x122xf32, #tpu.memory_space<vmem>>, vector<1x122xf32>
    %4 = vector.broadcast %3 : vector<1x122xf32> to vector<8x122xf32>
    %5 = arith.addf %2, %4 : vector<8x122xf32>
    %cst_5 = arith.constant 0.000000e+00 : f32
    %6 = vector.broadcast %cst_5 : f32 to vector<8x122xf32>
    %7 = arith.maximumf %5, %6 : vector<8x122xf32>
    %8 = arith.truncf %7 : vector<8x122xf32> to vector<8x122xbf16>
    %c0_6 = arith.constant 0 : index
    %c0_7 = arith.constant 0 : index
    %9 = vector.load %arg4[%c0_6, %c0_7] : memref<8x122xbf16, #tpu.memory_space<vmem>>, vector<8x122xbf16>
    tpu.vector_store %arg4[%c0_6, %c0_7], %8 {strides = array<i32>} : memref<8x122xbf16, #tpu.memory_space<vmem>>, vector<8x122xbf16>,
    return
  }
  func.func @transform_0(%arg0: i32) -> (i32, i32) {
    %c0_i32 = arith.constant 0 : i32
    %c0_i32_0 = arith.constant 0 : i32
    return %arg0, %c0_i32 : i32, i32
  }
  func.func @transform_1(%arg0: i32) -> (i32, i32) {
    %c0_i32 = arith.constant 0 : i32
    %c0_i32_0 = arith.constant 0 : i32
    %c0_i32_1 = arith.constant 0 : i32
    return %c0_i32, %c0_i32_0 : i32, i32
  }
  func.func @transform_2(%arg0: i32) -> (i32, i32) {
    %c0_i32 = arith.constant 0 : i32
    %c0_i32_0 = arith.constant 0 : i32
    %c0_i32_1 = arith.constant 0 : i32
    return %c0_i32, %c0_i32_0 : i32, i32
  }
  func.func @transform_3(%arg0: i32) -> (i32, i32) {
    %c0_i32 = arith.constant 0 : i32
    %c0_i32_0 = arith.constant 0 : i32
    return %arg0, %c0_i32 : i32, i32
  }
}

module attributes {stable_mosaic.version = 11 : i64} {
  func.func @_dwconv_bias_kernel(%arg0: i32, %arg1: memref<1x4x4x122xbf16, #tpu.memory_space<vmem>>, %arg2: memref<9x1x122xf32, #tpu.memory_space<vmem>>, %arg3: memref<1x122xf32, #tpu.memory_space<vmem>>, %arg4: memref<1x2x2x122xbf16, #tpu.memory_space<vmem>>) attributes {dimension_semantics = [#tpu.dimension_semantics<parallel>], iteration_bounds = array<i64: 2>, scalar_prefetch = 0 : i64, scratch_operands = 0 : i64, tpu.core_type = #tpu.core_type<tc>, window_params = [{transform_indices = @transform_0, window_bounds = array<i64: 1, 4, 4, 122>}, {pipeline_mode = #tpu.pipeline_mode<synchronous>, transform_indices = @transform_1, window_bounds = array<i64: 9, 1, 122>}, {pipeline_mode = #tpu.pipeline_mode<synchronous>, transform_indices = @transform_2, window_bounds = array<i64: 1, 122>}, {transform_indices = @transform_3, window_bounds = array<i64: 1, 2, 2, 122>}]} {
    %c0 = arith.constant 0 : index
    %c0_0 = arith.constant 0 : index
    %c0_1 = arith.constant 0 : index
    %c0_2 = arith.constant 0 : index
    %0 = vector.load %arg1[%c0, %c0_0, %c0_1, %c0_2] : memref<1x4x4x122xbf16, #tpu.memory_space<vmem>>, vector<1x4x4x122xbf16>
    %1 = vector.shape_cast %0 : vector<1x4x4x122xbf16> to vector<4x4x122xbf16>
    %2 = arith.extf %1 : vector<4x4x122xbf16> to vector<4x4x122xf32>
    %3 = vector.extract_strided_slice %2 {offsets = [0, 0, 0], sizes = [2, 2, 122], strides = [1, 1, 1]} : vector<4x4x122xf32> to vector<2x2x122xf32>
    %c0_3 = arith.constant 0 : index
    %c0_4 = arith.constant 0 : index
    %c0_5 = arith.constant 0 : index
    %4 = vector.load %arg2[%c0_3, %c0_4, %c0_5] : memref<9x1x122xf32, #tpu.memory_space<vmem>>, vector<1x1x122xf32>
    %5 = vector.shape_cast %4 : vector<1x1x122xf32> to vector<1x122xf32>
    %6 = vector.shape_cast %5 : vector<1x122xf32> to vector<1x1x122xf32>
    %7 = vector.broadcast %6 : vector<1x1x122xf32> to vector<2x2x122xf32>
    %8 = arith.mulf %3, %7 : vector<2x2x122xf32>
    %9 = vector.extract_strided_slice %2 {offsets = [0, 1, 0], sizes = [2, 2, 122], strides = [1, 1, 1]} : vector<4x4x122xf32> to vector<2x2x122xf32>
    %c1 = arith.constant 1 : index
    %c0_6 = arith.constant 0 : index
    %c0_7 = arith.constant 0 : index
    %10 = vector.load %arg2[%c1, %c0_6, %c0_7] : memref<9x1x122xf32, #tpu.memory_space<vmem>>, vector<1x1x122xf32>
    %11 = vector.shape_cast %10 : vector<1x1x122xf32> to vector<1x122xf32>
    %12 = vector.shape_cast %11 : vector<1x122xf32> to vector<1x1x122xf32>
    %13 = vector.broadcast %12 : vector<1x1x122xf32> to vector<2x2x122xf32>
    %14 = arith.mulf %9, %13 : vector<2x2x122xf32>
    %15 = arith.addf %8, %14 : vector<2x2x122xf32>
    %16 = vector.extract_strided_slice %2 {offsets = [0, 2, 0], sizes = [2, 2, 122], strides = [1, 1, 1]} : vector<4x4x122xf32> to vector<2x2x122xf32>
    %c2 = arith.constant 2 : index
    %c0_8 = arith.constant 0 : index
    %c0_9 = arith.constant 0 : index
    %17 = vector.load %arg2[%c2, %c0_8, %c0_9] : memref<9x1x122xf32, #tpu.memory_space<vmem>>, vector<1x1x122xf32>
    %18 = vector.shape_cast %17 : vector<1x1x122xf32> to vector<1x122xf32>
    %19 = vector.shape_cast %18 : vector<1x122xf32> to vector<1x1x122xf32>
    %20 = vector.broadcast %19 : vector<1x1x122xf32> to vector<2x2x122xf32>
    %21 = arith.mulf %16, %20 : vector<2x2x122xf32>
    %22 = arith.addf %15, %21 : vector<2x2x122xf32>
    %23 = vector.extract_strided_slice %2 {offsets = [1, 0, 0], sizes = [2, 2, 122], strides = [1, 1, 1]} : vector<4x4x122xf32> to vector<2x2x122xf32>
    %c3 = arith.constant 3 : index
    %c0_10 = arith.constant 0 : index
    %c0_11 = arith.constant 0 : index
    %24 = vector.load %arg2[%c3, %c0_10, %c0_11] : memref<9x1x122xf32, #tpu.memory_space<vmem>>, vector<1x1x122xf32>
    %25 = vector.shape_cast %24 : vector<1x1x122xf32> to vector<1x122xf32>
    %26 = vector.shape_cast %25 : vector<1x122xf32> to vector<1x1x122xf32>
    %27 = vector.broadcast %26 : vector<1x1x122xf32> to vector<2x2x122xf32>
    %28 = arith.mulf %23, %27 : vector<2x2x122xf32>
    %29 = arith.addf %22, %28 : vector<2x2x122xf32>
    %30 = vector.extract_strided_slice %2 {offsets = [1, 1, 0], sizes = [2, 2, 122], strides = [1, 1, 1]} : vector<4x4x122xf32> to vector<2x2x122xf32>
    %c4 = arith.constant 4 : index
    %c0_12 = arith.constant 0 : index
    %c0_13 = arith.constant 0 : index
    %31 = vector.load %arg2[%c4, %c0_12, %c0_13] : memref<9x1x122xf32, #tpu.memory_space<vmem>>, vector<1x1x122xf32>
    %32 = vector.shape_cast %31 : vector<1x1x122xf32> to vector<1x122xf32>
    %33 = vector.shape_cast %32 : vector<1x122xf32> to vector<1x1x122xf32>
    %34 = vector.broadcast %33 : vector<1x1x122xf32> to vector<2x2x122xf32>
    %35 = arith.mulf %30, %34 : vector<2x2x122xf32>
    %36 = arith.addf %29, %35 : vector<2x2x122xf32>
    %37 = vector.extract_strided_slice %2 {offsets = [1, 2, 0], sizes = [2, 2, 122], strides = [1, 1, 1]} : vector<4x4x122xf32> to vector<2x2x122xf32>
    %c5 = arith.constant 5 : index
    %c0_14 = arith.constant 0 : index
    %c0_15 = arith.constant 0 : index
    %38 = vector.load %arg2[%c5, %c0_14, %c0_15] : memref<9x1x122xf32, #tpu.memory_space<vmem>>, vector<1x1x122xf32>
    %39 = vector.shape_cast %38 : vector<1x1x122xf32> to vector<1x122xf32>
    %40 = vector.shape_cast %39 : vector<1x122xf32> to vector<1x1x122xf32>
    %41 = vector.broadcast %40 : vector<1x1x122xf32> to vector<2x2x122xf32>
    %42 = arith.mulf %37, %41 : vector<2x2x122xf32>
    %43 = arith.addf %36, %42 : vector<2x2x122xf32>
    %44 = vector.extract_strided_slice %2 {offsets = [2, 0, 0], sizes = [2, 2, 122], strides = [1, 1, 1]} : vector<4x4x122xf32> to vector<2x2x122xf32>
    %c6 = arith.constant 6 : index
    %c0_16 = arith.constant 0 : index
    %c0_17 = arith.constant 0 : index
    %45 = vector.load %arg2[%c6, %c0_16, %c0_17] : memref<9x1x122xf32, #tpu.memory_space<vmem>>, vector<1x1x122xf32>
    %46 = vector.shape_cast %45 : vector<1x1x122xf32> to vector<1x122xf32>
    %47 = vector.shape_cast %46 : vector<1x122xf32> to vector<1x1x122xf32>
    %48 = vector.broadcast %47 : vector<1x1x122xf32> to vector<2x2x122xf32>
    %49 = arith.mulf %44, %48 : vector<2x2x122xf32>
    %50 = arith.addf %43, %49 : vector<2x2x122xf32>
    %51 = vector.extract_strided_slice %2 {offsets = [2, 1, 0], sizes = [2, 2, 122], strides = [1, 1, 1]} : vector<4x4x122xf32> to vector<2x2x122xf32>
    %c7 = arith.constant 7 : index
    %c0_18 = arith.constant 0 : index
    %c0_19 = arith.constant 0 : index
    %52 = vector.load %arg2[%c7, %c0_18, %c0_19] : memref<9x1x122xf32, #tpu.memory_space<vmem>>, vector<1x1x122xf32>
    %53 = vector.shape_cast %52 : vector<1x1x122xf32> to vector<1x122xf32>
    %54 = vector.shape_cast %53 : vector<1x122xf32> to vector<1x1x122xf32>
    %55 = vector.broadcast %54 : vector<1x1x122xf32> to vector<2x2x122xf32>
    %56 = arith.mulf %51, %55 : vector<2x2x122xf32>
    %57 = arith.addf %50, %56 : vector<2x2x122xf32>
    %58 = vector.extract_strided_slice %2 {offsets = [2, 2, 0], sizes = [2, 2, 122], strides = [1, 1, 1]} : vector<4x4x122xf32> to vector<2x2x122xf32>
    %c8 = arith.constant 8 : index
    %c0_20 = arith.constant 0 : index
    %c0_21 = arith.constant 0 : index
    %59 = vector.load %arg2[%c8, %c0_20, %c0_21] : memref<9x1x122xf32, #tpu.memory_space<vmem>>, vector<1x1x122xf32>
    %60 = vector.shape_cast %59 : vector<1x1x122xf32> to vector<1x122xf32>
    %61 = vector.shape_cast %60 : vector<1x122xf32> to vector<1x1x122xf32>
    %62 = vector.broadcast %61 : vector<1x1x122xf32> to vector<2x2x122xf32>
    %63 = arith.mulf %58, %62 : vector<2x2x122xf32>
    %64 = arith.addf %57, %63 : vector<2x2x122xf32>
    %c0_22 = arith.constant 0 : index
    %c0_23 = arith.constant 0 : index
    %65 = vector.load %arg3[%c0_22, %c0_23] : memref<1x122xf32, #tpu.memory_space<vmem>>, vector<1x122xf32>
    %66 = vector.shape_cast %65 : vector<1x122xf32> to vector<1x1x122xf32>
    %67 = vector.broadcast %66 : vector<1x1x122xf32> to vector<2x2x122xf32>
    %68 = arith.addf %64, %67 : vector<2x2x122xf32>
    %69 = arith.truncf %68 : vector<2x2x122xf32> to vector<2x2x122xbf16>
    %c0_24 = arith.constant 0 : index
    %c0_25 = arith.constant 0 : index
    %c0_26 = arith.constant 0 : index
    %c0_27 = arith.constant 0 : index
    %70 = vector.load %arg4[%c0_24, %c0_25, %c0_26, %c0_27] : memref<1x2x2x122xbf16, #tpu.memory_space<vmem>>, vector<1x2x2x122xbf16>
    %71 = vector.shape_cast %70 : vector<1x2x2x122xbf16> to vector<2x2x122xbf16>
    %72 = vector.shape_cast %69 : vector<2x2x122xbf16> to vector<1x2x2x122xbf16>
    tpu.vector_store %arg4[%c0_24, %c0_25, %c0_26, %c0_27], %72 {strides = array<i32>} : memref<1x2x2x122xbf16, #tpu.memory_space<vmem>>, vector<1x2x2x122xbf16>,
    return
  }
  func.func @transform_0(%arg0: i32) -> (i32, i32, i32, i32) {
    %c0_i32 = arith.constant 0 : i32
    %c0_i32_0 = arith.constant 0 : i32
    %c0_i32_1 = arith.constant 0 : i32
    %c0_i32_2 = arith.constant 0 : i32
    return %arg0, %c0_i32, %c0_i32_0, %c0_i32_1 : i32, i32, i32, i32
  }
  func.func @transform_1(%arg0: i32) -> (i32, i32, i32) {
    %c0_i32 = arith.constant 0 : i32
    %c0_i32_0 = arith.constant 0 : i32
    %c0_i32_1 = arith.constant 0 : i32
    %c0_i32_2 = arith.constant 0 : i32
    return %c0_i32, %c0_i32_0, %c0_i32_1 : i32, i32, i32
  }
  func.func @transform_2(%arg0: i32) -> (i32, i32) {
    %c0_i32 = arith.constant 0 : i32
    %c0_i32_0 = arith.constant 0 : i32
    %c0_i32_1 = arith.constant 0 : i32
    return %c0_i32, %c0_i32_0 : i32, i32
  }
  func.func @transform_3(%arg0: i32) -> (i32, i32, i32, i32) {
    %c0_i32 = arith.constant 0 : i32
    %c0_i32_0 = arith.constant 0 : i32
    %c0_i32_1 = arith.constant 0 : i32
    %c0_i32_2 = arith.constant 0 : i32
    return %arg0, %c0_i32, %c0_i32_0, %c0_i32_1 : i32, i32, i32, i32
  }
}

module attributes {stable_mosaic.version = 11 : i64} {
  func.func @_matmul_bias_act_kernel(%arg0: i32, %arg1: memref<8x244xbf16, #tpu.memory_space<vmem>>, %arg2: memref<244x244xbf16, #tpu.memory_space<vmem>>, %arg3: memref<1x244xf32, #tpu.memory_space<vmem>>, %arg4: memref<8x244xbf16, #tpu.memory_space<vmem>>) attributes {dimension_semantics = [#tpu.dimension_semantics<parallel>], iteration_bounds = array<i64: 1>, scalar_prefetch = 0 : i64, scratch_operands = 0 : i64, tpu.core_type = #tpu.core_type<tc>, window_params = [{transform_indices = @transform_0, window_bounds = array<i64: 8, 244>}, {pipeline_mode = #tpu.pipeline_mode<synchronous>, transform_indices = @transform_1, window_bounds = array<i64: 244, 244>}, {pipeline_mode = #tpu.pipeline_mode<synchronous>, transform_indices = @transform_2, window_bounds = array<i64: 1, 244>}, {transform_indices = @transform_3, window_bounds = array<i64: 8, 244>}]} {
    %c0 = arith.constant 0 : index
    %c0_0 = arith.constant 0 : index
    %0 = vector.load %arg1[%c0, %c0_0] : memref<8x244xbf16, #tpu.memory_space<vmem>>, vector<8x244xbf16>
    %c0_1 = arith.constant 0 : index
    %c0_2 = arith.constant 0 : index
    %1 = vector.load %arg2[%c0_1, %c0_2] : memref<244x244xbf16, #tpu.memory_space<vmem>>, vector<244x244xbf16>
    %cst = arith.constant dense<0.000000e+00> : vector<8x244xf32>
    %2 = tpu.matmul %0, %1, %cst {dimension_numbers = #tpu.dot_dimension_numbers<[1], [0], [0], [1], [0, 0, 1, 1], [], []>} : vector<8x244xbf16>, vector<244x244xbf16>, vector<8x244xf32> -> vector<8x244xf32>
    %c0_3 = arith.constant 0 : index
    %c0_4 = arith.constant 0 : index
    %3 = vector.load %arg3[%c0_3, %c0_4] : memref<1x244xf32, #tpu.memory_space<vmem>>, vector<1x244xf32>
    %4 = vector.broadcast %3 : vector<1x244xf32> to vector<8x244xf32>
    %5 = arith.addf %2, %4 : vector<8x244xf32>
    %cst_5 = arith.constant 0.000000e+00 : f32
    %6 = vector.broadcast %cst_5 : f32 to vector<8x244xf32>
    %7 = arith.maximumf %5, %6 : vector<8x244xf32>
    %8 = arith.truncf %7 : vector<8x244xf32> to vector<8x244xbf16>
    %c0_6 = arith.constant 0 : index
    %c0_7 = arith.constant 0 : index
    %9 = vector.load %arg4[%c0_6, %c0_7] : memref<8x244xbf16, #tpu.memory_space<vmem>>, vector<8x244xbf16>
    tpu.vector_store %arg4[%c0_6, %c0_7], %8 {strides = array<i32>} : memref<8x244xbf16, #tpu.memory_space<vmem>>, vector<8x244xbf16>,
    return
  }
  func.func @transform_0(%arg0: i32) -> (i32, i32) {
    %c0_i32 = arith.constant 0 : i32
    %c0_i32_0 = arith.constant 0 : i32
    return %arg0, %c0_i32 : i32, i32
  }
  func.func @transform_1(%arg0: i32) -> (i32, i32) {
    %c0_i32 = arith.constant 0 : i32
    %c0_i32_0 = arith.constant 0 : i32
    %c0_i32_1 = arith.constant 0 : i32
    return %c0_i32, %c0_i32_0 : i32, i32
  }
  func.func @transform_2(%arg0: i32) -> (i32, i32) {
    %c0_i32 = arith.constant 0 : i32
    %c0_i32_0 = arith.constant 0 : i32
    %c0_i32_1 = arith.constant 0 : i32
    return %c0_i32, %c0_i32_0 : i32, i32
  }
  func.func @transform_3(%arg0: i32) -> (i32, i32) {
    %c0_i32 = arith.constant 0 : i32
    %c0_i32_0 = arith.constant 0 : i32
    return %arg0, %c0_i32 : i32, i32
  }
}

module attributes {stable_mosaic.version = 11 : i64} {
  func.func @_dwconv_bias_kernel(%arg0: i32, %arg1: memref<1x4x4x244xbf16, #tpu.memory_space<vmem>>, %arg2: memref<9x1x244xf32, #tpu.memory_space<vmem>>, %arg3: memref<1x244xf32, #tpu.memory_space<vmem>>, %arg4: memref<1x2x2x244xbf16, #tpu.memory_space<vmem>>) attributes {dimension_semantics = [#tpu.dimension_semantics<parallel>], iteration_bounds = array<i64: 2>, scalar_prefetch = 0 : i64, scratch_operands = 0 : i64, tpu.core_type = #tpu.core_type<tc>, window_params = [{transform_indices = @transform_0, window_bounds = array<i64: 1, 4, 4, 244>}, {pipeline_mode = #tpu.pipeline_mode<synchronous>, transform_indices = @transform_1, window_bounds = array<i64: 9, 1, 244>}, {pipeline_mode = #tpu.pipeline_mode<synchronous>, transform_indices = @transform_2, window_bounds = array<i64: 1, 244>}, {transform_indices = @transform_3, window_bounds = array<i64: 1, 2, 2, 244>}]} {
    %c0 = arith.constant 0 : index
    %c0_0 = arith.constant 0 : index
    %c0_1 = arith.constant 0 : index
    %c0_2 = arith.constant 0 : index
    %0 = vector.load %arg1[%c0, %c0_0, %c0_1, %c0_2] : memref<1x4x4x244xbf16, #tpu.memory_space<vmem>>, vector<1x4x4x244xbf16>
    %1 = vector.shape_cast %0 : vector<1x4x4x244xbf16> to vector<4x4x244xbf16>
    %2 = arith.extf %1 : vector<4x4x244xbf16> to vector<4x4x244xf32>
    %3 = vector.extract_strided_slice %2 {offsets = [0, 0, 0], sizes = [2, 2, 244], strides = [1, 1, 1]} : vector<4x4x244xf32> to vector<2x2x244xf32>
    %c0_3 = arith.constant 0 : index
    %c0_4 = arith.constant 0 : index
    %c0_5 = arith.constant 0 : index
    %4 = vector.load %arg2[%c0_3, %c0_4, %c0_5] : memref<9x1x244xf32, #tpu.memory_space<vmem>>, vector<1x1x244xf32>
    %5 = vector.shape_cast %4 : vector<1x1x244xf32> to vector<1x244xf32>
    %6 = vector.shape_cast %5 : vector<1x244xf32> to vector<1x1x244xf32>
    %7 = vector.broadcast %6 : vector<1x1x244xf32> to vector<2x2x244xf32>
    %8 = arith.mulf %3, %7 : vector<2x2x244xf32>
    %9 = vector.extract_strided_slice %2 {offsets = [0, 1, 0], sizes = [2, 2, 244], strides = [1, 1, 1]} : vector<4x4x244xf32> to vector<2x2x244xf32>
    %c1 = arith.constant 1 : index
    %c0_6 = arith.constant 0 : index
    %c0_7 = arith.constant 0 : index
    %10 = vector.load %arg2[%c1, %c0_6, %c0_7] : memref<9x1x244xf32, #tpu.memory_space<vmem>>, vector<1x1x244xf32>
    %11 = vector.shape_cast %10 : vector<1x1x244xf32> to vector<1x244xf32>
    %12 = vector.shape_cast %11 : vector<1x244xf32> to vector<1x1x244xf32>
    %13 = vector.broadcast %12 : vector<1x1x244xf32> to vector<2x2x244xf32>
    %14 = arith.mulf %9, %13 : vector<2x2x244xf32>
    %15 = arith.addf %8, %14 : vector<2x2x244xf32>
    %16 = vector.extract_strided_slice %2 {offsets = [0, 2, 0], sizes = [2, 2, 244], strides = [1, 1, 1]} : vector<4x4x244xf32> to vector<2x2x244xf32>
    %c2 = arith.constant 2 : index
    %c0_8 = arith.constant 0 : index
    %c0_9 = arith.constant 0 : index
    %17 = vector.load %arg2[%c2, %c0_8, %c0_9] : memref<9x1x244xf32, #tpu.memory_space<vmem>>, vector<1x1x244xf32>
    %18 = vector.shape_cast %17 : vector<1x1x244xf32> to vector<1x244xf32>
    %19 = vector.shape_cast %18 : vector<1x244xf32> to vector<1x1x244xf32>
    %20 = vector.broadcast %19 : vector<1x1x244xf32> to vector<2x2x244xf32>
    %21 = arith.mulf %16, %20 : vector<2x2x244xf32>
    %22 = arith.addf %15, %21 : vector<2x2x244xf32>
    %23 = vector.extract_strided_slice %2 {offsets = [1, 0, 0], sizes = [2, 2, 244], strides = [1, 1, 1]} : vector<4x4x244xf32> to vector<2x2x244xf32>
    %c3 = arith.constant 3 : index
    %c0_10 = arith.constant 0 : index
    %c0_11 = arith.constant 0 : index
    %24 = vector.load %arg2[%c3, %c0_10, %c0_11] : memref<9x1x244xf32, #tpu.memory_space<vmem>>, vector<1x1x244xf32>
    %25 = vector.shape_cast %24 : vector<1x1x244xf32> to vector<1x244xf32>
    %26 = vector.shape_cast %25 : vector<1x244xf32> to vector<1x1x244xf32>
    %27 = vector.broadcast %26 : vector<1x1x244xf32> to vector<2x2x244xf32>
    %28 = arith.mulf %23, %27 : vector<2x2x244xf32>
    %29 = arith.addf %22, %28 : vector<2x2x244xf32>
    %30 = vector.extract_strided_slice %2 {offsets = [1, 1, 0], sizes = [2, 2, 244], strides = [1, 1, 1]} : vector<4x4x244xf32> to vector<2x2x244xf32>
    %c4 = arith.constant 4 : index
    %c0_12 = arith.constant 0 : index
    %c0_13 = arith.constant 0 : index
    %31 = vector.load %arg2[%c4, %c0_12, %c0_13] : memref<9x1x244xf32, #tpu.memory_space<vmem>>, vector<1x1x244xf32>
    %32 = vector.shape_cast %31 : vector<1x1x244xf32> to vector<1x244xf32>
    %33 = vector.shape_cast %32 : vector<1x244xf32> to vector<1x1x244xf32>
    %34 = vector.broadcast %33 : vector<1x1x244xf32> to vector<2x2x244xf32>
    %35 = arith.mulf %30, %34 : vector<2x2x244xf32>
    %36 = arith.addf %29, %35 : vector<2x2x244xf32>
    %37 = vector.extract_strided_slice %2 {offsets = [1, 2, 0], sizes = [2, 2, 244], strides = [1, 1, 1]} : vector<4x4x244xf32> to vector<2x2x244xf32>
    %c5 = arith.constant 5 : index
    %c0_14 = arith.constant 0 : index
    %c0_15 = arith.constant 0 : index
    %38 = vector.load %arg2[%c5, %c0_14, %c0_15] : memref<9x1x244xf32, #tpu.memory_space<vmem>>, vector<1x1x244xf32>
    %39 = vector.shape_cast %38 : vector<1x1x244xf32> to vector<1x244xf32>
    %40 = vector.shape_cast %39 : vector<1x244xf32> to vector<1x1x244xf32>
    %41 = vector.broadcast %40 : vector<1x1x244xf32> to vector<2x2x244xf32>
    %42 = arith.mulf %37, %41 : vector<2x2x244xf32>
    %43 = arith.addf %36, %42 : vector<2x2x244xf32>
    %44 = vector.extract_strided_slice %2 {offsets = [2, 0, 0], sizes = [2, 2, 244], strides = [1, 1, 1]} : vector<4x4x244xf32> to vector<2x2x244xf32>
    %c6 = arith.constant 6 : index
    %c0_16 = arith.constant 0 : index
    %c0_17 = arith.constant 0 : index
    %45 = vector.load %arg2[%c6, %c0_16, %c0_17] : memref<9x1x244xf32, #tpu.memory_space<vmem>>, vector<1x1x244xf32>
    %46 = vector.shape_cast %45 : vector<1x1x244xf32> to vector<1x244xf32>
    %47 = vector.shape_cast %46 : vector<1x244xf32> to vector<1x1x244xf32>
    %48 = vector.broadcast %47 : vector<1x1x244xf32> to vector<2x2x244xf32>
    %49 = arith.mulf %44, %48 : vector<2x2x244xf32>
    %50 = arith.addf %43, %49 : vector<2x2x244xf32>
    %51 = vector.extract_strided_slice %2 {offsets = [2, 1, 0], sizes = [2, 2, 244], strides = [1, 1, 1]} : vector<4x4x244xf32> to vector<2x2x244xf32>
    %c7 = arith.constant 7 : index
    %c0_18 = arith.constant 0 : index
    %c0_19 = arith.constant 0 : index
    %52 = vector.load %arg2[%c7, %c0_18, %c0_19] : memref<9x1x244xf32, #tpu.memory_space<vmem>>, vector<1x1x244xf32>
    %53 = vector.shape_cast %52 : vector<1x1x244xf32> to vector<1x244xf32>
    %54 = vector.shape_cast %53 : vector<1x244xf32> to vector<1x1x244xf32>
    %55 = vector.broadcast %54 : vector<1x1x244xf32> to vector<2x2x244xf32>
    %56 = arith.mulf %51, %55 : vector<2x2x244xf32>
    %57 = arith.addf %50, %56 : vector<2x2x244xf32>
    %58 = vector.extract_strided_slice %2 {offsets = [2, 2, 0], sizes = [2, 2, 244], strides = [1, 1, 1]} : vector<4x4x244xf32> to vector<2x2x244xf32>
    %c8 = arith.constant 8 : index
    %c0_20 = arith.constant 0 : index
    %c0_21 = arith.constant 0 : index
    %59 = vector.load %arg2[%c8, %c0_20, %c0_21] : memref<9x1x244xf32, #tpu.memory_space<vmem>>, vector<1x1x244xf32>
    %60 = vector.shape_cast %59 : vector<1x1x244xf32> to vector<1x244xf32>
    %61 = vector.shape_cast %60 : vector<1x244xf32> to vector<1x1x244xf32>
    %62 = vector.broadcast %61 : vector<1x1x244xf32> to vector<2x2x244xf32>
    %63 = arith.mulf %58, %62 : vector<2x2x244xf32>
    %64 = arith.addf %57, %63 : vector<2x2x244xf32>
    %c0_22 = arith.constant 0 : index
    %c0_23 = arith.constant 0 : index
    %65 = vector.load %arg3[%c0_22, %c0_23] : memref<1x244xf32, #tpu.memory_space<vmem>>, vector<1x244xf32>
    %66 = vector.shape_cast %65 : vector<1x244xf32> to vector<1x1x244xf32>
    %67 = vector.broadcast %66 : vector<1x1x244xf32> to vector<2x2x244xf32>
    %68 = arith.addf %64, %67 : vector<2x2x244xf32>
    %69 = arith.truncf %68 : vector<2x2x244xf32> to vector<2x2x244xbf16>
    %c0_24 = arith.constant 0 : index
    %c0_25 = arith.constant 0 : index
    %c0_26 = arith.constant 0 : index
    %c0_27 = arith.constant 0 : index
    %70 = vector.load %arg4[%c0_24, %c0_25, %c0_26, %c0_27] : memref<1x2x2x244xbf16, #tpu.memory_space<vmem>>, vector<1x2x2x244xbf16>
    %71 = vector.shape_cast %70 : vector<1x2x2x244xbf16> to vector<2x2x244xbf16>
    %72 = vector.shape_cast %69 : vector<2x2x244xbf16> to vector<1x2x2x244xbf16>
    tpu.vector_store %arg4[%c0_24, %c0_25, %c0_26, %c0_27], %72 {strides = array<i32>} : memref<1x2x2x244xbf16, #tpu.memory_space<vmem>>, vector<1x2x2x244xbf16>,
    return
  }
  func.func @transform_0(%arg0: i32) -> (i32, i32, i32, i32) {
    %c0_i32 = arith.constant 0 : i32
    %c0_i32_0 = arith.constant 0 : i32
    %c0_i32_1 = arith.constant 0 : i32
    %c0_i32_2 = arith.constant 0 : i32
    return %arg0, %c0_i32, %c0_i32_0, %c0_i32_1 : i32, i32, i32, i32
  }
  func.func @transform_1(%arg0: i32) -> (i32, i32, i32) {
    %c0_i32 = arith.constant 0 : i32
    %c0_i32_0 = arith.constant 0 : i32
    %c0_i32_1 = arith.constant 0 : i32
    %c0_i32_2 = arith.constant 0 : i32
    return %c0_i32, %c0_i32_0, %c0_i32_1 : i32, i32, i32
  }
  func.func @transform_2(%arg0: i32) -> (i32, i32) {
    %c0_i32 = arith.constant 0 : i32
    %c0_i32_0 = arith.constant 0 : i32
    %c0_i32_1 = arith.constant 0 : i32
    return %c0_i32, %c0_i32_0 : i32, i32
  }
  func.func @transform_3(%arg0: i32) -> (i32, i32, i32, i32) {
    %c0_i32 = arith.constant 0 : i32
    %c0_i32_0 = arith.constant 0 : i32
    %c0_i32_1 = arith.constant 0 : i32
    %c0_i32_2 = arith.constant 0 : i32
    return %arg0, %c0_i32, %c0_i32_0, %c0_i32_1 : i32, i32, i32, i32
  }
}

module attributes {stable_mosaic.version = 11 : i64} {
  func.func @_matmul_bias_act_kernel(%arg0: i32, %arg1: memref<2x244xbf16, #tpu.memory_space<vmem>>, %arg2: memref<244x244xbf16, #tpu.memory_space<vmem>>, %arg3: memref<1x244xf32, #tpu.memory_space<vmem>>, %arg4: memref<2x244xbf16, #tpu.memory_space<vmem>>) attributes {dimension_semantics = [#tpu.dimension_semantics<parallel>], iteration_bounds = array<i64: 1>, scalar_prefetch = 0 : i64, scratch_operands = 0 : i64, tpu.core_type = #tpu.core_type<tc>, window_params = [{transform_indices = @transform_0, window_bounds = array<i64: 2, 244>}, {pipeline_mode = #tpu.pipeline_mode<synchronous>, transform_indices = @transform_1, window_bounds = array<i64: 244, 244>}, {pipeline_mode = #tpu.pipeline_mode<synchronous>, transform_indices = @transform_2, window_bounds = array<i64: 1, 244>}, {transform_indices = @transform_3, window_bounds = array<i64: 2, 244>}]} {
    %c0 = arith.constant 0 : index
    %c0_0 = arith.constant 0 : index
    %0 = vector.load %arg1[%c0, %c0_0] : memref<2x244xbf16, #tpu.memory_space<vmem>>, vector<2x244xbf16>
    %c0_1 = arith.constant 0 : index
    %c0_2 = arith.constant 0 : index
    %1 = vector.load %arg2[%c0_1, %c0_2] : memref<244x244xbf16, #tpu.memory_space<vmem>>, vector<244x244xbf16>
    %cst = arith.constant dense<0.000000e+00> : vector<2x244xf32>
    %2 = tpu.matmul %0, %1, %cst {dimension_numbers = #tpu.dot_dimension_numbers<[1], [0], [0], [1], [0, 0, 1, 1], [], []>} : vector<2x244xbf16>, vector<244x244xbf16>, vector<2x244xf32> -> vector<2x244xf32>
    %c0_3 = arith.constant 0 : index
    %c0_4 = arith.constant 0 : index
    %3 = vector.load %arg3[%c0_3, %c0_4] : memref<1x244xf32, #tpu.memory_space<vmem>>, vector<1x244xf32>
    %4 = vector.broadcast %3 : vector<1x244xf32> to vector<2x244xf32>
    %5 = arith.addf %2, %4 : vector<2x244xf32>
    %cst_5 = arith.constant 0.000000e+00 : f32
    %6 = vector.broadcast %cst_5 : f32 to vector<2x244xf32>
    %7 = arith.maximumf %5, %6 : vector<2x244xf32>
    %8 = arith.truncf %7 : vector<2x244xf32> to vector<2x244xbf16>
    %c0_6 = arith.constant 0 : index
    %c0_7 = arith.constant 0 : index
    %9 = vector.load %arg4[%c0_6, %c0_7] : memref<2x244xbf16, #tpu.memory_space<vmem>>, vector<2x244xbf16>
    tpu.vector_store %arg4[%c0_6, %c0_7], %8 {strides = array<i32>} : memref<2x244xbf16, #tpu.memory_space<vmem>>, vector<2x244xbf16>,
    return
  }
  func.func @transform_0(%arg0: i32) -> (i32, i32) {
    %c0_i32 = arith.constant 0 : i32
    %c0_i32_0 = arith.constant 0 : i32
    return %arg0, %c0_i32 : i32, i32
  }
  func.func @transform_1(%arg0: i32) -> (i32, i32) {
    %c0_i32 = arith.constant 0 : i32
    %c0_i32_0 = arith.constant 0 : i32
    %c0_i32_1 = arith.constant 0 : i32
    return %c0_i32, %c0_i32_0 : i32, i32
  }
  func.func @transform_2(%arg0: i32) -> (i32, i32) {
    %c0_i32 = arith.constant 0 : i32
    %c0_i32_0 = arith.constant 0 : i32
    %c0_i32_1 = arith.constant 0 : i32
    return %c0_i32, %c0_i32_0 : i32, i32
  }
  func.func @transform_3(%arg0: i32) -> (i32, i32) {
    %c0_i32 = arith.constant 0 : i32
    %c0_i32_0 = arith.constant 0 : i32
    return %arg0, %c0_i32 : i32, i32
  }
}

module attributes {stable_mosaic.version = 11 : i64} {
  func.func @_matmul_bias_act_kernel(%arg0: i32, %arg1: memref<2x244xbf16, #tpu.memory_space<vmem>>, %arg2: memref<244x244xbf16, #tpu.memory_space<vmem>>, %arg3: memref<1x244xf32, #tpu.memory_space<vmem>>, %arg4: memref<2x244xbf16, #tpu.memory_space<vmem>>) attributes {dimension_semantics = [#tpu.dimension_semantics<parallel>], iteration_bounds = array<i64: 1>, scalar_prefetch = 0 : i64, scratch_operands = 0 : i64, tpu.core_type = #tpu.core_type<tc>, window_params = [{transform_indices = @transform_0, window_bounds = array<i64: 2, 244>}, {pipeline_mode = #tpu.pipeline_mode<synchronous>, transform_indices = @transform_1, window_bounds = array<i64: 244, 244>}, {pipeline_mode = #tpu.pipeline_mode<synchronous>, transform_indices = @transform_2, window_bounds = array<i64: 1, 244>}, {transform_indices = @transform_3, window_bounds = array<i64: 2, 244>}]} {
    %c0 = arith.constant 0 : index
    %c0_0 = arith.constant 0 : index
    %0 = vector.load %arg1[%c0, %c0_0] : memref<2x244xbf16, #tpu.memory_space<vmem>>, vector<2x244xbf16>
    %c0_1 = arith.constant 0 : index
    %c0_2 = arith.constant 0 : index
    %1 = vector.load %arg2[%c0_1, %c0_2] : memref<244x244xbf16, #tpu.memory_space<vmem>>, vector<244x244xbf16>
    %cst = arith.constant dense<0.000000e+00> : vector<2x244xf32>
    %2 = tpu.matmul %0, %1, %cst {dimension_numbers = #tpu.dot_dimension_numbers<[1], [0], [0], [1], [0, 0, 1, 1], [], []>} : vector<2x244xbf16>, vector<244x244xbf16>, vector<2x244xf32> -> vector<2x244xf32>
    %c0_3 = arith.constant 0 : index
    %c0_4 = arith.constant 0 : index
    %3 = vector.load %arg3[%c0_3, %c0_4] : memref<1x244xf32, #tpu.memory_space<vmem>>, vector<1x244xf32>
    %4 = vector.broadcast %3 : vector<1x244xf32> to vector<2x244xf32>
    %5 = arith.addf %2, %4 : vector<2x244xf32>
    %cst_5 = arith.constant 0.000000e+00 : f32
    %6 = vector.broadcast %cst_5 : f32 to vector<2x244xf32>
    %7 = arith.maximumf %5, %6 : vector<2x244xf32>
    %8 = arith.truncf %7 : vector<2x244xf32> to vector<2x244xbf16>
    %c0_6 = arith.constant 0 : index
    %c0_7 = arith.constant 0 : index
    %9 = vector.load %arg4[%c0_6, %c0_7] : memref<2x244xbf16, #tpu.memory_space<vmem>>, vector<2x244xbf16>
    tpu.vector_store %arg4[%c0_6, %c0_7], %8 {strides = array<i32>} : memref<2x244xbf16, #tpu.memory_space<vmem>>, vector<2x244xbf16>,
    return
  }
  func.func @transform_0(%arg0: i32) -> (i32, i32) {
    %c0_i32 = arith.constant 0 : i32
    %c0_i32_0 = arith.constant 0 : i32
    return %arg0, %c0_i32 : i32, i32
  }
  func.func @transform_1(%arg0: i32) -> (i32, i32) {
    %c0_i32 = arith.constant 0 : i32
    %c0_i32_0 = arith.constant 0 : i32
    %c0_i32_1 = arith.constant 0 : i32
    return %c0_i32, %c0_i32_0 : i32, i32
  }
  func.func @transform_2(%arg0: i32) -> (i32, i32) {
    %c0_i32 = arith.constant 0 : i32
    %c0_i32_0 = arith.constant 0 : i32
    %c0_i32_1 = arith.constant 0 : i32
    return %c0_i32, %c0_i32_0 : i32, i32
  }
  func.func @transform_3(%arg0: i32) -> (i32, i32) {
    %c0_i32 = arith.constant 0 : i32
    %c0_i32_0 = arith.constant 0 : i32
    return %arg0, %c0_i32 : i32, i32
  }
}

module attributes {stable_mosaic.version = 11 : i64} {
  func.func @_dwconv_bias_kernel(%arg0: i32, %arg1: memref<1x3x3x244xbf16, #tpu.memory_space<vmem>>, %arg2: memref<9x1x244xf32, #tpu.memory_space<vmem>>, %arg3: memref<1x244xf32, #tpu.memory_space<vmem>>, %arg4: memref<1x1x1x244xbf16, #tpu.memory_space<vmem>>) attributes {dimension_semantics = [#tpu.dimension_semantics<parallel>], iteration_bounds = array<i64: 2>, scalar_prefetch = 0 : i64, scratch_operands = 0 : i64, tpu.core_type = #tpu.core_type<tc>, window_params = [{transform_indices = @transform_0, window_bounds = array<i64: 1, 3, 3, 244>}, {pipeline_mode = #tpu.pipeline_mode<synchronous>, transform_indices = @transform_1, window_bounds = array<i64: 9, 1, 244>}, {pipeline_mode = #tpu.pipeline_mode<synchronous>, transform_indices = @transform_2, window_bounds = array<i64: 1, 244>}, {transform_indices = @transform_3, window_bounds = array<i64: 1, 1, 1, 244>}]} {
    %c0 = arith.constant 0 : index
    %c0_0 = arith.constant 0 : index
    %c0_1 = arith.constant 0 : index
    %c0_2 = arith.constant 0 : index
    %0 = vector.load %arg1[%c0, %c0_0, %c0_1, %c0_2] : memref<1x3x3x244xbf16, #tpu.memory_space<vmem>>, vector<1x3x3x244xbf16>
    %1 = vector.shape_cast %0 : vector<1x3x3x244xbf16> to vector<3x3x244xbf16>
    %2 = arith.extf %1 : vector<3x3x244xbf16> to vector<3x3x244xf32>
    %3 = vector.extract_strided_slice %2 {offsets = [0, 0, 0], sizes = [1, 1, 244], strides = [1, 1, 1]} : vector<3x3x244xf32> to vector<1x1x244xf32>
    %c0_3 = arith.constant 0 : index
    %c0_4 = arith.constant 0 : index
    %c0_5 = arith.constant 0 : index
    %4 = vector.load %arg2[%c0_3, %c0_4, %c0_5] : memref<9x1x244xf32, #tpu.memory_space<vmem>>, vector<1x1x244xf32>
    %5 = vector.shape_cast %4 : vector<1x1x244xf32> to vector<1x244xf32>
    %6 = vector.shape_cast %5 : vector<1x244xf32> to vector<1x1x244xf32>
    %7 = arith.mulf %3, %6 : vector<1x1x244xf32>
    %8 = vector.extract_strided_slice %2 {offsets = [0, 1, 0], sizes = [1, 1, 244], strides = [1, 1, 1]} : vector<3x3x244xf32> to vector<1x1x244xf32>
    %c1 = arith.constant 1 : index
    %c0_6 = arith.constant 0 : index
    %c0_7 = arith.constant 0 : index
    %9 = vector.load %arg2[%c1, %c0_6, %c0_7] : memref<9x1x244xf32, #tpu.memory_space<vmem>>, vector<1x1x244xf32>
    %10 = vector.shape_cast %9 : vector<1x1x244xf32> to vector<1x244xf32>
    %11 = vector.shape_cast %10 : vector<1x244xf32> to vector<1x1x244xf32>
    %12 = arith.mulf %8, %11 : vector<1x1x244xf32>
    %13 = arith.addf %7, %12 : vector<1x1x244xf32>
    %14 = vector.extract_strided_slice %2 {offsets = [0, 2, 0], sizes = [1, 1, 244], strides = [1, 1, 1]} : vector<3x3x244xf32> to vector<1x1x244xf32>
    %c2 = arith.constant 2 : index
    %c0_8 = arith.constant 0 : index
    %c0_9 = arith.constant 0 : index
    %15 = vector.load %arg2[%c2, %c0_8, %c0_9] : memref<9x1x244xf32, #tpu.memory_space<vmem>>, vector<1x1x244xf32>
    %16 = vector.shape_cast %15 : vector<1x1x244xf32> to vector<1x244xf32>
    %17 = vector.shape_cast %16 : vector<1x244xf32> to vector<1x1x244xf32>
    %18 = arith.mulf %14, %17 : vector<1x1x244xf32>
    %19 = arith.addf %13, %18 : vector<1x1x244xf32>
    %20 = vector.extract_strided_slice %2 {offsets = [1, 0, 0], sizes = [1, 1, 244], strides = [1, 1, 1]} : vector<3x3x244xf32> to vector<1x1x244xf32>
    %c3 = arith.constant 3 : index
    %c0_10 = arith.constant 0 : index
    %c0_11 = arith.constant 0 : index
    %21 = vector.load %arg2[%c3, %c0_10, %c0_11] : memref<9x1x244xf32, #tpu.memory_space<vmem>>, vector<1x1x244xf32>
    %22 = vector.shape_cast %21 : vector<1x1x244xf32> to vector<1x244xf32>
    %23 = vector.shape_cast %22 : vector<1x244xf32> to vector<1x1x244xf32>
    %24 = arith.mulf %20, %23 : vector<1x1x244xf32>
    %25 = arith.addf %19, %24 : vector<1x1x244xf32>
    %26 = vector.extract_strided_slice %2 {offsets = [1, 1, 0], sizes = [1, 1, 244], strides = [1, 1, 1]} : vector<3x3x244xf32> to vector<1x1x244xf32>
    %c4 = arith.constant 4 : index
    %c0_12 = arith.constant 0 : index
    %c0_13 = arith.constant 0 : index
    %27 = vector.load %arg2[%c4, %c0_12, %c0_13] : memref<9x1x244xf32, #tpu.memory_space<vmem>>, vector<1x1x244xf32>
    %28 = vector.shape_cast %27 : vector<1x1x244xf32> to vector<1x244xf32>
    %29 = vector.shape_cast %28 : vector<1x244xf32> to vector<1x1x244xf32>
    %30 = arith.mulf %26, %29 : vector<1x1x244xf32>
    %31 = arith.addf %25, %30 : vector<1x1x244xf32>
    %32 = vector.extract_strided_slice %2 {offsets = [1, 2, 0], sizes = [1, 1, 244], strides = [1, 1, 1]} : vector<3x3x244xf32> to vector<1x1x244xf32>
    %c5 = arith.constant 5 : index
    %c0_14 = arith.constant 0 : index
    %c0_15 = arith.constant 0 : index
    %33 = vector.load %arg2[%c5, %c0_14, %c0_15] : memref<9x1x244xf32, #tpu.memory_space<vmem>>, vector<1x1x244xf32>
    %34 = vector.shape_cast %33 : vector<1x1x244xf32> to vector<1x244xf32>
    %35 = vector.shape_cast %34 : vector<1x244xf32> to vector<1x1x244xf32>
    %36 = arith.mulf %32, %35 : vector<1x1x244xf32>
    %37 = arith.addf %31, %36 : vector<1x1x244xf32>
    %38 = vector.extract_strided_slice %2 {offsets = [2, 0, 0], sizes = [1, 1, 244], strides = [1, 1, 1]} : vector<3x3x244xf32> to vector<1x1x244xf32>
    %c6 = arith.constant 6 : index
    %c0_16 = arith.constant 0 : index
    %c0_17 = arith.constant 0 : index
    %39 = vector.load %arg2[%c6, %c0_16, %c0_17] : memref<9x1x244xf32, #tpu.memory_space<vmem>>, vector<1x1x244xf32>
    %40 = vector.shape_cast %39 : vector<1x1x244xf32> to vector<1x244xf32>
    %41 = vector.shape_cast %40 : vector<1x244xf32> to vector<1x1x244xf32>
    %42 = arith.mulf %38, %41 : vector<1x1x244xf32>
    %43 = arith.addf %37, %42 : vector<1x1x244xf32>
    %44 = vector.extract_strided_slice %2 {offsets = [2, 1, 0], sizes = [1, 1, 244], strides = [1, 1, 1]} : vector<3x3x244xf32> to vector<1x1x244xf32>
    %c7 = arith.constant 7 : index
    %c0_18 = arith.constant 0 : index
    %c0_19 = arith.constant 0 : index
    %45 = vector.load %arg2[%c7, %c0_18, %c0_19] : memref<9x1x244xf32, #tpu.memory_space<vmem>>, vector<1x1x244xf32>
    %46 = vector.shape_cast %45 : vector<1x1x244xf32> to vector<1x244xf32>
    %47 = vector.shape_cast %46 : vector<1x244xf32> to vector<1x1x244xf32>
    %48 = arith.mulf %44, %47 : vector<1x1x244xf32>
    %49 = arith.addf %43, %48 : vector<1x1x244xf32>
    %50 = vector.extract_strided_slice %2 {offsets = [2, 2, 0], sizes = [1, 1, 244], strides = [1, 1, 1]} : vector<3x3x244xf32> to vector<1x1x244xf32>
    %c8 = arith.constant 8 : index
    %c0_20 = arith.constant 0 : index
    %c0_21 = arith.constant 0 : index
    %51 = vector.load %arg2[%c8, %c0_20, %c0_21] : memref<9x1x244xf32, #tpu.memory_space<vmem>>, vector<1x1x244xf32>
    %52 = vector.shape_cast %51 : vector<1x1x244xf32> to vector<1x244xf32>
    %53 = vector.shape_cast %52 : vector<1x244xf32> to vector<1x1x244xf32>
    %54 = arith.mulf %50, %53 : vector<1x1x244xf32>
    %55 = arith.addf %49, %54 : vector<1x1x244xf32>
    %c0_22 = arith.constant 0 : index
    %c0_23 = arith.constant 0 : index
    %56 = vector.load %arg3[%c0_22, %c0_23] : memref<1x244xf32, #tpu.memory_space<vmem>>, vector<1x244xf32>
    %57 = vector.shape_cast %56 : vector<1x244xf32> to vector<1x1x244xf32>
    %58 = arith.addf %55, %57 : vector<1x1x244xf32>
    %59 = arith.truncf %58 : vector<1x1x244xf32> to vector<1x1x244xbf16>
    %c0_24 = arith.constant 0 : index
    %c0_25 = arith.constant 0 : index
    %c0_26 = arith.constant 0 : index
    %c0_27 = arith.constant 0 : index
    %60 = vector.load %arg4[%c0_24, %c0_25, %c0_26, %c0_27] : memref<1x1x1x244xbf16, #tpu.memory_space<vmem>>, vector<1x1x1x244xbf16>
    %61 = vector.shape_cast %60 : vector<1x1x1x244xbf16> to vector<1x1x244xbf16>
    %62 = vector.shape_cast %59 : vector<1x1x244xbf16> to vector<1x1x1x244xbf16>
    tpu.vector_store %arg4[%c0_24, %c0_25, %c0_26, %c0_27], %62 {strides = array<i32>} : memref<1x1x1x244xbf16, #tpu.memory_space<vmem>>, vector<1x1x1x244xbf16>,
    return
  }
  func.func @transform_0(%arg0: i32) -> (i32, i32, i32, i32) {
    %c0_i32 = arith.constant 0 : i32
    %c0_i32_0 = arith.constant 0 : i32
    %c0_i32_1 = arith.constant 0 : i32
    %c0_i32_2 = arith.constant 0 : i32
    return %arg0, %c0_i32, %c0_i32_0, %c0_i32_1 : i32, i32, i32, i32
  }
  func.func @transform_1(%arg0: i32) -> (i32, i32, i32) {
    %c0_i32 = arith.constant 0 : i32
    %c0_i32_0 = arith.constant 0 : i32
    %c0_i32_1 = arith.constant 0 : i32
    %c0_i32_2 = arith.constant 0 : i32
    return %c0_i32, %c0_i32_0, %c0_i32_1 : i32, i32, i32
  }
  func.func @transform_2(%arg0: i32) -> (i32, i32) {
    %c0_i32 = arith.constant 0 : i32
    %c0_i32_0 = arith.constant 0 : i32
    %c0_i32_1 = arith.constant 0 : i32
    return %c0_i32, %c0_i32_0 : i32, i32
  }
  func.func @transform_3(%arg0: i32) -> (i32, i32, i32, i32) {
    %c0_i32 = arith.constant 0 : i32
    %c0_i32_0 = arith.constant 0 : i32
    %c0_i32_1 = arith.constant 0 : i32
    %c0_i32_2 = arith.constant 0 : i32
    return %arg0, %c0_i32, %c0_i32_0, %c0_i32_1 : i32, i32, i32, i32
  }
}

module attributes {stable_mosaic.version = 11 : i64} {
  func.func @_matmul_bias_act_kernel(%arg0: i32, %arg1: memref<2x488xbf16, #tpu.memory_space<vmem>>, %arg2: memref<488x488xbf16, #tpu.memory_space<vmem>>, %arg3: memref<1x488xf32, #tpu.memory_space<vmem>>, %arg4: memref<2x488xbf16, #tpu.memory_space<vmem>>) attributes {dimension_semantics = [#tpu.dimension_semantics<parallel>], iteration_bounds = array<i64: 1>, scalar_prefetch = 0 : i64, scratch_operands = 0 : i64, tpu.core_type = #tpu.core_type<tc>, window_params = [{transform_indices = @transform_0, window_bounds = array<i64: 2, 488>}, {pipeline_mode = #tpu.pipeline_mode<synchronous>, transform_indices = @transform_1, window_bounds = array<i64: 488, 488>}, {pipeline_mode = #tpu.pipeline_mode<synchronous>, transform_indices = @transform_2, window_bounds = array<i64: 1, 488>}, {transform_indices = @transform_3, window_bounds = array<i64: 2, 488>}]} {
    %c0 = arith.constant 0 : index
    %c0_0 = arith.constant 0 : index
    %0 = vector.load %arg1[%c0, %c0_0] : memref<2x488xbf16, #tpu.memory_space<vmem>>, vector<2x488xbf16>
    %c0_1 = arith.constant 0 : index
    %c0_2 = arith.constant 0 : index
    %1 = vector.load %arg2[%c0_1, %c0_2] : memref<488x488xbf16, #tpu.memory_space<vmem>>, vector<488x488xbf16>
    %cst = arith.constant dense<0.000000e+00> : vector<2x488xf32>
    %2 = tpu.matmul %0, %1, %cst {dimension_numbers = #tpu.dot_dimension_numbers<[1], [0], [0], [1], [0, 0, 1, 1], [], []>} : vector<2x488xbf16>, vector<488x488xbf16>, vector<2x488xf32> -> vector<2x488xf32>
    %c0_3 = arith.constant 0 : index
    %c0_4 = arith.constant 0 : index
    %3 = vector.load %arg3[%c0_3, %c0_4] : memref<1x488xf32, #tpu.memory_space<vmem>>, vector<1x488xf32>
    %4 = vector.broadcast %3 : vector<1x488xf32> to vector<2x488xf32>
    %5 = arith.addf %2, %4 : vector<2x488xf32>
    %cst_5 = arith.constant 0.000000e+00 : f32
    %6 = vector.broadcast %cst_5 : f32 to vector<2x488xf32>
    %7 = arith.maximumf %5, %6 : vector<2x488xf32>
    %8 = arith.truncf %7 : vector<2x488xf32> to vector<2x488xbf16>
    %c0_6 = arith.constant 0 : index
    %c0_7 = arith.constant 0 : index
    %9 = vector.load %arg4[%c0_6, %c0_7] : memref<2x488xbf16, #tpu.memory_space<vmem>>, vector<2x488xbf16>
    tpu.vector_store %arg4[%c0_6, %c0_7], %8 {strides = array<i32>} : memref<2x488xbf16, #tpu.memory_space<vmem>>, vector<2x488xbf16>,
    return
  }
  func.func @transform_0(%arg0: i32) -> (i32, i32) {
    %c0_i32 = arith.constant 0 : i32
    %c0_i32_0 = arith.constant 0 : i32
    return %arg0, %c0_i32 : i32, i32
  }
  func.func @transform_1(%arg0: i32) -> (i32, i32) {
    %c0_i32 = arith.constant 0 : i32
    %c0_i32_0 = arith.constant 0 : i32
    %c0_i32_1 = arith.constant 0 : i32
    return %c0_i32, %c0_i32_0 : i32, i32
  }
  func.func @transform_2(%arg0: i32) -> (i32, i32) {
    %c0_i32 = arith.constant 0 : i32
    %c0_i32_0 = arith.constant 0 : i32
    %c0_i32_1 = arith.constant 0 : i32
    return %c0_i32, %c0_i32_0 : i32, i32
  }
  func.func @transform_3(%arg0: i32) -> (i32, i32) {
    %c0_i32 = arith.constant 0 : i32
    %c0_i32_0 = arith.constant 0 : i32
    return %arg0, %c0_i32 : i32, i32
  }
}

module attributes {stable_mosaic.version = 11 : i64} {
  func.func @_dwconv_bias_kernel(%arg0: i32, %arg1: memref<1x3x3x488xbf16, #tpu.memory_space<vmem>>, %arg2: memref<9x1x488xf32, #tpu.memory_space<vmem>>, %arg3: memref<1x488xf32, #tpu.memory_space<vmem>>, %arg4: memref<1x1x1x488xbf16, #tpu.memory_space<vmem>>) attributes {dimension_semantics = [#tpu.dimension_semantics<parallel>], iteration_bounds = array<i64: 2>, scalar_prefetch = 0 : i64, scratch_operands = 0 : i64, tpu.core_type = #tpu.core_type<tc>, window_params = [{transform_indices = @transform_0, window_bounds = array<i64: 1, 3, 3, 488>}, {pipeline_mode = #tpu.pipeline_mode<synchronous>, transform_indices = @transform_1, window_bounds = array<i64: 9, 1, 488>}, {pipeline_mode = #tpu.pipeline_mode<synchronous>, transform_indices = @transform_2, window_bounds = array<i64: 1, 488>}, {transform_indices = @transform_3, window_bounds = array<i64: 1, 1, 1, 488>}]} {
    %c0 = arith.constant 0 : index
    %c0_0 = arith.constant 0 : index
    %c0_1 = arith.constant 0 : index
    %c0_2 = arith.constant 0 : index
    %0 = vector.load %arg1[%c0, %c0_0, %c0_1, %c0_2] : memref<1x3x3x488xbf16, #tpu.memory_space<vmem>>, vector<1x3x3x488xbf16>
    %1 = vector.shape_cast %0 : vector<1x3x3x488xbf16> to vector<3x3x488xbf16>
    %2 = arith.extf %1 : vector<3x3x488xbf16> to vector<3x3x488xf32>
    %3 = vector.extract_strided_slice %2 {offsets = [0, 0, 0], sizes = [1, 1, 488], strides = [1, 1, 1]} : vector<3x3x488xf32> to vector<1x1x488xf32>
    %c0_3 = arith.constant 0 : index
    %c0_4 = arith.constant 0 : index
    %c0_5 = arith.constant 0 : index
    %4 = vector.load %arg2[%c0_3, %c0_4, %c0_5] : memref<9x1x488xf32, #tpu.memory_space<vmem>>, vector<1x1x488xf32>
    %5 = vector.shape_cast %4 : vector<1x1x488xf32> to vector<1x488xf32>
    %6 = vector.shape_cast %5 : vector<1x488xf32> to vector<1x1x488xf32>
    %7 = arith.mulf %3, %6 : vector<1x1x488xf32>
    %8 = vector.extract_strided_slice %2 {offsets = [0, 1, 0], sizes = [1, 1, 488], strides = [1, 1, 1]} : vector<3x3x488xf32> to vector<1x1x488xf32>
    %c1 = arith.constant 1 : index
    %c0_6 = arith.constant 0 : index
    %c0_7 = arith.constant 0 : index
    %9 = vector.load %arg2[%c1, %c0_6, %c0_7] : memref<9x1x488xf32, #tpu.memory_space<vmem>>, vector<1x1x488xf32>
    %10 = vector.shape_cast %9 : vector<1x1x488xf32> to vector<1x488xf32>
    %11 = vector.shape_cast %10 : vector<1x488xf32> to vector<1x1x488xf32>
    %12 = arith.mulf %8, %11 : vector<1x1x488xf32>
    %13 = arith.addf %7, %12 : vector<1x1x488xf32>
    %14 = vector.extract_strided_slice %2 {offsets = [0, 2, 0], sizes = [1, 1, 488], strides = [1, 1, 1]} : vector<3x3x488xf32> to vector<1x1x488xf32>
    %c2 = arith.constant 2 : index
    %c0_8 = arith.constant 0 : index
    %c0_9 = arith.constant 0 : index
    %15 = vector.load %arg2[%c2, %c0_8, %c0_9] : memref<9x1x488xf32, #tpu.memory_space<vmem>>, vector<1x1x488xf32>
    %16 = vector.shape_cast %15 : vector<1x1x488xf32> to vector<1x488xf32>
    %17 = vector.shape_cast %16 : vector<1x488xf32> to vector<1x1x488xf32>
    %18 = arith.mulf %14, %17 : vector<1x1x488xf32>
    %19 = arith.addf %13, %18 : vector<1x1x488xf32>
    %20 = vector.extract_strided_slice %2 {offsets = [1, 0, 0], sizes = [1, 1, 488], strides = [1, 1, 1]} : vector<3x3x488xf32> to vector<1x1x488xf32>
    %c3 = arith.constant 3 : index
    %c0_10 = arith.constant 0 : index
    %c0_11 = arith.constant 0 : index
    %21 = vector.load %arg2[%c3, %c0_10, %c0_11] : memref<9x1x488xf32, #tpu.memory_space<vmem>>, vector<1x1x488xf32>
    %22 = vector.shape_cast %21 : vector<1x1x488xf32> to vector<1x488xf32>
    %23 = vector.shape_cast %22 : vector<1x488xf32> to vector<1x1x488xf32>
    %24 = arith.mulf %20, %23 : vector<1x1x488xf32>
    %25 = arith.addf %19, %24 : vector<1x1x488xf32>
    %26 = vector.extract_strided_slice %2 {offsets = [1, 1, 0], sizes = [1, 1, 488], strides = [1, 1, 1]} : vector<3x3x488xf32> to vector<1x1x488xf32>
    %c4 = arith.constant 4 : index
    %c0_12 = arith.constant 0 : index
    %c0_13 = arith.constant 0 : index
    %27 = vector.load %arg2[%c4, %c0_12, %c0_13] : memref<9x1x488xf32, #tpu.memory_space<vmem>>, vector<1x1x488xf32>
    %28 = vector.shape_cast %27 : vector<1x1x488xf32> to vector<1x488xf32>
    %29 = vector.shape_cast %28 : vector<1x488xf32> to vector<1x1x488xf32>
    %30 = arith.mulf %26, %29 : vector<1x1x488xf32>
    %31 = arith.addf %25, %30 : vector<1x1x488xf32>
    %32 = vector.extract_strided_slice %2 {offsets = [1, 2, 0], sizes = [1, 1, 488], strides = [1, 1, 1]} : vector<3x3x488xf32> to vector<1x1x488xf32>
    %c5 = arith.constant 5 : index
    %c0_14 = arith.constant 0 : index
    %c0_15 = arith.constant 0 : index
    %33 = vector.load %arg2[%c5, %c0_14, %c0_15] : memref<9x1x488xf32, #tpu.memory_space<vmem>>, vector<1x1x488xf32>
    %34 = vector.shape_cast %33 : vector<1x1x488xf32> to vector<1x488xf32>
    %35 = vector.shape_cast %34 : vector<1x488xf32> to vector<1x1x488xf32>
    %36 = arith.mulf %32, %35 : vector<1x1x488xf32>
    %37 = arith.addf %31, %36 : vector<1x1x488xf32>
    %38 = vector.extract_strided_slice %2 {offsets = [2, 0, 0], sizes = [1, 1, 488], strides = [1, 1, 1]} : vector<3x3x488xf32> to vector<1x1x488xf32>
    %c6 = arith.constant 6 : index
    %c0_16 = arith.constant 0 : index
    %c0_17 = arith.constant 0 : index
    %39 = vector.load %arg2[%c6, %c0_16, %c0_17] : memref<9x1x488xf32, #tpu.memory_space<vmem>>, vector<1x1x488xf32>
    %40 = vector.shape_cast %39 : vector<1x1x488xf32> to vector<1x488xf32>
    %41 = vector.shape_cast %40 : vector<1x488xf32> to vector<1x1x488xf32>
    %42 = arith.mulf %38, %41 : vector<1x1x488xf32>
    %43 = arith.addf %37, %42 : vector<1x1x488xf32>
    %44 = vector.extract_strided_slice %2 {offsets = [2, 1, 0], sizes = [1, 1, 488], strides = [1, 1, 1]} : vector<3x3x488xf32> to vector<1x1x488xf32>
    %c7 = arith.constant 7 : index
    %c0_18 = arith.constant 0 : index
    %c0_19 = arith.constant 0 : index
    %45 = vector.load %arg2[%c7, %c0_18, %c0_19] : memref<9x1x488xf32, #tpu.memory_space<vmem>>, vector<1x1x488xf32>
    %46 = vector.shape_cast %45 : vector<1x1x488xf32> to vector<1x488xf32>
    %47 = vector.shape_cast %46 : vector<1x488xf32> to vector<1x1x488xf32>
    %48 = arith.mulf %44, %47 : vector<1x1x488xf32>
    %49 = arith.addf %43, %48 : vector<1x1x488xf32>
    %50 = vector.extract_strided_slice %2 {offsets = [2, 2, 0], sizes = [1, 1, 488], strides = [1, 1, 1]} : vector<3x3x488xf32> to vector<1x1x488xf32>
    %c8 = arith.constant 8 : index
    %c0_20 = arith.constant 0 : index
    %c0_21 = arith.constant 0 : index
    %51 = vector.load %arg2[%c8, %c0_20, %c0_21] : memref<9x1x488xf32, #tpu.memory_space<vmem>>, vector<1x1x488xf32>
    %52 = vector.shape_cast %51 : vector<1x1x488xf32> to vector<1x488xf32>
    %53 = vector.shape_cast %52 : vector<1x488xf32> to vector<1x1x488xf32>
    %54 = arith.mulf %50, %53 : vector<1x1x488xf32>
    %55 = arith.addf %49, %54 : vector<1x1x488xf32>
    %c0_22 = arith.constant 0 : index
    %c0_23 = arith.constant 0 : index
    %56 = vector.load %arg3[%c0_22, %c0_23] : memref<1x488xf32, #tpu.memory_space<vmem>>, vector<1x488xf32>
    %57 = vector.shape_cast %56 : vector<1x488xf32> to vector<1x1x488xf32>
    %58 = arith.addf %55, %57 : vector<1x1x488xf32>
    %59 = arith.truncf %58 : vector<1x1x488xf32> to vector<1x1x488xbf16>
    %c0_24 = arith.constant 0 : index
    %c0_25 = arith.constant 0 : index
    %c0_26 = arith.constant 0 : index
    %c0_27 = arith.constant 0 : index
    %60 = vector.load %arg4[%c0_24, %c0_25, %c0_26, %c0_27] : memref<1x1x1x488xbf16, #tpu.memory_space<vmem>>, vector<1x1x1x488xbf16>
    %61 = vector.shape_cast %60 : vector<1x1x1x488xbf16> to vector<1x1x488xbf16>
    %62 = vector.shape_cast %59 : vector<1x1x488xbf16> to vector<1x1x1x488xbf16>
    tpu.vector_store %arg4[%c0_24, %c0_25, %c0_26, %c0_27], %62 {strides = array<i32>} : memref<1x1x1x488xbf16, #tpu.memory_space<vmem>>, vector<1x1x1x488xbf16>,
    return
  }
  func.func @transform_0(%arg0: i32) -> (i32, i32, i32, i32) {
    %c0_i32 = arith.constant 0 : i32
    %c0_i32_0 = arith.constant 0 : i32
    %c0_i32_1 = arith.constant 0 : i32
    %c0_i32_2 = arith.constant 0 : i32
    return %arg0, %c0_i32, %c0_i32_0, %c0_i32_1 : i32, i32, i32, i32
  }
  func.func @transform_1(%arg0: i32) -> (i32, i32, i32) {
    %c0_i32 = arith.constant 0 : i32
    %c0_i32_0 = arith.constant 0 : i32
    %c0_i32_1 = arith.constant 0 : i32
    %c0_i32_2 = arith.constant 0 : i32
    return %c0_i32, %c0_i32_0, %c0_i32_1 : i32, i32, i32
  }
  func.func @transform_2(%arg0: i32) -> (i32, i32) {
    %c0_i32 = arith.constant 0 : i32
    %c0_i32_0 = arith.constant 0 : i32
    %c0_i32_1 = arith.constant 0 : i32
    return %c0_i32, %c0_i32_0 : i32, i32
  }
  func.func @transform_3(%arg0: i32) -> (i32, i32, i32, i32) {
    %c0_i32 = arith.constant 0 : i32
    %c0_i32_0 = arith.constant 0 : i32
    %c0_i32_1 = arith.constant 0 : i32
    %c0_i32_2 = arith.constant 0 : i32
    return %arg0, %c0_i32, %c0_i32_0, %c0_i32_1 : i32, i32, i32, i32
  }
}

module attributes {stable_mosaic.version = 11 : i64} {
  func.func @_dwconv_bias_kernel(%arg0: i32, %arg1: memref<1x3x3x488xbf16, #tpu.memory_space<vmem>>, %arg2: memref<9x1x488xf32, #tpu.memory_space<vmem>>, %arg3: memref<1x488xf32, #tpu.memory_space<vmem>>, %arg4: memref<1x1x1x488xbf16, #tpu.memory_space<vmem>>) attributes {dimension_semantics = [#tpu.dimension_semantics<parallel>], iteration_bounds = array<i64: 2>, scalar_prefetch = 0 : i64, scratch_operands = 0 : i64, tpu.core_type = #tpu.core_type<tc>, window_params = [{transform_indices = @transform_0, window_bounds = array<i64: 1, 3, 3, 488>}, {pipeline_mode = #tpu.pipeline_mode<synchronous>, transform_indices = @transform_1, window_bounds = array<i64: 9, 1, 488>}, {pipeline_mode = #tpu.pipeline_mode<synchronous>, transform_indices = @transform_2, window_bounds = array<i64: 1, 488>}, {transform_indices = @transform_3, window_bounds = array<i64: 1, 1, 1, 488>}]} {
    %c0 = arith.constant 0 : index
    %c0_0 = arith.constant 0 : index
    %c0_1 = arith.constant 0 : index
    %c0_2 = arith.constant 0 : index
    %0 = vector.load %arg1[%c0, %c0_0, %c0_1, %c0_2] : memref<1x3x3x488xbf16, #tpu.memory_space<vmem>>, vector<1x3x3x488xbf16>
    %1 = vector.shape_cast %0 : vector<1x3x3x488xbf16> to vector<3x3x488xbf16>
    %2 = arith.extf %1 : vector<3x3x488xbf16> to vector<3x3x488xf32>
    %3 = vector.extract_strided_slice %2 {offsets = [0, 0, 0], sizes = [1, 1, 488], strides = [1, 1, 1]} : vector<3x3x488xf32> to vector<1x1x488xf32>
    %c0_3 = arith.constant 0 : index
    %c0_4 = arith.constant 0 : index
    %c0_5 = arith.constant 0 : index
    %4 = vector.load %arg2[%c0_3, %c0_4, %c0_5] : memref<9x1x488xf32, #tpu.memory_space<vmem>>, vector<1x1x488xf32>
    %5 = vector.shape_cast %4 : vector<1x1x488xf32> to vector<1x488xf32>
    %6 = vector.shape_cast %5 : vector<1x488xf32> to vector<1x1x488xf32>
    %7 = arith.mulf %3, %6 : vector<1x1x488xf32>
    %8 = vector.extract_strided_slice %2 {offsets = [0, 1, 0], sizes = [1, 1, 488], strides = [1, 1, 1]} : vector<3x3x488xf32> to vector<1x1x488xf32>
    %c1 = arith.constant 1 : index
    %c0_6 = arith.constant 0 : index
    %c0_7 = arith.constant 0 : index
    %9 = vector.load %arg2[%c1, %c0_6, %c0_7] : memref<9x1x488xf32, #tpu.memory_space<vmem>>, vector<1x1x488xf32>
    %10 = vector.shape_cast %9 : vector<1x1x488xf32> to vector<1x488xf32>
    %11 = vector.shape_cast %10 : vector<1x488xf32> to vector<1x1x488xf32>
    %12 = arith.mulf %8, %11 : vector<1x1x488xf32>
    %13 = arith.addf %7, %12 : vector<1x1x488xf32>
    %14 = vector.extract_strided_slice %2 {offsets = [0, 2, 0], sizes = [1, 1, 488], strides = [1, 1, 1]} : vector<3x3x488xf32> to vector<1x1x488xf32>
    %c2 = arith.constant 2 : index
    %c0_8 = arith.constant 0 : index
    %c0_9 = arith.constant 0 : index
    %15 = vector.load %arg2[%c2, %c0_8, %c0_9] : memref<9x1x488xf32, #tpu.memory_space<vmem>>, vector<1x1x488xf32>
    %16 = vector.shape_cast %15 : vector<1x1x488xf32> to vector<1x488xf32>
    %17 = vector.shape_cast %16 : vector<1x488xf32> to vector<1x1x488xf32>
    %18 = arith.mulf %14, %17 : vector<1x1x488xf32>
    %19 = arith.addf %13, %18 : vector<1x1x488xf32>
    %20 = vector.extract_strided_slice %2 {offsets = [1, 0, 0], sizes = [1, 1, 488], strides = [1, 1, 1]} : vector<3x3x488xf32> to vector<1x1x488xf32>
    %c3 = arith.constant 3 : index
    %c0_10 = arith.constant 0 : index
    %c0_11 = arith.constant 0 : index
    %21 = vector.load %arg2[%c3, %c0_10, %c0_11] : memref<9x1x488xf32, #tpu.memory_space<vmem>>, vector<1x1x488xf32>
    %22 = vector.shape_cast %21 : vector<1x1x488xf32> to vector<1x488xf32>
    %23 = vector.shape_cast %22 : vector<1x488xf32> to vector<1x1x488xf32>
    %24 = arith.mulf %20, %23 : vector<1x1x488xf32>
    %25 = arith.addf %19, %24 : vector<1x1x488xf32>
    %26 = vector.extract_strided_slice %2 {offsets = [1, 1, 0], sizes = [1, 1, 488], strides = [1, 1, 1]} : vector<3x3x488xf32> to vector<1x1x488xf32>
    %c4 = arith.constant 4 : index
    %c0_12 = arith.constant 0 : index
    %c0_13 = arith.constant 0 : index
    %27 = vector.load %arg2[%c4, %c0_12, %c0_13] : memref<9x1x488xf32, #tpu.memory_space<vmem>>, vector<1x1x488xf32>
    %28 = vector.shape_cast %27 : vector<1x1x488xf32> to vector<1x488xf32>
    %29 = vector.shape_cast %28 : vector<1x488xf32> to vector<1x1x488xf32>
    %30 = arith.mulf %26, %29 : vector<1x1x488xf32>
    %31 = arith.addf %25, %30 : vector<1x1x488xf32>
    %32 = vector.extract_strided_slice %2 {offsets = [1, 2, 0], sizes = [1, 1, 488], strides = [1, 1, 1]} : vector<3x3x488xf32> to vector<1x1x488xf32>
    %c5 = arith.constant 5 : index
    %c0_14 = arith.constant 0 : index
    %c0_15 = arith.constant 0 : index
    %33 = vector.load %arg2[%c5, %c0_14, %c0_15] : memref<9x1x488xf32, #tpu.memory_space<vmem>>, vector<1x1x488xf32>
    %34 = vector.shape_cast %33 : vector<1x1x488xf32> to vector<1x488xf32>
    %35 = vector.shape_cast %34 : vector<1x488xf32> to vector<1x1x488xf32>
    %36 = arith.mulf %32, %35 : vector<1x1x488xf32>
    %37 = arith.addf %31, %36 : vector<1x1x488xf32>
    %38 = vector.extract_strided_slice %2 {offsets = [2, 0, 0], sizes = [1, 1, 488], strides = [1, 1, 1]} : vector<3x3x488xf32> to vector<1x1x488xf32>
    %c6 = arith.constant 6 : index
    %c0_16 = arith.constant 0 : index
    %c0_17 = arith.constant 0 : index
    %39 = vector.load %arg2[%c6, %c0_16, %c0_17] : memref<9x1x488xf32, #tpu.memory_space<vmem>>, vector<1x1x488xf32>
    %40 = vector.shape_cast %39 : vector<1x1x488xf32> to vector<1x488xf32>
    %41 = vector.shape_cast %40 : vector<1x488xf32> to vector<1x1x488xf32>
    %42 = arith.mulf %38, %41 : vector<1x1x488xf32>
    %43 = arith.addf %37, %42 : vector<1x1x488xf32>
    %44 = vector.extract_strided_slice %2 {offsets = [2, 1, 0], sizes = [1, 1, 488], strides = [1, 1, 1]} : vector<3x3x488xf32> to vector<1x1x488xf32>
    %c7 = arith.constant 7 : index
    %c0_18 = arith.constant 0 : index
    %c0_19 = arith.constant 0 : index
    %45 = vector.load %arg2[%c7, %c0_18, %c0_19] : memref<9x1x488xf32, #tpu.memory_space<vmem>>, vector<1x1x488xf32>
    %46 = vector.shape_cast %45 : vector<1x1x488xf32> to vector<1x488xf32>
    %47 = vector.shape_cast %46 : vector<1x488xf32> to vector<1x1x488xf32>
    %48 = arith.mulf %44, %47 : vector<1x1x488xf32>
    %49 = arith.addf %43, %48 : vector<1x1x488xf32>
    %50 = vector.extract_strided_slice %2 {offsets = [2, 2, 0], sizes = [1, 1, 488], strides = [1, 1, 1]} : vector<3x3x488xf32> to vector<1x1x488xf32>
    %c8 = arith.constant 8 : index
    %c0_20 = arith.constant 0 : index
    %c0_21 = arith.constant 0 : index
    %51 = vector.load %arg2[%c8, %c0_20, %c0_21] : memref<9x1x488xf32, #tpu.memory_space<vmem>>, vector<1x1x488xf32>
    %52 = vector.shape_cast %51 : vector<1x1x488xf32> to vector<1x488xf32>
    %53 = vector.shape_cast %52 : vector<1x488xf32> to vector<1x1x488xf32>
    %54 = arith.mulf %50, %53 : vector<1x1x488xf32>
    %55 = arith.addf %49, %54 : vector<1x1x488xf32>
    %c0_22 = arith.constant 0 : index
    %c0_23 = arith.constant 0 : index
    %56 = vector.load %arg3[%c0_22, %c0_23] : memref<1x488xf32, #tpu.memory_space<vmem>>, vector<1x488xf32>
    %57 = vector.shape_cast %56 : vector<1x488xf32> to vector<1x1x488xf32>
    %58 = arith.addf %55, %57 : vector<1x1x488xf32>
    %59 = arith.truncf %58 : vector<1x1x488xf32> to vector<1x1x488xbf16>
    %c0_24 = arith.constant 0 : index
    %c0_25 = arith.constant 0 : index
    %c0_26 = arith.constant 0 : index
    %c0_27 = arith.constant 0 : index
    %60 = vector.load %arg4[%c0_24, %c0_25, %c0_26, %c0_27] : memref<1x1x1x488xbf16, #tpu.memory_space<vmem>>, vector<1x1x1x488xbf16>
    %61 = vector.shape_cast %60 : vector<1x1x1x488xbf16> to vector<1x1x488xbf16>
    %62 = vector.shape_cast %59 : vector<1x1x488xbf16> to vector<1x1x1x488xbf16>
    tpu.vector_store %arg4[%c0_24, %c0_25, %c0_26, %c0_27], %62 {strides = array<i32>} : memref<1x1x1x488xbf16, #tpu.memory_space<vmem>>, vector<1x1x1x488xbf16>,
    return
  }
  func.func @transform_0(%arg0: i32) -> (i32, i32, i32, i32) {
    %c0_i32 = arith.constant 0 : i32
    %c0_i32_0 = arith.constant 0 : i32
    %c0_i32_1 = arith.constant 0 : i32
    %c0_i32_2 = arith.constant 0 : i32
    return %arg0, %c0_i32, %c0_i32_0, %c0_i32_1 : i32, i32, i32, i32
  }
  func.func @transform_1(%arg0: i32) -> (i32, i32, i32) {
    %c0_i32 = arith.constant 0 : i32
    %c0_i32_0 = arith.constant 0 : i32
    %c0_i32_1 = arith.constant 0 : i32
    %c0_i32_2 = arith.constant 0 : i32
    return %c0_i32, %c0_i32_0, %c0_i32_1 : i32, i32, i32
  }
  func.func @transform_2(%arg0: i32) -> (i32, i32) {
    %c0_i32 = arith.constant 0 : i32
    %c0_i32_0 = arith.constant 0 : i32
    %c0_i32_1 = arith.constant 0 : i32
    return %c0_i32, %c0_i32_0 : i32, i32
  }
  func.func @transform_3(%arg0: i32) -> (i32, i32, i32, i32) {
    %c0_i32 = arith.constant 0 : i32
    %c0_i32_0 = arith.constant 0 : i32
    %c0_i32_1 = arith.constant 0 : i32
    %c0_i32_2 = arith.constant 0 : i32
    return %arg0, %c0_i32, %c0_i32_0, %c0_i32_1 : i32, i32, i32, i32
  }
}

module attributes {stable_mosaic.version = 11 : i64} {
  func.func @_matmul_bias_act_kernel(%arg0: i32, %arg1: memref<2x976xbf16, #tpu.memory_space<vmem>>, %arg2: memref<976x2048xbf16, #tpu.memory_space<vmem>>, %arg3: memref<1x2048xf32, #tpu.memory_space<vmem>>, %arg4: memref<2x2048xbf16, #tpu.memory_space<vmem>>) attributes {dimension_semantics = [#tpu.dimension_semantics<parallel>], iteration_bounds = array<i64: 1>, scalar_prefetch = 0 : i64, scratch_operands = 0 : i64, tpu.core_type = #tpu.core_type<tc>, window_params = [{transform_indices = @transform_0, window_bounds = array<i64: 2, 976>}, {pipeline_mode = #tpu.pipeline_mode<synchronous>, transform_indices = @transform_1, window_bounds = array<i64: 976, 2048>}, {pipeline_mode = #tpu.pipeline_mode<synchronous>, transform_indices = @transform_2, window_bounds = array<i64: 1, 2048>}, {transform_indices = @transform_3, window_bounds = array<i64: 2, 2048>}]} {
    %c0 = arith.constant 0 : index
    %c0_0 = arith.constant 0 : index
    %0 = vector.load %arg1[%c0, %c0_0] : memref<2x976xbf16, #tpu.memory_space<vmem>>, vector<2x976xbf16>
    %c0_1 = arith.constant 0 : index
    %c0_2 = arith.constant 0 : index
    %1 = vector.load %arg2[%c0_1, %c0_2] : memref<976x2048xbf16, #tpu.memory_space<vmem>>, vector<976x2048xbf16>
    %cst = arith.constant dense<0.000000e+00> : vector<2x2048xf32>
    %2 = tpu.matmul %0, %1, %cst {dimension_numbers = #tpu.dot_dimension_numbers<[1], [0], [0], [1], [0, 0, 1, 1], [], []>} : vector<2x976xbf16>, vector<976x2048xbf16>, vector<2x2048xf32> -> vector<2x2048xf32>
    %c0_3 = arith.constant 0 : index
    %c0_4 = arith.constant 0 : index
    %3 = vector.load %arg3[%c0_3, %c0_4] : memref<1x2048xf32, #tpu.memory_space<vmem>>, vector<1x2048xf32>
    %4 = vector.broadcast %3 : vector<1x2048xf32> to vector<2x2048xf32>
    %5 = arith.addf %2, %4 : vector<2x2048xf32>
    %cst_5 = arith.constant 0.000000e+00 : f32
    %6 = vector.broadcast %cst_5 : f32 to vector<2x2048xf32>
    %7 = arith.maximumf %5, %6 : vector<2x2048xf32>
    %8 = arith.truncf %7 : vector<2x2048xf32> to vector<2x2048xbf16>
    %c0_6 = arith.constant 0 : index
    %c0_7 = arith.constant 0 : index
    %9 = vector.load %arg4[%c0_6, %c0_7] : memref<2x2048xbf16, #tpu.memory_space<vmem>>, vector<2x2048xbf16>
    tpu.vector_store %arg4[%c0_6, %c0_7], %8 {strides = array<i32>} : memref<2x2048xbf16, #tpu.memory_space<vmem>>, vector<2x2048xbf16>,
    return
  }
  func.func @transform_0(%arg0: i32) -> (i32, i32) {
    %c0_i32 = arith.constant 0 : i32
    %c0_i32_0 = arith.constant 0 : i32
    return %arg0, %c0_i32 : i32, i32
  }
  func.func @transform_1(%arg0: i32) -> (i32, i32) {
    %c0_i32 = arith.constant 0 : i32
    %c0_i32_0 = arith.constant 0 : i32
    %c0_i32_1 = arith.constant 0 : i32
    return %c0_i32, %c0_i32_0 : i32, i32
  }
  func.func @transform_2(%arg0: i32) -> (i32, i32) {
    %c0_i32 = arith.constant 0 : i32
    %c0_i32_0 = arith.constant 0 : i32
    %c0_i32_1 = arith.constant 0 : i32
    return %c0_i32, %c0_i32_0 : i32, i32
  }
  func.func @transform_3(%arg0: i32) -> (i32, i32) {
    %c0_i32 = arith.constant 0 : i32
    %c0_i32_0 = arith.constant 0 : i32
    return %arg0, %c0_i32 : i32, i32
  }
}

module attributes {stable_mosaic.version = 11 : i64} {
  func.func @_global_avgpool_kernel(%arg0: i32, %arg1: memref<1x1x1x2048xbf16, #tpu.memory_space<vmem>>, %arg2: memref<1x1x2048xf32, #tpu.memory_space<vmem>>) attributes {dimension_semantics = [#tpu.dimension_semantics<parallel>], iteration_bounds = array<i64: 2>, scalar_prefetch = 0 : i64, scratch_operands = 0 : i64, tpu.core_type = #tpu.core_type<tc>, window_params = [{transform_indices = @transform_0, window_bounds = array<i64: 1, 1, 1, 2048>}, {transform_indices = @transform_1, window_bounds = array<i64: 1, 1, 2048>}]} {
    %c0 = arith.constant 0 : index
    %c0_0 = arith.constant 0 : index
    %c0_1 = arith.constant 0 : index
    %c0_2 = arith.constant 0 : index
    %0 = vector.load %arg1[%c0, %c0_0, %c0_1, %c0_2] : memref<1x1x1x2048xbf16, #tpu.memory_space<vmem>>, vector<1x1x1x2048xbf16>
    %1 = vector.shape_cast %0 : vector<1x1x1x2048xbf16> to vector<1x1x2048xbf16>
    %2 = arith.extf %1 : vector<1x1x2048xbf16> to vector<1x1x2048xf32>
    %cst = arith.constant dense<0.000000e+00> : vector<1x2048xf32>
    %3 = vector.multi_reduction <add>, %2, %cst [0] : vector<1x1x2048xf32> to vector<1x2048xf32>
    %cst_3 = arith.constant dense<0.000000e+00> : vector<2048xf32>
    %4 = vector.multi_reduction <add>, %3, %cst_3 [0] : vector<1x2048xf32> to vector<2048xf32>
    %5 = vector.shape_cast %4 : vector<2048xf32> to vector<1x2048xf32>
    %cst_4 = arith.constant 1.000000e+00 : f32
    %6 = vector.broadcast %cst_4 : f32 to vector<1x2048xf32>
    %7 = arith.mulf %5, %6 : vector<1x2048xf32>
    %c0_5 = arith.constant 0 : index
    %c0_6 = arith.constant 0 : index
    %c0_7 = arith.constant 0 : index
    %8 = vector.load %arg2[%c0_5, %c0_6, %c0_7] : memref<1x1x2048xf32, #tpu.memory_space<vmem>>, vector<1x1x2048xf32>
    %9 = vector.shape_cast %8 : vector<1x1x2048xf32> to vector<1x2048xf32>
    %10 = vector.shape_cast %7 : vector<1x2048xf32> to vector<1x1x2048xf32>
    tpu.vector_store %arg2[%c0_5, %c0_6, %c0_7], %10 {strides = array<i32>} : memref<1x1x2048xf32, #tpu.memory_space<vmem>>, vector<1x1x2048xf32>,
    return
  }
  func.func @transform_0(%arg0: i32) -> (i32, i32, i32, i32) {
    %c0_i32 = arith.constant 0 : i32
    %c0_i32_0 = arith.constant 0 : i32
    %c0_i32_1 = arith.constant 0 : i32
    %c0_i32_2 = arith.constant 0 : i32
    return %arg0, %c0_i32, %c0_i32_0, %c0_i32_1 : i32, i32, i32, i32
  }
  func.func @transform_1(%arg0: i32) -> (i32, i32, i32) {
    %c0_i32 = arith.constant 0 : i32
    %c0_i32_0 = arith.constant 0 : i32
    %c0_i32_1 = arith.constant 0 : i32
    return %arg0, %c0_i32, %c0_i32_0 : i32, i32, i32
  }
}

</mosaic_0001>

<bundles_post_ra>
// kernel: shufflenet_forward.62
= control target key start
LH: loop header
LB: loop body
LE: loop exit
PB: predicated region body
PF: predicated region fallthrough
CT: control target
= control target key end

     0   :  { %8 = vsyncpa [#allocation3], 0  ;;  %s315_s0 = inlined_call_operand.vmem [shape: bf16[32,24], index: 0, kind: input, shape index: {}]   ;;  %s316_s1 = inlined_call_operand.hbm [shape: bf16[24,122], index: 1, kind: input, shape index: {}]   ;;  %s317_s2 = inlined_call_operand.hbm [shape: f32[1,122], index: 2, kind: input, shape index: {}]   ;;  %s318_s3 = inlined_call_operand.vmem [shape: bf16[32,122], index: 3, kind: output, shape index: {}]  }
   0x1   :  { %9 = vsyncpa [#allocation5], 0  ;;  %s249_s12 = smov [#allocation2]   ;;  %s201_s16 = scalar_lea.hbm %s316_s1, 192 }
   0x2   :  { %s17_s13 = sshll.u32 %s249_s12, 4  ;;  %p202_p0 = scmp.ne.s32.totalorder %s316_s1, %s201_s16  ;;  %s18_s13 = int_to_ptr.vmem [resolvable:$true] %s17_s13 }
   0x3   :  { %p205_p1 = scmp.lt.u32.totalorder %s201_s16, %s316_s1 }
   0x5   :  { %p207_p2 = pnand %p205_p1, %p202_p0 }
   0x7   :  { %210 = shalt.err (!%p207_p2)
}
   0x8   :  { %s211_s21 = scalar_lea.vmem %s18_s13, 192  ;;  %p216_p4 = scmp.lt.s32.totalorder %s18_s13, %s18_s13 }
   0x9   :  { %p212_p3 = scmp.ne.s32.totalorder %s18_s13, %s211_s21  ;;  %p217_p5 = scmp.lt.s32.totalorder %s211_s21, %s211_s21 }
   0xb   :  { %p218_p6 = por %p217_p5, %p216_p4 }
   0xd   :  { %p219_p7 = pnand %p218_p6, %p212_p3 }
   0xf   :  { %222 = shalt.err (!%p219_p7)
}
  0x10   :  { %s250_s22 = smov 64   ;;  %s251_s23 = smov 4  }
  0x11   :  { %23 = dma.hbm_to_vmem [thread:$0]  %s316_s1, 192, %s18_s13, [#allocation3], %s250_s22, %s250_s22, %s251_s23  }
  0x12   :  { %s252_s26 = smov [#allocation4]   ;;  %s223_s30 = scalar_lea.hbm %s317_s2, 16 }
  0x13   :  { %s30_s27 = sshll.u32 %s252_s26, 4  ;;  %p224_p8 = scmp.ne.s32.totalorder %s317_s2, %s223_s30  ;;  %s31_s27 = int_to_ptr.vmem [resolvable:$true] %s30_s27 }
  0x14   :  { %p227_p9 = scmp.lt.u32.totalorder %s223_s30, %s317_s2 }
  0x16   :  { %p229_p10 = pnand %p227_p9, %p224_p8 }
  0x18   :  { %232 = shalt.err (!%p229_p10)
}
  0x19   :  { %s233_s8 = scalar_lea.vmem %s31_s27, 16  ;;  %s237_s1 = scalar_lea.vmem %s31_s27, 32 }
  0x1a   :  { %p234_p11 = scmp.ne.s32.totalorder %s31_s27, %s233_s8  ;;  %p238_p12 = scmp.lt.s32.totalorder %s31_s27, %s31_s27 }
  0x1b   :  { %p239_p13 = scmp.lt.s32.totalorder %s237_s1, %s233_s8 }
  0x1d   :  { %p240_p0 = por %p239_p13, %p238_p12 }
  0x1f   :  { %p241_p1 = pnand %p240_p0, %p234_p11 }
  0x21   :  { %244 = shalt.err (!%p241_p1)
}
  0x22   :  { %33 = dma.hbm_to_vmem [thread:$0]  %s317_s2, 16, %s31_s27, [#allocation5]  }
  0x23   :  { %245 = dma.done.wait [#allocation3], 192  }
  0x24   :  { %246 = vsyncadd [#allocation3], 4294967104 }
  0x25   :  { %247 = dma.done.wait [#allocation5], 16  }
  0x26   :  { %248 = vsyncadd [#allocation5], 4294967280  ;;  %vm81_vm0 = vcmask 1043456   ;;  %v197_v0 = vld [vmem:[#allocation2] sm:$0xff]   ;;  %vm74_vm1 = vcmask 195584   ;;  %v200_v4 = vld [vmem:[%s315_s0 + $0x8] sm:$0xff]  }
  0x27   :  { %v198_v1 = vld [vmem:[#allocation2 + $0x8] ss:$0 sps:$4 sm:$0xff]   ;;  %184 = vmatprep.subr.bf16.mxu0 %v197_v0  ;;  %v199_v2 = vld [vmem:[%s315_s0] sm:$0xff]   ;;  %v165_v5 = vld [vmem:[#allocation4] ss:$0 sm:$0xff]  ;;  %vm154_vm2 = vcmask 994304  }
  0x28   :  { %185 = vmatpush3.bf16.msra.mxu0 %v197_v0  ;;  %v83_v3 = vsel %vm81_vm0, %v198_v1, 0  ;;  %188 = vmatprep.mubr.msk.bf16.mxu0 %vm74_vm1, %v199_v2 }
  0x29   :  { %192 = vmatprep.subr.msk.bf16.mxu0 %vm81_vm0, %v198_v1 }
  0x2c   :  { %187 = vmatpush3.bf16.msra.mxu0 %v83_v3 }
  0x2f   :  { %189 = vmatmul.mubr.msk.bf16.vlgmr.msra.gmra.mrb[0].mxu0 %vm74_vm1, %v200_v4 }
 0x102   :  { %v190_v6 = vpop.f32.mrb[0].mxu0 }
 0x103   :  { %v128_v7 = vadd.f32 %v190_v6, %v165_v5  ;;  %v119_v8 = vpop.f32.mrb[1].mxu0 }
 0x104   :  { %v120_v9 = vadd.f32 %v165_v5, %v119_v8  ;;  %v191_v10 = vpop.f32.mrb[2].mxu0 }
 0x105   :  { %v136_v11 = vmax.f32 %v128_v7, 0.0  ;;  %v131_v12 = vadd.f32 %v191_v10, %v165_v5  ;;  %v122_v13 = vpop.f32.mrb[3].mxu0 }
 0x106   :  { %v134_v14 = vmax.f32 %v120_v9, 0.0  ;;  %v123_v15 = vadd.f32 %v165_v5, %v122_v13 }
 0x107   :  { %v178_v16 = vpack.c.bf16 %v136_v11, %v136_v11  ;;  %v137_v17 = vmax.f32 %v131_v12, 0.0 }
 0x108   :  { %v176_v18 = vpack.c.bf16 %v134_v14, %v134_v14  ;;  %v135_v19 = vmax.f32 %v123_v15, 0.0 }
 0x109   :  { %157 = vst.msk [vmem:[%s318_s3 + $0x8] sm:$0xf] %vm154_vm2, %v178_v16  ;;  %v179_v20 = vpack.c.bf16 %v137_v17, %v137_v17 }
 0x10a   :  { %155 = vst.msk [vmem:[%s318_s3] sm:$0xf] %vm154_vm2, %v176_v18  ;;  %v177_v21 = vpack.c.bf16 %v135_v19, %v135_v19 }
 0x10b   :  { %158 = vst.msk [vmem:[%s318_s3 + $0xc] sm:$0xf] %vm154_vm2, %v179_v20 }
 0x10c   :  { %156 = vst.msk [vmem:[%s318_s3 + $0x4] sm:$0xf] %vm154_vm2, %v177_v21 }
 0x10d   :  { %163 = vsyncpa [#allocation3], 1 }
 0x10e   :  { %164 = vsyncpa [#allocation5], 1 }

// kernel: shufflenet_forward.59
= control target key start
LH: loop header
LB: loop body
LE: loop exit
PB: predicated region body
PF: predicated region fallthrough
CT: control target
= control target key end

     0   :  { %s539_s6 = smov 0   ;;  %s712_s0 = inlined_call_operand.vmem [shape: bf16[2,10,10,24], index: 0, kind: input, shape index: {}]   ;;  %s713_s1 = inlined_call_operand.vmem [shape: bf16[2,8,8,24], index: 1, kind: output, shape index: {}]  }
   0x1 LB: > { %s491_s7 = sadd.s32 4294967295, %s527_s6   ;;  %p495_p0 = scmp.ge.s32.totalorder %s527_s6, 1  ;;  %s527_s6 = sphi %s539_s6, %s11_s6  }
   0x2   : > { %p87_p1 = scmp.lt.s32.totalorder %s527_s6, 3 }
   0x4   : > { %p88_p2 = pnand %p495_p0, %p87_p1 }
   0x5   : > { %p107_p3 = scmp.lt.s32.totalorder (!%p88_p2), %s491_s7, 1  ;;  %vm137_vm0 = vsmask.f32 (!%p88_p2), 3328  ;;  %vm138_vm1 = vsmask.f32 (!%p88_p2), 7440  ;;  %vm284_vm2 = vcmask (!%p88_p2), 1042432  }
   0x6   : > { %91 = sbr.rel (%p88_p2) target bundleno = 73 (0x49), region = 24  ;;  %vm285_vm3 = vcmask (!%p88_p2), 1046532   ;;  %vm580_vm5 = vmor (!%p88_p2), %vm137_vm0, %vm138_vm1  ;;  %vm427_vm6 = vcmask (!%p88_p2), 191488  }
   0x7   : > { %vm571_vm4 = vmor (!%p88_p2), %vm284_vm2, %vm285_vm3 }
   0xd   : > { %s719_s7 = smov (!%p107_p3, %s491_s7), 1 }
   0xe   : > { %s512_s8 = smul.u32 80, %s719_s7  ;;  %s511_s12 = sshll.u32 %s719_s7, 5 }
   0xf   : > { %s645_s15 = scalar_lea.vmem %s713_s1, %s511_s12 }
  0x10   : > { %s553_s11 = scalar_lea.vmem %s712_s0, %s512_s8 }
  0x11   : > { %v117_v0 = vld [vmem:[%s553_s11] sm:$0xf]  ;;  %v118_v1 = vld [vmem:[%s553_s11 + $0x4] sm:$0x1]  ;;  %v558_v2 = vld [vmem:[%s553_s11 + $0x8] sm:$0xf] }
  0x12   : > { %v120_v3 = vld [vmem:[%s553_s11 + $0xc] sm:$0x1]  ;;  %v562_v4 = vld [vmem:[%s553_s11 + $0x10] sm:$0xf]  ;;  %v141_v5 = vshrl.u32 %v117_v0, 16  ;;  %v144_v6 = vshll.u32 %v117_v0, 16 }
  0x13   : > { %v150_v7 = vshll.u32 %v118_v1, 16  ;;  %v155_v8 = vshrl.u32 %v558_v2, 16  ;;  %v122_v9 = vld [vmem:[%s553_s11 + $0x14] sm:$0x1]  ;;  %v158_v10 = vshll.u32 %v558_v2, 16  ;;  %v164_v11 = vshll.u32 %v120_v3, 16 }
  0x14   : > { %v169_v12 = vshrl.u32 %v562_v4, 16  ;;  %v172_v13 = vshll.u32 %v562_v4, 16  ;;  %v143_v14 = vrot.slane %v141_v5, 4  ;;  %v146_v15 = vrot.slane %v144_v6, 5  ;;  %v576_v27 = vld [vmem:[%s553_s11 + $0x18] sm:$0xf] }
  0x15   : > { %v152_v16 = vrot.slane %v150_v7, 5  ;;  %v157_v17 = vrot.slane %v155_v8, 4  ;;  %v160_v18 = vrot.slane %v158_v10, 5  ;;  %v166_v19 = vrot.slane %v164_v11, 5  ;;  %v124_v33 = vld [vmem:[%s553_s11 + $0x1c] sm:$0x1] }
  0x16   : > { %v171_v20 = vrot.slane %v169_v12, 4  ;;  %v174_v21 = vrot.slane %v172_v13, 5  ;;  %v147_v23 = vor.u32 %v146_v15, %v143_v14  ;;  %v178_v24 = vshll.u32 %v122_v9, 16  ;;  %v604_v50 = vld [vmem:[%s553_s11 + $0x20] sm:$0xf] }
  0x17   : > { %v499_v25 = vrot.slane %v117_v0, 9  ;;  %v289_v26 = vrot.slane %v118_v1, 5  ;;  %v161_v29 = vor.u32 %v160_v18, %v157_v17  ;;  %v500_v31 = vrot.slane %v558_v2, 9  ;;  %v126_v55 = vld [vmem:[%s553_s11 + $0x24] sm:$0x1] }
  0x18   : > { %v175_v30 = vor.u32 %v174_v21, %v171_v20  ;;  %v293_v32 = vrot.slane %v120_v3, 5  ;;  %v148_v34 = vrot.slane %v147_v23, 4  ;;  %v180_v35 = vrot.slane %v178_v24, 5  ;;  %v616_v3 = vld [vmem:[%s553_s11 + $0x28] sm:$0xf] }
  0x19   : > { %v290_v36 = vsel %vm571_vm4, %v499_v25, %v289_v26  ;;  %v501_v37 = vrot.slane %v562_v4, 9  ;;  %v162_v38 = vrot.slane %v161_v29, 4  ;;  %v297_v41 = vrot.slane %v122_v9, 5  ;;  %v128_v23 = vld [vmem:[%s553_s11 + $0x2c] sm:$0x1] }
  0x1a   : > { %v176_v39 = vrot.slane %v175_v30, 4  ;;  %v294_v40 = vsel %vm571_vm4, %v500_v31, %v293_v32  ;;  %v153_v42 = vsel %vm580_vm5, %v148_v34, %v152_v16  ;;  %v183_v43 = vshrl.u32 %v576_v27, 16 }
  0x1b   : > { %v186_v44 = vshll.u32 %v576_v27, 16  ;;  %v192_v45 = vshll.u32 %v124_v33, 16  ;;  %v167_v46 = vsel %vm580_vm5, %v162_v38, %v166_v19  ;;  %v260_v48 = vmax.bf16 %v153_v42, %v117_v0  ;;  %v640_v42 = vld [vmem:[%s553_s11 + $0x30] sm:$0xf] }
  0x1c   : > { %v181_v47 = vsel %vm580_vm5, %v176_v39, %v180_v35  ;;  %v601_v49 = vsel %vm571_vm4, %v501_v37, %v297_v41  ;;  %v261_v51 = vmax.bf16 %v167_v46, %v558_v2  ;;  %v185_v53 = vrot.slane %v183_v43, 4 }
  0x1d   : > { %v262_v52 = vmax.bf16 %v181_v47, %v562_v4  ;;  %v188_v54 = vrot.slane %v186_v44, 5  ;;  %v327_v56 = vmax.bf16 %v290_v36, %v260_v48  ;;  %v194_v57 = vrot.slane %v192_v45, 5 }
  0x1e   : > { %v502_v58 = vrot.slane %v576_v27, 9  ;;  %v301_v59 = vrot.slane %v124_v33, 5  ;;  %v328_v60 = vmax.bf16 %v294_v40, %v261_v51  ;;  %v197_v63 = vshrl.u32 %v604_v50, 16  ;;  %v130_v51 = vld [vmem:[%s553_s11 + $0x34] sm:$0x1] }
  0x1f   : > { %v329_v61 = vmax.bf16 %v601_v49, %v262_v52  ;;  %v189_v62 = vor.u32 %v188_v54, %v185_v53  ;;  %v335_v0 = vmax.bf16 %v327_v56, %v558_v2  ;;  %v200_v5 = vshll.u32 %v604_v50, 16 }
  0x20   : > { %v302_v1 = vsel %vm571_vm4, %v502_v58, %v301_v59  ;;  %v206_v6 = vshll.u32 %v126_v55, 16  ;;  %v336_v7 = vmax.bf16 %v328_v60, %v562_v4  ;;  %v199_v10 = vrot.slane %v197_v63, 4  ;;  %v656_v58 = vld [vmem:[%s553_s11 + $0x38] sm:$0xf] }
  0x21   : > { %v337_v8 = vmax.bf16 %v329_v61, %v576_v27  ;;  %v190_v9 = vrot.slane %v189_v62, 4  ;;  %v358_v11 = vmax.bf16 %v335_v0, %v167_v46  ;;  %v202_v12 = vrot.slane %v200_v5, 5 }
  0x22   : > { %v208_v2 = vrot.slane %v206_v6, 5  ;;  %v503_v13 = vrot.slane %v604_v50, 9  ;;  %v359_v14 = vmax.bf16 %v336_v7, %v181_v47  ;;  %v305_v16 = vrot.slane %v126_v55, 5  ;;  %v132_v6 = vld [vmem:[%s553_s11 + $0x3c] sm:$0x1] }
  0x23   : > { %v195_v15 = vsel %vm580_vm5, %v190_v9, %v194_v57  ;;  %v211_v17 = vshrl.u32 %v616_v3, 16  ;;  %v373_v18 = vmax.bf16 %v358_v11, %v294_v40  ;;  %v203_v21 = vor.u32 %v202_v12, %v199_v10 }
  0x24   : > { %v263_v19 = vmax.bf16 %v195_v15, %v576_v27  ;;  %v360_v20 = vmax.bf16 %v337_v8, %v195_v15  ;;  %v374_v24 = vmax.bf16 %v359_v14, %v601_v49  ;;  %v306_v25 = vsel %vm571_vm4, %v503_v13, %v305_v16 }
  0x25   : > { %v213_v26 = vrot.slane %v211_v17, 4  ;;  %v214_v29 = vshll.u32 %v616_v3, 16  ;;  %v381_v30 = vmax.bf16 %v373_v18, %v562_v4  ;;  %v204_v33 = vrot.slane %v203_v21, 4  ;;  %v133_v17 = vld [vmem:[%s553_s11 + $0x40] sm:$0xf] }
  0x26   : > { %v330_v31 = vmax.bf16 %v302_v1, %v263_v19  ;;  %v375_v32 = vmax.bf16 %v360_v20, %v302_v1  ;;  %v382_v34 = vmax.bf16 %v374_v24, %v576_v27  ;;  %v220_v36 = vshll.u32 %v128_v23, 16 }
  0x27   : > { %v216_v35 = vrot.slane %v214_v29, 5  ;;  %v504_v37 = vrot.slane %v616_v3, 9  ;;  %v404_v38 = vmax.bf16 %v381_v30, %v181_v47  ;;  %v209_v40 = vsel %vm580_vm5, %v204_v33, %v208_v2  ;;  %v134_v29 = vld [vmem:[%s553_s11 + $0x44] sm:$0x1] }
  0x28   : > { %v338_v39 = vmax.bf16 %v330_v31, %v604_v50  ;;  %v383_v41 = vmax.bf16 %v375_v32, %v604_v50  ;;  %v405_v4 = vmax.bf16 %v382_v34, %v195_v15  ;;  %v264_v27 = vmax.bf16 %v209_v40, %v604_v50 }
  0x29   : > { %v217_v43 = vor.u32 %v216_v35, %v213_v26  ;;  %v222_v44 = vrot.slane %v220_v36, 5  ;;  %v419_v45 = vmax.bf16 %v404_v38, %v601_v49  ;;  %v309_v48 = vrot.slane %v128_v23, 5 }
  0x2a   : > { %v361_v46 = vmax.bf16 %v338_v39, %v209_v40  ;;  %v406_v47 = vmax.bf16 %v383_v41, %v209_v40  ;;  %v420_v52 = vmax.bf16 %v405_v4, %v302_v1  ;;  %v331_v53 = vmax.bf16 %v306_v25, %v264_v27  ;;  %v135_v41 = vld [vmem:[%s553_s11 + $0x48] sm:$0xf] }
  0x2b   : > { %v218_v54 = vrot.slane %v217_v43, 4  ;;  %v225_v55 = vshrl.u32 %v640_v42, 16  ;;  %428 = vst.msk [vmem:[%s645_s15] sm:$0xf] %vm427_vm6, %v419_v45  ;;  %v310_v57 = vsel %vm571_vm4, %v504_v37, %v309_v48  ;;  %v228_v49 = vshll.u32 %v640_v42, 16 }
  0x2c   : > { %v376_v50 = vmax.bf16 %v361_v46, %v306_v25  ;;  %v421_v56 = vmax.bf16 %v406_v47, %v306_v25  ;;  %429 = vst.msk [vmem:[%s645_s15 + $0x4] sm:$0xf] %vm427_vm6, %v420_v52  ;;  %v339_v59 = vmax.bf16 %v331_v53, %v616_v3  ;;  %v234_v62 = vshll.u32 %v130_v51, 16  ;;  %v136_v45 = vld [vmem:[%s553_s11 + $0x4c] sm:$0x1] }
  0x2d   : > { %v223_v60 = vsel %vm580_vm5, %v218_v54, %v222_v44  ;;  %v227_v61 = vrot.slane %v225_v55, 4  ;;  %v230_v1 = vrot.slane %v228_v49, 5  ;;  %v505_v5 = vrot.slane %v640_v42, 9 }
  0x2e   : > { %430 = vst.msk [vmem:[%s645_s15 + $0x8] sm:$0xf] %vm427_vm6, %v421_v56  ;;  %v265_v63 = vmax.bf16 %v223_v60, %v616_v3  ;;  %v384_v0 = vmax.bf16 %v376_v50, %v616_v3  ;;  %v362_v7 = vmax.bf16 %v339_v59, %v223_v60  ;;  %v236_v8 = vrot.slane %v234_v62, 5 }
  0x2f   : > { %v313_v9 = vrot.slane %v130_v51, 5  ;;  %v239_v10 = vshrl.u32 %v656_v58, 16  ;;  %v231_v2 = vor.u32 %v230_v1, %v227_v61  ;;  %v242_v13 = vshll.u32 %v656_v58, 16 }
  0x30   : > { %v332_v11 = vmax.bf16 %v310_v57, %v265_v63  ;;  %v407_v12 = vmax.bf16 %v384_v0, %v223_v60  ;;  %v377_v14 = vmax.bf16 %v362_v7, %v310_v57  ;;  %v248_v16 = vshll.u32 %v132_v6, 16 }
  0x31   : > { %v314_v3 = vsel %vm571_vm4, %v505_v5, %v313_v9  ;;  %v241_v15 = vrot.slane %v239_v10, 4  ;;  %v232_v20 = vrot.slane %v231_v2, 4  ;;  %v244_v21 = vrot.slane %v242_v13, 5 }
  0x32   : > { %v340_v18 = vmax.bf16 %v332_v11, %v640_v42  ;;  %v422_v19 = vmax.bf16 %v407_v12, %v310_v57  ;;  %v385_v23 = vmax.bf16 %v377_v14, %v640_v42  ;;  %v250_v24 = vrot.slane %v248_v16, 5 }
  0x33   : > { %v506_v25 = vrot.slane %v656_v58, 9  ;;  %v317_v26 = vrot.slane %v132_v6, 5  ;;  %v237_v30 = vsel %vm580_vm5, %v232_v20, %v236_v8  ;;  %v245_v31 = vor.u32 %v244_v21, %v241_v15 }
  0x34   : > { %431 = vst.msk [vmem:[%s645_s15 + $0xc] sm:$0xf] %vm427_vm6, %v422_v19  ;;  %v344_v32 = vshrl.u32 %v133_v17, 16  ;;  %v347_v33 = vshll.u32 %v133_v17, 16  ;;  %v266_v34 = vmax.bf16 %v237_v30, %v640_v42  ;;  %v363_v35 = vmax.bf16 %v340_v18, %v237_v30 }
  0x35   : > { %v408_v36 = vmax.bf16 %v385_v23, %v237_v30  ;;  %v246_v37 = vrot.slane %v245_v31, 4  ;;  %v353_v40 = vshll.u32 %v134_v29, 16  ;;  %v318_v44 = vsel %vm571_vm4, %v506_v25, %v317_v26 }
  0x36   : > { %v346_v38 = vrot.slane %v344_v32, 4  ;;  %v349_v39 = vrot.slane %v347_v33, 5  ;;  %v333_v4 = vmax.bf16 %v314_v3, %v266_v34  ;;  %v378_v27 = vmax.bf16 %v363_v35, %v314_v3 }
  0x37   : > { %v423_v43 = vmax.bf16 %v408_v36, %v314_v3  ;;  %v251_v46 = vsel %vm580_vm5, %v246_v37, %v250_v24  ;;  %v355_v42 = vrot.slane %v353_v40, 5  ;;  %v507_v48 = vrot.slane %v133_v17, 9 }
  0x38   : > { %v350_v47 = vor.u32 %v349_v39, %v346_v38  ;;  %v341_v51 = vmax.bf16 %v333_v4, %v656_v58  ;;  %v267_v52 = vmax.bf16 %v251_v46, %v656_v58  ;;  %v386_v53 = vmax.bf16 %v378_v27, %v656_v58 }
  0x39   : > { %432 = vst.msk [vmem:[%s645_s15 + $0x10] sm:$0xf] %vm427_vm6, %v423_v43  ;;  %v390_v54 = vshrl.u32 %v135_v41, 16  ;;  %v370_v50 = vrot.slane %v134_v29, 5  ;;  %v393_v56 = vshll.u32 %v135_v41, 16  ;;  %v399_v57 = vshll.u32 %v136_v45, 16 }
  0x3a   : > { %v351_v55 = vrot.slane %v350_v47, 4  ;;  %v334_v49 = vmax.bf16 %v318_v44, %v267_v52  ;;  %v364_v59 = vmax.bf16 %v341_v51, %v251_v46  ;;  %v409_v60 = vmax.bf16 %v386_v53, %v251_v46 }
  0x3b   : > { %v392_v61 = vrot.slane %v390_v54, 4  ;;  %v395_v63 = vrot.slane %v393_v56, 5  ;;  %v371_v58 = vsel %vm571_vm4, %v507_v48, %v370_v50  ;;  %v401_v7 = vrot.slane %v399_v57, 5 }
  0x3c   : > { %v356_v62 = vsel %vm580_vm5, %v351_v55, %v355_v42  ;;  %v379_v0 = vmax.bf16 %v364_v59, %v318_v44  ;;  %v424_v1 = vmax.bf16 %v409_v60, %v318_v44  ;;  %v342_v5 = vmax.bf16 %v334_v49, %v133_v17 }
  0x3d   : > { %v396_v6 = vor.u32 %v395_v63, %v392_v61  ;;  %v508_v11 = vrot.slane %v135_v41, 9  ;;  %v416_v12 = vrot.slane %v136_v45, 5 }
  0x3e   : > { %433 = vst.msk [vmem:[%s645_s15 + $0x14] sm:$0xf] %vm427_vm6, %v424_v1  ;;  %v365_v8 = vmax.bf16 %v356_v62, %v342_v5  ;;  %v387_v9 = vmax.bf16 %v379_v0, %v133_v17 }
  0x3f   : > { %v397_v10 = vrot.slane %v396_v6, 4  ;;  %v417_v16 = vsel %vm571_vm4, %v508_v11, %v416_v12 }
  0x40   : > { %v380_v2 = vmax.bf16 %v371_v58, %v365_v8  ;;  %v410_v13 = vmax.bf16 %v387_v9, %v356_v62 }
  0x41   : > { %v402_v14 = vsel %vm580_vm5, %v397_v10, %v401_v7 }
  0x42   : > { %v425_v3 = vmax.bf16 %v410_v13, %v371_v58  ;;  %v388_v15 = vmax.bf16 %v380_v2, %v135_v41 }
  0x44   : > { %434 = vst.msk [vmem:[%s645_s15 + $0x18] sm:$0xf] %vm427_vm6, %v425_v3  ;;  %v411_v18 = vmax.bf16 %v402_v14, %v388_v15 }
  0x46   : > { %v426_v19 = vmax.bf16 %v417_v16, %v411_v18 }
  0x48   : > { %435 = vst.msk [vmem:[%s645_s15 + $0x1c] sm:$0xf] %vm427_vm6, %v426_v19 }
  0x49 PF: > { %s11_s6 = sadd.s32 1, %s527_s6  }
  0x4a   : > { %p8_p4 = scmp.ge.s32.totalorder %s11_s6, 4  }
  0x4c   :  { %10 = sbr.rel (!%p8_p4) target bundleno = 1 (0x1), region = 54 }

// kernel: shufflenet_forward.58
= control target key start
LH: loop header
LB: loop body
LE: loop exit
PB: predicated region body
PF: predicated region fallthrough
CT: control target
= control target key end

     0   :  { %8 = vsyncpa [#allocation3], 0  ;;  %s467_s12 = smov [#allocation2]   ;;  %s605_s0 = inlined_call_operand.vmem [shape: bf16[128,36], index: 0, kind: input, shape index: {}]   ;;  %s606_s1 = inlined_call_operand.vmem [shape: bf16[36,24], index: 1, kind: input, shape index: {}]   ;;  %s607_s2 = inlined_call_operand.hbm [shape: f32[1,24], index: 2, kind: input, shape index: {}]   ;;  %s608_s3 = inlined_call_operand.vmem [shape: bf16[128,24], index: 3, kind: output, shape index: {}]  }
   0x1   :  { %s19_s13 = sshll.u32 %s467_s12, 4  ;;  %s443_s16 = scalar_lea.hbm %s607_s2, 16  ;;  %s20_s13 = int_to_ptr.vmem [resolvable:$true] %s19_s13 }
   0x2   :  { %p444_p0 = scmp.ne.s32.totalorder %s607_s2, %s443_s16  ;;  %p447_p1 = scmp.lt.u32.totalorder %s443_s16, %s607_s2 }
   0x4   :  { %p449_p2 = pnand %p447_p1, %p444_p0 }
   0x6   :  { %452 = shalt.err (!%p449_p2)
}
   0x7   :  { %s453_s21 = scalar_lea.vmem %s20_s13, 16  ;;  %s457_s22 = scalar_lea.vmem %s20_s13, 32 }
   0x8   :  { %p454_p3 = scmp.ne.s32.totalorder %s20_s13, %s453_s21  ;;  %p458_p4 = scmp.lt.s32.totalorder %s20_s13, %s20_s13 }
   0x9   :  { %p459_p5 = scmp.lt.s32.totalorder %s457_s22, %s453_s21 }
   0xb   :  { %p460_p6 = por %p459_p5, %p458_p4 }
   0xd   :  { %p461_p7 = pnand %p460_p6, %p454_p3 }
   0xf   :  { %464 = shalt.err (!%p461_p7)
}
  0x10   :  { %22 = dma.hbm_to_vmem [thread:$0]  %s607_s2, 16, %s20_s13, [#allocation3]  }
  0x11   :  { %465 = dma.done.wait [#allocation3], 16  }
  0x12   :  { %466 = vsyncadd [#allocation3], 4294967280  ;;  %v432_v0 = vld [vmem:[%s606_s1] sm:$0xff]   ;;  %v433_v1 = vld [vmem:[%s606_s1 + $0x8] sm:$0xff]   ;;  %vm110_vm0 = vcmask 293888   ;;  %vm135_vm1 = vcmask 1041408  }
  0x13   :  { %401 = vmatprep.subr.bf16.mxu0 %v432_v0  ;;  %423 = vmatprep.subr.bf16.mxu1 %v432_v0  ;;  %v434_v2 = vld [vmem:[%s606_s1 + $0x10] ss:$0 sps:$4 sm:$0x33]   ;;  %v435_v3 = vld [vmem:[%s605_s0] sm:$0xff]   ;;  %v437_v6 = vld [vmem:[%s605_s0 + $0x8] sm:$0xff]   ;;  %vm316_vm2 = vcmask 191488  }
  0x14   :  { %402 = vmatpush3.bf16.msra.mxu0 %v432_v0  ;;  %426 = vmatpush3.bf16.msra.mxu1 %v432_v0  ;;  %v436_v4 = vld [vmem:[%s605_s0 + $0x20] sm:$0xff]   ;;  %v137_v5 = vsel %vm135_vm1, %v434_v2, 0  ;;  %v438_v7 = vld [vmem:[%s605_s0 + $0x28] sm:$0xff]   ;;  %v439_v8 = vld [vmem:[%s605_s0 + $0x10] sm:$0xff]  }
  0x15   :  { %403 = vmatprep.subr.bf16.mxu0 %v433_v1  ;;  %424 = vmatprep.subr.bf16.mxu1 %v433_v1  ;;  %v440_v9 = vld [vmem:[%s605_s0 + $0x30] sm:$0xff]   ;;  %v441_v10 = vld [vmem:[%s605_s0 + $0x18] sm:$0xff]   ;;  %v338_v12 = vld [vmem:[#allocation2] ss:$0 sm:$0xff] }
  0x16   :  { %407 = vmatprep.mubr.msk.bf16.mxu0 %vm110_vm0, %v435_v3  ;;  %415 = vmatprep.mubr.msk.bf16.mxu1 %vm110_vm0, %v436_v4  ;;  %v442_v11 = vld [vmem:[%s605_s0 + $0x38] sm:$0xff]  }
  0x18   :  { %404 = vmatpush3.bf16.msra.mxu0 %v433_v1  ;;  %427 = vmatpush3.bf16.msra.mxu1 %v433_v1 }
  0x19   :  { %429 = vmatprep.subr.msk.bf16.mxu0 %vm135_vm1, %v434_v2  ;;  %430 = vmatprep.subr.msk.bf16.mxu1 %vm135_vm1, %v434_v2 }
  0x1c   :  { %406 = vmatpush3.bf16.msra.mxu0 %v137_v5  ;;  %428 = vmatpush3.bf16.msra.mxu1 %v137_v5 }
  0x1f   :  { %408 = vmatmul.mubr.msk.bf16.vlgmr.msra.gmra.mrb[0].mxu0 %vm110_vm0, %v437_v6  ;;  %416 = vmatmul.mubr.msk.bf16.vlgmr.msra.gmra.mrb[0].mxu1 %vm110_vm0, %v438_v7 }
  0x20   :  { %411 = vmatprep.mubr.msk.bf16.mxu0 %vm110_vm0, %v439_v8  ;;  %419 = vmatprep.mubr.msk.bf16.mxu1 %vm110_vm0, %v440_v9 }
  0x27   :  { %412 = vmatmul.mubr.msk.bf16.gmra.mrb[4].mxu0 %vm110_vm0, %v441_v10  ;;  %420 = vmatmul.mubr.msk.bf16.gmra.mrb[4].mxu1 %vm110_vm0, %v442_v11 }
  0xf2   :  { %v409_v13 = vpop.f32.mrb[0].mxu0  ;;  %v417_v14 = vpop.f32.mrb[0].mxu1 }
  0xf3   :  { %v182_v15 = vadd.f32 %v409_v13, %v338_v12  ;;  %v214_v16 = vadd.f32 %v417_v14, %v338_v12  ;;  %v173_v17 = vpop.f32.mrb[1].mxu0  ;;  %v205_v18 = vpop.f32.mrb[1].mxu1 }
  0xf4   :  { %v174_v19 = vadd.f32 %v338_v12, %v173_v17  ;;  %v206_v20 = vadd.f32 %v338_v12, %v205_v18  ;;  %v410_v21 = vpop.f32.mrb[2].mxu0  ;;  %v418_v22 = vpop.f32.mrb[2].mxu1 }
  0xf5   :  { %v238_v23 = vmax.f32 %v182_v15, 0.0  ;;  %v246_v24 = vmax.f32 %v214_v16, 0.0  ;;  %v185_v25 = vadd.f32 %v410_v21, %v338_v12  ;;  %v217_v26 = vadd.f32 %v418_v22, %v338_v12  ;;  %v176_v27 = vpop.f32.mrb[3].mxu0  ;;  %v208_v28 = vpop.f32.mrb[3].mxu1 }
  0xf6   :  { %v236_v29 = vmax.f32 %v174_v19, 0.0  ;;  %v244_v30 = vmax.f32 %v206_v20, 0.0  ;;  %v177_v31 = vadd.f32 %v338_v12, %v176_v27  ;;  %v209_v32 = vadd.f32 %v338_v12, %v208_v28 }
  0xf7   :  { %v376_v33 = vpack.c.bf16 %v238_v23, %v238_v23  ;;  %v384_v34 = vpack.c.bf16 %v246_v24, %v246_v24  ;;  %v239_v35 = vmax.f32 %v185_v25, 0.0  ;;  %v247_v36 = vmax.f32 %v217_v26, 0.0 }
  0xf8   :  { %v374_v37 = vpack.c.bf16 %v236_v29, %v236_v29  ;;  %v382_v38 = vpack.c.bf16 %v244_v30, %v244_v30  ;;  %v237_v39 = vmax.f32 %v177_v31, 0.0  ;;  %v245_v40 = vmax.f32 %v209_v32, 0.0 }
  0xf9   :  { %319 = vst.msk [vmem:[%s608_s3 + $0x8] sm:$0xf] %vm316_vm2, %v376_v33  ;;  %327 = vst.msk [vmem:[%s608_s3 + $0x28] sm:$0xf] %vm316_vm2, %v384_v34  ;;  %v377_v41 = vpack.c.bf16 %v239_v35, %v239_v35  ;;  %v385_v42 = vpack.c.bf16 %v247_v36, %v247_v36 }
  0xfa   :  { %317 = vst.msk [vmem:[%s608_s3] sm:$0xf] %vm316_vm2, %v374_v37  ;;  %325 = vst.msk [vmem:[%s608_s3 + $0x20] sm:$0xf] %vm316_vm2, %v382_v38  ;;  %v375_v43 = vpack.c.bf16 %v237_v39, %v237_v39  ;;  %v383_v44 = vpack.c.bf16 %v245_v40, %v245_v40  ;;  %v413_v45 = vpop.f32.mrb[4].mxu0  ;;  %v421_v46 = vpop.f32.mrb[4].mxu1 }
  0xfb   :  { %320 = vst.msk [vmem:[%s608_s3 + $0xc] sm:$0xf] %vm316_vm2, %v377_v41  ;;  %328 = vst.msk [vmem:[%s608_s3 + $0x2c] sm:$0xf] %vm316_vm2, %v385_v42  ;;  %v198_v47 = vadd.f32 %v413_v45, %v338_v12  ;;  %v230_v48 = vadd.f32 %v421_v46, %v338_v12  ;;  %v189_v49 = vpop.f32.mrb[5].mxu0  ;;  %v221_v50 = vpop.f32.mrb[5].mxu1 }
  0xfc   :  { %318 = vst.msk [vmem:[%s608_s3 + $0x4] sm:$0xf] %vm316_vm2, %v375_v43  ;;  %326 = vst.msk [vmem:[%s608_s3 + $0x24] sm:$0xf] %vm316_vm2, %v383_v44  ;;  %v190_v51 = vadd.f32 %v338_v12, %v189_v49  ;;  %v222_v52 = vadd.f32 %v338_v12, %v221_v50  ;;  %v414_v53 = vpop.f32.mrb[6].mxu0  ;;  %v422_v54 = vpop.f32.mrb[6].mxu1 }
  0xfd   :  { %v242_v55 = vmax.f32 %v198_v47, 0.0  ;;  %v250_v56 = vmax.f32 %v230_v48, 0.0  ;;  %v201_v57 = vadd.f32 %v414_v53, %v338_v12  ;;  %v233_v58 = vadd.f32 %v422_v54, %v338_v12  ;;  %v192_v59 = vpop.f32.mrb[7].mxu0  ;;  %v224_v60 = vpop.f32.mrb[7].mxu1 }
  0xfe   :  { %v240_v61 = vmax.f32 %v190_v51, 0.0  ;;  %v248_v62 = vmax.f32 %v222_v52, 0.0  ;;  %v193_v63 = vadd.f32 %v338_v12, %v192_v59  ;;  %v225_v0 = vadd.f32 %v338_v12, %v224_v60 }
  0xff   :  { %v380_v1 = vpack.c.bf16 %v242_v55, %v242_v55  ;;  %v388_v2 = vpack.c.bf16 %v250_v56, %v250_v56  ;;  %v243_v3 = vmax.f32 %v201_v57, 0.0  ;;  %v251_v4 = vmax.f32 %v233_v58, 0.0 }
 0x100   :  { %v378_v5 = vpack.c.bf16 %v240_v61, %v240_v61  ;;  %v386_v6 = vpack.c.bf16 %v248_v62, %v248_v62  ;;  %v241_v7 = vmax.f32 %v193_v63, 0.0  ;;  %v249_v8 = vmax.f32 %v225_v0, 0.0 }
 0x101   :  { %323 = vst.msk [vmem:[%s608_s3 + $0x18] sm:$0xf] %vm316_vm2, %v380_v1  ;;  %331 = vst.msk [vmem:[%s608_s3 + $0x38] sm:$0xf] %vm316_vm2, %v388_v2  ;;  %v381_v9 = vpack.c.bf16 %v243_v3, %v243_v3  ;;  %v389_v10 = vpack.c.bf16 %v251_v4, %v251_v4 }
 0x102   :  { %321 = vst.msk [vmem:[%s608_s3 + $0x10] sm:$0xf] %vm316_vm2, %v378_v5  ;;  %329 = vst.msk [vmem:[%s608_s3 + $0x30] sm:$0xf] %vm316_vm2, %v386_v6  ;;  %v379_v11 = vpack.c.bf16 %v241_v7, %v241_v7  ;;  %v387_v12 = vpack.c.bf16 %v249_v8, %v249_v8 }
 0x103   :  { %324 = vst.msk [vmem:[%s608_s3 + $0x1c] sm:$0xf] %vm316_vm2, %v381_v9  ;;  %332 = vst.msk [vmem:[%s608_s3 + $0x3c] sm:$0xf] %vm316_vm2, %v389_v10 }
 0x104   :  { %322 = vst.msk [vmem:[%s608_s3 + $0x14] sm:$0xf] %vm316_vm2, %v379_v11  ;;  %330 = vst.msk [vmem:[%s608_s3 + $0x34] sm:$0xf] %vm316_vm2, %v387_v12 }
 0x105   :  { %337 = vsyncpa [#allocation3], 1 }

// kernel: shufflenet_forward.63
= control target key start
LH: loop header
LB: loop body
LE: loop exit
PB: predicated region body
PF: predicated region fallthrough
CT: control target
= control target key end

     0   :  { %8 = vsyncpa [#allocation3], 0  ;;  %s839_s0 = inlined_call_operand.vmem [shape: bf16[2,6,6,122], index: 0, kind: input, shape index: {}]   ;;  %s840_s1 = inlined_call_operand.hbm [shape: f32[9,1,122], index: 1, kind: input, shape index: {}]   ;;  %s841_s2 = inlined_call_operand.hbm [shape: f32[1,122], index: 2, kind: input, shape index: {}]   ;;  %s842_s3 = inlined_call_operand.vmem [shape: bf16[2,4,4,122], index: 3, kind: output, shape index: {}]  }
   0x1   :  { %9 = vsyncpa [#allocation5], 0  ;;  %s672_s12 = smov 0  }
   0x2 LB: > { %s678_s13 = sadd.s32 4294967295, %s646_s12   ;;  %p521_p0 = scmp.ge.s32.totalorder %s646_s12, 1  ;;  %s646_s12 = sphi %s672_s12, %s15_s12  }
   0x3   : > { %p114_p1 = scmp.lt.s32.totalorder %s646_s12, 3  ;;  %s648_s14 = smov [#allocation2]  }
   0x4   : > { %s126_s15 = sshll.u32 %s648_s14, 4  ;;  %p843_p3 = scmp.eq.s32.totalorder %s678_s13, 0  ;;  %s127_s15 = int_to_ptr.vmem [resolvable:$true] %s126_s15 }
   0x5   : > { %p682_p2 = pnand %p521_p0, %p114_p1  ;;  %s649_s17 = smov [#allocation4]  }
   0x6   : > { %s140_s18 = sshll.u32 %s649_s17, 4  ;;  %s576_s22 = scalar_lea.hbm %s840_s1, 144  ;;  %s695_s18 = int_to_ptr.vmem [resolvable:$true] %s140_s18 }
   0x7   : > { %s845_s16 = scalar_select %p682_p2, 1, 0 }
   0x8   : > { %p553_p4 = pneg %p682_p2  ;;  %p577_p6 = scmp.ne.s32.totalorder %s840_s1, %s576_s22 }
   0x9   : > { %p583_p10 = scmp.lt.u32.totalorder %s576_s22, %s840_s1 }
   0xa   : > { %p691_p5 = pnand %p843_p3, %p553_p4 }
   0xc   : > { %p578_p7 = pneg %p691_p5 }
   0xe   : > { %p579_p8 = pnand %p578_p7, %p577_p6 }
  0x10   : > { %p580_p9 = pneg %p579_p8 }
  0x12   : > { %p585_p11 = pnand %p583_p10, %p580_p9 }
  0x14   : > { %588 = shalt.err (!%p585_p11)
}
  0x15   : > { %s589_s27 = scalar_lea.vmem %s127_s15, 144  ;;  %s596_s28 = scalar_lea.vmem %s127_s15, 160 }
  0x16   : > { %p590_p12 = scmp.ne.s32.totalorder %s127_s15, %s589_s27  ;;  %p597_p1 = scmp.lt.s32.totalorder %s127_s15, %s127_s15 }
  0x17   : > { %p598_p4 = scmp.lt.s32.totalorder %s596_s28, %s589_s27 }
  0x18   : > { %p592_p13 = pnand %p590_p12, %p578_p7 }
  0x19   : > { %p599_p3 = por %p598_p4, %p597_p1 }
  0x1a   : > { %p593_p0 = pneg %p592_p13 }
  0x1c   : > { %p600_p2 = pnand %p599_p3, %p593_p0 }
  0x1e   : > { %603 = shalt.err (!%p600_p2)
}
  0x1f   : > { %s650_s29 = smov 16   ;;  %s651_s30 = smov 1  }
  0x20   : > { %556 = dma.hbm_to_vmem [thread:$0]  (!%p691_p5), %s840_s1, 144, %s127_s15, [#allocation3], %s650_s29, %s650_s29, %s651_s30  }
  0x21   : > { %s604_s8 = scalar_lea.hbm %s841_s2, 16 }
  0x22   : > { %p605_p6 = scmp.ne.s32.totalorder %s841_s2, %s604_s8  ;;  %p611_p8 = scmp.lt.u32.totalorder %s604_s8, %s841_s2 }
  0x24   : > { %p607_p2 = pnand %p605_p6, %p578_p7 }
  0x26   : > { %p608_p3 = pneg %p607_p2 }
  0x28   : > { %p613_p9 = pnand %p611_p8, %p608_p3 }
  0x2a   : > { %616 = shalt.err (!%p613_p9)
}
  0x2b   : > { %s617_s15 = scalar_lea.vmem %s695_s18, 16  ;;  %s624_s17 = scalar_lea.vmem %s695_s18, 32 }
  0x2c   : > { %p618_p10 = scmp.ne.s32.totalorder %s695_s18, %s617_s15  ;;  %p625_p13 = scmp.lt.s32.totalorder %s695_s18, %s695_s18 }
  0x2d   : > { %p626_p0 = scmp.lt.s32.totalorder %s624_s17, %s617_s15 }
  0x2e   : > { %p620_p11 = pnand %p618_p10, %p578_p7 }
  0x2f   : > { %p627_p1 = por %p626_p0, %p625_p13 }
  0x30   : > { %p621_p12 = pneg %p620_p11 }
  0x32   : > { %p628_p4 = pnand %p627_p1, %p621_p12 }
  0x34   : > { %631 = shalt.err (!%p628_p4)
}
  0x35   : > { %559 = dma.hbm_to_vmem [thread:$0]  (!%p691_p5), %s841_s2, 16, %s695_s18, [#allocation5]  }
  0x36   : > { %p847_p6 = scmp.ne.s32.totalorder %s845_s16, 0 }
  0x37   : > { %p848_p7 = scmp.eq.s32.totalorder (!%p847_p6), %s678_s13, 0 }
  0x38   : > { %161 = sbr.rel (%p847_p6) target bundleno = 115 (0x73), region = 32 }
  0x3f   : > { %637 = dma.done.wait (%p848_p7), [#allocation3], 144   ;;  %p849_p2 = pmov %p848_p7 }
  0x41   : > { %639 = vsyncadd (%p849_p2), [#allocation3], 4294967152  ;;  %p850_p3 = pmov %p849_p2 }
  0x42   : > { %p851_p8 = pmov %p849_p2 }
  0x43   : > { %641 = dma.done.wait (%p850_p3), [#allocation5], 16  }
  0x44   : > { %643 = vsyncadd (%p851_p8), [#allocation5], 4294967280  ;;  %p189_p9 = scmp.lt.s32.totalorder %s678_s13, 1  ;;  %v769_v5 = vld [vmem:[#allocation2] ss:$0 sm:$0xff]  ;;  %vm437_vm0 = vcmask 992256  }
  0x45   : > { %v772_v8 = vld [vmem:[#allocation2 + $0x1] ss:$0 sm:$0xff]  ;;  %v774_v9 = vld [vmem:[#allocation2 + $0x2] ss:$0 sm:$0xff]  ;;  %v779_v14 = vld [vmem:[#allocation2 + $0x3] ss:$0 sm:$0xff] }
  0x46   : > { %s853_s13 = smov (!%p189_p9, %s678_s13), 1  ;;  %v781_v15 = vld [vmem:[#allocation2 + $0x4] ss:$0 sm:$0xff]  ;;  %v783_v16 = vld [vmem:[#allocation2 + $0x5] ss:$0 sm:$0xff] }
  0x47   : > { %s544_s16 = smul.u32 24, %s853_s13  ;;  %v786_v19 = vld [vmem:[#allocation2 + $0x6] ss:$0 sm:$0xff]  ;;  %v788_v20 = vld [vmem:[#allocation2 + $0x7] ss:$0 sm:$0xff]  ;;  %s543_s23 = sshll.u32 %s853_s13, 3 }
  0x48   : > { %v790_v21 = vld [vmem:[#allocation2 + $0x8] ss:$0 sm:$0xff]  ;;  %s198_s26 = scalar_lea.vmem %s842_s3, %s543_s23 }
  0x49   : > { %s763_s22 = scalar_lea.vmem %s839_s0, %s544_s16 }
  0x4a   : > { %v199_v0 = vld [vmem:[%s763_s22] sm:$0x7]  ;;  %v200_v1 = vld [vmem:[%s763_s22 + $0x4] sm:$0x7]  ;;  %v201_v2 = vld [vmem:[%s763_s22 + $0x8] sm:$0x7] }
  0x4b   : > { %v202_v3 = vld [vmem:[%s763_s22 + $0xc] sm:$0x7]  ;;  %v205_v4 = vunpack.c.l.bf16 %v199_v0  ;;  %v203_v6 = vld [vmem:[%s763_s22 + $0x10] sm:$0x7]  ;;  %v206_v7 = vunpack.c.l.bf16 %v200_v1  ;;  %v207_v10 = vunpack.c.l.bf16 %v201_v2 }
  0x4c   : > { %v208_v17 = vunpack.c.l.bf16 %v202_v3  ;;  %v209_v30 = vunpack.c.l.bf16 %v203_v6 }
  0x4d   : > { %v218_v11 = vmul.f32 %v769_v5, %v205_v4  ;;  %v230_v12 = vmul.f32 %v772_v8, %v205_v4  ;;  %v258_v13 = vmul.f32 %v774_v9, %v205_v4  ;;  %v302_v18 = vmul.f32 %v781_v15, %v206_v7 }
  0x4e   : > { %v330_v24 = vmul.f32 %v783_v16, %v206_v7  ;;  %v374_v25 = vmul.f32 %v788_v20, %v207_v10  ;;  %v795_v26 = vmul.f32 %v790_v21, %v207_v10  ;;  %v219_v27 = vmul.f32 %v769_v5, %v206_v7 }
  0x4f   : > { %v238_v22 = vrot.slane %v230_v12, 1  ;;  %v266_v23 = vrot.slane %v258_v13, 2  ;;  %v231_v28 = vmul.f32 %v772_v8, %v206_v7  ;;  %v259_v29 = vmul.f32 %v774_v9, %v206_v7 }
  0x50   : > { %v286_v32 = vmul.f32 %v779_v14, %v206_v7  ;;  %v358_v33 = vmul.f32 %v786_v19, %v207_v10  ;;  %v310_v34 = vrot.slane %v302_v18, 1  ;;  %v303_v37 = vmul.f32 %v781_v15, %v207_v10 }
  0x51   : > { %v246_v31 = vadd.f32 %v238_v22, %v218_v11  ;;  %v239_v35 = vrot.slane %v231_v28, 1  ;;  %v267_v36 = vrot.slane %v259_v29, 2  ;;  %v338_v39 = vrot.slane %v330_v24, 2  ;;  %v204_v11 = vld [vmem:[%s763_s22 + $0x14] sm:$0x7] }
  0x52   : > { %v382_v40 = vrot.slane %v374_v25, 1  ;;  %v331_v41 = vmul.f32 %v783_v16, %v207_v10  ;;  %v410_v42 = vrot.slane %v795_v26, 2  ;;  %v287_v44 = vmul.f32 %v779_v14, %v207_v10  ;;  %v540_v29 = vld [vmem:[#allocation4] ss:$0 sm:$0xff] }
  0x53   : > { %v274_v38 = vadd.f32 %v266_v23, %v246_v31  ;;  %v247_v43 = vadd.f32 %v239_v35, %v219_v27  ;;  %v375_v45 = vmul.f32 %v788_v20, %v208_v17  ;;  %v403_v47 = vmul.f32 %v790_v21, %v208_v17 }
  0x54   : > { %v220_v48 = vmul.f32 %v769_v5, %v207_v10  ;;  %v232_v49 = vmul.f32 %v772_v8, %v207_v10  ;;  %v311_v51 = vrot.slane %v303_v37, 1  ;;  %v260_v52 = vmul.f32 %v774_v9, %v207_v10 }
  0x55   : > { %v290_v46 = vadd.f32 %v286_v32, %v274_v38  ;;  %v275_v50 = vadd.f32 %v267_v36, %v247_v43  ;;  %v304_v53 = vmul.f32 %v781_v15, %v208_v17  ;;  %v339_v55 = vrot.slane %v331_v41, 2 }
  0x56   : > { %v359_v56 = vmul.f32 %v786_v19, %v208_v17  ;;  %v240_v57 = vrot.slane %v232_v49, 1  ;;  %v383_v59 = vrot.slane %v375_v45, 1  ;;  %v268_v60 = vrot.slane %v260_v52, 2 }
  0x57   : > { %v318_v54 = vadd.f32 %v310_v34, %v290_v46  ;;  %v291_v58 = vadd.f32 %v287_v44, %v275_v50  ;;  %v332_v61 = vmul.f32 %v783_v16, %v208_v17  ;;  %v411_v63 = vrot.slane %v403_v47, 2 }
  0x58   : > { %v248_v0 = vadd.f32 %v240_v57, %v220_v48  ;;  %v288_v1 = vmul.f32 %v779_v14, %v208_v17  ;;  %v312_v3 = vrot.slane %v304_v53, 1  ;;  %v360_v4 = vmul.f32 %v786_v19, %v209_v30 }
  0x59   : > { %v346_v62 = vadd.f32 %v338_v39, %v318_v54  ;;  %v319_v2 = vadd.f32 %v311_v51, %v291_v58  ;;  %v376_v6 = vmul.f32 %v788_v20, %v209_v30  ;;  %v221_v12 = vmul.f32 %v769_v5, %v208_v17 }
  0x5a   : > { %v276_v10 = vadd.f32 %v268_v60, %v248_v0  ;;  %v233_v13 = vmul.f32 %v772_v8, %v208_v17  ;;  %v340_v22 = vrot.slane %v332_v61, 2  ;;  %v404_v23 = vmul.f32 %v790_v21, %v209_v30 }
  0x5b   : > { %v362_v7 = vadd.f32 %v358_v33, %v346_v62  ;;  %v347_v18 = vadd.f32 %v339_v55, %v319_v2  ;;  %v261_v24 = vmul.f32 %v774_v9, %v208_v17  ;;  %v305_v28 = vmul.f32 %v781_v15, %v209_v30 }
  0x5c   : > { %v292_v26 = vadd.f32 %v288_v1, %v276_v10  ;;  %v241_v27 = vrot.slane %v233_v13, 1  ;;  %v210_v32 = vunpack.c.l.bf16 %v204_v11  ;;  %v333_v34 = vmul.f32 %v783_v16, %v209_v30 }
  0x5d   : > { %v390_v25 = vadd.f32 %v382_v40, %v362_v7  ;;  %v363_v31 = vadd.f32 %v359_v56, %v347_v18  ;;  %v269_v33 = vrot.slane %v261_v24, 2  ;;  %v289_v36 = vmul.f32 %v779_v14, %v209_v30 }
  0x5e   : > { %v320_v8 = vadd.f32 %v312_v3, %v292_v26  ;;  %v249_v35 = vadd.f32 %v241_v27, %v221_v12  ;;  %v384_v38 = vrot.slane %v376_v6, 1  ;;  %v313_v40 = vrot.slane %v305_v28, 1 }
  0x5f   : > { %v418_v5 = vadd.f32 %v410_v42, %v390_v25  ;;  %v391_v37 = vadd.f32 %v383_v59, %v363_v31  ;;  %v412_v41 = vrot.slane %v404_v23, 2  ;;  %v341_v16 = vrot.slane %v333_v34, 2 }
  0x60   : > { %v348_v17 = vadd.f32 %v340_v22, %v320_v8  ;;  %v277_v39 = vadd.f32 %v269_v33, %v249_v35  ;;  %v377_v45 = vmul.f32 %v788_v20, %v210_v32  ;;  %v361_v47 = vmul.f32 %v786_v19, %v210_v32 }
  0x61   : > { %v429_v9 = vadd.f32 %v540_v29, %v418_v5  ;;  %v419_v15 = vadd.f32 %v411_v63, %v391_v37  ;;  %v405_v48 = vmul.f32 %v790_v21, %v210_v32 }
  0x62   : > { %v364_v42 = vadd.f32 %v360_v4, %v348_v17  ;;  %v293_v44 = vadd.f32 %v289_v36, %v277_v39  ;;  %v385_v52 = vrot.slane %v377_v45, 1 }
  0x63   : > { %v433_v43 = vpack.c.bf16 %v429_v9, %v429_v9  ;;  %v430_v14 = vadd.f32 %v540_v29, %v419_v15  ;;  %v413_v55 = vrot.slane %v405_v48, 2 }
  0x64   : > { %v392_v30 = vadd.f32 %v384_v38, %v364_v42  ;;  %v321_v46 = vadd.f32 %v313_v40, %v293_v44 }
  0x65   : > { %438 = vst.msk [vmem:[%s198_s26] sm:$0x3] %vm437_vm0, %v433_v43  ;;  %v434_v49 = vpack.c.bf16 %v430_v14, %v430_v14 }
  0x66   : > { %v420_v50 = vadd.f32 %v412_v41, %v392_v30  ;;  %v349_v51 = vadd.f32 %v341_v16, %v321_v46 }
  0x67   : > { %439 = vst.msk [vmem:[%s198_s26 + $0x2] sm:$0x3] %vm437_vm0, %v434_v49 }
  0x68   : > { %v431_v53 = vadd.f32 %v540_v29, %v420_v50  ;;  %v365_v54 = vadd.f32 %v361_v47, %v349_v51 }
  0x6a   : > { %v435_v56 = vpack.c.bf16 %v431_v53, %v431_v53  ;;  %v393_v20 = vadd.f32 %v385_v52, %v365_v54 }
  0x6c   : > { %440 = vst.msk [vmem:[%s198_s26 + $0x4] sm:$0x3] %vm437_vm0, %v435_v56  ;;  %v421_v57 = vadd.f32 %v413_v55, %v393_v20 }
  0x6e   : > { %v432_v58 = vadd.f32 %v540_v29, %v421_v57 }
  0x70   : > { %v436_v59 = vpack.c.bf16 %v432_v58, %v432_v58 }
  0x72   : > { %441 = vst.msk [vmem:[%s198_s26 + $0x6] sm:$0x3] %vm437_vm0, %v436_v59 }
  0x73 PF: > { %s15_s12 = sadd.s32 1, %s646_s12  }
  0x74   : > { %p12_p5 = scmp.ge.s32.totalorder %s15_s12, 4  }
  0x76   :  { %14 = sbr.rel (!%p12_p5) target bundleno = 2 (0x2), region = 79 }
  0x7d   :  { %463 = vsyncpa [#allocation3], 1 }
  0x7e   :  { %465 = vsyncpa [#allocation3 + $0x1], 1 }
  0x7f   :  { %466 = vsyncpa [#allocation5], 1 }

// kernel: shufflenet_forward.61
= control target key start
LH: loop header
LB: loop body
LE: loop exit
PB: predicated region body
PF: predicated region fallthrough
CT: control target
= control target key end

     0   :  { %8 = vsyncpa [#allocation3], 0  ;;  %s246_s0 = inlined_call_operand.vmem [shape: bf16[8,24], index: 0, kind: input, shape index: {}]   ;;  %s247_s1 = inlined_call_operand.hbm [shape: bf16[24,122], index: 1, kind: input, shape index: {}]   ;;  %s248_s2 = inlined_call_operand.hbm [shape: f32[1,122], index: 2, kind: input, shape index: {}]   ;;  %s249_s3 = inlined_call_operand.vmem [shape: bf16[8,122], index: 3, kind: output, shape index: {}]  }
   0x1   :  { %9 = vsyncpa [#allocation5], 0  ;;  %s190_s12 = smov [#allocation2]   ;;  %s142_s16 = scalar_lea.hbm %s247_s1, 192 }
   0x2   :  { %s17_s13 = sshll.u32 %s190_s12, 4  ;;  %p143_p0 = scmp.ne.s32.totalorder %s247_s1, %s142_s16  ;;  %s18_s13 = int_to_ptr.vmem [resolvable:$true] %s17_s13 }
   0x3   :  { %p146_p1 = scmp.lt.u32.totalorder %s142_s16, %s247_s1 }
   0x5   :  { %p148_p2 = pnand %p146_p1, %p143_p0 }
   0x7   :  { %151 = shalt.err (!%p148_p2)
}
   0x8   :  { %s152_s21 = scalar_lea.vmem %s18_s13, 192  ;;  %p157_p4 = scmp.lt.s32.totalorder %s18_s13, %s18_s13 }
   0x9   :  { %p153_p3 = scmp.ne.s32.totalorder %s18_s13, %s152_s21  ;;  %p158_p5 = scmp.lt.s32.totalorder %s152_s21, %s152_s21 }
   0xb   :  { %p159_p6 = por %p158_p5, %p157_p4 }
   0xd   :  { %p160_p7 = pnand %p159_p6, %p153_p3 }
   0xf   :  { %163 = shalt.err (!%p160_p7)
}
  0x10   :  { %s191_s22 = smov 64   ;;  %s192_s23 = smov 4  }
  0x11   :  { %23 = dma.hbm_to_vmem [thread:$0]  %s247_s1, 192, %s18_s13, [#allocation3], %s191_s22, %s191_s22, %s192_s23  }
  0x12   :  { %s193_s26 = smov [#allocation4]   ;;  %s164_s30 = scalar_lea.hbm %s248_s2, 16 }
  0x13   :  { %s30_s27 = sshll.u32 %s193_s26, 4  ;;  %p165_p8 = scmp.ne.s32.totalorder %s248_s2, %s164_s30  ;;  %s31_s27 = int_to_ptr.vmem [resolvable:$true] %s30_s27 }
  0x14   :  { %p168_p9 = scmp.lt.u32.totalorder %s164_s30, %s248_s2 }
  0x16   :  { %p170_p10 = pnand %p168_p9, %p165_p8 }
  0x18   :  { %173 = shalt.err (!%p170_p10)
}
  0x19   :  { %s174_s8 = scalar_lea.vmem %s31_s27, 16  ;;  %s178_s1 = scalar_lea.vmem %s31_s27, 32 }
  0x1a   :  { %p175_p11 = scmp.ne.s32.totalorder %s31_s27, %s174_s8  ;;  %p179_p12 = scmp.lt.s32.totalorder %s31_s27, %s31_s27 }
  0x1b   :  { %p180_p13 = scmp.lt.s32.totalorder %s178_s1, %s174_s8 }
  0x1d   :  { %p181_p0 = por %p180_p13, %p179_p12 }
  0x1f   :  { %p182_p1 = pnand %p181_p0, %p175_p11 }
  0x21   :  { %185 = shalt.err (!%p182_p1)
}
  0x22   :  { %33 = dma.hbm_to_vmem [thread:$0]  %s248_s2, 16, %s31_s27, [#allocation5]  }
  0x23   :  { %186 = dma.done.wait [#allocation3], 192  }
  0x24   :  { %187 = vsyncadd [#allocation3], 4294967104 }
  0x25   :  { %188 = dma.done.wait [#allocation5], 16  }
  0x26   :  { %189 = vsyncadd [#allocation5], 4294967280  ;;  %v194_v0 = vmov 0.0   ;;  %vm195_vm0 = vmmov 0   ;;  %v140_v1 = vld [vmem:[#allocation2] sm:$0xff]   ;;  %vm65_vm1 = vcmask 1043456  }
  0x27   :  { %126 = vmatprep.subr.bf16.mxu0 %v194_v0  ;;  %130 = vmatprep.mubr.msk.bf16.mxu0 %vm195_vm0, %v194_v0  ;;  %v141_v2 = vld [vmem:[#allocation2 + $0x8] ss:$0 sps:$4 sm:$0xff]   ;;  %v41_v4 = vld [vmem:[%s246_s0] sm:$0xf]  ;;  %vm61_vm2 = vcmask 195584   ;;  %vm111_vm3 = vcmask 994304  }
  0x28   :  { %127 = vmatpush3.bf16.msra.mxu0 %v140_v1  ;;  %v67_v3 = vsel %vm65_vm1, %v141_v2, 0  ;;  %v119_v5 = vld [vmem:[#allocation4] ss:$0 sm:$0xff] }
  0x29   :  { %128 = vmatprep.subr.bf16.mxu0 %v194_v0 }
  0x2c   :  { %129 = vmatpush3.bf16.msra.mxu0 %v67_v3 }
  0x2f   :  { %131 = vmatmul.mubr.msk.bf16.vlgmr.msra.gmra.mrb[0].mxu0 %vm61_vm2, %v41_v4 }
 0x102   :  { %v103_v6 = vpop.f32.mrb[0].mxu0 }
 0x103   :  { %v104_v7 = vadd.f32 %v119_v5, %v103_v6  ;;  %v132_v8 = vpop.f32.mrb[1].mxu0 }
 0x104   :  { %v106_v9 = vpop.f32.mrb[2].mxu0 }
 0x105   :  { %v109_v10 = vmax.f32 %v104_v7, 0.0  ;;  %v133_v11 = vpop.f32.mrb[3].mxu0 }
 0x107   :  { %v110_v12 = vpack.c.bf16 %v109_v10, %v109_v10 }
 0x109   :  { %112 = vst.msk [vmem:[%s249_s3] sm:$0xf] %vm111_vm3, %v110_v12 }
 0x10a   :  { %117 = vsyncpa [#allocation3], 1 }
 0x10b   :  { %118 = vsyncpa [#allocation5], 1 }

// kernel: shufflenet_forward.64
= control target key start
LH: loop header
LB: loop body
LE: loop exit
PB: predicated region body
PF: predicated region fallthrough
CT: control target
= control target key end

     0   :  { %8 = vsyncpa [#allocation3], 0  ;;  %s327_s0 = inlined_call_operand.vmem [shape: bf16[8,122], index: 0, kind: input, shape index: {}]   ;;  %s328_s1 = inlined_call_operand.hbm [shape: bf16[122,122], index: 1, kind: input, shape index: {}]   ;;  %s329_s2 = inlined_call_operand.hbm [shape: f32[1,122], index: 2, kind: input, shape index: {}]   ;;  %s330_s3 = inlined_call_operand.vmem [shape: bf16[8,122], index: 3, kind: output, shape index: {}]  }
   0x1   :  { %9 = vsyncpa [#allocation5], 0  ;;  %s271_s12 = smov [#allocation2]   ;;  %s223_s16 = scalar_lea.hbm %s328_s1, 1024 }
   0x2   :  { %s17_s13 = sshll.u32 %s271_s12, 4  ;;  %p224_p0 = scmp.ne.s32.totalorder %s328_s1, %s223_s16  ;;  %s18_s13 = int_to_ptr.vmem [resolvable:$true] %s17_s13 }
   0x3   :  { %p227_p1 = scmp.lt.u32.totalorder %s223_s16, %s328_s1 }
   0x5   :  { %p229_p2 = pnand %p227_p1, %p224_p0 }
   0x7   :  { %232 = shalt.err (!%p229_p2)
}
   0x8   :  { %s233_s21 = scalar_lea.vmem %s18_s13, 1024  ;;  %p238_p4 = scmp.lt.s32.totalorder %s18_s13, %s18_s13 }
   0x9   :  { %p234_p3 = scmp.ne.s32.totalorder %s18_s13, %s233_s21  ;;  %p239_p5 = scmp.lt.s32.totalorder %s233_s21, %s233_s21 }
   0xb   :  { %p240_p6 = por %p239_p5, %p238_p4 }
   0xd   :  { %p241_p7 = pnand %p240_p6, %p234_p3 }
   0xf   :  { %244 = shalt.err (!%p241_p7)
}
  0x10   :  { %s272_s22 = smov 64   ;;  %s273_s23 = smov 4  }
  0x11   :  { %23 = dma.hbm_to_vmem [thread:$0]  %s328_s1, 1024, %s18_s13, [#allocation3], %s272_s22, %s272_s22, %s273_s23  }
  0x12   :  { %s274_s26 = smov [#allocation4]   ;;  %s245_s30 = scalar_lea.hbm %s329_s2, 16 }
  0x13   :  { %s30_s27 = sshll.u32 %s274_s26, 4  ;;  %p246_p8 = scmp.ne.s32.totalorder %s329_s2, %s245_s30  ;;  %s31_s27 = int_to_ptr.vmem [resolvable:$true] %s30_s27 }
  0x14   :  { %p249_p9 = scmp.lt.u32.totalorder %s245_s30, %s329_s2 }
  0x16   :  { %p251_p10 = pnand %p249_p9, %p246_p8 }
  0x18   :  { %254 = shalt.err (!%p251_p10)
}
  0x19   :  { %s255_s8 = scalar_lea.vmem %s31_s27, 16  ;;  %s259_s1 = scalar_lea.vmem %s31_s27, 32 }
  0x1a   :  { %p256_p11 = scmp.ne.s32.totalorder %s31_s27, %s255_s8  ;;  %p260_p12 = scmp.lt.s32.totalorder %s31_s27, %s31_s27 }
  0x1b   :  { %p261_p13 = scmp.lt.s32.totalorder %s259_s1, %s255_s8 }
  0x1d   :  { %p262_p0 = por %p261_p13, %p260_p12 }
  0x1f   :  { %p263_p1 = pnand %p262_p0, %p256_p11 }
  0x21   :  { %266 = shalt.err (!%p263_p1)
}
  0x22   :  { %33 = dma.hbm_to_vmem [thread:$0]  %s329_s2, 16, %s31_s27, [#allocation5]  }
  0x23   :  { %267 = dma.done.wait [#allocation3], 1024  }
  0x24   :  { %268 = vsyncadd [#allocation3], 4294966272 }
  0x25   :  { %269 = dma.done.wait [#allocation5], 16  }
  0x26   :  { %270 = vsyncadd [#allocation5], 4294967280  ;;  %v275_v0 = vmov 0.0   ;;  %vm276_vm0 = vmmov 0   ;;  %v215_v1 = vld [vmem:[#allocation2] sm:$0xff]   ;;  %v216_v2 = vld [vmem:[#allocation2 + $0x8] sm:$0xff]  }
  0x27   :  { %189 = vmatprep.subr.bf16.mxu0 %v275_v0  ;;  %205 = vmatprep.mubr.msk.bf16.mxu0 %vm276_vm0, %v275_v0  ;;  %v217_v3 = vld [vmem:[#allocation2 + $0x10] sm:$0xff]   ;;  %v218_v4 = vld [vmem:[#allocation2 + $0x18] sm:$0xff]   ;;  %v219_v5 = vld [vmem:[#allocation2 + $0x20] sm:$0xff]   ;;  %vm116_vm1 = vcmask 1044480   ;;  %vm112_vm2 = vcmask 998400   ;;  %vm162_vm3 = vcmask 994304  }
  0x28   :  { %190 = vmatpush3.bf16.msra.mxu0 %v215_v1  ;;  %v220_v6 = vld [vmem:[#allocation2 + $0x28] sm:$0xff]   ;;  %v221_v7 = vld [vmem:[#allocation2 + $0x30] sm:$0xff]   ;;  %v222_v8 = vld [vmem:[#allocation2 + $0x38] sm:$0x1f]  }
  0x29   :  { %191 = vmatprep.subr.bf16.mxu0 %v275_v0  ;;  %v118_v9 = vsel %vm116_vm1, %v222_v8, 0  ;;  %v41_v10 = vld [vmem:[%s327_s0] sm:$0xf] }
  0x2a   :  { %v170_v11 = vld [vmem:[#allocation4] ss:$0 sm:$0xff] }
  0x2c   :  { %192 = vmatpush3.bf16.msra.mxu0 %v216_v2 }
  0x2d   :  { %193 = vmatprep.subr.bf16.mxu0 %v275_v0 }
  0x30   :  { %194 = vmatpush3.bf16.msra.mxu0 %v217_v3 }
  0x31   :  { %195 = vmatprep.subr.bf16.mxu0 %v275_v0 }
  0x34   :  { %196 = vmatpush3.bf16.msra.mxu0 %v218_v4 }
  0x35   :  { %197 = vmatprep.subr.bf16.mxu0 %v275_v0 }
  0x38   :  { %198 = vmatpush3.bf16.msra.mxu0 %v219_v5 }
  0x39   :  { %199 = vmatprep.subr.bf16.mxu0 %v275_v0 }
  0x3c   :  { %200 = vmatpush3.bf16.msra.mxu0 %v220_v6 }
  0x3d   :  { %201 = vmatprep.subr.bf16.mxu0 %v275_v0 }
  0x40   :  { %202 = vmatpush3.bf16.msra.mxu0 %v221_v7 }
  0x41   :  { %203 = vmatprep.subr.bf16.mxu0 %v275_v0 }
  0x44   :  { %204 = vmatpush3.bf16.msra.mxu0 %v118_v9 }
  0x47   :  { %206 = vmatmul.mubr.msk.bf16.vlgmr.msra.gmra.mrb[0].mxu0 %vm112_vm2, %v41_v10 }
 0x11a   :  { %v154_v12 = vpop.f32.mrb[0].mxu0 }
 0x11b   :  { %v155_v13 = vadd.f32 %v170_v11, %v154_v12  ;;  %v207_v14 = vpop.f32.mrb[1].mxu0 }
 0x11c   :  { %v157_v15 = vpop.f32.mrb[2].mxu0 }
 0x11d   :  { %v160_v16 = vmax.f32 %v155_v13, 0.0  ;;  %v208_v17 = vpop.f32.mrb[3].mxu0 }
 0x11f   :  { %v161_v18 = vpack.c.bf16 %v160_v16, %v160_v16 }
 0x121   :  { %163 = vst.msk [vmem:[%s330_s3] sm:$0xf] %vm162_vm3, %v161_v18 }
 0x122   :  { %168 = vsyncpa [#allocation3], 1 }
 0x123   :  { %169 = vsyncpa [#allocation5], 1 }

// kernel: shufflenet_forward.60
= control target key start
LH: loop header
LB: loop body
LE: loop exit
PB: predicated region body
PF: predicated region fallthrough
CT: control target
= control target key end

     0   :  { %8 = vsyncpa [#allocation3], 0  ;;  %s839_s0 = inlined_call_operand.vmem [shape: bf16[2,6,6,24], index: 0, kind: input, shape index: {}]   ;;  %s840_s1 = inlined_call_operand.hbm [shape: f32[9,1,24], index: 1, kind: input, shape index: {}]   ;;  %s841_s2 = inlined_call_operand.hbm [shape: f32[1,24], index: 2, kind: input, shape index: {}]   ;;  %s842_s3 = inlined_call_operand.vmem [shape: bf16[2,4,4,24], index: 3, kind: output, shape index: {}]  }
   0x1   :  { %9 = vsyncpa [#allocation5], 0  ;;  %s672_s12 = smov 0  }
   0x2 LB: > { %s678_s13 = sadd.s32 4294967295, %s646_s12   ;;  %p521_p0 = scmp.ge.s32.totalorder %s646_s12, 1  ;;  %s646_s12 = sphi %s672_s12, %s15_s12  }
   0x3   : > { %p114_p1 = scmp.lt.s32.totalorder %s646_s12, 3  ;;  %s648_s14 = smov [#allocation2]  }
   0x4   : > { %s126_s15 = sshll.u32 %s648_s14, 4  ;;  %p843_p3 = scmp.eq.s32.totalorder %s678_s13, 0  ;;  %s127_s15 = int_to_ptr.vmem [resolvable:$true] %s126_s15 }
   0x5   : > { %p682_p2 = pnand %p521_p0, %p114_p1  ;;  %s649_s17 = smov [#allocation4]  }
   0x6   : > { %s140_s18 = sshll.u32 %s649_s17, 4  ;;  %s576_s22 = scalar_lea.hbm %s840_s1, 144  ;;  %s695_s18 = int_to_ptr.vmem [resolvable:$true] %s140_s18 }
   0x7   : > { %s845_s16 = scalar_select %p682_p2, 1, 0 }
   0x8   : > { %p553_p4 = pneg %p682_p2  ;;  %p577_p6 = scmp.ne.s32.totalorder %s840_s1, %s576_s22 }
   0x9   : > { %p583_p10 = scmp.lt.u32.totalorder %s576_s22, %s840_s1 }
   0xa   : > { %p691_p5 = pnand %p843_p3, %p553_p4 }
   0xc   : > { %p578_p7 = pneg %p691_p5 }
   0xe   : > { %p579_p8 = pnand %p578_p7, %p577_p6 }
  0x10   : > { %p580_p9 = pneg %p579_p8 }
  0x12   : > { %p585_p11 = pnand %p583_p10, %p580_p9 }
  0x14   : > { %588 = shalt.err (!%p585_p11)
}
  0x15   : > { %s589_s27 = scalar_lea.vmem %s127_s15, 144  ;;  %s596_s28 = scalar_lea.vmem %s127_s15, 160 }
  0x16   : > { %p590_p12 = scmp.ne.s32.totalorder %s127_s15, %s589_s27  ;;  %p597_p1 = scmp.lt.s32.totalorder %s127_s15, %s127_s15 }
  0x17   : > { %p598_p4 = scmp.lt.s32.totalorder %s596_s28, %s589_s27 }
  0x18   : > { %p592_p13 = pnand %p590_p12, %p578_p7 }
  0x19   : > { %p599_p3 = por %p598_p4, %p597_p1 }
  0x1a   : > { %p593_p0 = pneg %p592_p13 }
  0x1c   : > { %p600_p2 = pnand %p599_p3, %p593_p0 }
  0x1e   : > { %603 = shalt.err (!%p600_p2)
}
  0x1f   : > { %s650_s29 = smov 16   ;;  %s651_s30 = smov 1  }
  0x20   : > { %556 = dma.hbm_to_vmem [thread:$0]  (!%p691_p5), %s840_s1, 144, %s127_s15, [#allocation3], %s650_s29, %s650_s29, %s651_s30  }
  0x21   : > { %s604_s8 = scalar_lea.hbm %s841_s2, 16 }
  0x22   : > { %p605_p6 = scmp.ne.s32.totalorder %s841_s2, %s604_s8  ;;  %p611_p8 = scmp.lt.u32.totalorder %s604_s8, %s841_s2 }
  0x24   : > { %p607_p2 = pnand %p605_p6, %p578_p7 }
  0x26   : > { %p608_p3 = pneg %p607_p2 }
  0x28   : > { %p613_p9 = pnand %p611_p8, %p608_p3 }
  0x2a   : > { %616 = shalt.err (!%p613_p9)
}
  0x2b   : > { %s617_s15 = scalar_lea.vmem %s695_s18, 16  ;;  %s624_s17 = scalar_lea.vmem %s695_s18, 32 }
  0x2c   : > { %p618_p10 = scmp.ne.s32.totalorder %s695_s18, %s617_s15  ;;  %p625_p13 = scmp.lt.s32.totalorder %s695_s18, %s695_s18 }
  0x2d   : > { %p626_p0 = scmp.lt.s32.totalorder %s624_s17, %s617_s15 }
  0x2e   : > { %p620_p11 = pnand %p618_p10, %p578_p7 }
  0x2f   : > { %p627_p1 = por %p626_p0, %p625_p13 }
  0x30   : > { %p621_p12 = pneg %p620_p11 }
  0x32   : > { %p628_p4 = pnand %p627_p1, %p621_p12 }
  0x34   : > { %631 = shalt.err (!%p628_p4)
}
  0x35   : > { %559 = dma.hbm_to_vmem [thread:$0]  (!%p691_p5), %s841_s2, 16, %s695_s18, [#allocation5]  }
  0x36   : > { %p847_p6 = scmp.ne.s32.totalorder %s845_s16, 0 }
  0x37   : > { %p848_p7 = scmp.eq.s32.totalorder (!%p847_p6), %s678_s13, 0 }
  0x38   : > { %161 = sbr.rel (%p847_p6) target bundleno = 115 (0x73), region = 32 }
  0x3f   : > { %637 = dma.done.wait (%p848_p7), [#allocation3], 144   ;;  %p849_p2 = pmov %p848_p7 }
  0x41   : > { %639 = vsyncadd (%p849_p2), [#allocation3], 4294967152  ;;  %p850_p3 = pmov %p849_p2 }
  0x42   : > { %p851_p8 = pmov %p849_p2 }
  0x43   : > { %641 = dma.done.wait (%p850_p3), [#allocation5], 16  }
  0x44   : > { %643 = vsyncadd (%p851_p8), [#allocation5], 4294967280  ;;  %p189_p9 = scmp.lt.s32.totalorder %s678_s13, 1  ;;  %v769_v5 = vld [vmem:[#allocation2] ss:$0 sm:$0xff]  ;;  %vm437_vm0 = vcmask 189440  }
  0x45   : > { %v772_v8 = vld [vmem:[#allocation2 + $0x1] ss:$0 sm:$0xff]  ;;  %v774_v9 = vld [vmem:[#allocation2 + $0x2] ss:$0 sm:$0xff]  ;;  %v779_v14 = vld [vmem:[#allocation2 + $0x3] ss:$0 sm:$0xff] }
  0x46   : > { %s853_s13 = smov (!%p189_p9, %s678_s13), 1  ;;  %v781_v15 = vld [vmem:[#allocation2 + $0x4] ss:$0 sm:$0xff]  ;;  %v783_v16 = vld [vmem:[#allocation2 + $0x5] ss:$0 sm:$0xff] }
  0x47   : > { %s544_s16 = smul.u32 24, %s853_s13  ;;  %v786_v19 = vld [vmem:[#allocation2 + $0x6] ss:$0 sm:$0xff]  ;;  %v788_v20 = vld [vmem:[#allocation2 + $0x7] ss:$0 sm:$0xff]  ;;  %s543_s23 = sshll.u32 %s853_s13, 3 }
  0x48   : > { %v790_v21 = vld [vmem:[#allocation2 + $0x8] ss:$0 sm:$0xff]  ;;  %s198_s26 = scalar_lea.vmem %s842_s3, %s543_s23 }
  0x49   : > { %s763_s22 = scalar_lea.vmem %s839_s0, %s544_s16 }
  0x4a   : > { %v199_v0 = vld [vmem:[%s763_s22] sm:$0x7]  ;;  %v200_v1 = vld [vmem:[%s763_s22 + $0x4] sm:$0x7]  ;;  %v201_v2 = vld [vmem:[%s763_s22 + $0x8] sm:$0x7] }
  0x4b   : > { %v202_v3 = vld [vmem:[%s763_s22 + $0xc] sm:$0x7]  ;;  %v205_v4 = vunpack.c.l.bf16 %v199_v0  ;;  %v203_v6 = vld [vmem:[%s763_s22 + $0x10] sm:$0x7]  ;;  %v206_v7 = vunpack.c.l.bf16 %v200_v1  ;;  %v207_v10 = vunpack.c.l.bf16 %v201_v2 }
  0x4c   : > { %v208_v17 = vunpack.c.l.bf16 %v202_v3  ;;  %v209_v30 = vunpack.c.l.bf16 %v203_v6 }
  0x4d   : > { %v218_v11 = vmul.f32 %v769_v5, %v205_v4  ;;  %v230_v12 = vmul.f32 %v772_v8, %v205_v4  ;;  %v258_v13 = vmul.f32 %v774_v9, %v205_v4  ;;  %v302_v18 = vmul.f32 %v781_v15, %v206_v7 }
  0x4e   : > { %v330_v24 = vmul.f32 %v783_v16, %v206_v7  ;;  %v374_v25 = vmul.f32 %v788_v20, %v207_v10  ;;  %v795_v26 = vmul.f32 %v790_v21, %v207_v10  ;;  %v219_v27 = vmul.f32 %v769_v5, %v206_v7 }
  0x4f   : > { %v238_v22 = vrot.slane %v230_v12, 1  ;;  %v266_v23 = vrot.slane %v258_v13, 2  ;;  %v231_v28 = vmul.f32 %v772_v8, %v206_v7  ;;  %v259_v29 = vmul.f32 %v774_v9, %v206_v7 }
  0x50   : > { %v286_v32 = vmul.f32 %v779_v14, %v206_v7  ;;  %v358_v33 = vmul.f32 %v786_v19, %v207_v10  ;;  %v310_v34 = vrot.slane %v302_v18, 1  ;;  %v303_v37 = vmul.f32 %v781_v15, %v207_v10 }
  0x51   : > { %v246_v31 = vadd.f32 %v238_v22, %v218_v11  ;;  %v239_v35 = vrot.slane %v231_v28, 1  ;;  %v267_v36 = vrot.slane %v259_v29, 2  ;;  %v338_v39 = vrot.slane %v330_v24, 2  ;;  %v204_v11 = vld [vmem:[%s763_s22 + $0x14] sm:$0x7] }
  0x52   : > { %v382_v40 = vrot.slane %v374_v25, 1  ;;  %v331_v41 = vmul.f32 %v783_v16, %v207_v10  ;;  %v410_v42 = vrot.slane %v795_v26, 2  ;;  %v287_v44 = vmul.f32 %v779_v14, %v207_v10  ;;  %v540_v29 = vld [vmem:[#allocation4] ss:$0 sm:$0xff] }
  0x53   : > { %v274_v38 = vadd.f32 %v266_v23, %v246_v31  ;;  %v247_v43 = vadd.f32 %v239_v35, %v219_v27  ;;  %v375_v45 = vmul.f32 %v788_v20, %v208_v17  ;;  %v403_v47 = vmul.f32 %v790_v21, %v208_v17 }
  0x54   : > { %v220_v48 = vmul.f32 %v769_v5, %v207_v10  ;;  %v232_v49 = vmul.f32 %v772_v8, %v207_v10  ;;  %v311_v51 = vrot.slane %v303_v37, 1  ;;  %v260_v52 = vmul.f32 %v774_v9, %v207_v10 }
  0x55   : > { %v290_v46 = vadd.f32 %v286_v32, %v274_v38  ;;  %v275_v50 = vadd.f32 %v267_v36, %v247_v43  ;;  %v304_v53 = vmul.f32 %v781_v15, %v208_v17  ;;  %v339_v55 = vrot.slane %v331_v41, 2 }
  0x56   : > { %v359_v56 = vmul.f32 %v786_v19, %v208_v17  ;;  %v240_v57 = vrot.slane %v232_v49, 1  ;;  %v383_v59 = vrot.slane %v375_v45, 1  ;;  %v268_v60 = vrot.slane %v260_v52, 2 }
  0x57   : > { %v318_v54 = vadd.f32 %v310_v34, %v290_v46  ;;  %v291_v58 = vadd.f32 %v287_v44, %v275_v50  ;;  %v332_v61 = vmul.f32 %v783_v16, %v208_v17  ;;  %v411_v63 = vrot.slane %v403_v47, 2 }
  0x58   : > { %v248_v0 = vadd.f32 %v240_v57, %v220_v48  ;;  %v288_v1 = vmul.f32 %v779_v14, %v208_v17  ;;  %v312_v3 = vrot.slane %v304_v53, 1  ;;  %v360_v4 = vmul.f32 %v786_v19, %v209_v30 }
  0x59   : > { %v346_v62 = vadd.f32 %v338_v39, %v318_v54  ;;  %v319_v2 = vadd.f32 %v311_v51, %v291_v58  ;;  %v376_v6 = vmul.f32 %v788_v20, %v209_v30  ;;  %v221_v12 = vmul.f32 %v769_v5, %v208_v17 }
  0x5a   : > { %v276_v10 = vadd.f32 %v268_v60, %v248_v0  ;;  %v233_v13 = vmul.f32 %v772_v8, %v208_v17  ;;  %v340_v22 = vrot.slane %v332_v61, 2  ;;  %v404_v23 = vmul.f32 %v790_v21, %v209_v30 }
  0x5b   : > { %v362_v7 = vadd.f32 %v358_v33, %v346_v62  ;;  %v347_v18 = vadd.f32 %v339_v55, %v319_v2  ;;  %v261_v24 = vmul.f32 %v774_v9, %v208_v17  ;;  %v305_v28 = vmul.f32 %v781_v15, %v209_v30 }
  0x5c   : > { %v292_v26 = vadd.f32 %v288_v1, %v276_v10  ;;  %v241_v27 = vrot.slane %v233_v13, 1  ;;  %v210_v32 = vunpack.c.l.bf16 %v204_v11  ;;  %v333_v34 = vmul.f32 %v783_v16, %v209_v30 }
  0x5d   : > { %v390_v25 = vadd.f32 %v382_v40, %v362_v7  ;;  %v363_v31 = vadd.f32 %v359_v56, %v347_v18  ;;  %v269_v33 = vrot.slane %v261_v24, 2  ;;  %v289_v36 = vmul.f32 %v779_v14, %v209_v30 }
  0x5e   : > { %v320_v8 = vadd.f32 %v312_v3, %v292_v26  ;;  %v249_v35 = vadd.f32 %v241_v27, %v221_v12  ;;  %v384_v38 = vrot.slane %v376_v6, 1  ;;  %v313_v40 = vrot.slane %v305_v28, 1 }
  0x5f   : > { %v418_v5 = vadd.f32 %v410_v42, %v390_v25  ;;  %v391_v37 = vadd.f32 %v383_v59, %v363_v31  ;;  %v412_v41 = vrot.slane %v404_v23, 2  ;;  %v341_v16 = vrot.slane %v333_v34, 2 }
  0x60   : > { %v348_v17 = vadd.f32 %v340_v22, %v320_v8  ;;  %v277_v39 = vadd.f32 %v269_v33, %v249_v35  ;;  %v377_v45 = vmul.f32 %v788_v20, %v210_v32  ;;  %v361_v47 = vmul.f32 %v786_v19, %v210_v32 }
  0x61   : > { %v429_v9 = vadd.f32 %v540_v29, %v418_v5  ;;  %v419_v15 = vadd.f32 %v411_v63, %v391_v37  ;;  %v405_v48 = vmul.f32 %v790_v21, %v210_v32 }
  0x62   : > { %v364_v42 = vadd.f32 %v360_v4, %v348_v17  ;;  %v293_v44 = vadd.f32 %v289_v36, %v277_v39  ;;  %v385_v52 = vrot.slane %v377_v45, 1 }
  0x63   : > { %v433_v43 = vpack.c.bf16 %v429_v9, %v429_v9  ;;  %v430_v14 = vadd.f32 %v540_v29, %v419_v15  ;;  %v413_v55 = vrot.slane %v405_v48, 2 }
  0x64   : > { %v392_v30 = vadd.f32 %v384_v38, %v364_v42  ;;  %v321_v46 = vadd.f32 %v313_v40, %v293_v44 }
  0x65   : > { %438 = vst.msk [vmem:[%s198_s26] sm:$0x3] %vm437_vm0, %v433_v43  ;;  %v434_v49 = vpack.c.bf16 %v430_v14, %v430_v14 }
  0x66   : > { %v420_v50 = vadd.f32 %v412_v41, %v392_v30  ;;  %v349_v51 = vadd.f32 %v341_v16, %v321_v46 }
  0x67   : > { %439 = vst.msk [vmem:[%s198_s26 + $0x2] sm:$0x3] %vm437_vm0, %v434_v49 }
  0x68   : > { %v431_v53 = vadd.f32 %v540_v29, %v420_v50  ;;  %v365_v54 = vadd.f32 %v361_v47, %v349_v51 }
  0x6a   : > { %v435_v56 = vpack.c.bf16 %v431_v53, %v431_v53  ;;  %v393_v20 = vadd.f32 %v385_v52, %v365_v54 }
  0x6c   : > { %440 = vst.msk [vmem:[%s198_s26 + $0x4] sm:$0x3] %vm437_vm0, %v435_v56  ;;  %v421_v57 = vadd.f32 %v413_v55, %v393_v20 }
  0x6e   : > { %v432_v58 = vadd.f32 %v540_v29, %v421_v57 }
  0x70   : > { %v436_v59 = vpack.c.bf16 %v432_v58, %v432_v58 }
  0x72   : > { %441 = vst.msk [vmem:[%s198_s26 + $0x6] sm:$0x3] %vm437_vm0, %v436_v59 }
  0x73 PF: > { %s15_s12 = sadd.s32 1, %s646_s12  }
  0x74   : > { %p12_p5 = scmp.ge.s32.totalorder %s15_s12, 4  }
  0x76   :  { %14 = sbr.rel (!%p12_p5) target bundleno = 2 (0x2), region = 79 }
  0x7d   :  { %463 = vsyncpa [#allocation3], 1 }
  0x7e   :  { %465 = vsyncpa [#allocation3 + $0x1], 1 }
  0x7f   :  { %466 = vsyncpa [#allocation5], 1 }

// kernel: shufflenet_forward.66
= control target key start
LH: loop header
LB: loop body
LE: loop exit
PB: predicated region body
PF: predicated region fallthrough
CT: control target
= control target key end

     0   :  { %8 = vsyncpa [#allocation3], 0  ;;  %s709_s0 = inlined_call_operand.vmem [shape: bf16[2,4,4,122], index: 0, kind: input, shape index: {}]   ;;  %s710_s1 = inlined_call_operand.hbm [shape: f32[9,1,122], index: 1, kind: input, shape index: {}]   ;;  %s711_s2 = inlined_call_operand.hbm [shape: f32[1,122], index: 2, kind: input, shape index: {}]   ;;  %s712_s3 = inlined_call_operand.vmem [shape: bf16[2,2,2,122], index: 3, kind: output, shape index: {}]  }
   0x1   :  { %9 = vsyncpa [#allocation5], 0  ;;  %s611_s12 = smov 0  }
   0x2 LB: > { %s617_s13 = sadd.s32 4294967295, %s585_s12   ;;  %p449_p0 = scmp.ge.s32.totalorder %s585_s12, 1  ;;  %s585_s12 = sphi %s611_s12, %s15_s12  }
   0x3   : > { %p114_p1 = scmp.lt.s32.totalorder %s585_s12, 3  ;;  %s587_s14 = smov [#allocation2]  }
   0x4   : > { %s126_s15 = sshll.u32 %s587_s14, 4  ;;  %p713_p3 = scmp.eq.s32.totalorder %s617_s13, 0  ;;  %s127_s15 = int_to_ptr.vmem [resolvable:$true] %s126_s15 }
   0x5   : > { %p621_p2 = pnand %p449_p0, %p114_p1  ;;  %s588_s17 = smov [#allocation4]  }
   0x6   : > { %s140_s18 = sshll.u32 %s588_s17, 4  ;;  %s515_s22 = scalar_lea.hbm %s710_s1, 144  ;;  %s634_s18 = int_to_ptr.vmem [resolvable:$true] %s140_s18 }
   0x7   : > { %s715_s16 = scalar_select %p621_p2, 1, 0 }
   0x8   : > { %p492_p4 = pneg %p621_p2  ;;  %p516_p6 = scmp.ne.s32.totalorder %s710_s1, %s515_s22 }
   0x9   : > { %p522_p10 = scmp.lt.u32.totalorder %s515_s22, %s710_s1 }
   0xa   : > { %p630_p5 = pnand %p713_p3, %p492_p4 }
   0xc   : > { %p517_p7 = pneg %p630_p5 }
   0xe   : > { %p518_p8 = pnand %p517_p7, %p516_p6 }
  0x10   : > { %p519_p9 = pneg %p518_p8 }
  0x12   : > { %p524_p11 = pnand %p522_p10, %p519_p9 }
  0x14   : > { %527 = shalt.err (!%p524_p11)
}
  0x15   : > { %s528_s27 = scalar_lea.vmem %s127_s15, 144  ;;  %s535_s28 = scalar_lea.vmem %s127_s15, 160 }
  0x16   : > { %p529_p12 = scmp.ne.s32.totalorder %s127_s15, %s528_s27  ;;  %p536_p1 = scmp.lt.s32.totalorder %s127_s15, %s127_s15 }
  0x17   : > { %p537_p4 = scmp.lt.s32.totalorder %s535_s28, %s528_s27 }
  0x18   : > { %p531_p13 = pnand %p529_p12, %p517_p7 }
  0x19   : > { %p538_p3 = por %p537_p4, %p536_p1 }
  0x1a   : > { %p532_p0 = pneg %p531_p13 }
  0x1c   : > { %p539_p2 = pnand %p538_p3, %p532_p0 }
  0x1e   : > { %542 = shalt.err (!%p539_p2)
}
  0x1f   : > { %s589_s29 = smov 16   ;;  %s590_s30 = smov 1  }
  0x20   : > { %495 = dma.hbm_to_vmem [thread:$0]  (!%p630_p5), %s710_s1, 144, %s127_s15, [#allocation3], %s589_s29, %s589_s29, %s590_s30  }
  0x21   : > { %s543_s8 = scalar_lea.hbm %s711_s2, 16 }
  0x22   : > { %p544_p6 = scmp.ne.s32.totalorder %s711_s2, %s543_s8  ;;  %p550_p8 = scmp.lt.u32.totalorder %s543_s8, %s711_s2 }
  0x24   : > { %p546_p2 = pnand %p544_p6, %p517_p7 }
  0x26   : > { %p547_p3 = pneg %p546_p2 }
  0x28   : > { %p552_p9 = pnand %p550_p8, %p547_p3 }
  0x2a   : > { %555 = shalt.err (!%p552_p9)
}
  0x2b   : > { %s556_s15 = scalar_lea.vmem %s634_s18, 16  ;;  %s563_s17 = scalar_lea.vmem %s634_s18, 32 }
  0x2c   : > { %p557_p10 = scmp.ne.s32.totalorder %s634_s18, %s556_s15  ;;  %p564_p13 = scmp.lt.s32.totalorder %s634_s18, %s634_s18 }
  0x2d   : > { %p565_p0 = scmp.lt.s32.totalorder %s563_s17, %s556_s15 }
  0x2e   : > { %p559_p11 = pnand %p557_p10, %p517_p7 }
  0x2f   : > { %p566_p1 = por %p565_p0, %p564_p13 }
  0x30   : > { %p560_p12 = pneg %p559_p11 }
  0x32   : > { %p567_p4 = pnand %p566_p1, %p560_p12 }
  0x34   : > { %570 = shalt.err (!%p567_p4)
}
  0x35   : > { %498 = dma.hbm_to_vmem [thread:$0]  (!%p630_p5), %s711_s2, 16, %s634_s18, [#allocation5]  }
  0x36   : > { %p717_p6 = scmp.ne.s32.totalorder %s715_s16, 0 }
  0x37   : > { %p718_p7 = scmp.eq.s32.totalorder (!%p717_p6), %s617_s13, 0 }
  0x38   : > { %161 = sbr.rel (%p717_p6) target bundleno = 101 (0x65), region = 32 }
  0x3f   : > { %576 = dma.done.wait (%p718_p7), [#allocation3], 144   ;;  %p719_p2 = pmov %p718_p7 }
  0x41   : > { %578 = vsyncadd (%p719_p2), [#allocation3], 4294967152  ;;  %p720_p3 = pmov %p719_p2 }
  0x42   : > { %p721_p8 = pmov %p719_p2 }
  0x43   : > { %580 = dma.done.wait (%p720_p3), [#allocation5], 16  }
  0x44   : > { %582 = vsyncadd (%p721_p8), [#allocation5], 4294967280  ;;  %p188_p9 = scmp.lt.s32.totalorder %s617_s13, 1  ;;  %v459_v5 = vld [vmem:[#allocation2] ss:$0 sm:$0xff]  ;;  %vm369_vm0 = vcmask 991232  }
  0x45   : > { %v460_v6 = vld [vmem:[#allocation2 + $0x1] ss:$0 sm:$0xff]  ;;  %v463_v7 = vld [vmem:[#allocation2 + $0x2] ss:$0 sm:$0xff]  ;;  %v467_v8 = vld [vmem:[#allocation2 + $0x4] ss:$0 sm:$0xff] }
  0x46   : > { %s723_s13 = smov (!%p188_p9, %s617_s13), 1  ;;  %v470_v13 = vld [vmem:[#allocation2 + $0x5] ss:$0 sm:$0xff]  ;;  %v466_v18 = vld [vmem:[#allocation2 + $0x3] ss:$0 sm:$0xff] }
  0x47   : > { %s483_s16 = sshll.u32 %s723_s13, 3  ;;  %v474_v29 = vld [vmem:[#allocation2 + $0x7] ss:$0 sm:$0xff]  ;;  %v473_v36 = vld [vmem:[#allocation2 + $0x6] ss:$0 sm:$0xff]  ;;  %s458_s23 = sshll.u32 %s723_s13, 1 }
  0x48   : > { %s192_s22 = scalar_lea.vmem %s709_s0, %s483_s16  ;;  %v477_v37 = vld [vmem:[#allocation2 + $0x8] ss:$0 sm:$0xff]  ;;  %v480_v61 = vld [vmem:[#allocation4] ss:$0 sm:$0xff]  ;;  %s196_s26 = scalar_lea.vmem %s712_s3, %s458_s23 }
  0x49   : > { %v197_v0 = vld [vmem:[%s192_s22] sm:$0x3]  ;;  %v198_v1 = vld [vmem:[%s192_s22 + $0x2] sm:$0x3]  ;;  %v199_v2 = vld [vmem:[%s192_s22 + $0x4] sm:$0x3] }
  0x4a   : > { %v201_v3 = vunpack.c.l.bf16 %v197_v0  ;;  %v202_v4 = vunpack.c.l.bf16 %v198_v1  ;;  %v200_v14 = vld [vmem:[%s192_s22 + $0x6] sm:$0x3]  ;;  %v203_v15 = vunpack.c.l.bf16 %v199_v2 }
  0x4b   : > { %v204_v25 = vunpack.c.l.bf16 %v200_v14 }
  0x4c   : > { %v212_v9 = vmul.f32 %v459_v5, %v201_v3  ;;  %v213_v10 = vmul.f32 %v459_v5, %v202_v4  ;;  %v222_v11 = vmul.f32 %v460_v6, %v201_v3  ;;  %v223_v12 = vmul.f32 %v460_v6, %v202_v4 }
  0x4d   : > { %v242_v16 = vmul.f32 %v463_v7, %v201_v3  ;;  %v243_v17 = vmul.f32 %v463_v7, %v202_v4  ;;  %v274_v21 = vmul.f32 %v467_v8, %v202_v4  ;;  %v294_v24 = vmul.f32 %v470_v13, %v202_v4 }
  0x4e   : > { %v461_v19 = vrot.slane %v222_v11, 9  ;;  %v462_v20 = vrot.slane %v223_v12, 9  ;;  %v262_v28 = vmul.f32 %v466_v18, %v202_v4  ;;  %v263_v30 = vmul.f32 %v466_v18, %v203_v15 }
  0x4f   : > { %v464_v22 = vrot.slane %v242_v16, 10  ;;  %v465_v23 = vrot.slane %v243_v17, 10  ;;  %v275_v31 = vmul.f32 %v467_v8, %v203_v15  ;;  %v295_v32 = vmul.f32 %v470_v13, %v203_v15 }
  0x50   : > { %v232_v26 = vadd.f32 %v461_v19, %v212_v9  ;;  %v233_v27 = vadd.f32 %v462_v20, %v213_v10  ;;  %v468_v35 = vrot.slane %v274_v21, 9  ;;  %v471_v38 = vrot.slane %v294_v24, 10 }
  0x51   : > { %v326_v39 = vmul.f32 %v474_v29, %v203_v15  ;;  %v469_v40 = vrot.slane %v275_v31, 9  ;;  %v472_v43 = vrot.slane %v295_v32, 10  ;;  %v327_v44 = vmul.f32 %v474_v29, %v204_v25 }
  0x52   : > { %v252_v33 = vadd.f32 %v464_v22, %v232_v26  ;;  %v253_v34 = vadd.f32 %v465_v23, %v233_v27  ;;  %v314_v45 = vmul.f32 %v473_v36, %v203_v15  ;;  %v346_v46 = vmul.f32 %v477_v37, %v203_v15 }
  0x53   : > { %v315_v49 = vmul.f32 %v473_v36, %v204_v25  ;;  %v347_v50 = vmul.f32 %v477_v37, %v204_v25  ;;  %v475_v52 = vrot.slane %v326_v39, 9  ;;  %v476_v54 = vrot.slane %v327_v44, 9 }
  0x54   : > { %v264_v41 = vadd.f32 %v262_v28, %v252_v33  ;;  %v265_v42 = vadd.f32 %v263_v30, %v253_v34  ;;  %v478_v56 = vrot.slane %v346_v46, 10 }
  0x55   : > { %v479_v58 = vrot.slane %v347_v50, 10 }
  0x56   : > { %v284_v47 = vadd.f32 %v468_v35, %v264_v41  ;;  %v285_v48 = vadd.f32 %v469_v40, %v265_v42 }
  0x58   : > { %v304_v51 = vadd.f32 %v471_v38, %v284_v47  ;;  %v305_v53 = vadd.f32 %v472_v43, %v285_v48 }
  0x5a   : > { %v316_v55 = vadd.f32 %v314_v45, %v304_v51  ;;  %v317_v57 = vadd.f32 %v315_v49, %v305_v53 }
  0x5c   : > { %v336_v59 = vadd.f32 %v475_v52, %v316_v55  ;;  %v337_v60 = vadd.f32 %v476_v54, %v317_v57 }
  0x5e   : > { %v356_v62 = vadd.f32 %v478_v56, %v336_v59  ;;  %v357_v63 = vadd.f32 %v479_v58, %v337_v60 }
  0x60   : > { %v365_v0 = vadd.f32 %v480_v61, %v356_v62  ;;  %v366_v1 = vadd.f32 %v480_v61, %v357_v63 }
  0x62   : > { %v367_v2 = vpack.c.bf16 %v365_v0, %v365_v0  ;;  %v368_v3 = vpack.c.bf16 %v366_v1, %v366_v1 }
  0x64   : > { %370 = vst.msk [vmem:[%s196_s26] sm:$0x1] %vm369_vm0, %v367_v2  ;;  %371 = vst.msk [vmem:[%s196_s26 + $0x1] sm:$0x1] %vm369_vm0, %v368_v3 }
  0x65 PF: > { %s15_s12 = sadd.s32 1, %s585_s12  }
  0x66   : > { %p12_p5 = scmp.ge.s32.totalorder %s15_s12, 4  }
  0x68   :  { %14 = sbr.rel (!%p12_p5) target bundleno = 2 (0x2), region = 79 }
  0x6f   :  { %391 = vsyncpa [#allocation3], 1 }
  0x70   :  { %393 = vsyncpa [#allocation3 + $0x1], 1 }
  0x71   :  { %394 = vsyncpa [#allocation5], 1 }

// kernel: shufflenet_forward.76
= control target key start
LH: loop header
LB: loop body
LE: loop exit
PB: predicated region body
PF: predicated region fallthrough
CT: control target
= control target key end

     0   :  { %vm219_vm0 = vcmask 949248   ;;  %vm223_vm1 = vcmask 1041408   ;;  %v48_v37 = vlaneseq  ;;  %vm281_vm2 = vcmask 1043456   ;;  %s498_s1 = inlined_call_operand.vmem [shape: bf16[244,244], index: 1, kind: input, shape index: {}]   ;;  %s499_s0 = inlined_call_operand.vmem [shape: bf16[8,244], index: 0, kind: input, shape index: {}]   ;;  %s500_s2 = inlined_call_operand.vmem [shape: f32[1,244], index: 2, kind: input, shape index: {}]   ;;  %s501_s3 = inlined_call_operand.vmem [shape: bf16[8,244], index: 3, kind: output, shape index: {}]  }
   0x1   :  { %v327_v0 = vld [vmem:[%s498_s1 + $0x4] ss:$8 sps:$4 sm:$0xff]   ;;  %v329_v1 = vld [vmem:[%s498_s1] ss:$8 sps:$4 sm:$0xff]   ;;  %v330_v2 = vld [vmem:[%s498_s1 + $0x14] ss:$8 sps:$4 sm:$0xff]  }
   0x2   :  { %230 = vmatprep.subr.bf16.mxu0 %v327_v0  ;;  %v332_v3 = vld [vmem:[%s498_s1 + $0x10] ss:$8 sps:$4 sm:$0xff]   ;;  %v333_v4 = vld [vmem:[%s498_s1 + $0x24] ss:$8 sps:$4 sm:$0xff]   ;;  %v335_v5 = vld [vmem:[%s498_s1 + $0x20] ss:$8 sps:$4 sm:$0xff]  }
   0x3   :  { %231 = vmatpush1.bf16.msra.mxu0 %v329_v1  ;;  %v336_v6 = vld [vmem:[%s498_s1 + $0x34] ss:$8 sps:$4 sm:$0xff]   ;;  %v338_v7 = vld [vmem:[%s498_s1 + $0x30] ss:$8 sps:$4 sm:$0xff]   ;;  %v339_v8 = vld [vmem:[%s498_s1 + $0x44] ss:$8 sps:$4 sm:$0xff]  }
   0x4   :  { %232 = vmatprep.subr.bf16.mxu0 %v330_v2  ;;  %v341_v9 = vld [vmem:[%s498_s1 + $0x40] ss:$8 sps:$4 sm:$0xff]   ;;  %v342_v10 = vld [vmem:[%s498_s1 + $0x54] ss:$8 sps:$4 sm:$0xff]   ;;  %v344_v11 = vld [vmem:[%s498_s1 + $0x50] ss:$8 sps:$4 sm:$0xff]  }
   0x5   :  { %v345_v12 = vld [vmem:[%s498_s1 + $0x64] ss:$8 sps:$4 sm:$0xff]   ;;  %v347_v15 = vld [vmem:[%s498_s1 + $0x60] ss:$8 sps:$4 sm:$0xff]   ;;  %v348_v16 = vld [vmem:[%s498_s1 + $0x74] ss:$8 sps:$4 sm:$0xff]  }
   0x6   :  { %v14_v13 = vld [vmem:[%s499_s0] sm:$0xff]  ;;  %v350_v17 = vld [vmem:[%s498_s1 + $0x70] ss:$8 sps:$4 sm:$0xff]   ;;  %v354_v20 = vld [vmem:[%s498_s1 + $0x94] ss:$8 sps:$4 sm:$0xff]   ;;  %v49_v38 = vshrl.u32 %v48_v37, 7 }
   0x7   :  { %233 = vmatpush1.bf16.msra.mxu0 %v332_v3  ;;  %v290_v14 = vcombine.high %v14_v13, %v14_v13  ;;  %v351_v18 = vld [vmem:[%s498_s1 + $0x84] ss:$8 sps:$4 sm:$0xff]   ;;  %v353_v19 = vld [vmem:[%s498_s1 + $0x80] ss:$8 sps:$4 sm:$0xff]   ;;  %v356_v21 = vld [vmem:[%s498_s1 + $0x90] ss:$8 sps:$4 sm:$0xff]   ;;  %v289_v36 = vcombine.low %v14_v13, %v14_v13 }
   0x8   :  { %234 = vmatprep.subr.bf16.mxu0 %v333_v4  ;;  %v357_v22 = vld [vmem:[%s498_s1 + $0xa4] ss:$8 sps:$4 sm:$0xff]   ;;  %v359_v23 = vld [vmem:[%s498_s1 + $0xa0] ss:$8 sps:$4 sm:$0xff]   ;;  %v360_v24 = vld [vmem:[%s498_s1 + $0xb4] ss:$8 sps:$4 sm:$0xff]  }
   0x9   :  { %324 = vmatprep.mubr.msk.bf16.mxu0 %vm219_vm0, %v290_v14  ;;  %v362_v25 = vld [vmem:[%s498_s1 + $0xb0] ss:$8 sps:$4 sm:$0xff]   ;;  %v363_v26 = vld [vmem:[%s498_s1 + $0xc4] ss:$8 sps:$4 sm:$0xff]   ;;  %v365_v27 = vld [vmem:[%s498_s1 + $0xc0] ss:$8 sps:$4 sm:$0xff]  }
   0xa   :  { %v366_v28 = vld [vmem:[%s498_s1 + $0xd4] ss:$8 sps:$4 sm:$0xff]   ;;  %v368_v29 = vld [vmem:[%s498_s1 + $0xd0] ss:$8 sps:$4 sm:$0xff]   ;;  %v369_v30 = vld [vmem:[%s498_s1 + $0xe4] ss:$8 sps:$4 sm:$0xff]  }
   0xb   :  { %235 = vmatpush1.bf16.msra.mxu0 %v335_v5  ;;  %v45_v31 = vld [vmem:[%s498_s1 + $0xf0] sm:$0x33]  ;;  %v371_v32 = vld [vmem:[%s498_s1 + $0xe0] ss:$8 sps:$4 sm:$0xff]   ;;  %v50_v39 = vsub.s32 0, %v49_v38  ;;  %v54_v41 = vsub.s32 1, %v49_v38 }
   0xc   :  { %236 = vmatprep.subr.bf16.mxu0 %v336_v6  ;;  %v322_v33 = vcombine.high %v45_v31, %v45_v31  ;;  %v321_v34 = vcombine.low %v45_v31, %v45_v31  ;;  %v46_v40 = vld [vmem:[%s500_s2] sm:$0x3]  ;;  %vm282_vm3 = vcmask 949252  }
   0xd   :  { %v51_v42 = vrot.slane %v46_v40, %v50_v39  ;;  %v55_v43 = vrot.slane %v46_v40, %v54_v41  ;;  %vm283_vm4 = vmor %vm282_vm3, %vm281_vm2 }
   0xe   :  { %v225_v35 = vsel %vm223_vm1, %v321_v34, 0 }
   0xf   :  { %237 = vmatpush1.bf16.msra.mxu0 %v338_v7 }
  0x10   :  { %238 = vmatprep.subr.bf16.mxu0 %v339_v8 }
  0x13   :  { %239 = vmatpush1.bf16.msra.mxu0 %v341_v9 }
  0x14   :  { %240 = vmatprep.subr.bf16.mxu0 %v342_v10 }
  0x17   :  { %241 = vmatpush1.bf16.msra.mxu0 %v344_v11 }
  0x18   :  { %242 = vmatprep.subr.bf16.mxu0 %v345_v12 }
  0x1b   :  { %243 = vmatpush1.bf16.msra.mxu0 %v347_v15 }
  0x1c   :  { %244 = vmatprep.subr.bf16.mxu0 %v348_v16 }
  0x1f   :  { %245 = vmatpush1.bf16.msra.mxu0 %v350_v17 }
  0x20   :  { %246 = vmatprep.subr.bf16.mxu0 %v351_v18 }
  0x23   :  { %247 = vmatpush1.bf16.msra.mxu0 %v353_v19 }
  0x24   :  { %248 = vmatprep.subr.bf16.mxu0 %v354_v20 }
  0x27   :  { %249 = vmatpush1.bf16.msra.mxu0 %v356_v21 }
  0x28   :  { %250 = vmatprep.subr.bf16.mxu0 %v357_v22 }
  0x2b   :  { %251 = vmatpush1.bf16.msra.mxu0 %v359_v23 }
  0x2c   :  { %252 = vmatprep.subr.bf16.mxu0 %v360_v24 }
  0x2f   :  { %253 = vmatpush1.bf16.msra.mxu0 %v362_v25 }
  0x30   :  { %254 = vmatprep.subr.bf16.mxu0 %v363_v26 }
  0x33   :  { %255 = vmatpush1.bf16.msra.mxu0 %v365_v27 }
  0x34   :  { %256 = vmatprep.subr.bf16.mxu0 %v366_v28 }
  0x37   :  { %257 = vmatpush1.bf16.msra.mxu0 %v368_v29 }
  0x38   :  { %258 = vmatprep.subr.bf16.mxu0 %v369_v30 }
  0x3b   :  { %259 = vmatpush1.bf16.msra.mxu0 %v371_v32 }
  0x3c   :  { %323 = vmatprep.subr.msk.bf16.mxu0 %vm223_vm1, %v322_v33 }
  0x3f   :  { %261 = vmatpush1.bf16.msra.mxu0 %v225_v35 }
  0x42   :  { %263 = vmatmul.mubr.bf16.vlgmr.msra.gmra.mrb[0].mxu0 %v289_v36 }
 0x115   :  { %v264_v44 = vpop.f32.mrb[0].mxu0 }
 0x116   :  { %v265_v45 = vadd.f32 %v264_v44, %v51_v42  ;;  %v266_v46 = vpop.f32.mrb[1].mxu0 }
 0x117   :  { %v267_v47 = vadd.f32 %v266_v46, %v55_v43  ;;  %v268_v48 = vpop.f32.mrb[2].mxu0 }
 0x118   :  { %v271_v49 = vmax.f32 %v265_v45, 0.0  ;;  %v269_v50 = vpop.f32.mrb[3].mxu0 }
 0x119   :  { %v272_v51 = vmax.f32 %v267_v47, 0.0 }
 0x11b   :  { %v326_v52 = vpack.c.bf16 %v272_v51, %v271_v49 }
 0x11d   :  { %284 = vst.msk [vmem:[%s501_s3] sm:$0xff] %vm283_vm4, %v326_v52 }

// kernel: shufflenet_forward.77
= control target key start
LH: loop header
LB: loop body
LE: loop exit
PB: predicated region body
PF: predicated region fallthrough
CT: control target
= control target key end

     0   :  { %s579_s12 = smov 0   ;;  %s672_s0 = inlined_call_operand.vmem [shape: bf16[2,4,4,244], index: 0, kind: input, shape index: {}]   ;;  %s673_s1 = inlined_call_operand.vmem [shape: f32[9,1,244], index: 1, kind: input, shape index: {}]   ;;  %s674_s2 = inlined_call_operand.vmem [shape: f32[1,244], index: 2, kind: input, shape index: {}]   ;;  %s675_s3 = inlined_call_operand.vmem [shape: bf16[2,2,2,244], index: 3, kind: output, shape index: {}]  }
   0x1 LB: > { %s499_s13 = sadd.s32 4294967295, %s556_s12   ;;  %p503_p0 = scmp.ge.s32.totalorder %s556_s12, 1  ;;  %s556_s12 = sphi %s579_s12, %s13_s12  }
   0x2   : > { %p137_p1 = scmp.lt.s32.totalorder %s556_s12, 3 }
   0x4   : > { %p138_p2 = pnand %p503_p0, %p137_p1 }
   0x5   : > { %p160_p3 = scmp.lt.s32.totalorder (!%p138_p2), %s499_s13, 1  ;;  %v179_v0 = vlaneseq (!%p138_p2)  ;;  %v177_v2 = vld [vmem:[%s673_s1] sm:$0x3] (!%p138_p2)  ;;  %v507_v3 = vld [vmem:[%s673_s1 + $0x2] sm:$0x3] (!%p138_p2)  ;;  %vm441_vm0 = vcmask (!%p138_p2), 1040384  }
   0x6   : > { %141 = sbr.rel (%p138_p2) target bundleno = 50 (0x32), region = 32  ;;  %v510_v6 = vld [vmem:[%s673_s1 + $0x4] sm:$0x3] (!%p138_p2)  ;;  %v513_v7 = vld [vmem:[%s673_s1 + $0x6] sm:$0x3] (!%p138_p2)  ;;  %vm442_vm1 = vcmask (!%p138_p2), 943105  }
   0x7   : > { %v589_v1 = vshrl.u32 (!%p138_p2), %v179_v0, 7  ;;  %v514_v14 = vld [vmem:[%s673_s1 + $0x8] sm:$0x3] (!%p138_p2)  ;;  %v517_v23 = vld [vmem:[%s673_s1 + $0xa] sm:$0x3] (!%p138_p2)  ;;  %vm443_vm2 = vmor (!%p138_p2), %vm442_vm1, %vm441_vm0 }
   0x8   : > { %v520_v28 = vld [vmem:[%s673_s1 + $0xc] sm:$0x3] (!%p138_p2)  ;;  %v521_v53 = vld [vmem:[%s673_s1 + $0xe] sm:$0x3] (!%p138_p2)  ;;  %v524_v58 = vld [vmem:[%s673_s1 + $0x10] sm:$0x3] (!%p138_p2) }
   0x9   : > { %v599_v4 = vsub.s32 (!%p138_p2), 0, %v589_v1  ;;  %v602_v5 = vsub.s32 (!%p138_p2), 1, %v589_v1 }
   0xb   : > { %v182_v10 = vrot.slane (!%p138_p2), %v177_v2, %v599_v4  ;;  %v186_v11 = vrot.slane (!%p138_p2), %v177_v2, %v602_v5  ;;  %v197_v12 = vrot.slane (!%p138_p2), %v507_v3, %v599_v4  ;;  %v201_v13 = vrot.slane (!%p138_p2), %v507_v3, %v602_v5 }
   0xc   : > { %v223_v21 = vrot.slane (!%p138_p2), %v510_v6, %v599_v4  ;;  %v227_v22 = vrot.slane (!%p138_p2), %v510_v6, %v602_v5  ;;  %v249_v24 = vrot.slane (!%p138_p2), %v513_v7, %v599_v4  ;;  %v253_v25 = vrot.slane (!%p138_p2), %v513_v7, %v602_v5 }
   0xd   : > { %s677_s13 = smov (!%p160_p3, %s499_s13), 1  ;;  %v187_v19 = vcombine.low %v182_v10, %v186_v11  ;;  %v202_v20 = vcombine.low %v197_v12, %v201_v13  ;;  %v266_v26 = vrot.slane %v514_v14, %v599_v4  ;;  %v270_v27 = vrot.slane %v514_v14, %v602_v5  ;;  %v381_v14 = vld [vmem:[%s674_s2] sm:$0x3] }
   0xe   : > { %s531_s18 = sshll.u32 %s677_s13, 4  ;;  %v228_v32 = vcombine.low %v223_v21, %v227_v22  ;;  %v254_v33 = vcombine.low %v249_v24, %v253_v25  ;;  %v292_v35 = vrot.slane %v517_v23, %v599_v4  ;;  %v296_v36 = vrot.slane %v517_v23, %v602_v5  ;;  %s506_s11 = sshll.u32 %s677_s13, 2 }
   0xf   : > { %s164_s21 = scalar_lea.vmem %s672_s0, %s531_s18  ;;  %v203_v31 = vrot.slane %v202_v20, 7  ;;  %v271_v34 = vcombine.low %v266_v26, %v270_v27  ;;  %v318_v40 = vrot.slane %v520_v28, %v599_v4  ;;  %v322_v52 = vrot.slane %v520_v28, %v602_v5  ;;  %s168_s16 = scalar_lea.vmem %s675_s3, %s506_s11 }
  0x10   : > { %v533_v8 = vld [vmem:[%s164_s21] sm:$0xff]   ;;  %v540_v9 = vld [vmem:[%s164_s21 + $0x8] sm:$0xff]   ;;  %v229_v39 = vrot.slane %v228_v32, 6  ;;  %v297_v44 = vcombine.low %v292_v35, %v296_v36  ;;  %v335_v3 = vrot.slane %v521_v53, %v599_v4  ;;  %v339_v6 = vrot.slane %v521_v53, %v602_v5 }
  0x11   : > { %v534_v15 = vunpack.c.l.bf16 %v533_v8  ;;  %v535_v16 = vunpack.c.h.bf16 %v533_v8  ;;  %v620_v17 = vunpack.c.l.bf16 %v540_v9  ;;  %v622_v18 = vunpack.c.h.bf16 %v540_v9 }
  0x12   : > { %v272_v43 = vrot.slane %v271_v34, 7  ;;  %v298_v51 = vrot.slane %v297_v44, 6  ;;  %v323_v2 = vcombine.low %v318_v40, %v322_v52  ;;  %v361_v7 = vrot.slane %v524_v58, %v599_v4 }
  0x13   : > { %v189_v29 = vmul.f32 %v534_v15, %v187_v19  ;;  %v190_v30 = vmul.f32 %v535_v16, %v187_v19  ;;  %v205_v37 = vmul.f32 %v534_v15, %v203_v31  ;;  %v206_v38 = vmul.f32 %v535_v16, %v203_v31 }
  0x14   : > { %v256_v41 = vmul.f32 %v535_v16, %v254_v33  ;;  %v257_v42 = vmul.f32 %v620_v17, %v254_v33  ;;  %v231_v47 = vmul.f32 %v534_v15, %v229_v39  ;;  %v232_v48 = vmul.f32 %v535_v16, %v229_v39 }
  0x15   : > { %v508_v45 = vrot.slane %v205_v37, 9  ;;  %v509_v46 = vrot.slane %v206_v38, 9  ;;  %v274_v49 = vmul.f32 %v535_v16, %v272_v43  ;;  %v275_v50 = vmul.f32 %v620_v17, %v272_v43 }
  0x16   : > { %v511_v56 = vrot.slane %v231_v47, 10  ;;  %v512_v57 = vrot.slane %v232_v48, 10  ;;  %v300_v61 = vmul.f32 %v535_v16, %v298_v51  ;;  %v301_v62 = vmul.f32 %v620_v17, %v298_v51 }
  0x17   : > { %v215_v54 = vadd.f32 %v508_v45, %v189_v29  ;;  %v216_v55 = vadd.f32 %v509_v46, %v190_v30  ;;  %v515_v59 = vrot.slane %v274_v49, 9  ;;  %v516_v60 = vrot.slane %v275_v50, 9 }
  0x18   : > { %v518_v10 = vrot.slane %v300_v61, 10  ;;  %v519_v11 = vrot.slane %v301_v62, 10  ;;  %v340_v12 = vcombine.low %v335_v3, %v339_v6  ;;  %v365_v13 = vrot.slane %v524_v58, %v602_v5 }
  0x19   : > { %v241_v63 = vadd.f32 %v511_v56, %v215_v54  ;;  %v242_v0 = vadd.f32 %v512_v57, %v216_v55  ;;  %v325_v19 = vmul.f32 %v620_v17, %v323_v2  ;;  %v326_v20 = vmul.f32 %v622_v18, %v323_v2 }
  0x1a   : > { %v341_v21 = vrot.slane %v340_v12, 7  ;;  %v366_v22 = vcombine.low %v361_v7, %v365_v13  ;;  %v386_v25 = vrot.slane %v381_v14, %v599_v4  ;;  %v390_v26 = vrot.slane %v381_v14, %v602_v5 }
  0x1b   : > { %v258_v8 = vadd.f32 %v256_v41, %v241_v63  ;;  %v259_v9 = vadd.f32 %v257_v42, %v242_v0  ;;  %v558_v32 = vmov 1966171168  }
  0x1c   : > { %v343_v27 = vmul.f32 %v620_v17, %v341_v21  ;;  %v344_v28 = vmul.f32 %v622_v18, %v341_v21  ;;  %v367_v29 = vrot.slane %v366_v22, 6  ;;  %v411_v33 = vunpack.c.l.s4 %v558_v32 }
  0x1d   : > { %v284_v15 = vadd.f32 %v515_v59, %v258_v8  ;;  %v285_v16 = vadd.f32 %v516_v60, %v259_v9  ;;  %v391_v38 = vcombine.low %v386_v25, %v390_v26 }
  0x1e   : > { %v522_v34 = vrot.slane %v343_v27, 9  ;;  %v523_v35 = vrot.slane %v344_v28, 9  ;;  %v369_v36 = vmul.f32 %v620_v17, %v367_v29  ;;  %v370_v37 = vmul.f32 %v622_v18, %v367_v29 }
  0x1f   : > { %v310_v23 = vadd.f32 %v518_v10, %v284_v15  ;;  %v311_v24 = vadd.f32 %v519_v11, %v285_v16  ;;  %v412_v42 = vunpack.c.0.s8 %v411_v33 }
  0x20   : > { %v525_v39 = vrot.slane %v369_v36, 10  ;;  %v526_v5 = vrot.slane %v370_v37, 10 }
  0x21   : > { %v327_v30 = vadd.f32 %v325_v19, %v310_v23  ;;  %v328_v31 = vadd.f32 %v326_v20, %v311_v24  ;;  %v415_v47 = vsub.s32 %v412_v42, %v589_v1 }
  0x23   : > { %v353_v4 = vadd.f32 %v522_v34, %v327_v30  ;;  %v354_v40 = vadd.f32 %v523_v35, %v328_v31 }
  0x25   : > { %v379_v41 = vadd.f32 %v525_v39, %v353_v4  ;;  %v380_v43 = vadd.f32 %v526_v5, %v354_v40 }
  0x27   : > { %v393_v44 = vadd.f32 %v391_v38, %v379_v41  ;;  %v394_v45 = vadd.f32 %v391_v38, %v380_v43 }
  0x29   : > { %v397_v46 = vcombine.high %v393_v44, %v393_v44  ;;  %v398_v48 = vcombine.high %v394_v45, %v394_v45 }
  0x2b   : > { %v527_v49 = vpack.c.bf16 %v397_v46, %v393_v44  ;;  %v528_v17 = vpack.c.bf16 %v398_v48, %v394_v45 }
  0x2d   : > { %v416_v18 = vrot.slane %v527_v49, %v415_v47  ;;  %v431_v50 = vrot.slane %v528_v17, %v415_v47 }
  0x2f   : > { %v423_v51 = vrot.slane %v416_v18, %v415_v47  ;;  %v438_v52 = vrot.slane %v431_v50, %v415_v47 }
  0x31   : > { %444 = vst.msk [vmem:[%s168_s16] sm:$0x3] %vm443_vm2, %v423_v51  ;;  %445 = vst.msk [vmem:[%s168_s16 + $0x2] sm:$0x3] %vm443_vm2, %v438_v52 }
  0x32 PF: > { %s13_s12 = sadd.s32 1, %s556_s12  }
  0x33   : > { %p10_p4 = scmp.ge.s32.totalorder %s13_s12, 4  }
  0x35   :  { %12 = sbr.rel (!%p10_p4) target bundleno = 1 (0x1), region = 70 }

// kernel: shufflenet_forward.78
= control target key start
LH: loop header
LB: loop body
LE: loop exit
PB: predicated region body
PF: predicated region fallthrough
CT: control target
= control target key end

     0   :  { %v48_v8 = vlaneseq  ;;  %v403_v9 = vmov 1966171168   ;;  %vm237_vm0 = vcmask 949248   ;;  %vm241_vm1 = vcmask 1041408   ;;  %s537_s1 = inlined_call_operand.vmem [shape: bf16[244,244], index: 1, kind: input, shape index: {}]   ;;  %s538_s0 = inlined_call_operand.vmem [shape: bf16[2,244], index: 0, kind: input, shape index: {}]   ;;  %s539_s2 = inlined_call_operand.vmem [shape: f32[1,244], index: 2, kind: input, shape index: {}]   ;;  %s540_s3 = inlined_call_operand.vmem [shape: bf16[2,244], index: 3, kind: output, shape index: {}]  }
   0x1   :  { %v356_v0 = vld [vmem:[%s537_s1 + $0x4] ss:$8 sps:$4 sm:$0xff]   ;;  %v358_v1 = vld [vmem:[%s537_s1] ss:$8 sps:$4 sm:$0xff]   ;;  %v359_v2 = vld [vmem:[%s537_s1 + $0x14] ss:$8 sps:$4 sm:$0xff]   ;;  %v68_v10 = vunpack.c.l.s4 %v403_v9 }
   0x2   :  { %248 = vmatprep.subr.bf16.mxu0 %v356_v0  ;;  %v361_v3 = vld [vmem:[%s537_s1 + $0x10] ss:$8 sps:$4 sm:$0xff]   ;;  %v362_v4 = vld [vmem:[%s537_s1 + $0x24] ss:$8 sps:$4 sm:$0xff]   ;;  %v364_v5 = vld [vmem:[%s537_s1 + $0x20] ss:$8 sps:$4 sm:$0xff]  }
   0x3   :  { %249 = vmatpush1.bf16.msra.mxu0 %v358_v1  ;;  %v365_v6 = vld [vmem:[%s537_s1 + $0x34] ss:$8 sps:$4 sm:$0xff]   ;;  %v367_v7 = vld [vmem:[%s537_s1 + $0x30] ss:$8 sps:$4 sm:$0xff]   ;;  %v368_v11 = vld [vmem:[%s537_s1 + $0x44] ss:$8 sps:$4 sm:$0xff]   ;;  %v69_v14 = vunpack.c.0.s8 %v68_v10 }
   0x4   :  { %250 = vmatprep.subr.bf16.mxu0 %v359_v2  ;;  %v370_v12 = vld [vmem:[%s537_s1 + $0x40] ss:$8 sps:$4 sm:$0xff]   ;;  %v454_v13 = vshrl.u32 %v48_v8, 7  ;;  %v371_v15 = vld [vmem:[%s537_s1 + $0x54] ss:$8 sps:$4 sm:$0xff]   ;;  %vm311_vm2 = vcmask 1040384  }
   0x5   :  { %v373_v16 = vld [vmem:[%s537_s1 + $0x50] ss:$8 sps:$4 sm:$0xff]   ;;  %v374_v18 = vld [vmem:[%s537_s1 + $0x64] ss:$8 sps:$4 sm:$0xff]   ;;  %v376_v21 = vld [vmem:[%s537_s1 + $0x60] ss:$8 sps:$4 sm:$0xff]  }
   0x6   :  { %v463_v17 = vsub.s32 %v69_v14, %v454_v13  ;;  %v319_v19 = vld.sshfl [vmem:[%s538_s0] sm:$0x11 pattern:$0x75316420]  ;;  %v377_v23 = vld [vmem:[%s537_s1 + $0x74] ss:$8 sps:$4 sm:$0xff]  }
   0x7   :  { %251 = vmatpush1.bf16.msra.mxu0 %v361_v3  ;;  %v66_v20 = vcombine.high %v319_v19, %v319_v19  ;;  %v379_v24 = vld [vmem:[%s537_s1 + $0x70] ss:$8 sps:$4 sm:$0xff]   ;;  %v380_v25 = vld [vmem:[%s537_s1 + $0x84] ss:$8 sps:$4 sm:$0xff]   ;;  %v382_v26 = vld [vmem:[%s537_s1 + $0x80] ss:$8 sps:$4 sm:$0xff]  }
   0x8   :  { %252 = vmatprep.subr.bf16.mxu0 %v362_v4  ;;  %v383_v27 = vld [vmem:[%s537_s1 + $0x94] ss:$8 sps:$4 sm:$0xff]   ;;  %v385_v28 = vld [vmem:[%s537_s1 + $0x90] ss:$8 sps:$4 sm:$0xff]   ;;  %v386_v29 = vld [vmem:[%s537_s1 + $0xa4] ss:$8 sps:$4 sm:$0xff]   ;;  %v73_v43 = vrot.slane %v319_v19, %v463_v17 }
   0x9   :  { %v80_v22 = vrot.slane %v66_v20, %v463_v17  ;;  %v388_v30 = vld [vmem:[%s537_s1 + $0xa0] ss:$8 sps:$4 sm:$0xff]   ;;  %v389_v31 = vld [vmem:[%s537_s1 + $0xb4] ss:$8 sps:$4 sm:$0xff]   ;;  %v391_v32 = vld [vmem:[%s537_s1 + $0xb0] ss:$8 sps:$4 sm:$0xff]  }
   0xa   :  { %v392_v33 = vld [vmem:[%s537_s1 + $0xc4] ss:$8 sps:$4 sm:$0xff]   ;;  %v394_v34 = vld [vmem:[%s537_s1 + $0xc0] ss:$8 sps:$4 sm:$0xff]   ;;  %v395_v35 = vld [vmem:[%s537_s1 + $0xd4] ss:$8 sps:$4 sm:$0xff]  }
   0xb   :  { %253 = vmatpush1.bf16.msra.mxu0 %v364_v5  ;;  %353 = vmatprep.mubr.msk.bf16.mxu0 %vm237_vm0, %v80_v22  ;;  %v397_v36 = vld [vmem:[%s537_s1 + $0xd0] ss:$8 sps:$4 sm:$0xff]   ;;  %v398_v37 = vld [vmem:[%s537_s1 + $0xe4] ss:$8 sps:$4 sm:$0xff]   ;;  %v400_v39 = vld [vmem:[%s537_s1 + $0xe0] ss:$8 sps:$4 sm:$0xff]  }
   0xc   :  { %254 = vmatprep.subr.bf16.mxu0 %v365_v6  ;;  %v45_v38 = vld [vmem:[%s537_s1 + $0xf0] sm:$0x33]  ;;  %v50_v44 = vsub.s32 0, %v454_v13  ;;  %v46_v45 = vld [vmem:[%s539_s2] sm:$0x3]  ;;  %v54_v46 = vsub.s32 1, %v454_v13 }
   0xd   :  { %v351_v40 = vcombine.high %v45_v38, %v45_v38  ;;  %v350_v41 = vcombine.low %v45_v38, %v45_v38  ;;  %vm312_vm3 = vcmask 943105  }
   0xe   :  { %v51_v47 = vrot.slane %v46_v45, %v50_v44  ;;  %v55_v48 = vrot.slane %v46_v45, %v54_v46  ;;  %vm313_vm4 = vmor %vm312_vm3, %vm311_vm2 }
   0xf   :  { %255 = vmatpush1.bf16.msra.mxu0 %v367_v7  ;;  %v243_v42 = vsel %vm241_vm1, %v350_v41, 0 }
  0x10   :  { %256 = vmatprep.subr.bf16.mxu0 %v368_v11 }
  0x13   :  { %257 = vmatpush1.bf16.msra.mxu0 %v370_v12 }
  0x14   :  { %258 = vmatprep.subr.bf16.mxu0 %v371_v15 }
  0x17   :  { %259 = vmatpush1.bf16.msra.mxu0 %v373_v16 }
  0x18   :  { %260 = vmatprep.subr.bf16.mxu0 %v374_v18 }
  0x1b   :  { %261 = vmatpush1.bf16.msra.mxu0 %v376_v21 }
  0x1c   :  { %262 = vmatprep.subr.bf16.mxu0 %v377_v23 }
  0x1f   :  { %263 = vmatpush1.bf16.msra.mxu0 %v379_v24 }
  0x20   :  { %264 = vmatprep.subr.bf16.mxu0 %v380_v25 }
  0x23   :  { %265 = vmatpush1.bf16.msra.mxu0 %v382_v26 }
  0x24   :  { %266 = vmatprep.subr.bf16.mxu0 %v383_v27 }
  0x27   :  { %267 = vmatpush1.bf16.msra.mxu0 %v385_v28 }
  0x28   :  { %268 = vmatprep.subr.bf16.mxu0 %v386_v29 }
  0x2b   :  { %269 = vmatpush1.bf16.msra.mxu0 %v388_v30 }
  0x2c   :  { %270 = vmatprep.subr.bf16.mxu0 %v389_v31 }
  0x2f   :  { %271 = vmatpush1.bf16.msra.mxu0 %v391_v32 }
  0x30   :  { %272 = vmatprep.subr.bf16.mxu0 %v392_v33 }
  0x33   :  { %273 = vmatpush1.bf16.msra.mxu0 %v394_v34 }
  0x34   :  { %274 = vmatprep.subr.bf16.mxu0 %v395_v35 }
  0x37   :  { %275 = vmatpush1.bf16.msra.mxu0 %v397_v36 }
  0x38   :  { %276 = vmatprep.subr.bf16.mxu0 %v398_v37 }
  0x3b   :  { %277 = vmatpush1.bf16.msra.mxu0 %v400_v39 }
  0x3c   :  { %352 = vmatprep.subr.msk.bf16.mxu0 %vm241_vm1, %v351_v40 }
  0x3f   :  { %279 = vmatpush1.bf16.msra.mxu0 %v243_v42 }
  0x42   :  { %281 = vmatmul.mubr.bf16.vlgmr.msra.gmra.mrb[0].mxu0 %v73_v43 }
 0x115   :  { %v282_v49 = vpop.f32.mrb[0].mxu0 }
 0x116   :  { %v283_v50 = vadd.f32 %v282_v49, %v51_v47  ;;  %v284_v51 = vpop.f32.mrb[1].mxu0 }
 0x117   :  { %v285_v52 = vadd.f32 %v284_v51, %v55_v48  ;;  %v286_v53 = vpop.f32.mrb[2].mxu0 }
 0x118   :  { %v289_v54 = vmax.f32 %v283_v50, 0.0  ;;  %v287_v55 = vpop.f32.mrb[3].mxu0 }
 0x119   :  { %v290_v56 = vmax.f32 %v285_v52, 0.0 }
 0x11b   :  { %v354_v57 = vpack.c.bf16 %v290_v56, %v289_v54 }
 0x11d   :  { %v302_v58 = vrot.slane %v354_v57, %v463_v17 }
 0x11f   :  { %v309_v59 = vrot.slane %v302_v58, %v463_v17 }
 0x121   :  { %314 = vst.msk [vmem:[%s540_s3] sm:$0x3] %vm313_vm4, %v309_v59 }

// kernel: shufflenet_forward.79
= control target key start
LH: loop header
LB: loop body
LE: loop exit
PB: predicated region body
PF: predicated region fallthrough
CT: control target
= control target key end

     0   :  { %8 = vsyncpa [#allocation3], 0  ;;  %s441_s12 = smov [#allocation2]   ;;  %s585_s0 = inlined_call_operand.vmem [shape: bf16[2,244], index: 0, kind: input, shape index: {}]   ;;  %s586_s1 = inlined_call_operand.vmem [shape: bf16[244,244], index: 1, kind: input, shape index: {}]   ;;  %s587_s2 = inlined_call_operand.hbm [shape: f32[1,244], index: 2, kind: input, shape index: {}]   ;;  %s588_s3 = inlined_call_operand.vmem [shape: bf16[2,244], index: 3, kind: output, shape index: {}]  }
   0x1   :  { %s19_s13 = sshll.u32 %s441_s12, 4  ;;  %s417_s16 = scalar_lea.hbm %s587_s2, 32  ;;  %s20_s13 = int_to_ptr.vmem [resolvable:$true] %s19_s13 }
   0x2   :  { %p418_p0 = scmp.ne.s32.totalorder %s587_s2, %s417_s16  ;;  %p421_p1 = scmp.lt.u32.totalorder %s417_s16, %s587_s2 }
   0x4   :  { %p423_p2 = pnand %p421_p1, %p418_p0 }
   0x6   :  { %426 = shalt.err (!%p423_p2)
}
   0x7   :  { %s427_s21 = scalar_lea.vmem %s20_s13, 32  ;;  %p432_p4 = scmp.lt.s32.totalorder %s20_s13, %s20_s13 }
   0x8   :  { %p428_p3 = scmp.ne.s32.totalorder %s20_s13, %s427_s21  ;;  %p433_p5 = scmp.lt.s32.totalorder %s427_s21, %s427_s21 }
   0xa   :  { %p434_p6 = por %p433_p5, %p432_p4 }
   0xc   :  { %p435_p7 = pnand %p434_p6, %p428_p3 }
   0xe   :  { %438 = shalt.err (!%p435_p7)
}
   0xf   :  { %22 = dma.hbm_to_vmem [thread:$0]  %s587_s2, 32, %s20_s13, [#allocation3]  }
  0x10   :  { %439 = dma.done.wait [#allocation3], 32  }
  0x11   :  { %440 = vsyncadd [#allocation3], 4294967264  ;;  %v370_v0 = vld [vmem:[%s586_s1 + $0x4] ss:$8 sps:$4 sm:$0xff]   ;;  %v372_v1 = vld [vmem:[%s586_s1] ss:$8 sps:$4 sm:$0xff]   ;;  %v60_v8 = vlaneseq }
  0x12   :  { %260 = vmatprep.subr.bf16.mxu0 %v370_v0  ;;  %v373_v2 = vld [vmem:[%s586_s1 + $0x14] ss:$8 sps:$4 sm:$0xff]   ;;  %v375_v3 = vld [vmem:[%s586_s1 + $0x10] ss:$8 sps:$4 sm:$0xff]   ;;  %v376_v4 = vld [vmem:[%s586_s1 + $0x24] ss:$8 sps:$4 sm:$0xff]  }
  0x13   :  { %261 = vmatpush1.bf16.msra.mxu0 %v372_v1  ;;  %v378_v5 = vld [vmem:[%s586_s1 + $0x20] ss:$8 sps:$4 sm:$0xff]   ;;  %v379_v6 = vld [vmem:[%s586_s1 + $0x34] ss:$8 sps:$4 sm:$0xff]   ;;  %v381_v7 = vld [vmem:[%s586_s1 + $0x30] ss:$8 sps:$4 sm:$0xff]  }
  0x14   :  { %262 = vmatprep.subr.bf16.mxu0 %v373_v2  ;;  %v442_v9 = vmov 1966171168   ;;  %v382_v11 = vld [vmem:[%s586_s1 + $0x44] ss:$8 sps:$4 sm:$0xff]   ;;  %v384_v12 = vld [vmem:[%s586_s1 + $0x40] ss:$8 sps:$4 sm:$0xff]  }
  0x15   :  { %v80_v10 = vunpack.c.l.s4 %v442_v9  ;;  %v505_v13 = vshrl.u32 %v60_v8, 7  ;;  %v385_v15 = vld [vmem:[%s586_s1 + $0x54] ss:$8 sps:$4 sm:$0xff]   ;;  %v387_v16 = vld [vmem:[%s586_s1 + $0x50] ss:$8 sps:$4 sm:$0xff]   ;;  %vm249_vm0 = vcmask 949248  }
  0x16   :  { %v388_v18 = vld [vmem:[%s586_s1 + $0x64] ss:$8 sps:$4 sm:$0xff]   ;;  %v332_v19 = vld.sshfl [vmem:[%s585_s0] sm:$0x11 pattern:$0x75316420] }
  0x17   :  { %263 = vmatpush1.bf16.msra.mxu0 %v375_v3  ;;  %v81_v14 = vunpack.c.0.s8 %v80_v10  ;;  %v78_v20 = vcombine.high %v332_v19, %v332_v19  ;;  %v390_v21 = vld [vmem:[%s586_s1 + $0x60] ss:$8 sps:$4 sm:$0xff]   ;;  %v391_v23 = vld [vmem:[%s586_s1 + $0x74] ss:$8 sps:$4 sm:$0xff]   ;;  %v393_v24 = vld [vmem:[%s586_s1 + $0x70] ss:$8 sps:$4 sm:$0xff]  }
  0x18   :  { %264 = vmatprep.subr.bf16.mxu0 %v376_v4  ;;  %v394_v25 = vld [vmem:[%s586_s1 + $0x84] ss:$8 sps:$4 sm:$0xff]   ;;  %v396_v26 = vld [vmem:[%s586_s1 + $0x80] ss:$8 sps:$4 sm:$0xff]   ;;  %v397_v27 = vld [vmem:[%s586_s1 + $0x94] ss:$8 sps:$4 sm:$0xff]  }
  0x19   :  { %v514_v17 = vsub.s32 %v81_v14, %v505_v13  ;;  %v399_v28 = vld [vmem:[%s586_s1 + $0x90] ss:$8 sps:$4 sm:$0xff]   ;;  %v400_v29 = vld [vmem:[%s586_s1 + $0xa4] ss:$8 sps:$4 sm:$0xff]   ;;  %v402_v30 = vld [vmem:[%s586_s1 + $0xa0] ss:$8 sps:$4 sm:$0xff]  }
  0x1a   :  { %v403_v31 = vld [vmem:[%s586_s1 + $0xb4] ss:$8 sps:$4 sm:$0xff]   ;;  %v405_v32 = vld [vmem:[%s586_s1 + $0xb0] ss:$8 sps:$4 sm:$0xff]   ;;  %v406_v33 = vld [vmem:[%s586_s1 + $0xc4] ss:$8 sps:$4 sm:$0xff]  }
  0x1b   :  { %265 = vmatpush1.bf16.msra.mxu0 %v378_v5  ;;  %v92_v22 = vrot.slane %v78_v20, %v514_v17  ;;  %v408_v34 = vld [vmem:[%s586_s1 + $0xc0] ss:$8 sps:$4 sm:$0xff]   ;;  %v409_v35 = vld [vmem:[%s586_s1 + $0xd4] ss:$8 sps:$4 sm:$0xff]   ;;  %v411_v36 = vld [vmem:[%s586_s1 + $0xd0] ss:$8 sps:$4 sm:$0xff]   ;;  %v85_v43 = vrot.slane %v332_v19, %v514_v17 }
  0x1c   :  { %266 = vmatprep.subr.bf16.mxu0 %v379_v6  ;;  %v412_v37 = vld [vmem:[%s586_s1 + $0xe4] ss:$8 sps:$4 sm:$0xff]   ;;  %v57_v38 = vld [vmem:[%s586_s1 + $0xf0] sm:$0x33]  ;;  %v414_v39 = vld [vmem:[%s586_s1 + $0xe0] ss:$8 sps:$4 sm:$0xff]  }
  0x1d   :  { %366 = vmatprep.mubr.msk.bf16.mxu0 %vm249_vm0, %v92_v22  ;;  %v364_v40 = vcombine.high %v57_v38, %v57_v38  ;;  %v363_v41 = vcombine.low %v57_v38, %v57_v38  ;;  %vm253_vm1 = vcmask 1041408   ;;  %v62_v44 = vsub.s32 0, %v505_v13  ;;  %v58_v45 = vld [vmem:[#allocation2] sm:$0x3] }
  0x1e   :  { %v66_v46 = vsub.s32 1, %v505_v13  ;;  %vm323_vm2 = vcmask 1040384   ;;  %vm324_vm3 = vcmask 943105  }
  0x1f   :  { %267 = vmatpush1.bf16.msra.mxu0 %v381_v7  ;;  %v255_v42 = vsel %vm253_vm1, %v363_v41, 0  ;;  %v63_v47 = vrot.slane %v58_v45, %v62_v44  ;;  %vm325_vm4 = vmor %vm324_vm3, %vm323_vm2 }
  0x20   :  { %268 = vmatprep.subr.bf16.mxu0 %v382_v11  ;;  %v67_v48 = vrot.slane %v58_v45, %v66_v46 }
  0x23   :  { %269 = vmatpush1.bf16.msra.mxu0 %v384_v12 }
  0x24   :  { %270 = vmatprep.subr.bf16.mxu0 %v385_v15 }
  0x27   :  { %271 = vmatpush1.bf16.msra.mxu0 %v387_v16 }
  0x28   :  { %272 = vmatprep.subr.bf16.mxu0 %v388_v18 }
  0x2b   :  { %273 = vmatpush1.bf16.msra.mxu0 %v390_v21 }
  0x2c   :  { %274 = vmatprep.subr.bf16.mxu0 %v391_v23 }
  0x2f   :  { %275 = vmatpush1.bf16.msra.mxu0 %v393_v24 }
  0x30   :  { %276 = vmatprep.subr.bf16.mxu0 %v394_v25 }
  0x33   :  { %277 = vmatpush1.bf16.msra.mxu0 %v396_v26 }
  0x34   :  { %278 = vmatprep.subr.bf16.mxu0 %v397_v27 }
  0x37   :  { %279 = vmatpush1.bf16.msra.mxu0 %v399_v28 }
  0x38   :  { %280 = vmatprep.subr.bf16.mxu0 %v400_v29 }
  0x3b   :  { %281 = vmatpush1.bf16.msra.mxu0 %v402_v30 }
  0x3c   :  { %282 = vmatprep.subr.bf16.mxu0 %v403_v31 }
  0x3f   :  { %283 = vmatpush1.bf16.msra.mxu0 %v405_v32 }
  0x40   :  { %284 = vmatprep.subr.bf16.mxu0 %v406_v33 }
  0x43   :  { %285 = vmatpush1.bf16.msra.mxu0 %v408_v34 }
  0x44   :  { %286 = vmatprep.subr.bf16.mxu0 %v409_v35 }
  0x47   :  { %287 = vmatpush1.bf16.msra.mxu0 %v411_v36 }
  0x48   :  { %288 = vmatprep.subr.bf16.mxu0 %v412_v37 }
  0x4b   :  { %289 = vmatpush1.bf16.msra.mxu0 %v414_v39 }
  0x4c   :  { %365 = vmatprep.subr.msk.bf16.mxu0 %vm253_vm1, %v364_v40 }
  0x4f   :  { %291 = vmatpush1.bf16.msra.mxu0 %v255_v42 }
  0x52   :  { %293 = vmatmul.mubr.bf16.vlgmr.msra.gmra.mrb[0].mxu0 %v85_v43 }
 0x125   :  { %v294_v49 = vpop.f32.mrb[0].mxu0 }
 0x126   :  { %v295_v50 = vadd.f32 %v294_v49, %v63_v47  ;;  %v296_v51 = vpop.f32.mrb[1].mxu0 }
 0x127   :  { %v297_v52 = vadd.f32 %v296_v51, %v67_v48  ;;  %v298_v53 = vpop.f32.mrb[2].mxu0 }
 0x128   :  { %v301_v54 = vmax.f32 %v295_v50, 0.0  ;;  %v299_v55 = vpop.f32.mrb[3].mxu0 }
 0x129   :  { %v302_v56 = vmax.f32 %v297_v52, 0.0 }
 0x12b   :  { %v367_v57 = vpack.c.bf16 %v302_v56, %v301_v54 }
 0x12d   :  { %v314_v58 = vrot.slane %v367_v57, %v514_v17 }
 0x12f   :  { %v321_v59 = vrot.slane %v314_v58, %v514_v17 }
 0x131   :  { %326 = vst.msk [vmem:[%s588_s3] sm:$0x3] %vm325_vm4, %v321_v59 }
 0x132   :  { %331 = vsyncpa [#allocation3], 1 }

// kernel: shufflenet_forward.80
= control target key start
LH: loop header
LB: loop body
LE: loop exit
PB: predicated region body
PF: predicated region fallthrough
CT: control target
= control target key end

     0   :  { %8 = vsyncpa [#allocation3], 0  ;;  %s559_s12 = smov 0   ;;  %s652_s0 = inlined_call_operand.vmem [shape: bf16[2,3,3,244], index: 0, kind: input, shape index: {}]   ;;  %s653_s1 = inlined_call_operand.vmem [shape: f32[9,1,244], index: 1, kind: input, shape index: {}]   ;;  %s654_s2 = inlined_call_operand.hbm [shape: f32[1,244], index: 2, kind: input, shape index: {}]   ;;  %s655_s3 = inlined_call_operand.vmem [shape: bf16[2,1,1,244], index: 3, kind: output, shape index: {}]  }
   0x1 LB: > { %s565_s13 = sadd.s32 4294967295, %s534_s12   ;;  %p446_p0 = scmp.ge.s32.totalorder %s534_s12, 1  ;;  %s534_s12 = sphi %s559_s12, %s14_s12  }
   0x2   : > { %p113_p1 = scmp.lt.s32.totalorder %s534_s12, 3  ;;  %p656_p3 = scmp.eq.s32.totalorder %s565_s13, 0 }
   0x3   : > { %s536_s15 = smov [#allocation2]   ;;  %s496_s20 = scalar_lea.hbm %s654_s2, 32 }
   0x4   : > { %p569_p2 = pnand %p446_p0, %p113_p1  ;;  %s129_s16 = sshll.u32 %s536_s15, 4  ;;  %s130_s16 = int_to_ptr.vmem [resolvable:$true] %s129_s16 }
   0x5   : > { %p497_p6 = scmp.ne.s32.totalorder %s654_s2, %s496_s20  ;;  %p503_p10 = scmp.lt.u32.totalorder %s496_s20, %s654_s2 }
   0x6   : > { %s658_s14 = scalar_select %p569_p2, 1, 0 }
   0x7   : > { %p479_p4 = pneg %p569_p2 }
   0x9   : > { %p578_p5 = pnand %p656_p3, %p479_p4 }
   0xb   : > { %p498_p7 = pneg %p578_p5 }
   0xd   : > { %p499_p8 = pnand %p498_p7, %p497_p6 }
   0xf   : > { %p500_p9 = pneg %p499_p8 }
  0x11   : > { %p505_p11 = pnand %p503_p10, %p500_p9 }
  0x13   : > { %508 = shalt.err (!%p505_p11)
}
  0x14   : > { %s509_s25 = scalar_lea.vmem %s130_s16, 32  ;;  %p517_p1 = scmp.lt.s32.totalorder %s130_s16, %s130_s16 }
  0x15   : > { %p510_p12 = scmp.ne.s32.totalorder %s130_s16, %s509_s25  ;;  %p518_p4 = scmp.lt.s32.totalorder %s509_s25, %s509_s25 }
  0x17   : > { %p512_p13 = pnand %p510_p12, %p498_p7  ;;  %p519_p3 = por %p518_p4, %p517_p1 }
  0x19   : > { %p513_p0 = pneg %p512_p13 }
  0x1b   : > { %p520_p2 = pnand %p519_p3, %p513_p0 }
  0x1d   : > { %523 = shalt.err (!%p520_p2)
}
  0x1e   : > { %482 = dma.hbm_to_vmem [thread:$0]  (!%p578_p5), %s654_s2, 32, %s130_s16, [#allocation3]  }
  0x1f   : > { %p660_p6 = scmp.ne.s32.totalorder %s658_s14, 0 }
  0x20   : > { %p661_p8 = scmp.eq.s32.totalorder (!%p660_p6), %s565_s13, 0 }
  0x21   : > { %150 = sbr.rel (%p660_p6) target bundleno = 82 (0x52), region = 32 }
  0x28   : > { %529 = dma.done.wait (%p661_p8), [#allocation3], 32   ;;  %p662_p7 = pmov %p661_p8 }
  0x29   : > { %p173_p9 = scmp.lt.s32.totalorder %s565_s13, 1  ;;  %v193_v0 = vlaneseq  ;;  %v537_v1 = vmov 286326784   ;;  %v188_v7 = vld [vmem:[%s653_s1] sm:$0x3]  ;;  %v453_v10 = vld [vmem:[%s653_s1 + $0x2] sm:$0x3] }
  0x2a   : > { %531 = vsyncadd (%p662_p7), [#allocation3], 4294967264  ;;  %v191_v2 = vunpack.c.l.s4 %v537_v1  ;;  %v455_v11 = vld [vmem:[%s653_s1 + $0x4] sm:$0x3]  ;;  %v457_v12 = vld [vmem:[%s653_s1 + $0x6] sm:$0x3] }
  0x2b   : > { %s664_s13 = smov (!%p173_p9, %s565_s13), 1  ;;  %v608_v3 = vshrl.u32 %v193_v0, 7  ;;  %v458_v16 = vld [vmem:[%s653_s1 + $0x8] sm:$0x3]  ;;  %v460_v17 = vld [vmem:[%s653_s1 + $0xa] sm:$0x3] }
  0x2c   : > { %v192_v4 = vunpack.c.0.s8 %v191_v2  ;;  %s474_s28 = smul.u32 12, %s664_s13  ;;  %v463_v25 = vld [vmem:[%s653_s1 + $0xe] sm:$0x3]  ;;  %v462_v30 = vld [vmem:[%s653_s1 + $0xc] sm:$0x3]  ;;  %vm369_vm0 = vcmask 1040384  }
  0x2d   : > { %v465_v31 = vld [vmem:[%s653_s1 + $0x10] sm:$0x3]  ;;  %v327_v48 = vld [vmem:[#allocation2] sm:$0x3]  ;;  %v538_v51 = vmov 1966171168  }
  0x2e   : > { %v195_v5 = vsub.s32 %v192_v4, %v608_v3  ;;  %s177_s4 = scalar_lea.vmem %s652_s0, %s474_s28  ;;  %v355_v52 = vunpack.c.l.s4 %v538_v51  ;;  %v341_v56 = vsub.s32 0, %v608_v3  ;;  %v345_v57 = vsub.s32 4, %v608_v3  ;;  %s452_s25 = sshll.u32 %s664_s13, 1 }
  0x2f   : > { %v471_v6 = vld [vmem:[%s177_s4] sm:$0xff]   ;;  %v184_v20 = vld [vmem:[%s177_s4 + $0x8] sm:$0xf]  ;;  %vm370_vm1 = vsmask.f32 256  ;;  %vm372_vm2 = vcmask 943105   ;;  %s181_s28 = scalar_lea.vmem %s655_s3, %s452_s25 }
  0x30   : > { %v472_v8 = vunpack.c.l.bf16 %v471_v6  ;;  %v196_v9 = vrot.slane %v188_v7, %v195_v5  ;;  %v473_v13 = vunpack.c.h.bf16 %v471_v6  ;;  %v208_v14 = vrot.slane %v453_v10, %v195_v5  ;;  %vm371_vm4 = vmand %vm369_vm0, %vm370_vm1  ;;  %v376_v1 = vld [vmem:[%s181_s28] sm:$0x3] }
  0x31   : > { %v225_v15 = vrot.slane %v455_v11, %v195_v5  ;;  %v242_v18 = vrot.slane %v457_v12, %v195_v5  ;;  %v255_v19 = vrot.slane %v458_v16, %v195_v5  ;;  %v272_v24 = vrot.slane %v460_v17, %v195_v5 }
  0x32   : > { %v198_v21 = vmul.f32 %v472_v8, %v196_v9  ;;  %v210_v22 = vmul.f32 %v472_v8, %v208_v14  ;;  %v187_v29 = vunpack.c.l.bf16 %v184_v20  ;;  %v302_v35 = vrot.slane %v463_v25, %v195_v5 }
  0x33   : > { %v227_v23 = vmul.f32 %v472_v8, %v225_v15  ;;  %v257_v28 = vmul.f32 %v473_v13, %v255_v19  ;;  %v244_v33 = vmul.f32 %v473_v13, %v242_v18  ;;  %v274_v34 = vmul.f32 %v473_v13, %v272_v24 }
  0x34   : > { %v454_v26 = vrot.slane %v210_v22, 9  ;;  %v289_v38 = vrot.slane %v462_v30, %v195_v5  ;;  %v319_v39 = vrot.slane %v465_v31, %v195_v5  ;;  %v304_v42 = vmul.f32 %v302_v35, %v187_v29 }
  0x35   : > { %v456_v27 = vrot.slane %v227_v23, 10  ;;  %v459_v37 = vrot.slane %v257_v28, 9  ;;  %v461_v41 = vrot.slane %v274_v34, 10  ;;  %v335_v54 = vrot.slane %v327_v48, %v195_v5 }
  0x36   : > { %v215_v32 = vadd.f32 %v454_v26, %v198_v21  ;;  %v291_v44 = vmul.f32 %v289_v38, %v187_v29  ;;  %v321_v45 = vmul.f32 %v319_v39, %v187_v29  ;;  %v464_v47 = vrot.slane %v304_v42, 9 }
  0x37   : > { %v356_v58 = vunpack.c.0.s8 %v355_v52  ;;  %vm373_vm3 = vsmask.f32 1280 }
  0x38   : > { %v232_v36 = vadd.f32 %v456_v27, %v215_v32  ;;  %v466_v50 = vrot.slane %v321_v45, 10  ;;  %vm374_vm5 = vmand %vm372_vm2, %vm373_vm3 }
  0x39   : > { %v359_v62 = vsub.s32 %v356_v58, %v608_v3  ;;  %vm375_vm6 = vmor %vm374_vm5, %vm371_vm4 }
  0x3a   : > { %v245_v40 = vadd.f32 %v244_v33, %v232_v36 }
  0x3c   : > { %v262_v43 = vadd.f32 %v459_v37, %v245_v40 }
  0x3e   : > { %v279_v46 = vadd.f32 %v461_v41, %v262_v43 }
  0x40   : > { %v292_v49 = vadd.f32 %v291_v44, %v279_v46 }
  0x42   : > { %v309_v53 = vadd.f32 %v464_v47, %v292_v49 }
  0x44   : > { %v326_v55 = vadd.f32 %v466_v50, %v309_v53 }
  0x46   : > { %v337_v59 = vadd.f32 %v335_v54, %v326_v55 }
  0x48   : > { %v342_v60 = vrot.slane %v337_v59, %v341_v56  ;;  %v346_v61 = vrot.slane %v337_v59, %v345_v57 }
  0x4a   : > { %v467_v63 = vpack.c.bf16 %v346_v61, %v342_v60 }
  0x4c   : > { %v360_v0 = vrot.slane %v467_v63, %v359_v62 }
  0x4e   : > { %v367_v2 = vrot.slane %v360_v0, %v359_v62 }
  0x50   : > { %v377_v4 = vsel %vm375_vm6, %v367_v2, %v376_v1 }
  0x51   : > { %378 = vst [vmem:[%s181_s28] sm:$0x3] %v377_v4 }
  0x52 PF: > { %s14_s12 = sadd.s32 1, %s534_s12  }
  0x53   : > { %p11_p2 = scmp.ge.s32.totalorder %s14_s12, 4  }
  0x55   :  { %13 = sbr.rel (!%p11_p2) target bundleno = 1 (0x1), region = 75 }
  0x5c   :  { %398 = vsyncpa [#allocation3], 1 }
  0x5d   :  { %400 = vsyncpa [#allocation3 + $0x1], 1 }

// kernel: shufflenet_forward.102
= control target key start
LH: loop header
LB: loop body
LE: loop exit
PB: predicated region body
PF: predicated region fallthrough
CT: control target
= control target key end

     0   :  { %v140_v38 = vlaneseq  ;;  %v1356_v39 = vmov 1966171168   ;;  %vm798_vm0 = vcmask 850944   ;;  %vm802_vm1 = vcmask 1043456   ;;  %s1772_s1 = inlined_call_operand.vmem [shape: bf16[488,488], index: 1, kind: input, shape index: {}]   ;;  %s1773_s0 = inlined_call_operand.vmem [shape: bf16[2,488], index: 0, kind: input, shape index: {}]   ;;  %s1774_s2 = inlined_call_operand.vmem [shape: f32[1,488], index: 2, kind: input, shape index: {}]   ;;  %s1775_s3 = inlined_call_operand.vmem [shape: bf16[2,488], index: 3, kind: output, shape index: {}]  }
   0x1   :  { %v1172_v0 = vld [vmem:[%s1772_s1 + $0x4] ss:$16 sps:$4 sm:$0xff]   ;;  %v1174_v1 = vld [vmem:[%s1772_s1 + $0xc] ss:$16 sps:$4 sm:$0xff]   ;;  %v1176_v2 = vld [vmem:[%s1772_s1] ss:$16 sps:$4 sm:$0xff]   ;;  %v170_v40 = vunpack.c.l.s4 %v1356_v39 }
   0x2   :  { %815 = vmatprep.subr.bf16.mxu0 %v1172_v0  ;;  %v1177_v3 = vld [vmem:[%s1772_s1 + $0x8] ss:$16 sps:$4 sm:$0xff]   ;;  %897 = vmatprep.subr.bf16.mxu1 %v1174_v1  ;;  %v1178_v4 = vld [vmem:[%s1772_s1 + $0x24] ss:$16 sps:$4 sm:$0xff]   ;;  %v1180_v5 = vld [vmem:[%s1772_s1 + $0x2c] ss:$16 sps:$4 sm:$0xff]  }
   0x3   :  { %816 = vmatpush1.bf16.msra.mxu0 %v1176_v2  ;;  %898 = vmatpush1.bf16.msra.mxu1 %v1177_v3  ;;  %v1182_v6 = vld [vmem:[%s1772_s1 + $0x20] ss:$16 sps:$4 sm:$0xff]   ;;  %v1183_v7 = vld [vmem:[%s1772_s1 + $0x28] ss:$16 sps:$4 sm:$0xff]   ;;  %v1184_v8 = vld [vmem:[%s1772_s1 + $0x44] ss:$16 sps:$4 sm:$0xff]   ;;  %v171_v46 = vunpack.c.0.s8 %v170_v40 }
   0x4   :  { %817 = vmatprep.subr.bf16.mxu0 %v1178_v4  ;;  %899 = vmatprep.subr.bf16.mxu1 %v1180_v5  ;;  %v1186_v9 = vld [vmem:[%s1772_s1 + $0x4c] ss:$16 sps:$4 sm:$0xff]   ;;  %v1188_v10 = vld [vmem:[%s1772_s1 + $0x40] ss:$16 sps:$4 sm:$0xff]   ;;  %v1189_v11 = vld [vmem:[%s1772_s1 + $0x48] ss:$16 sps:$4 sm:$0xff]  }
   0x5   :  { %v1190_v12 = vld [vmem:[%s1772_s1 + $0x64] ss:$16 sps:$4 sm:$0xff]   ;;  %v1192_v13 = vld [vmem:[%s1772_s1 + $0x6c] ss:$16 sps:$4 sm:$0xff]   ;;  %v1194_v14 = vld [vmem:[%s1772_s1 + $0x60] ss:$16 sps:$4 sm:$0xff]  }
   0x6   :  { %v1195_v15 = vld [vmem:[%s1772_s1 + $0x68] ss:$16 sps:$4 sm:$0xff]   ;;  %v1196_v16 = vld [vmem:[%s1772_s1 + $0x84] ss:$16 sps:$4 sm:$0xff]   ;;  %v1198_v17 = vld [vmem:[%s1772_s1 + $0x8c] ss:$16 sps:$4 sm:$0xff]  }
   0x7   :  { %818 = vmatpush1.bf16.msra.mxu0 %v1182_v6  ;;  %900 = vmatpush1.bf16.msra.mxu1 %v1183_v7  ;;  %v1200_v18 = vld [vmem:[%s1772_s1 + $0x80] ss:$16 sps:$4 sm:$0xff]   ;;  %v1201_v19 = vld [vmem:[%s1772_s1 + $0x88] ss:$16 sps:$4 sm:$0xff]   ;;  %v1202_v20 = vld [vmem:[%s1772_s1 + $0xa4] ss:$16 sps:$4 sm:$0xff]  }
   0x8   :  { %819 = vmatprep.subr.bf16.mxu0 %v1184_v8  ;;  %901 = vmatprep.subr.bf16.mxu1 %v1186_v9  ;;  %v1204_v21 = vld [vmem:[%s1772_s1 + $0xac] ss:$16 sps:$4 sm:$0xff]   ;;  %v1206_v22 = vld [vmem:[%s1772_s1 + $0xa0] ss:$16 sps:$4 sm:$0xff]   ;;  %v1207_v23 = vld [vmem:[%s1772_s1 + $0xa8] ss:$16 sps:$4 sm:$0xff]  }
   0x9   :  { %v1208_v24 = vld [vmem:[%s1772_s1 + $0xc4] ss:$16 sps:$4 sm:$0xff]   ;;  %v1210_v25 = vld [vmem:[%s1772_s1 + $0xcc] ss:$16 sps:$4 sm:$0xff]   ;;  %v1212_v26 = vld [vmem:[%s1772_s1 + $0xc0] ss:$16 sps:$4 sm:$0xff]  }
   0xa   :  { %v1213_v27 = vld [vmem:[%s1772_s1 + $0xc8] ss:$16 sps:$4 sm:$0xff]   ;;  %v1214_v28 = vld [vmem:[%s1772_s1 + $0xe4] ss:$16 sps:$4 sm:$0xff]   ;;  %v1216_v29 = vld [vmem:[%s1772_s1 + $0xec] ss:$16 sps:$4 sm:$0xff]  }
   0xb   :  { %820 = vmatpush1.bf16.msra.mxu0 %v1188_v10  ;;  %902 = vmatpush1.bf16.msra.mxu1 %v1189_v11  ;;  %v1218_v30 = vld [vmem:[%s1772_s1 + $0xe0] ss:$16 sps:$4 sm:$0xff]   ;;  %v1219_v31 = vld [vmem:[%s1772_s1 + $0xe8] ss:$16 sps:$4 sm:$0xff]   ;;  %v1220_v32 = vld [vmem:[%s1772_s1 + $0x104] ss:$16 sps:$4 sm:$0xff]  }
   0xc   :  { %821 = vmatprep.subr.bf16.mxu0 %v1190_v12  ;;  %903 = vmatprep.subr.bf16.mxu1 %v1192_v13  ;;  %v1222_v33 = vld [vmem:[%s1772_s1 + $0x10c] ss:$16 sps:$4 sm:$0xff]   ;;  %v1224_v34 = vld [vmem:[%s1772_s1 + $0x100] ss:$16 sps:$4 sm:$0xff]   ;;  %v1225_v35 = vld [vmem:[%s1772_s1 + $0x108] ss:$16 sps:$4 sm:$0xff]  }
   0xd   :  { %v1226_v36 = vld [vmem:[%s1772_s1 + $0x124] ss:$16 sps:$4 sm:$0xff]   ;;  %v1228_v37 = vld [vmem:[%s1772_s1 + $0x12c] ss:$16 sps:$4 sm:$0xff]   ;;  %v1230_v41 = vld [vmem:[%s1772_s1 + $0x120] ss:$16 sps:$4 sm:$0xff]  }
   0xe   :  { %v1231_v42 = vld [vmem:[%s1772_s1 + $0x128] ss:$16 sps:$4 sm:$0xff]   ;;  %v1232_v43 = vld [vmem:[%s1772_s1 + $0x144] ss:$16 sps:$4 sm:$0xff]   ;;  %v1234_v44 = vld [vmem:[%s1772_s1 + $0x14c] ss:$16 sps:$4 sm:$0xff]  }
   0xf   :  { %822 = vmatpush1.bf16.msra.mxu0 %v1194_v14  ;;  %904 = vmatpush1.bf16.msra.mxu1 %v1195_v15  ;;  %v1503_v45 = vshrl.u32 %v140_v38, 7  ;;  %v1236_v47 = vld [vmem:[%s1772_s1 + $0x140] ss:$16 sps:$4 sm:$0xff]   ;;  %v1237_v48 = vld [vmem:[%s1772_s1 + $0x148] ss:$16 sps:$4 sm:$0xff]   ;;  %vm1016_vm2 = vcmask 1040384  }
  0x10   :  { %823 = vmatprep.subr.bf16.mxu0 %v1196_v16  ;;  %905 = vmatprep.subr.bf16.mxu1 %v1198_v17  ;;  %v1238_v49 = vld [vmem:[%s1772_s1 + $0x164] ss:$16 sps:$4 sm:$0xff]   ;;  %v1240_v50 = vld [vmem:[%s1772_s1 + $0x16c] ss:$16 sps:$4 sm:$0xff]   ;;  %v1242_v53 = vld [vmem:[%s1772_s1 + $0x160] ss:$16 sps:$4 sm:$0xff]  }
  0x11   :  { %v1518_v51 = vsub.s32 %v171_v46, %v1503_v45  ;;  %v1028_v52 = vld.sshfl [vmem:[%s1773_s0] sm:$0x33 pattern:$0x75316420]  ;;  %v1243_v54 = vld [vmem:[%s1772_s1 + $0x168] ss:$16 sps:$4 sm:$0xff]  }
  0x12   :  { %v168_v55 = vcombine.high %v1028_v52, %v1028_v52  ;;  %v1244_v56 = vld [vmem:[%s1772_s1 + $0x184] ss:$16 sps:$4 sm:$0xff]   ;;  %v1246_v57 = vld [vmem:[%s1772_s1 + $0x18c] ss:$16 sps:$4 sm:$0xff]   ;;  %v1248_v59 = vld [vmem:[%s1772_s1 + $0x180] ss:$16 sps:$4 sm:$0xff]  }
  0x13   :  { %824 = vmatpush1.bf16.msra.mxu0 %v1200_v18  ;;  %906 = vmatpush1.bf16.msra.mxu1 %v1201_v19  ;;  %v1249_v60 = vld [vmem:[%s1772_s1 + $0x188] ss:$16 sps:$4 sm:$0xff]   ;;  %v1250_v61 = vld [vmem:[%s1772_s1 + $0x1a4] ss:$16 sps:$4 sm:$0xff]   ;;  %v1252_v62 = vld [vmem:[%s1772_s1 + $0x1ac] ss:$16 sps:$4 sm:$0xff]   ;;  %v1588_v12 = vrot.slane %v1028_v52, %v1518_v51 }
  0x14   :  { %825 = vmatprep.subr.bf16.mxu0 %v1202_v20  ;;  %907 = vmatprep.subr.bf16.mxu1 %v1204_v21  ;;  %v182_v58 = vrot.slane %v168_v55, %v1518_v51  ;;  %v1254_v63 = vld [vmem:[%s1772_s1 + $0x1a0] ss:$16 sps:$4 sm:$0xff]   ;;  %v1255_v0 = vld [vmem:[%s1772_s1 + $0x1a8] ss:$16 sps:$4 sm:$0xff]   ;;  %v1256_v1 = vld [vmem:[%s1772_s1 + $0x1c4] ss:$16 sps:$4 sm:$0xff]  }
  0x15   :  { %v1258_v2 = vld [vmem:[%s1772_s1 + $0x1cc] ss:$16 sps:$4 sm:$0xff]   ;;  %v1260_v3 = vld [vmem:[%s1772_s1 + $0x1c0] ss:$16 sps:$4 sm:$0xff]   ;;  %v1261_v4 = vld [vmem:[%s1772_s1 + $0x1c8] ss:$16 sps:$4 sm:$0xff]  }
  0x16   :  { %847 = vmatprep.mubr.bf16.mxu0 %v182_v58  ;;  %929 = vmatprep.mubr.bf16.mxu1 %v182_v58  ;;  %v1262_v5 = vld [vmem:[%s1772_s1 + $0x1e4] ss:$16 sps:$4 sm:$0xff]   ;;  %v1264_v6 = vld [vmem:[%s1772_s1 + $0x1ec] ss:$16 sps:$4 sm:$0xff]   ;;  %v1266_v7 = vld [vmem:[%s1772_s1 + $0x1e0] ss:$16 sps:$4 sm:$0xff]   ;;  %v184_v16 = vcombine.high %v182_v58, %v182_v58 }
  0x17   :  { %826 = vmatpush1.bf16.msra.mxu0 %v1206_v22  ;;  %908 = vmatpush1.bf16.msra.mxu1 %v1207_v23  ;;  %v1267_v8 = vld [vmem:[%s1772_s1 + $0x1e8] ss:$16 sps:$4 sm:$0xff]   ;;  %v1270_v9 = vld [vmem:[%s1772_s1 + $0x204] ss:$16 sps:$4 sm:$0xff]   ;;  %v1273_v10 = vld [vmem:[%s1772_s1 + $0x20c] ss:$16 sps:$4 sm:$0xff]  }
  0x18   :  { %827 = vmatprep.subr.bf16.mxu0 %v1208_v24  ;;  %909 = vmatprep.subr.bf16.mxu1 %v1210_v25  ;;  %v1268_v11 = vld [vmem:[%s1772_s1 + $0x200] ss:$16 sps:$4 sm:$0xff]   ;;  %v1271_v13 = vld [vmem:[%s1772_s1 + $0x208] ss:$16 sps:$4 sm:$0xff]   ;;  %v1276_v14 = vld [vmem:[%s1772_s1 + $0x224] ss:$16 sps:$4 sm:$0xff]  }
  0x19   :  { %v1279_v15 = vld [vmem:[%s1772_s1 + $0x22c] ss:$16 sps:$4 sm:$0xff]   ;;  %v1274_v17 = vld [vmem:[%s1772_s1 + $0x220] ss:$16 sps:$4 sm:$0xff]   ;;  %v1277_v18 = vld [vmem:[%s1772_s1 + $0x228] ss:$16 sps:$4 sm:$0xff]  }
  0x1a   :  { %v1282_v19 = vld [vmem:[%s1772_s1 + $0x244] ss:$16 sps:$4 sm:$0xff]   ;;  %v1285_v20 = vld [vmem:[%s1772_s1 + $0x24c] ss:$16 sps:$4 sm:$0xff]   ;;  %v1280_v21 = vld [vmem:[%s1772_s1 + $0x240] ss:$16 sps:$4 sm:$0xff]  }
  0x1b   :  { %828 = vmatpush1.bf16.msra.mxu0 %v1212_v26  ;;  %910 = vmatpush1.bf16.msra.mxu1 %v1213_v27  ;;  %v1283_v22 = vld [vmem:[%s1772_s1 + $0x248] ss:$16 sps:$4 sm:$0xff]   ;;  %v1288_v23 = vld [vmem:[%s1772_s1 + $0x264] ss:$16 sps:$4 sm:$0xff]   ;;  %v1291_v24 = vld [vmem:[%s1772_s1 + $0x26c] ss:$16 sps:$4 sm:$0xff]  }
  0x1c   :  { %829 = vmatprep.subr.bf16.mxu0 %v1214_v28  ;;  %911 = vmatprep.subr.bf16.mxu1 %v1216_v29  ;;  %v1286_v25 = vld [vmem:[%s1772_s1 + $0x260] ss:$16 sps:$4 sm:$0xff]   ;;  %v1289_v26 = vld [vmem:[%s1772_s1 + $0x268] ss:$16 sps:$4 sm:$0xff]   ;;  %v1294_v27 = vld [vmem:[%s1772_s1 + $0x284] ss:$16 sps:$4 sm:$0xff]  }
  0x1d   :  { %v1297_v28 = vld [vmem:[%s1772_s1 + $0x28c] ss:$16 sps:$4 sm:$0xff]   ;;  %v1292_v29 = vld [vmem:[%s1772_s1 + $0x280] ss:$16 sps:$4 sm:$0xff]   ;;  %v1307_v38 = vld [vmem:[%s1772_s1 + $0x2c8] ss:$16 sps:$4 sm:$0xff]  }
  0x1e   :  { %v1312_v39 = vld [vmem:[%s1772_s1 + $0x2e4] ss:$16 sps:$4 sm:$0xff]   ;;  %v1315_v40 = vld [vmem:[%s1772_s1 + $0x2ec] ss:$16 sps:$4 sm:$0xff]   ;;  %v1316_v46 = vld [vmem:[%s1772_s1 + $0x300] ss:$16 sps:$4 sm:$0xff]  }
  0x1f   :  { %830 = vmatpush1.bf16.msra.mxu0 %v1218_v30  ;;  %912 = vmatpush1.bf16.msra.mxu1 %v1219_v31  ;;  %v1295_v30 = vld [vmem:[%s1772_s1 + $0x288] ss:$16 sps:$4 sm:$0xff]   ;;  %v1300_v31 = vld [vmem:[%s1772_s1 + $0x2a4] ss:$16 sps:$4 sm:$0xff]   ;;  %v1328_v55 = vld [vmem:[%s1772_s1 + $0x340] ss:$16 sps:$4 sm:$0xff]  }
  0x20   :  { %831 = vmatprep.subr.bf16.mxu0 %v1220_v32  ;;  %913 = vmatprep.subr.bf16.mxu1 %v1222_v33  ;;  %v1303_v32 = vld [vmem:[%s1772_s1 + $0x2ac] ss:$16 sps:$4 sm:$0xff]   ;;  %v1298_v33 = vld [vmem:[%s1772_s1 + $0x2a0] ss:$16 sps:$4 sm:$0xff]   ;;  %v1325_v52 = vld [vmem:[%s1772_s1 + $0x328] ss:$16 sps:$4 sm:$0xff]  }
  0x21   :  { %v1339_v58 = vld [vmem:[%s1772_s1 + $0x36c] ss:$16 sps:$4 sm:$0xff]   ;;  %vm1017_vm3 = vcmask 1041409   ;;  %vm1019_vm5 = vcmask 1042434   ;;  %vm1021_vm7 = vcmask 846851  }
  0x22   :  { %vm1018_vm4 = vmor %vm1017_vm3, %vm1016_vm2 }
  0x23   :  { %832 = vmatpush1.bf16.msra.mxu0 %v1224_v34  ;;  %914 = vmatpush1.bf16.msra.mxu1 %v1225_v35  ;;  %v1301_v34 = vld [vmem:[%s1772_s1 + $0x2a8] ss:$16 sps:$4 sm:$0xff]   ;;  %v1306_v35 = vld [vmem:[%s1772_s1 + $0x2c4] ss:$16 sps:$4 sm:$0xff]   ;;  %vm1020_vm6 = vmor %vm1019_vm5, %vm1018_vm4 }
  0x24   :  { %833 = vmatprep.subr.bf16.mxu0 %v1226_v36  ;;  %915 = vmatprep.subr.bf16.mxu1 %v1228_v37  ;;  %v1309_v36 = vld [vmem:[%s1772_s1 + $0x2cc] ss:$16 sps:$4 sm:$0xff]   ;;  %v1304_v37 = vld [vmem:[%s1772_s1 + $0x2c0] ss:$16 sps:$4 sm:$0xff]   ;;  %vm1022_vm8 = vmor %vm1021_vm7, %vm1020_vm6 }
  0x27   :  { %834 = vmatpush1.bf16.msra.mxu0 %v1230_v41  ;;  %916 = vmatpush1.bf16.msra.mxu1 %v1231_v42  ;;  %v1310_v41 = vld [vmem:[%s1772_s1 + $0x2e0] ss:$16 sps:$4 sm:$0xff]   ;;  %v1313_v42 = vld [vmem:[%s1772_s1 + $0x2e8] ss:$16 sps:$4 sm:$0xff]  }
  0x28   :  { %835 = vmatprep.subr.bf16.mxu0 %v1232_v43  ;;  %917 = vmatprep.subr.bf16.mxu1 %v1234_v44  ;;  %v1318_v43 = vld [vmem:[%s1772_s1 + $0x304] ss:$16 sps:$4 sm:$0xff]   ;;  %v1321_v44 = vld [vmem:[%s1772_s1 + $0x30c] ss:$16 sps:$4 sm:$0xff]  }
  0x2b   :  { %836 = vmatpush1.bf16.msra.mxu0 %v1236_v47  ;;  %918 = vmatpush1.bf16.msra.mxu1 %v1237_v48  ;;  %v1319_v47 = vld [vmem:[%s1772_s1 + $0x308] ss:$16 sps:$4 sm:$0xff]   ;;  %v1324_v48 = vld [vmem:[%s1772_s1 + $0x324] ss:$16 sps:$4 sm:$0xff]  }
  0x2c   :  { %837 = vmatprep.subr.bf16.mxu0 %v1238_v49  ;;  %919 = vmatprep.subr.bf16.mxu1 %v1240_v50  ;;  %v1327_v49 = vld [vmem:[%s1772_s1 + $0x32c] ss:$16 sps:$4 sm:$0xff]   ;;  %v1322_v50 = vld [vmem:[%s1772_s1 + $0x320] ss:$16 sps:$4 sm:$0xff]  }
  0x2f   :  { %838 = vmatpush1.bf16.msra.mxu0 %v1242_v53  ;;  %920 = vmatpush1.bf16.msra.mxu1 %v1243_v54  ;;  %v1330_v53 = vld [vmem:[%s1772_s1 + $0x344] ss:$16 sps:$4 sm:$0xff]   ;;  %v1333_v54 = vld [vmem:[%s1772_s1 + $0x34c] ss:$16 sps:$4 sm:$0xff]  }
  0x30   :  { %839 = vmatprep.subr.bf16.mxu0 %v1244_v56  ;;  %921 = vmatprep.subr.bf16.mxu1 %v1246_v57  ;;  %v1331_v56 = vld [vmem:[%s1772_s1 + $0x348] ss:$16 sps:$4 sm:$0xff]   ;;  %v1336_v57 = vld [vmem:[%s1772_s1 + $0x364] ss:$16 sps:$4 sm:$0xff]  }
  0x33   :  { %840 = vmatpush1.bf16.msra.mxu0 %v1248_v59  ;;  %922 = vmatpush1.bf16.msra.mxu1 %v1249_v60  ;;  %v1334_v59 = vld [vmem:[%s1772_s1 + $0x360] ss:$16 sps:$4 sm:$0xff]   ;;  %v1337_v60 = vld [vmem:[%s1772_s1 + $0x368] ss:$16 sps:$4 sm:$0xff]  }
  0x34   :  { %841 = vmatprep.subr.bf16.mxu0 %v1250_v61  ;;  %923 = vmatprep.subr.bf16.mxu1 %v1252_v62  ;;  %v1342_v61 = vld [vmem:[%s1772_s1 + $0x384] ss:$16 sps:$4 sm:$0xff]   ;;  %v1345_v62 = vld [vmem:[%s1772_s1 + $0x38c] ss:$16 sps:$4 sm:$0xff]  }
  0x37   :  { %842 = vmatpush1.bf16.msra.mxu0 %v1254_v63  ;;  %924 = vmatpush1.bf16.msra.mxu1 %v1255_v0  ;;  %v1340_v63 = vld [vmem:[%s1772_s1 + $0x380] ss:$16 sps:$4 sm:$0xff]   ;;  %v1343_v0 = vld [vmem:[%s1772_s1 + $0x388] ss:$16 sps:$4 sm:$0xff]  }
  0x38   :  { %843 = vmatprep.subr.bf16.mxu0 %v1256_v1  ;;  %925 = vmatprep.subr.bf16.mxu1 %v1258_v2  ;;  %v1348_v1 = vld [vmem:[%s1772_s1 + $0x3a4] ss:$16 sps:$4 sm:$0xff]   ;;  %v1351_v2 = vld [vmem:[%s1772_s1 + $0x3ac] ss:$16 sps:$4 sm:$0xff]  }
  0x3b   :  { %844 = vmatpush1.bf16.msra.mxu0 %v1260_v3  ;;  %926 = vmatpush1.bf16.msra.mxu1 %v1261_v4  ;;  %v136_v3 = vld [vmem:[%s1772_s1 + $0x3c0] sm:$0xff]  ;;  %v137_v4 = vld [vmem:[%s1772_s1 + $0x3c8] sm:$0xff] }
  0x3c   :  { %845 = vmatprep.subr.bf16.mxu0 %v1262_v5  ;;  %927 = vmatprep.subr.bf16.mxu1 %v1264_v6  ;;  %v1346_v5 = vld [vmem:[%s1772_s1 + $0x3a0] ss:$16 sps:$4 sm:$0xff]   ;;  %v1349_v6 = vld [vmem:[%s1772_s1 + $0x3a8] ss:$16 sps:$4 sm:$0xff]  }
  0x3f   :  { %846 = vmatpush1.bf16.msra.mxu0 %v1266_v7  ;;  %928 = vmatpush1.bf16.msra.mxu1 %v1267_v8  ;;  %v1150_v7 = vcombine.high %v136_v3, %v136_v3  ;;  %v1152_v8 = vcombine.high %v137_v4, %v137_v4 }
  0x40   :  { %856 = vmatprep.subr.bf16.mxu0 %v1270_v9  ;;  %938 = vmatprep.subr.bf16.mxu1 %v1273_v10  ;;  %v1149_v9 = vcombine.low %v136_v3, %v136_v3  ;;  %v1151_v10 = vcombine.low %v137_v4, %v137_v4 }
  0x42   :  { %848 = vmatmul.mubr.bf16.vlgmr.msra.gmra.mrb[0].mxu0 %v1588_v12  ;;  %930 = vmatmul.mubr.bf16.vlgmr.msra.gmra.mrb[0].mxu1 %v1588_v12 }
  0x43   :  { %857 = vmatpush1.bf16.msra.mxu0 %v1268_v11  ;;  %939 = vmatpush1.bf16.msra.mxu1 %v1271_v13  ;;  %v804_v11 = vsel %vm802_vm1, %v1149_v9, 0  ;;  %v810_v13 = vsel %vm802_vm1, %v1151_v10, 0 }
  0x44   :  { %858 = vmatprep.subr.bf16.mxu0 %v1276_v14  ;;  %940 = vmatprep.subr.bf16.mxu1 %v1279_v15  ;;  %v183_v14 = vcombine.high %v1588_v12, %v1588_v12  ;;  %v142_v15 = vsub.s32 0, %v1503_v45 }
  0x45   :  { %1154 = vmatprep.mubr.msk.bf16.mxu0 %vm798_vm0, %v184_v16  ;;  %1156 = vmatprep.mubr.msk.bf16.mxu1 %vm798_vm0, %v184_v16  ;;  %v150_v16 = vsub.s32 2, %v1503_v45 }
  0x47   :  { %859 = vmatpush1.bf16.msra.mxu0 %v1274_v17  ;;  %941 = vmatpush1.bf16.msra.mxu1 %v1277_v18  ;;  %v138_v17 = vld [vmem:[%s1774_s2] sm:$0xf]  ;;  %v146_v18 = vsub.s32 1, %v1503_v45 }
  0x48   :  { %860 = vmatprep.subr.bf16.mxu0 %v1282_v19  ;;  %942 = vmatprep.subr.bf16.mxu1 %v1285_v20  ;;  %v154_v19 = vsub.s32 3, %v1503_v45  ;;  %v143_v20 = vrot.slane %v138_v17, %v142_v15 }
  0x4a   :  { %v155_v12 = vrot.slane %v138_v17, %v154_v19 }
  0x4b   :  { %861 = vmatpush1.bf16.msra.mxu0 %v1280_v21  ;;  %943 = vmatpush1.bf16.msra.mxu1 %v1283_v22  ;;  %v151_v21 = vrot.slane %v138_v17, %v150_v16  ;;  %v147_v22 = vrot.slane %v138_v17, %v146_v18 }
  0x4c   :  { %862 = vmatprep.subr.bf16.mxu0 %v1288_v23  ;;  %944 = vmatprep.subr.bf16.mxu1 %v1291_v24 }
  0x4f   :  { %863 = vmatpush1.bf16.msra.mxu0 %v1286_v25  ;;  %945 = vmatpush1.bf16.msra.mxu1 %v1289_v26 }
  0x50   :  { %864 = vmatprep.subr.bf16.mxu0 %v1294_v27  ;;  %946 = vmatprep.subr.bf16.mxu1 %v1297_v28 }
  0x53   :  { %865 = vmatpush1.bf16.msra.mxu0 %v1292_v29  ;;  %947 = vmatpush1.bf16.msra.mxu1 %v1295_v30 }
  0x54   :  { %866 = vmatprep.subr.bf16.mxu0 %v1300_v31  ;;  %948 = vmatprep.subr.bf16.mxu1 %v1303_v32 }
  0x57   :  { %867 = vmatpush1.bf16.msra.mxu0 %v1298_v33  ;;  %949 = vmatpush1.bf16.msra.mxu1 %v1301_v34 }
  0x58   :  { %868 = vmatprep.subr.bf16.mxu0 %v1306_v35  ;;  %950 = vmatprep.subr.bf16.mxu1 %v1309_v36 }
  0x5b   :  { %869 = vmatpush1.bf16.msra.mxu0 %v1304_v37  ;;  %951 = vmatpush1.bf16.msra.mxu1 %v1307_v38 }
  0x5c   :  { %870 = vmatprep.subr.bf16.mxu0 %v1312_v39  ;;  %952 = vmatprep.subr.bf16.mxu1 %v1315_v40 }
  0x5f   :  { %871 = vmatpush1.bf16.msra.mxu0 %v1310_v41  ;;  %953 = vmatpush1.bf16.msra.mxu1 %v1313_v42 }
  0x60   :  { %872 = vmatprep.subr.bf16.mxu0 %v1318_v43  ;;  %954 = vmatprep.subr.bf16.mxu1 %v1321_v44 }
  0x63   :  { %873 = vmatpush1.bf16.msra.mxu0 %v1316_v46  ;;  %955 = vmatpush1.bf16.msra.mxu1 %v1319_v47 }
  0x64   :  { %874 = vmatprep.subr.bf16.mxu0 %v1324_v48  ;;  %956 = vmatprep.subr.bf16.mxu1 %v1327_v49 }
  0x67   :  { %875 = vmatpush1.bf16.msra.mxu0 %v1322_v50  ;;  %957 = vmatpush1.bf16.msra.mxu1 %v1325_v52 }
  0x68   :  { %876 = vmatprep.subr.bf16.mxu0 %v1330_v53  ;;  %958 = vmatprep.subr.bf16.mxu1 %v1333_v54 }
  0x6b   :  { %877 = vmatpush1.bf16.msra.mxu0 %v1328_v55  ;;  %959 = vmatpush1.bf16.msra.mxu1 %v1331_v56 }
  0x6c   :  { %878 = vmatprep.subr.bf16.mxu0 %v1336_v57  ;;  %960 = vmatprep.subr.bf16.mxu1 %v1339_v58 }
  0x6f   :  { %879 = vmatpush1.bf16.msra.mxu0 %v1334_v59  ;;  %961 = vmatpush1.bf16.msra.mxu1 %v1337_v60 }
  0x70   :  { %880 = vmatprep.subr.bf16.mxu0 %v1342_v61  ;;  %962 = vmatprep.subr.bf16.mxu1 %v1345_v62 }
  0x73   :  { %881 = vmatpush1.bf16.msra.mxu0 %v1340_v63  ;;  %963 = vmatpush1.bf16.msra.mxu1 %v1343_v0 }
  0x74   :  { %882 = vmatprep.subr.bf16.mxu0 %v1348_v1  ;;  %964 = vmatprep.subr.bf16.mxu1 %v1351_v2 }
  0x77   :  { %883 = vmatpush1.bf16.msra.mxu0 %v1346_v5  ;;  %965 = vmatpush1.bf16.msra.mxu1 %v1349_v6 }
  0x78   :  { %1153 = vmatprep.subr.msk.bf16.mxu0 %vm802_vm1, %v1150_v7  ;;  %1155 = vmatprep.subr.msk.bf16.mxu1 %vm802_vm1, %v1152_v8 }
  0x7b   :  { %885 = vmatpush1.bf16.msra.mxu0 %v804_v11  ;;  %967 = vmatpush1.bf16.msra.mxu1 %v810_v13 }
  0x7e   :  { %889 = vmatmul.mubr.bf16.vlgmr.msra.gmra.mrb[0].mxu0 %v183_v14  ;;  %971 = vmatmul.mubr.bf16.vlgmr.msra.gmra.mrb[0].mxu1 %v183_v14 }
 0x151   :  { %v890_v23 = vpop.f32.mrb[0].mxu0  ;;  %v972_v24 = vpop.f32.mrb[0].mxu1 }
 0x152   :  { %v1159_v25 = vadd.f32 %v890_v23, %v143_v20  ;;  %v1161_v26 = vadd.f32 %v972_v24, %v151_v21  ;;  %v892_v27 = vpop.f32.mrb[1].mxu0  ;;  %v974_v28 = vpop.f32.mrb[1].mxu1 }
 0x153   :  { %v1160_v29 = vadd.f32 %v892_v27, %v147_v22  ;;  %v1162_v30 = vadd.f32 %v974_v28, %v155_v12  ;;  %v894_v31 = vpop.f32.mrb[2].mxu0  ;;  %v976_v32 = vpop.f32.mrb[2].mxu1 }
 0x154   :  { %v979_v33 = vmax.f32 %v1159_v25, 0.0  ;;  %v981_v34 = vmax.f32 %v1161_v26, 0.0  ;;  %v895_v35 = vpop.f32.mrb[3].mxu0  ;;  %v977_v45 = vpop.f32.mrb[3].mxu1 }
 0x155   :  { %v980_v36 = vmax.f32 %v1160_v29, 0.0  ;;  %v982_v37 = vmax.f32 %v1162_v30, 0.0 }
 0x157   :  { %v1157_v38 = vpack.c.bf16 %v980_v36, %v979_v33  ;;  %v1158_v39 = vpack.c.bf16 %v982_v37, %v981_v34 }
 0x159   :  { %v999_v40 = vrot.slane %v1157_v38, %v1518_v51  ;;  %v1006_v41 = vrot.slane %v1158_v39, %v1518_v51 }
 0x15b   :  { %v1007_v42 = vcombine.low %v999_v40, %v1006_v41 }
 0x15d   :  { %v1014_v43 = vrot.slane %v1007_v42, %v1518_v51 }
 0x15f   :  { %1023 = vst.msk [vmem:[%s1775_s3] sm:$0xf] %vm1022_vm8, %v1014_v43 }

// kernel: shufflenet_forward.103
= control target key start
LH: loop header
LB: loop body
LE: loop exit
PB: predicated region body
PF: predicated region fallthrough
CT: control target
= control target key end

     0   :  { %8 = vsyncpa [#allocation3], 0  ;;  %s721_s12 = smov 0   ;;  %s851_s0 = inlined_call_operand.vmem [shape: bf16[2,3,3,488], index: 0, kind: input, shape index: {}]   ;;  %s852_s1 = inlined_call_operand.vmem [shape: f32[9,1,488], index: 1, kind: input, shape index: {}]   ;;  %s853_s2 = inlined_call_operand.hbm [shape: f32[1,488], index: 2, kind: input, shape index: {}]   ;;  %s854_s3 = inlined_call_operand.vmem [shape: bf16[2,1,1,488], index: 3, kind: output, shape index: {}]  }
   0x1 LB: > { %s727_s13 = sadd.s32 4294967295, %s695_s12   ;;  %p603_p0 = scmp.ge.s32.totalorder %s695_s12, 1  ;;  %s695_s12 = sphi %s721_s12, %s14_s12  }
   0x2   : > { %p113_p1 = scmp.lt.s32.totalorder %s695_s12, 3  ;;  %p855_p3 = scmp.eq.s32.totalorder %s727_s13, 0 }
   0x3   : > { %s697_s15 = smov [#allocation2]   ;;  %s657_s20 = scalar_lea.hbm %s853_s2, 64 }
   0x4   : > { %p731_p2 = pnand %p603_p0, %p113_p1  ;;  %s129_s16 = sshll.u32 %s697_s15, 4  ;;  %s130_s16 = int_to_ptr.vmem [resolvable:$true] %s129_s16 }
   0x5   : > { %p658_p6 = scmp.ne.s32.totalorder %s853_s2, %s657_s20  ;;  %p664_p10 = scmp.lt.u32.totalorder %s657_s20, %s853_s2 }
   0x6   : > { %s857_s14 = scalar_select %p731_p2, 1, 0 }
   0x7   : > { %p639_p4 = pneg %p731_p2 }
   0x9   : > { %p740_p5 = pnand %p855_p3, %p639_p4 }
   0xb   : > { %p659_p7 = pneg %p740_p5 }
   0xd   : > { %p660_p8 = pnand %p659_p7, %p658_p6 }
   0xf   : > { %p661_p9 = pneg %p660_p8 }
  0x11   : > { %p666_p11 = pnand %p664_p10, %p661_p9 }
  0x13   : > { %669 = shalt.err (!%p666_p11)
}
  0x14   : > { %s670_s25 = scalar_lea.vmem %s130_s16, 64  ;;  %p678_p1 = scmp.lt.s32.totalorder %s130_s16, %s130_s16 }
  0x15   : > { %p671_p12 = scmp.ne.s32.totalorder %s130_s16, %s670_s25  ;;  %p679_p4 = scmp.lt.s32.totalorder %s670_s25, %s670_s25 }
  0x17   : > { %p673_p13 = pnand %p671_p12, %p659_p7  ;;  %p680_p3 = por %p679_p4, %p678_p1 }
  0x19   : > { %p674_p0 = pneg %p673_p13 }
  0x1b   : > { %p681_p2 = pnand %p680_p3, %p674_p0 }
  0x1d   : > { %684 = shalt.err (!%p681_p2)
}
  0x1e   : > { %642 = dma.hbm_to_vmem [thread:$0]  (!%p740_p5), %s853_s2, 64, %s130_s16, [#allocation3]  }
  0x1f   : > { %p859_p6 = scmp.ne.s32.totalorder %s857_s14, 0 }
  0x20   : > { %p860_p8 = scmp.eq.s32.totalorder (!%p859_p6), %s727_s13, 0 }
  0x21   : > { %150 = sbr.rel (%p859_p6) target bundleno = 85 (0x55), region = 32 }
  0x28   : > { %690 = dma.done.wait (%p860_p8), [#allocation3], 64   ;;  %p861_p7 = pmov %p860_p8 }
  0x29   : > { %p173_p9 = scmp.lt.s32.totalorder %s727_s13, 1  ;;  %v196_v0 = vlaneseq  ;;  %v698_v1 = vmov 286326784   ;;  %v699_v3 = vmov 858989090   ;;  %v191_v14 = vld [vmem:[%s852_s1] sm:$0xf] }
  0x2a   : > { %692 = vsyncadd (%p861_p7), [#allocation3], 4294967232  ;;  %v194_v2 = vunpack.c.l.s4 %v698_v1  ;;  %v201_v4 = vunpack.c.l.s4 %v699_v3  ;;  %v610_v15 = vld [vmem:[%s852_s1 + $0x4] sm:$0xf]  ;;  %v613_v16 = vld [vmem:[%s852_s1 + $0x8] sm:$0xf] }
  0x2b   : > { %s867_s13 = smov (!%p173_p9, %s727_s13), 1  ;;  %v770_v5 = vshrl.u32 %v196_v0, 7  ;;  %v616_v21 = vld [vmem:[%s852_s1 + $0xc] sm:$0xf]  ;;  %v617_v27 = vld [vmem:[%s852_s1 + $0x10] sm:$0xf] }
  0x2c   : > { %v195_v6 = vunpack.c.0.s8 %v194_v2  ;;  %v202_v7 = vunpack.c.0.s8 %v201_v4  ;;  %s634_s28 = smul.u32 24, %s867_s13  ;;  %v620_v36 = vld [vmem:[%s852_s1 + $0x14] sm:$0xf]  ;;  %v623_v45 = vld [vmem:[%s852_s1 + $0x18] sm:$0xf]  ;;  %vm518_vm0 = vcmask 1040384  }
  0x2d   : > { %v624_v54 = vld [vmem:[%s852_s1 + $0x1c] sm:$0xf]  ;;  %v627_v59 = vld [vmem:[%s852_s1 + $0x20] sm:$0xf]  ;;  %vm519_vm1 = vsmask.f32 256 }
  0x2e   : > { %s177_s4 = scalar_lea.vmem %s851_s0, %s634_s28  ;;  %v777_v8 = vsub.s32 %v195_v6, %v770_v5  ;;  %v780_v9 = vsub.s32 %v202_v7, %v770_v5  ;;  %vm521_vm2 = vcmask 1041409   ;;  %vm522_vm3 = vsmask.f32 1280  ;;  %vm829_vm4 = vmand %vm518_vm0, %vm519_vm1  ;;  %s609_s25 = sshll.u32 %s867_s13, 2 }
  0x2f   : > { %v182_v10 = vld [vmem:[%s177_s4] sm:$0xff]  ;;  %v183_v11 = vld [vmem:[%s177_s4 + $0x8] sm:$0xff]  ;;  %v184_v22 = vld [vmem:[%s177_s4 + $0x10] sm:$0xff]  ;;  %vm525_vm6 = vcmask 1042434   ;;  %vm526_vm7 = vsmask.f32 2304  ;;  %s181_s28 = scalar_lea.vmem %s854_s3, %s609_s25 }
  0x30   : > { %v185_v12 = vunpack.c.l.bf16 %v182_v10  ;;  %v186_v13 = vunpack.c.h.bf16 %v182_v10  ;;  %v187_v17 = vunpack.c.l.bf16 %v183_v11  ;;  %v188_v18 = vunpack.c.h.bf16 %v183_v11  ;;  %vm835_vm5 = vmand %vm521_vm2, %vm522_vm3 }
  0x31   : > { %v199_v19 = vrot.slane %v191_v14, %v777_v8  ;;  %v206_v20 = vrot.slane %v191_v14, %v780_v9  ;;  %v220_v23 = vrot.slane %v610_v15, %v777_v8  ;;  %v227_v24 = vrot.slane %v610_v15, %v780_v9  ;;  %vm524_vm8 = vmor %vm835_vm5, %vm829_vm4 }
  0x32   : > { %v251_v25 = vrot.slane %v613_v16, %v777_v8  ;;  %v258_v26 = vrot.slane %v613_v16, %v780_v9  ;;  %v282_v30 = vrot.slane %v616_v21, %v777_v8  ;;  %v289_v31 = vrot.slane %v616_v21, %v780_v9  ;;  %vm527_vm9 = vmand %vm525_vm6, %vm526_vm7 }
  0x33   : > { %v209_v28 = vmul.f32 %v199_v19, %v185_v12  ;;  %v210_v29 = vmul.f32 %v206_v20, %v186_v13  ;;  %v230_v32 = vmul.f32 %v220_v23, %v185_v12  ;;  %v231_v33 = vmul.f32 %v227_v24, %v186_v13  ;;  %v443_v23 = vld [vmem:[#allocation2] sm:$0xf]  ;;  %vm528_vm12 = vmor %vm527_vm9, %vm524_vm8 }
  0x34   : > { %v261_v34 = vmul.f32 %v251_v25, %v185_v12  ;;  %v262_v35 = vmul.f32 %v258_v26, %v186_v13  ;;  %v189_v37 = vunpack.c.l.bf16 %v184_v22  ;;  %v190_v38 = vunpack.c.h.bf16 %v184_v22 }
  0x35   : > { %v305_v39 = vrot.slane %v617_v27, %v777_v8  ;;  %v312_v40 = vrot.slane %v617_v27, %v780_v9  ;;  %v611_v41 = vrot.slane %v230_v32, 9  ;;  %v612_v42 = vrot.slane %v231_v33, 9 }
  0x36   : > { %v614_v43 = vrot.slane %v261_v34, 10  ;;  %v615_v44 = vrot.slane %v262_v35, 10  ;;  %v336_v48 = vrot.slane %v620_v36, %v777_v8  ;;  %v343_v49 = vrot.slane %v620_v36, %v780_v9 }
  0x37   : > { %v315_v46 = vmul.f32 %v305_v39, %v187_v17  ;;  %v316_v47 = vmul.f32 %v312_v40, %v188_v18  ;;  %v240_v50 = vadd.f32 %v611_v41, %v209_v28  ;;  %v241_v51 = vadd.f32 %v612_v42, %v210_v29 }
  0x38   : > { %v292_v52 = vmul.f32 %v282_v30, %v187_v17  ;;  %v293_v53 = vmul.f32 %v289_v31, %v188_v18  ;;  %v346_v55 = vmul.f32 %v336_v48, %v187_v17  ;;  %v347_v56 = vmul.f32 %v343_v49, %v188_v18 }
  0x39   : > { %v367_v57 = vrot.slane %v623_v45, %v777_v8  ;;  %v374_v58 = vrot.slane %v623_v45, %v780_v9  ;;  %v271_v60 = vadd.f32 %v614_v43, %v240_v50  ;;  %v272_v61 = vadd.f32 %v615_v44, %v241_v51  ;;  %v533_v50 = vld [vmem:[%s181_s28] sm:$0xf] }
  0x3a   : > { %v618_v62 = vrot.slane %v315_v46, 9  ;;  %v619_v63 = vrot.slane %v316_v47, 9  ;;  %v621_v0 = vrot.slane %v346_v55, 10  ;;  %v622_v1 = vrot.slane %v347_v56, 10 }
  0x3b   : > { %v390_v2 = vrot.slane %v624_v54, %v777_v8  ;;  %v397_v3 = vrot.slane %v624_v54, %v780_v9  ;;  %v294_v4 = vadd.f32 %v292_v52, %v271_v60  ;;  %v295_v6 = vadd.f32 %v293_v53, %v272_v61 }
  0x3c   : > { %v421_v7 = vrot.slane %v627_v59, %v777_v8  ;;  %v428_v10 = vrot.slane %v627_v59, %v780_v9  ;;  %v377_v11 = vmul.f32 %v367_v57, %v189_v37  ;;  %v378_v12 = vmul.f32 %v374_v58, %v190_v38 }
  0x3d   : > { %v400_v13 = vmul.f32 %v390_v2, %v189_v37  ;;  %v401_v14 = vmul.f32 %v397_v3, %v190_v38  ;;  %v325_v15 = vadd.f32 %v618_v62, %v294_v4  ;;  %v326_v16 = vadd.f32 %v619_v63, %v295_v6 }
  0x3e   : > { %v431_v17 = vmul.f32 %v421_v7, %v189_v37  ;;  %v432_v18 = vmul.f32 %v428_v10, %v190_v38  ;;  %v700_v24 = vmov 1966171168   ;;  %v451_v32 = vrot.slane %v443_v23, %v777_v8 }
  0x3f   : > { %v356_v19 = vadd.f32 %v621_v0, %v325_v15  ;;  %v357_v20 = vadd.f32 %v622_v1, %v326_v16  ;;  %v625_v21 = vrot.slane %v400_v13, 9  ;;  %v626_v22 = vrot.slane %v401_v14, 9 }
  0x40   : > { %v496_v25 = vunpack.c.l.s4 %v700_v24  ;;  %v628_v28 = vrot.slane %v431_v17, 10  ;;  %v629_v29 = vrot.slane %v432_v18, 10  ;;  %v458_v33 = vrot.slane %v443_v23, %v780_v9 }
  0x41   : > { %v379_v26 = vadd.f32 %v377_v11, %v356_v19  ;;  %v380_v27 = vadd.f32 %v378_v12, %v357_v20  ;;  %v467_v38 = vsub.s32 0, %v770_v5  ;;  %v471_v39 = vsub.s32 4, %v770_v5 }
  0x42   : > { %v497_v34 = vunpack.c.0.s8 %v496_v25  ;;  %vm529_vm10 = vcmask 846851   ;;  %vm530_vm11 = vsmask.f32 3328 }
  0x43   : > { %v410_v30 = vadd.f32 %v625_v21, %v379_v26  ;;  %v411_v31 = vadd.f32 %v626_v22, %v380_v27  ;;  %vm531_vm13 = vmand %vm529_vm10, %vm530_vm11 }
  0x44   : > { %v500_v41 = vsub.s32 %v497_v34, %v770_v5  ;;  %vm532_vm14 = vmor %vm531_vm13, %vm528_vm12 }
  0x45   : > { %v441_v36 = vadd.f32 %v628_v28, %v410_v30  ;;  %v442_v37 = vadd.f32 %v629_v29, %v411_v31 }
  0x47   : > { %v461_v8 = vadd.f32 %v451_v32, %v441_v36  ;;  %v462_v9 = vadd.f32 %v458_v33, %v442_v37 }
  0x49   : > { %v468_v42 = vrot.slane %v461_v8, %v467_v38  ;;  %v472_v43 = vrot.slane %v461_v8, %v471_v39  ;;  %v476_v44 = vrot.slane %v462_v9, %v467_v38  ;;  %v480_v45 = vrot.slane %v462_v9, %v471_v39 }
  0x4b   : > { %v630_v46 = vpack.c.bf16 %v472_v43, %v468_v42  ;;  %v631_v47 = vpack.c.bf16 %v480_v45, %v476_v44 }
  0x4d   : > { %v501_v5 = vrot.slane %v630_v46, %v500_v41  ;;  %v508_v48 = vrot.slane %v631_v47, %v500_v41 }
  0x4f   : > { %v509_v49 = vcombine.low %v501_v5, %v508_v48 }
  0x51   : > { %v516_v51 = vrot.slane %v509_v49, %v500_v41 }
  0x53   : > { %v534_v52 = vsel %vm532_vm14, %v516_v51, %v533_v50 }
  0x54   : > { %535 = vst [vmem:[%s181_s28] sm:$0xf] %v534_v52 }
  0x55 PF: > { %s14_s12 = sadd.s32 1, %s695_s12  }
  0x56   : > { %p11_p2 = scmp.ge.s32.totalorder %s14_s12, 4  }
  0x58   :  { %13 = sbr.rel (!%p11_p2) target bundleno = 1 (0x1), region = 75 }
  0x5f   :  { %555 = vsyncpa [#allocation3], 1 }
  0x60   :  { %557 = vsyncpa [#allocation3 + $0x1], 1 }

// kernel: shufflenet_forward.100
= control target key start
LH: loop header
LB: loop body
LE: loop exit
PB: predicated region body
PF: predicated region fallthrough
CT: control target
= control target key end

     0   :  { %s650_s12 = smov 0   ;;  %s744_s0 = inlined_call_operand.vmem [shape: bf16[2,3,3,488], index: 0, kind: input, shape index: {}]   ;;  %s745_s1 = inlined_call_operand.vmem [shape: f32[9,1,488], index: 1, kind: input, shape index: {}]   ;;  %s746_s2 = inlined_call_operand.vmem [shape: f32[1,488], index: 2, kind: input, shape index: {}]   ;;  %s747_s3 = inlined_call_operand.vmem [shape: bf16[2,1,1,488], index: 3, kind: output, shape index: {}]  }
   0x1 LB: > { %s576_s13 = sadd.s32 4294967295, %s625_s12   ;;  %p580_p0 = scmp.ge.s32.totalorder %s625_s12, 1  ;;  %s625_s12 = sphi %s650_s12, %s13_s12  }
   0x2   : > { %p137_p1 = scmp.lt.s32.totalorder %s625_s12, 3 }
   0x4   : > { %p138_p2 = pnand %p580_p0, %p137_p1 }
   0x5   : > { %p160_p3 = scmp.lt.s32.totalorder (!%p138_p2), %s576_s13, 1  ;;  %v183_v0 = vlaneseq (!%p138_p2)  ;;  %v627_v1 = vmov (!%p138_p2), 286326784   ;;  %v628_v3 = vmov (!%p138_p2), 858989090   ;;  %v178_v8 = vld [vmem:[%s745_s1] sm:$0xf] (!%p138_p2) }
   0x6   : > { %141 = sbr.rel (%p138_p2) target bundleno = 54 (0x36), region = 32  ;;  %v181_v2 = vunpack.c.l.s4 (!%p138_p2), %v627_v1  ;;  %v188_v4 = vunpack.c.l.s4 (!%p138_p2), %v628_v3  ;;  %v583_v9 = vld [vmem:[%s745_s1 + $0x4] sm:$0xf] (!%p138_p2)  ;;  %v586_v12 = vld [vmem:[%s745_s1 + $0x8] sm:$0xf] (!%p138_p2)  ;;  %vm505_vm0 = vcmask (!%p138_p2), 1040384  }
   0x7   : > { %v660_v5 = vshrl.u32 (!%p138_p2), %v183_v0, 7  ;;  %v589_v24 = vld [vmem:[%s745_s1 + $0xc] sm:$0xf] (!%p138_p2)  ;;  %v590_v29 = vld [vmem:[%s745_s1 + $0x10] sm:$0xf] (!%p138_p2)  ;;  %vm508_vm2 = vcmask (!%p138_p2), 1041409  }
   0x8   : > { %v182_v6 = vunpack.c.0.s8 (!%p138_p2), %v181_v2  ;;  %v189_v7 = vunpack.c.0.s8 (!%p138_p2), %v188_v4  ;;  %v593_v42 = vld [vmem:[%s745_s1 + $0x14] sm:$0xf] (!%p138_p2)  ;;  %v596_v43 = vld [vmem:[%s745_s1 + $0x18] sm:$0xf] (!%p138_p2)  ;;  %v597_v56 = vld [vmem:[%s745_s1 + $0x1c] sm:$0xf] (!%p138_p2) }
   0x9   : > { %v600_v61 = vld [vmem:[%s745_s1 + $0x20] sm:$0xf] (!%p138_p2)  ;;  %vm506_vm1 = vsmask.f32 (!%p138_p2), 256  ;;  %vm509_vm3 = vsmask.f32 (!%p138_p2), 1280 }
   0xa   : > { %v670_v10 = vsub.s32 (!%p138_p2), %v182_v6, %v660_v5  ;;  %v673_v11 = vsub.s32 (!%p138_p2), %v189_v7, %v660_v5  ;;  %vm722_vm4 = vmand (!%p138_p2), %vm505_vm0, %vm506_vm1  ;;  %vm512_vm6 = vcmask (!%p138_p2), 1042434   ;;  %vm513_vm7 = vsmask.f32 (!%p138_p2), 2304 }
   0xb   : > { %vm728_vm5 = vmand (!%p138_p2), %vm508_vm2, %vm509_vm3  ;;  %vm516_vm10 = vcmask (!%p138_p2), 846851   ;;  %vm517_vm11 = vsmask.f32 (!%p138_p2), 3328 }
   0xc   : > { %v186_v16 = vrot.slane (!%p138_p2), %v178_v8, %v670_v10  ;;  %v193_v17 = vrot.slane (!%p138_p2), %v178_v8, %v673_v11  ;;  %v207_v18 = vrot.slane (!%p138_p2), %v583_v9, %v670_v10  ;;  %v214_v19 = vrot.slane (!%p138_p2), %v583_v9, %v673_v11  ;;  %vm511_vm8 = vmor (!%p138_p2), %vm728_vm5, %vm722_vm4 }
   0xd   : > { %s753_s13 = smov (!%p160_p3, %s576_s13), 1  ;;  %v238_v27 = vrot.slane %v586_v12, %v670_v10  ;;  %v245_v28 = vrot.slane %v586_v12, %v673_v11  ;;  %v269_v36 = vrot.slane %v589_v24, %v670_v10  ;;  %v276_v37 = vrot.slane %v589_v24, %v673_v11  ;;  %vm514_vm9 = vmand %vm512_vm6, %vm513_vm7 }
   0xe   : > { %s607_s14 = smul.u32 24, %s753_s13  ;;  %v292_v40 = vrot.slane %v590_v29, %v670_v10  ;;  %v299_v41 = vrot.slane %v590_v29, %v673_v11  ;;  %v323_v52 = vrot.slane %v593_v42, %v670_v10  ;;  %v330_v53 = vrot.slane %v593_v42, %v673_v11  ;;  %s582_s11 = sshll.u32 %s753_s13, 2  ;;  %vm515_vm12 = vmor %vm514_vm9, %vm511_vm8 }
   0xf   : > { %v354_v54 = vrot.slane %v596_v43, %v670_v10  ;;  %v361_v55 = vrot.slane %v596_v43, %v673_v11  ;;  %v377_v4 = vrot.slane %v597_v56, %v670_v10  ;;  %v384_v6 = vrot.slane %v597_v56, %v673_v11  ;;  %s168_s16 = scalar_lea.vmem %s747_s3, %s582_s11  ;;  %vm518_vm13 = vmand %vm516_vm10, %vm517_vm11 }
  0x10   : > { %s164_s21 = scalar_lea.vmem %s744_s0, %s607_s14  ;;  %v408_v9 = vrot.slane %v600_v61, %v670_v10  ;;  %v415_v12 = vrot.slane %v600_v61, %v673_v11  ;;  %v629_v24 = vmov 1966171168   ;;  %vm519_vm14 = vmor %vm518_vm13, %vm515_vm12 }
  0x11   : > { %v169_v13 = vld [vmem:[%s164_s21] sm:$0xff]  ;;  %v170_v14 = vld [vmem:[%s164_s21 + $0x8] sm:$0xff]  ;;  %v171_v15 = vld [vmem:[%s164_s21 + $0x10] sm:$0xff] }
  0x12   : > { %v172_v20 = vunpack.c.l.bf16 %v169_v13  ;;  %v173_v21 = vunpack.c.h.bf16 %v169_v13  ;;  %v174_v22 = vunpack.c.l.bf16 %v170_v14  ;;  %v175_v23 = vunpack.c.h.bf16 %v170_v14 }
  0x13   : > { %v176_v25 = vunpack.c.l.bf16 %v171_v15  ;;  %v177_v26 = vunpack.c.h.bf16 %v171_v15 }
  0x14   : > { %v196_v30 = vmul.f32 %v186_v16, %v172_v20  ;;  %v197_v31 = vmul.f32 %v193_v17, %v173_v21  ;;  %v217_v32 = vmul.f32 %v207_v18, %v172_v20  ;;  %v218_v33 = vmul.f32 %v214_v19, %v173_v21 }
  0x15   : > { %v248_v34 = vmul.f32 %v238_v27, %v172_v20  ;;  %v249_v35 = vmul.f32 %v245_v28, %v173_v21  ;;  %v279_v46 = vmul.f32 %v269_v36, %v174_v22  ;;  %v280_v47 = vmul.f32 %v276_v37, %v175_v23 }
  0x16   : > { %v584_v38 = vrot.slane %v217_v32, 9  ;;  %v585_v39 = vrot.slane %v218_v33, 9  ;;  %v302_v50 = vmul.f32 %v292_v40, %v174_v22  ;;  %v303_v51 = vmul.f32 %v299_v41, %v175_v23 }
  0x17   : > { %v587_v44 = vrot.slane %v248_v34, 10  ;;  %v588_v45 = vrot.slane %v249_v35, 10  ;;  %v333_v62 = vmul.f32 %v323_v52, %v174_v22  ;;  %v334_v63 = vmul.f32 %v330_v53, %v175_v23  ;;  %v430_v23 = vld [vmem:[%s746_s2] sm:$0xf] }
  0x18   : > { %v227_v48 = vadd.f32 %v584_v38, %v196_v30  ;;  %v228_v49 = vadd.f32 %v585_v39, %v197_v31  ;;  %v591_v59 = vrot.slane %v302_v50, 9  ;;  %v592_v60 = vrot.slane %v303_v51, 9  ;;  %v520_v50 = vld [vmem:[%s168_s16] sm:$0xf] }
  0x19   : > { %v364_v0 = vmul.f32 %v354_v54, %v176_v25  ;;  %v365_v1 = vmul.f32 %v361_v55, %v177_v26  ;;  %v594_v7 = vrot.slane %v333_v62, 10  ;;  %v595_v8 = vrot.slane %v334_v63, 10 }
  0x1a   : > { %v258_v57 = vadd.f32 %v587_v44, %v227_v48  ;;  %v259_v58 = vadd.f32 %v588_v45, %v228_v49  ;;  %v387_v15 = vmul.f32 %v377_v4, %v176_v25  ;;  %v388_v16 = vmul.f32 %v384_v6, %v177_v26 }
  0x1b   : > { %v418_v17 = vmul.f32 %v408_v9, %v176_v25  ;;  %v419_v18 = vmul.f32 %v415_v12, %v177_v26  ;;  %v483_v27 = vunpack.c.l.s4 %v629_v24  ;;  %v438_v32 = vrot.slane %v430_v23, %v670_v10 }
  0x1c   : > { %v281_v2 = vadd.f32 %v279_v46, %v258_v57  ;;  %v282_v3 = vadd.f32 %v280_v47, %v259_v58  ;;  %v598_v21 = vrot.slane %v387_v15, 9  ;;  %v599_v22 = vrot.slane %v388_v16, 9 }
  0x1d   : > { %v601_v30 = vrot.slane %v418_v17, 10  ;;  %v602_v31 = vrot.slane %v419_v18, 10  ;;  %v445_v33 = vrot.slane %v430_v23, %v673_v11  ;;  %v484_v34 = vunpack.c.0.s8 %v483_v27 }
  0x1e   : > { %v312_v13 = vadd.f32 %v591_v59, %v281_v2  ;;  %v313_v14 = vadd.f32 %v592_v60, %v282_v3  ;;  %v454_v38 = vsub.s32 0, %v660_v5  ;;  %v458_v39 = vsub.s32 4, %v660_v5 }
  0x1f   : > { %v487_v41 = vsub.s32 %v484_v34, %v660_v5 }
  0x20   : > { %v343_v19 = vadd.f32 %v594_v7, %v312_v13  ;;  %v344_v20 = vadd.f32 %v595_v8, %v313_v14 }
  0x22   : > { %v366_v28 = vadd.f32 %v364_v0, %v343_v19  ;;  %v367_v29 = vadd.f32 %v365_v1, %v344_v20 }
  0x24   : > { %v397_v25 = vadd.f32 %v598_v21, %v366_v28  ;;  %v398_v26 = vadd.f32 %v599_v22, %v367_v29 }
  0x26   : > { %v428_v36 = vadd.f32 %v601_v30, %v397_v25  ;;  %v429_v37 = vadd.f32 %v602_v31, %v398_v26 }
  0x28   : > { %v448_v10 = vadd.f32 %v438_v32, %v428_v36  ;;  %v449_v11 = vadd.f32 %v445_v33, %v429_v37 }
  0x2a   : > { %v455_v42 = vrot.slane %v448_v10, %v454_v38  ;;  %v459_v43 = vrot.slane %v448_v10, %v458_v39  ;;  %v463_v44 = vrot.slane %v449_v11, %v454_v38  ;;  %v467_v45 = vrot.slane %v449_v11, %v458_v39 }
  0x2c   : > { %v603_v46 = vpack.c.bf16 %v459_v43, %v455_v42  ;;  %v604_v47 = vpack.c.bf16 %v467_v45, %v463_v44 }
  0x2e   : > { %v488_v5 = vrot.slane %v603_v46, %v487_v41  ;;  %v495_v48 = vrot.slane %v604_v47, %v487_v41 }
  0x30   : > { %v496_v49 = vcombine.low %v488_v5, %v495_v48 }
  0x32   : > { %v503_v51 = vrot.slane %v496_v49, %v487_v41 }
  0x34   : > { %v521_v52 = vsel %vm519_vm14, %v503_v51, %v520_v50 }
  0x35   : > { %522 = vst [vmem:[%s168_s16] sm:$0xf] %v521_v52 }
  0x36 PF: > { %s13_s12 = sadd.s32 1, %s625_s12  }
  0x37   : > { %p10_p4 = scmp.ge.s32.totalorder %s13_s12, 4  }
  0x39   :  { %12 = sbr.rel (!%p10_p4) target bundleno = 1 (0x1), region = 70 }

// kernel: shufflenet_forward.115
= control target key start
LH: loop header
LB: loop body
LE: loop exit
PB: predicated region body
PF: predicated region fallthrough
CT: control target
= control target key end

     0   :  { %s254_s6 = smov 0   ;;  %s271_s0 = inlined_call_operand.vmem [shape: bf16[2,1,1,2048], index: 0, kind: input, shape index: {}]   ;;  %s272_s1 = inlined_call_operand.vmem [shape: f32[2,1,2048], index: 1, kind: output, shape index: {}]  }
   0x1 LB: > { %s217_s7 = sadd.s32 4294967295, %s241_s6   ;;  %p221_p0 = scmp.ge.s32.totalorder %s241_s6, 1  ;;  %s241_s6 = sphi %s254_s6, %s11_s6  }
   0x2   : > { %p86_p1 = scmp.lt.s32.totalorder %s241_s6, 3 }
   0x4   : > { %p87_p2 = pnand %p221_p0, %p86_p1 }
   0x5   : > { %p104_p3 = scmp.lt.s32.totalorder (!%p87_p2), %s217_s7, 1  ;;  %v133_v0 = vlaneseq (!%p87_p2)  ;;  %v243_v1 = vmov (!%p87_p2), 1966171168  }
   0x6   : > { %90 = sbr.rel (%p87_p2) target bundleno = 24 (0x18), region = 24  ;;  %v131_v2 = vunpack.c.l.s4 (!%p87_p2), %v243_v1 }
   0x7   : > { %v134_v3 = vshrl.u32 (!%p87_p2), %v133_v0, 7 }
   0x8   : > { %v132_v4 = vunpack.c.0.s8 (!%p87_p2), %v131_v2 }
   0xa   : > { %v135_v5 = vsub.s32 (!%p87_p2), %v132_v4, %v134_v3 }
   0xd   : > { %s274_s7 = smov (!%p104_p3, %s217_s7), 1 }
   0xe   : > { %s222_s8 = sshll.u32 %s274_s7, 4 }
   0xf   : > { %s107_s11 = scalar_lea.vmem %s271_s0, %s222_s8  ;;  %s111_s14 = scalar_lea.vmem %s272_s1, %s222_s8 }
  0x10   : > { %v112_v6 = vld [vmem:[%s107_s11] sm:$0xff]  ;;  %v113_v7 = vld [vmem:[%s107_s11 + $0x8] sm:$0xff] }
  0x11   : > { %v114_v8 = vunpack.c.l.bf16 %v112_v6  ;;  %v115_v9 = vunpack.c.h.bf16 %v112_v6  ;;  %v116_v10 = vunpack.c.l.bf16 %v113_v7  ;;  %v117_v11 = vunpack.c.h.bf16 %v113_v7 }
  0x13   : > { %v136_v12 = vrot.slane %v114_v8, %v135_v5  ;;  %v143_v13 = vrot.slane %v115_v9, %v135_v5  ;;  %v151_v14 = vrot.slane %v116_v10, %v135_v5  ;;  %v158_v15 = vrot.slane %v117_v11, %v135_v5 }
  0x15   : > { %v144_v16 = vcombine.low %v136_v12, %v143_v13  ;;  %v159_v17 = vcombine.low %v151_v14, %v158_v15 }
  0x17   : > { %162 = vst [vmem:[%s111_s14] sm:$0xff] %v144_v16  ;;  %163 = vst [vmem:[%s111_s14 + $0x8] sm:$0xff] %v159_v17 }
  0x18 PF: > { %s11_s6 = sadd.s32 1, %s241_s6  }
  0x19   : > { %p8_p4 = scmp.ge.s32.totalorder %s11_s6, 4  }
  0x1b   :  { %10 = sbr.rel (!%p8_p4) target bundleno = 1 (0x1), region = 54 }

// kernel: shufflenet_forward.114
= control target key start
LH: loop header
LB: loop body
LE: loop exit
PB: predicated region body
PF: predicated region fallthrough
CT: control target
= control target key end

     0   :  { %v996_v32 = vlaneseq  ;;  %v8590_v33 = vmov 1966171168   ;;  %vm6013_vm0 = vcmask 654336   ;;  %s11747_s1 = inlined_call_operand.vmem [shape: bf16[976,2048], index: 1, kind: input, shape index: {}]   ;;  %s11748_s0 = inlined_call_operand.vmem [shape: bf16[2,976], index: 0, kind: input, shape index: {}]   ;;  %s11749_s2 = inlined_call_operand.vmem [shape: f32[1,2048], index: 2, kind: input, shape index: {}]   ;;  %s11750_s3 = inlined_call_operand.vmem [shape: bf16[2,2048], index: 3, kind: output, shape index: {}]  }
   0x1   :  { %v16_v0 = vld [vmem:[%s11747_s1] sm:$0xff]  ;;  %v17_v2 = vld [vmem:[%s11747_s1 + $0x8] sm:$0xff]  ;;  %v1079_v34 = vunpack.c.l.s4 %v8590_v33 }
   0x2   :  { %v24_v1 = vld [vmem:[%s11747_s1 + $0x40] sm:$0xff]  ;;  %v25_v4 = vld [vmem:[%s11747_s1 + $0x48] sm:$0xff]  ;;  %v8677_v43 = vshrl.u32 %v996_v32, 7 }
   0x3   :  { %v7484_v3 = vcombine.high %v16_v0, %v24_v1  ;;  %v7483_v5 = vcombine.low %v16_v0, %v24_v1  ;;  %v32_v6 = vld [vmem:[%s11747_s1 + $0x80] sm:$0xff]  ;;  %v7486_v8 = vcombine.high %v17_v2, %v25_v4  ;;  %v7485_v9 = vcombine.low %v17_v2, %v25_v4  ;;  %v33_v11 = vld [vmem:[%s11747_s1 + $0x88] sm:$0xff] }
   0x4   :  { %v40_v7 = vld [vmem:[%s11747_s1 + $0xc0] sm:$0xff]  ;;  %v41_v12 = vld [vmem:[%s11747_s1 + $0xc8] sm:$0xff]  ;;  %v1080_v44 = vunpack.c.0.s8 %v1079_v34 }
   0x5   :  { %v7500_v10 = vcombine.high %v32_v6, %v40_v7  ;;  %v48_v13 = vld [vmem:[%s11747_s1 + $0x100] sm:$0xff]  ;;  %6017 = vmatprep.subr.bf16.mxu0 %v7484_v3  ;;  %v7502_v14 = vcombine.high %v33_v11, %v41_v12  ;;  %v49_v16 = vld [vmem:[%s11747_s1 + $0x108] sm:$0xff]  ;;  %6181 = vmatprep.subr.bf16.mxu1 %v7486_v8  ;;  %v7499_v18 = vcombine.low %v32_v6, %v40_v7 }
   0x6   :  { %v56_v15 = vld [vmem:[%s11747_s1 + $0x140] sm:$0xff]  ;;  %v57_v17 = vld [vmem:[%s11747_s1 + $0x148] sm:$0xff]  ;;  %6018 = vmatpush1.bf16.msra.mxu0 %v7483_v5  ;;  %6182 = vmatpush1.bf16.msra.mxu1 %v7485_v9  ;;  %v7501_v19 = vcombine.low %v33_v11, %v41_v12  ;;  %v8692_v53 = vsub.s32 %v1080_v44, %v8677_v43 }
   0x7   :  { %6019 = vmatprep.subr.bf16.mxu0 %v7500_v10  ;;  %v7516_v20 = vcombine.high %v48_v13, %v56_v15  ;;  %6183 = vmatprep.subr.bf16.mxu1 %v7502_v14  ;;  %v7518_v21 = vcombine.high %v49_v16, %v57_v17  ;;  %v64_v22 = vld [vmem:[%s11747_s1 + $0x180] sm:$0xff]  ;;  %v65_v24 = vld [vmem:[%s11747_s1 + $0x188] sm:$0xff]  ;;  %v7515_v26 = vcombine.low %v48_v13, %v56_v15 }
   0x8   :  { %v72_v23 = vld [vmem:[%s11747_s1 + $0x1c0] sm:$0xff]  ;;  %v73_v25 = vld [vmem:[%s11747_s1 + $0x1c8] sm:$0xff]  ;;  %v7517_v27 = vcombine.low %v49_v16, %v57_v17 }
   0x9   :  { %v7532_v28 = vcombine.high %v64_v22, %v72_v23  ;;  %v7534_v29 = vcombine.high %v65_v24, %v73_v25  ;;  %v80_v30 = vld [vmem:[%s11747_s1 + $0x200] sm:$0xff]  ;;  %v81_v35 = vld [vmem:[%s11747_s1 + $0x208] sm:$0xff]  ;;  %v7531_v37 = vcombine.low %v64_v22, %v72_v23  ;;  %v7533_v38 = vcombine.low %v65_v24, %v73_v25 }
   0xa   :  { %6020 = vmatpush1.bf16.msra.mxu0 %v7499_v18  ;;  %6184 = vmatpush1.bf16.msra.mxu1 %v7501_v19  ;;  %v88_v31 = vld [vmem:[%s11747_s1 + $0x240] sm:$0xff]  ;;  %v89_v36 = vld [vmem:[%s11747_s1 + $0x248] sm:$0xff] }
   0xb   :  { %6021 = vmatprep.subr.bf16.mxu0 %v7516_v20  ;;  %6185 = vmatprep.subr.bf16.mxu1 %v7518_v21  ;;  %v7548_v39 = vcombine.high %v80_v30, %v88_v31  ;;  %v7550_v40 = vcombine.high %v81_v35, %v89_v36  ;;  %v96_v41 = vld [vmem:[%s11747_s1 + $0x280] sm:$0xff]  ;;  %v97_v45 = vld [vmem:[%s11747_s1 + $0x288] sm:$0xff]  ;;  %v7547_v47 = vcombine.low %v80_v30, %v88_v31 }
   0xc   :  { %v104_v42 = vld [vmem:[%s11747_s1 + $0x2c0] sm:$0xff]  ;;  %v105_v46 = vld [vmem:[%s11747_s1 + $0x2c8] sm:$0xff]  ;;  %v7549_v48 = vcombine.low %v81_v35, %v89_v36 }
   0xd   :  { %v7564_v49 = vcombine.high %v96_v41, %v104_v42  ;;  %v7566_v50 = vcombine.high %v97_v45, %v105_v46  ;;  %v112_v51 = vld [vmem:[%s11747_s1 + $0x300] sm:$0xff]  ;;  %v113_v54 = vld [vmem:[%s11747_s1 + $0x308] sm:$0xff]  ;;  %v7563_v56 = vcombine.low %v96_v41, %v104_v42  ;;  %v7565_v57 = vcombine.low %v97_v45, %v105_v46 }
   0xe   :  { %6022 = vmatpush1.bf16.msra.mxu0 %v7515_v26  ;;  %6186 = vmatpush1.bf16.msra.mxu1 %v7517_v27  ;;  %v120_v52 = vld [vmem:[%s11747_s1 + $0x340] sm:$0xff]  ;;  %v121_v55 = vld [vmem:[%s11747_s1 + $0x348] sm:$0xff] }
   0xf   :  { %6023 = vmatprep.subr.bf16.mxu0 %v7532_v28  ;;  %6187 = vmatprep.subr.bf16.mxu1 %v7534_v29  ;;  %v7580_v58 = vcombine.high %v112_v51, %v120_v52  ;;  %v8703_v59 = vld [vmem:[%s11748_s0] sm:$0xff]  ;;  %v7582_v60 = vcombine.high %v113_v54, %v121_v55  ;;  %v129_v0 = vld [vmem:[%s11747_s1 + $0x388] sm:$0xff]  ;;  %v7579_v2 = vcombine.low %v112_v51, %v120_v52 }
  0x10   :  { %v128_v61 = vld [vmem:[%s11747_s1 + $0x380] sm:$0xff]  ;;  %v8713_v63 = vrot.slane %v8703_v59, %v8692_v53  ;;  %v137_v1 = vld [vmem:[%s11747_s1 + $0x3c8] sm:$0xff]  ;;  %v7581_v4 = vcombine.low %v113_v54, %v121_v55 }
  0x11   :  { %v136_v62 = vld [vmem:[%s11747_s1 + $0x3c0] sm:$0xff]  ;;  %v7598_v6 = vcombine.high %v129_v0, %v137_v1  ;;  %v145_v10 = vld [vmem:[%s11747_s1 + $0x408] sm:$0xff]  ;;  %v7597_v13 = vcombine.low %v129_v0, %v137_v1 }
  0x12   :  { %6024 = vmatpush1.bf16.msra.mxu0 %v7531_v37  ;;  %6188 = vmatpush1.bf16.msra.mxu1 %v7533_v38  ;;  %v1092_v3 = vcombine.high %v8713_v63, %v8713_v63  ;;  %v7596_v5 = vcombine.high %v128_v61, %v136_v62  ;;  %v144_v7 = vld [vmem:[%s11747_s1 + $0x400] sm:$0xff]  ;;  %v153_v11 = vld [vmem:[%s11747_s1 + $0x448] sm:$0xff]  ;;  %v7595_v12 = vcombine.low %v128_v61, %v136_v62 }
  0x13   :  { %6025 = vmatprep.subr.bf16.mxu0 %v7548_v39  ;;  %6189 = vmatprep.subr.bf16.mxu1 %v7550_v40  ;;  %v152_v8 = vld [vmem:[%s11747_s1 + $0x440] sm:$0xff]  ;;  %v7614_v15 = vcombine.high %v145_v10, %v153_v11  ;;  %v161_v18 = vld [vmem:[%s11747_s1 + $0x488] sm:$0xff]  ;;  %v7613_v21 = vcombine.low %v145_v10, %v153_v11 }
  0x14   :  { %v8730_v9 = vrot.slane %v1092_v3, %v8692_v53  ;;  %v7612_v14 = vcombine.high %v144_v7, %v152_v8  ;;  %v160_v16 = vld [vmem:[%s11747_s1 + $0x480] sm:$0xff]  ;;  %v169_v19 = vld [vmem:[%s11747_s1 + $0x4c8] sm:$0xff]  ;;  %v7611_v20 = vcombine.low %v144_v7, %v152_v8 }
  0x15   :  { %v168_v17 = vld [vmem:[%s11747_s1 + $0x4c0] sm:$0xff]  ;;  %v7630_v23 = vcombine.high %v161_v18, %v169_v19  ;;  %v177_v26 = vld [vmem:[%s11747_s1 + $0x508] sm:$0xff]  ;;  %v7629_v29 = vcombine.low %v161_v18, %v169_v19 }
  0x16   :  { %6026 = vmatpush1.bf16.msra.mxu0 %v7547_v47  ;;  %6190 = vmatpush1.bf16.msra.mxu1 %v7549_v48  ;;  %v7628_v22 = vcombine.high %v160_v16, %v168_v17  ;;  %v176_v24 = vld [vmem:[%s11747_s1 + $0x500] sm:$0xff]  ;;  %v185_v27 = vld [vmem:[%s11747_s1 + $0x548] sm:$0xff]  ;;  %v7627_v28 = vcombine.low %v160_v16, %v168_v17 }
  0x17   :  { %6027 = vmatprep.subr.bf16.mxu0 %v7564_v49  ;;  %6191 = vmatprep.subr.bf16.mxu1 %v7566_v50  ;;  %v184_v25 = vld [vmem:[%s11747_s1 + $0x540] sm:$0xff]  ;;  %v7646_v31 = vcombine.high %v177_v26, %v185_v27  ;;  %v193_v34 = vld [vmem:[%s11747_s1 + $0x588] sm:$0xff]  ;;  %v7645_v37 = vcombine.low %v177_v26, %v185_v27 }
  0x18   :  { %6049 = vmatprep.mubr.bf16.mxu0 %v8730_v9  ;;  %6213 = vmatprep.mubr.bf16.mxu1 %v8730_v9  ;;  %v7644_v30 = vcombine.high %v176_v24, %v184_v25  ;;  %v192_v32 = vld [vmem:[%s11747_s1 + $0x580] sm:$0xff]  ;;  %v201_v35 = vld [vmem:[%s11747_s1 + $0x5c8] sm:$0xff]  ;;  %v7643_v36 = vcombine.low %v176_v24, %v184_v25 }
  0x19   :  { %v200_v33 = vld [vmem:[%s11747_s1 + $0x5c0] sm:$0xff]  ;;  %v7662_v39 = vcombine.high %v193_v34, %v201_v35  ;;  %v209_v42 = vld [vmem:[%s11747_s1 + $0x608] sm:$0xff]  ;;  %v7661_v46 = vcombine.low %v193_v34, %v201_v35 }
  0x1a   :  { %6028 = vmatpush1.bf16.msra.mxu0 %v7563_v56  ;;  %6192 = vmatpush1.bf16.msra.mxu1 %v7565_v57  ;;  %v7660_v38 = vcombine.high %v192_v32, %v200_v33  ;;  %v208_v40 = vld [vmem:[%s11747_s1 + $0x600] sm:$0xff]  ;;  %v217_v44 = vld [vmem:[%s11747_s1 + $0x648] sm:$0xff]  ;;  %v7659_v45 = vcombine.low %v192_v32, %v200_v33 }
  0x1b   :  { %6029 = vmatprep.subr.bf16.mxu0 %v7580_v58  ;;  %6193 = vmatprep.subr.bf16.mxu1 %v7582_v60  ;;  %v216_v41 = vld [vmem:[%s11747_s1 + $0x640] sm:$0xff]  ;;  %v7678_v48 = vcombine.high %v209_v42, %v217_v44  ;;  %v225_v51 = vld [vmem:[%s11747_s1 + $0x688] sm:$0xff]  ;;  %v7677_v55 = vcombine.low %v209_v42, %v217_v44 }
  0x1c   :  { %v7676_v47 = vcombine.high %v208_v40, %v216_v41  ;;  %v224_v49 = vld [vmem:[%s11747_s1 + $0x680] sm:$0xff]  ;;  %v233_v52 = vld [vmem:[%s11747_s1 + $0x6c8] sm:$0xff]  ;;  %v7675_v54 = vcombine.low %v208_v40, %v216_v41 }
  0x1d   :  { %v232_v50 = vld [vmem:[%s11747_s1 + $0x6c0] sm:$0xff]  ;;  %v7694_v57 = vcombine.high %v225_v51, %v233_v52  ;;  %v241_v61 = vld [vmem:[%s11747_s1 + $0x708] sm:$0xff]  ;;  %v7693_v1 = vcombine.low %v225_v51, %v233_v52 }
  0x1e   :  { %6030 = vmatpush1.bf16.msra.mxu0 %v7579_v2  ;;  %6194 = vmatpush1.bf16.msra.mxu1 %v7581_v4  ;;  %v7692_v56 = vcombine.high %v224_v49, %v232_v50  ;;  %v240_v58 = vld [vmem:[%s11747_s1 + $0x700] sm:$0xff]  ;;  %v249_v62 = vld [vmem:[%s11747_s1 + $0x748] sm:$0xff]  ;;  %v7691_v0 = vcombine.low %v224_v49, %v232_v50 }
  0x1f   :  { %6031 = vmatprep.subr.bf16.mxu0 %v7596_v5  ;;  %6195 = vmatprep.subr.bf16.mxu1 %v7598_v6  ;;  %v248_v60 = vld [vmem:[%s11747_s1 + $0x740] sm:$0xff]  ;;  %v7710_v3 = vcombine.high %v241_v61, %v249_v62  ;;  %v257_v6 = vld [vmem:[%s11747_s1 + $0x788] sm:$0xff]  ;;  %v7709_v10 = vcombine.low %v241_v61, %v249_v62 }
  0x20   :  { %v7708_v2 = vcombine.high %v240_v58, %v248_v60  ;;  %v256_v4 = vld [vmem:[%s11747_s1 + $0x780] sm:$0xff]  ;;  %v265_v7 = vld [vmem:[%s11747_s1 + $0x7c8] sm:$0xff]  ;;  %v7707_v8 = vcombine.low %v240_v58, %v248_v60 }
  0x21   :  { %v264_v5 = vld [vmem:[%s11747_s1 + $0x7c0] sm:$0xff]  ;;  %v281_v16 = vld [vmem:[%s11747_s1 + $0x848] sm:$0xff]  ;;  %v7725_v18 = vcombine.low %v257_v6, %v265_v7 }
  0x22   :  { %6032 = vmatpush1.bf16.msra.mxu0 %v7595_v12  ;;  %6196 = vmatpush1.bf16.msra.mxu1 %v7597_v13  ;;  %v7724_v11 = vcombine.high %v256_v4, %v264_v5  ;;  %v7726_v12 = vcombine.high %v257_v6, %v265_v7  ;;  %v272_v13 = vld [vmem:[%s11747_s1 + $0x800] sm:$0xff]  ;;  %v7723_v17 = vcombine.low %v256_v4, %v264_v5  ;;  %v289_v24 = vld [vmem:[%s11747_s1 + $0x888] sm:$0xff] }
  0x23   :  { %6033 = vmatprep.subr.bf16.mxu0 %v7612_v14  ;;  %6197 = vmatprep.subr.bf16.mxu1 %v7614_v15  ;;  %v280_v14 = vld [vmem:[%s11747_s1 + $0x840] sm:$0xff]  ;;  %v273_v15 = vld [vmem:[%s11747_s1 + $0x808] sm:$0xff] }
  0x24   :  { %v7740_v19 = vcombine.high %v272_v13, %v280_v14  ;;  %v297_v25 = vld [vmem:[%s11747_s1 + $0x8c8] sm:$0xff]  ;;  %v7739_v26 = vcombine.low %v272_v13, %v280_v14  ;;  %v7741_v27 = vcombine.low %v273_v15, %v281_v16 }
  0x25   :  { %v305_v32 = vld [vmem:[%s11747_s1 + $0x908] sm:$0xff]  ;;  %v7757_v35 = vcombine.low %v289_v24, %v297_v25 }
  0x26   :  { %6034 = vmatpush1.bf16.msra.mxu0 %v7611_v20  ;;  %6198 = vmatpush1.bf16.msra.mxu1 %v7613_v21  ;;  %v7742_v20 = vcombine.high %v273_v15, %v281_v16  ;;  %v288_v21 = vld [vmem:[%s11747_s1 + $0x880] sm:$0xff]  ;;  %v313_v33 = vld [vmem:[%s11747_s1 + $0x948] sm:$0xff] }
  0x27   :  { %6035 = vmatprep.subr.bf16.mxu0 %v7628_v22  ;;  %6199 = vmatprep.subr.bf16.mxu1 %v7630_v23  ;;  %v296_v22 = vld [vmem:[%s11747_s1 + $0x8c0] sm:$0xff]  ;;  %v8844_v23 = vrot.slane %v8713_v63, %v8692_v53  ;;  %v321_v40 = vld [vmem:[%s11747_s1 + $0x988] sm:$0xff]  ;;  %v7773_v44 = vcombine.low %v305_v32, %v313_v33 }
  0x28   :  { %v304_v63 = vld [vmem:[%s11747_s1 + $0x900] sm:$0xff]  ;;  %v7755_v34 = vcombine.low %v288_v21, %v296_v22  ;;  %v329_v41 = vld [vmem:[%s11747_s1 + $0x9c8] sm:$0xff] }
  0x29   :  { %v337_v49 = vld [vmem:[%s11747_s1 + $0xa08] sm:$0xff]  ;;  %v7789_v52 = vcombine.low %v321_v40, %v329_v41 }
  0x2a   :  { %6036 = vmatpush1.bf16.msra.mxu0 %v7627_v28  ;;  %6200 = vmatpush1.bf16.msra.mxu1 %v7629_v29  ;;  %v7756_v28 = vcombine.high %v288_v21, %v296_v22  ;;  %v7758_v29 = vcombine.high %v289_v24, %v297_v25  ;;  %v345_v50 = vld [vmem:[%s11747_s1 + $0xa48] sm:$0xff] }
  0x2b   :  { %6037 = vmatprep.subr.bf16.mxu0 %v7644_v30  ;;  %6201 = vmatprep.subr.bf16.mxu1 %v7646_v31  ;;  %v312_v30 = vld [vmem:[%s11747_s1 + $0x940] sm:$0xff]  ;;  %v8860_v31 = vcombine.high %v8730_v9, %v8730_v9  ;;  %v353_v58 = vld [vmem:[%s11747_s1 + $0xa88] sm:$0xff]  ;;  %v7805_v62 = vcombine.low %v337_v49, %v345_v50 }
  0x2c   :  { %v7771_v42 = vcombine.low %v304_v63, %v312_v30  ;;  %v361_v60 = vld [vmem:[%s11747_s1 + $0xac8] sm:$0xff] }
  0x2d   :  { %v369_v4 = vld [vmem:[%s11747_s1 + $0xb08] sm:$0xff]  ;;  %v7821_v7 = vcombine.low %v353_v58, %v361_v60 }
  0x2e   :  { %6038 = vmatpush1.bf16.msra.mxu0 %v7643_v36  ;;  %6202 = vmatpush1.bf16.msra.mxu1 %v7645_v37  ;;  %v7772_v36 = vcombine.high %v304_v63, %v312_v30  ;;  %v7774_v37 = vcombine.high %v305_v32, %v313_v33  ;;  %v377_v5 = vld [vmem:[%s11747_s1 + $0xb48] sm:$0xff] }
  0x2f   :  { %6039 = vmatprep.subr.bf16.mxu0 %v7660_v38  ;;  %6203 = vmatprep.subr.bf16.mxu1 %v7662_v39  ;;  %v320_v38 = vld [vmem:[%s11747_s1 + $0x980] sm:$0xff]  ;;  %v385_v13 = vld [vmem:[%s11747_s1 + $0xb88] sm:$0xff]  ;;  %v7837_v16 = vcombine.low %v369_v4, %v377_v5 }
  0x30   :  { %v328_v39 = vld [vmem:[%s11747_s1 + $0x9c0] sm:$0xff]  ;;  %v393_v14 = vld [vmem:[%s11747_s1 + $0xbc8] sm:$0xff] }
  0x31   :  { %v7787_v51 = vcombine.low %v320_v38, %v328_v39  ;;  %v401_v21 = vld [vmem:[%s11747_s1 + $0xc08] sm:$0xff]  ;;  %v7853_v25 = vcombine.low %v385_v13, %v393_v14 }
  0x32   :  { %6040 = vmatpush1.bf16.msra.mxu0 %v7659_v45  ;;  %6204 = vmatpush1.bf16.msra.mxu1 %v7661_v46  ;;  %v7788_v45 = vcombine.high %v320_v38, %v328_v39  ;;  %v7790_v46 = vcombine.high %v321_v40, %v329_v41  ;;  %v409_v22 = vld [vmem:[%s11747_s1 + $0xc48] sm:$0xff] }
  0x33   :  { %6041 = vmatprep.subr.bf16.mxu0 %v7676_v47  ;;  %6205 = vmatprep.subr.bf16.mxu1 %v7678_v48  ;;  %v336_v47 = vld [vmem:[%s11747_s1 + $0xa00] sm:$0xff]  ;;  %v417_v63 = vld [vmem:[%s11747_s1 + $0xc88] sm:$0xff]  ;;  %v7869_v33 = vcombine.low %v401_v21, %v409_v22 }
  0x34   :  { %v344_v48 = vld [vmem:[%s11747_s1 + $0xa40] sm:$0xff]  ;;  %v425_v30 = vld [vmem:[%s11747_s1 + $0xcc8] sm:$0xff] }
  0x35   :  { %v7803_v61 = vcombine.low %v336_v47, %v344_v48  ;;  %v433_v38 = vld [vmem:[%s11747_s1 + $0xd08] sm:$0xff]  ;;  %v7885_v41 = vcombine.low %v417_v63, %v425_v30 }
  0x36   :  { %6042 = vmatpush1.bf16.msra.mxu0 %v7675_v54  ;;  %6206 = vmatpush1.bf16.msra.mxu1 %v7677_v55  ;;  %v7804_v54 = vcombine.high %v336_v47, %v344_v48  ;;  %v7806_v55 = vcombine.high %v337_v49, %v345_v50  ;;  %v441_v39 = vld [vmem:[%s11747_s1 + $0xd48] sm:$0xff] }
  0x37   :  { %6043 = vmatprep.subr.bf16.mxu0 %v7692_v56  ;;  %6207 = vmatprep.subr.bf16.mxu1 %v7694_v57  ;;  %v352_v56 = vld [vmem:[%s11747_s1 + $0xa80] sm:$0xff]  ;;  %v449_v47 = vld [vmem:[%s11747_s1 + $0xd88] sm:$0xff]  ;;  %v7901_v50 = vcombine.low %v433_v38, %v441_v39 }
  0x38   :  { %v360_v57 = vld [vmem:[%s11747_s1 + $0xac0] sm:$0xff]  ;;  %v457_v48 = vld [vmem:[%s11747_s1 + $0xdc8] sm:$0xff] }
  0x39   :  { %v7819_v6 = vcombine.low %v352_v56, %v360_v57 }
  0x3a   :  { %6044 = vmatpush1.bf16.msra.mxu0 %v7691_v0  ;;  %6208 = vmatpush1.bf16.msra.mxu1 %v7693_v1  ;;  %v7820_v0 = vcombine.high %v352_v56, %v360_v57  ;;  %v7822_v1 = vcombine.high %v353_v58, %v361_v60  ;;  %v465_v56 = vld [vmem:[%s11747_s1 + $0xe08] sm:$0xff]  ;;  %v7917_v60 = vcombine.low %v449_v47, %v457_v48 }
  0x3b   :  { %6045 = vmatprep.subr.bf16.mxu0 %v7708_v2  ;;  %6209 = vmatprep.subr.bf16.mxu1 %v7710_v3  ;;  %v368_v2 = vld [vmem:[%s11747_s1 + $0xb00] sm:$0xff]  ;;  %v473_v57 = vld [vmem:[%s11747_s1 + $0xe48] sm:$0xff] }
  0x3c   :  { %v376_v3 = vld [vmem:[%s11747_s1 + $0xb40] sm:$0xff] }
  0x3d   :  { %v7835_v15 = vcombine.low %v368_v2, %v376_v3 }
  0x3e   :  { %6046 = vmatpush1.bf16.msra.mxu0 %v7707_v8  ;;  %6210 = vmatpush1.bf16.msra.mxu1 %v7709_v10  ;;  %v7836_v8 = vcombine.high %v368_v2, %v376_v3  ;;  %v7838_v10 = vcombine.high %v369_v4, %v377_v5  ;;  %v481_v2 = vld [vmem:[%s11747_s1 + $0xe88] sm:$0xff]  ;;  %v7933_v5 = vcombine.low %v465_v56, %v473_v57 }
  0x3f   :  { %6047 = vmatprep.subr.bf16.mxu0 %v7724_v11  ;;  %6211 = vmatprep.subr.bf16.mxu1 %v7726_v12  ;;  %v384_v11 = vld [vmem:[%s11747_s1 + $0xb80] sm:$0xff]  ;;  %v489_v3 = vld [vmem:[%s11747_s1 + $0xec8] sm:$0xff] }
  0x40   :  { %v392_v12 = vld [vmem:[%s11747_s1 + $0xbc0] sm:$0xff] }
  0x41   :  { %v7851_v24 = vcombine.low %v384_v11, %v392_v12 }
  0x42   :  { %6048 = vmatpush1.bf16.msra.mxu0 %v7723_v17  ;;  %6212 = vmatpush1.bf16.msra.mxu1 %v7725_v18  ;;  %v7852_v17 = vcombine.high %v384_v11, %v392_v12  ;;  %v7854_v18 = vcombine.high %v385_v13, %v393_v14  ;;  %v497_v11 = vld [vmem:[%s11747_s1 + $0xf08] sm:$0xff]  ;;  %v7949_v14 = vcombine.low %v481_v2, %v489_v3 }
  0x43   :  { %6058 = vmatprep.subr.bf16.mxu0 %v7740_v19  ;;  %6222 = vmatprep.subr.bf16.mxu1 %v7742_v20  ;;  %v400_v19 = vld [vmem:[%s11747_s1 + $0xc00] sm:$0xff]  ;;  %v505_v12 = vld [vmem:[%s11747_s1 + $0xf48] sm:$0xff] }
  0x44   :  { %v408_v20 = vld [vmem:[%s11747_s1 + $0xc40] sm:$0xff] }
  0x45   :  { %6050 = vmatmul.mubr.bf16.vlgmr.msra.gmra.mrb[0].mxu0 %v8844_v23  ;;  %6214 = vmatmul.mubr.bf16.vlgmr.msra.gmra.mrb[0].mxu1 %v8844_v23  ;;  %v7867_v32 = vcombine.low %v400_v19, %v408_v20 }
  0x46   :  { %6059 = vmatpush1.bf16.msra.mxu0 %v7739_v26  ;;  %6223 = vmatpush1.bf16.msra.mxu1 %v7741_v27  ;;  %v7868_v26 = vcombine.high %v400_v19, %v408_v20  ;;  %v7870_v27 = vcombine.high %v401_v21, %v409_v22  ;;  %v1077_v19 = vcombine.high %v8703_v59, %v8703_v59  ;;  %v513_v20 = vld [vmem:[%s11747_s1 + $0xf88] sm:$0xff]  ;;  %v528_v59 = vld [vmem:[%s11747_s1 + $0x1000] sm:$0xff] }
  0x47   :  { %6060 = vmatprep.subr.bf16.mxu0 %v7756_v28  ;;  %6224 = vmatprep.subr.bf16.mxu1 %v7758_v29  ;;  %v416_v28 = vld [vmem:[%s11747_s1 + $0xc80] sm:$0xff]  ;;  %v521_v21 = vld [vmem:[%s11747_s1 + $0xfc8] sm:$0xff] }
  0x48   :  { %6090 = vmatprep.mubr.bf16.mxu0 %v8860_v31  ;;  %6254 = vmatprep.mubr.bf16.mxu1 %v8860_v31  ;;  %v424_v29 = vld [vmem:[%s11747_s1 + $0xcc0] sm:$0xff] }
  0x49   :  { %v7883_v40 = vcombine.low %v416_v28, %v424_v29 }
  0x4a   :  { %6061 = vmatpush1.bf16.msra.mxu0 %v7755_v34  ;;  %6225 = vmatpush1.bf16.msra.mxu1 %v7757_v35  ;;  %v7884_v34 = vcombine.high %v416_v28, %v424_v29  ;;  %v7886_v35 = vcombine.high %v417_v63, %v425_v30  ;;  %v9037_v28 = vrot.slane %v1077_v19, %v8692_v53  ;;  %v529_v29 = vld [vmem:[%s11747_s1 + $0x1008] sm:$0xff]  ;;  %v624_v19 = vld [vmem:[%s11747_s1 + $0x1300] sm:$0xff] }
  0x4b   :  { %6062 = vmatprep.subr.bf16.mxu0 %v7772_v36  ;;  %6226 = vmatprep.subr.bf16.mxu1 %v7774_v37  ;;  %v432_v36 = vld [vmem:[%s11747_s1 + $0xd00] sm:$0xff]  ;;  %v537_v63 = vld [vmem:[%s11747_s1 + $0x1048] sm:$0xff] }
  0x4c   :  { %v440_v37 = vld [vmem:[%s11747_s1 + $0xd40] sm:$0xff] }
  0x4d   :  { %v7899_v49 = vcombine.low %v432_v36, %v440_v37 }
  0x4e   :  { %6063 = vmatpush1.bf16.msra.mxu0 %v7771_v42  ;;  %6227 = vmatpush1.bf16.msra.mxu1 %v7773_v44  ;;  %v7900_v42 = vcombine.high %v432_v36, %v440_v37  ;;  %v7902_v44 = vcombine.high %v433_v38, %v441_v39  ;;  %v552_v36 = vld [vmem:[%s11747_s1 + $0x10c0] sm:$0xff]  ;;  %v1093_v37 = vcombine.high %v9037_v28, %v9037_v28  ;;  %v545_v39 = vld [vmem:[%s11747_s1 + $0x1088] sm:$0xff] }
  0x4f   :  { %6064 = vmatprep.subr.bf16.mxu0 %v7788_v45  ;;  %6228 = vmatprep.subr.bf16.mxu1 %v7790_v46  ;;  %v448_v45 = vld [vmem:[%s11747_s1 + $0xd80] sm:$0xff]  ;;  %v9055_v38 = vcombine.high %v8844_v23, %v8844_v23 }
  0x50   :  { %v456_v46 = vld [vmem:[%s11747_s1 + $0xdc0] sm:$0xff] }
  0x51   :  { %v7915_v58 = vcombine.low %v448_v45, %v456_v46 }
  0x52   :  { %6065 = vmatpush1.bf16.msra.mxu0 %v7787_v51  ;;  %6229 = vmatpush1.bf16.msra.mxu1 %v7789_v52  ;;  %v7916_v51 = vcombine.high %v448_v45, %v456_v46  ;;  %v7918_v52 = vcombine.high %v449_v47, %v457_v48  ;;  %v560_v46 = vld [vmem:[%s11747_s1 + $0x1100] sm:$0xff]  ;;  %v9070_v48 = vrot.slane %v1093_v37, %v8692_v53 }
  0x53   :  { %6066 = vmatprep.subr.bf16.mxu0 %v7804_v54  ;;  %6230 = vmatprep.subr.bf16.mxu1 %v7806_v55  ;;  %v464_v54 = vld [vmem:[%s11747_s1 + $0xe00] sm:$0xff] }
  0x54   :  { %v472_v55 = vld [vmem:[%s11747_s1 + $0xe40] sm:$0xff] }
  0x55   :  { %v7931_v4 = vcombine.low %v464_v54, %v472_v55  ;;  %v568_v47 = vld [vmem:[%s11747_s1 + $0x1140] sm:$0xff] }
  0x56   :  { %6067 = vmatpush1.bf16.msra.mxu0 %v7803_v61  ;;  %6231 = vmatpush1.bf16.msra.mxu1 %v7805_v62  ;;  %v7932_v61 = vcombine.high %v464_v54, %v472_v55  ;;  %v7934_v62 = vcombine.high %v465_v56, %v473_v57  ;;  %v8028_v54 = vcombine.high %v560_v46, %v568_v47  ;;  %v576_v56 = vld [vmem:[%s11747_s1 + $0x1180] sm:$0xff] }
  0x57   :  { %6068 = vmatprep.subr.bf16.mxu0 %v7820_v0  ;;  %6232 = vmatprep.subr.bf16.mxu1 %v7822_v1  ;;  %v480_v0 = vld [vmem:[%s11747_s1 + $0xe80] sm:$0xff] }
  0x58   :  { %v488_v1 = vld [vmem:[%s11747_s1 + $0xec0] sm:$0xff] }
  0x59   :  { %v7947_v13 = vcombine.low %v480_v0, %v488_v1  ;;  %v584_v57 = vld [vmem:[%s11747_s1 + $0x11c0] sm:$0xff] }
  0x5a   :  { %6069 = vmatpush1.bf16.msra.mxu0 %v7819_v6  ;;  %6233 = vmatpush1.bf16.msra.mxu1 %v7821_v7  ;;  %v7948_v6 = vcombine.high %v480_v0, %v488_v1  ;;  %v7950_v7 = vcombine.high %v481_v2, %v489_v3  ;;  %v8044_v0 = vcombine.high %v576_v56, %v584_v57  ;;  %v592_v2 = vld [vmem:[%s11747_s1 + $0x1200] sm:$0xff] }
  0x5b   :  { %6070 = vmatprep.subr.bf16.mxu0 %v7836_v8  ;;  %6234 = vmatprep.subr.bf16.mxu1 %v7838_v10  ;;  %v496_v8 = vld [vmem:[%s11747_s1 + $0xf00] sm:$0xff] }
  0x5c   :  { %v504_v10 = vld [vmem:[%s11747_s1 + $0xf40] sm:$0xff] }
  0x5d   :  { %v7963_v22 = vcombine.low %v496_v8, %v504_v10  ;;  %v600_v3 = vld [vmem:[%s11747_s1 + $0x1240] sm:$0xff] }
  0x5e   :  { %6071 = vmatpush1.bf16.msra.mxu0 %v7835_v15  ;;  %6235 = vmatpush1.bf16.msra.mxu1 %v7837_v16  ;;  %v7964_v15 = vcombine.high %v496_v8, %v504_v10  ;;  %v7966_v16 = vcombine.high %v497_v11, %v505_v12  ;;  %v8060_v8 = vcombine.high %v592_v2, %v600_v3  ;;  %v664_v37 = vld [vmem:[%s11747_s1 + $0x1440] sm:$0xff] }
  0x5f   :  { %6072 = vmatprep.subr.bf16.mxu0 %v7852_v17  ;;  %6236 = vmatprep.subr.bf16.mxu1 %v7854_v18  ;;  %v512_v17 = vld [vmem:[%s11747_s1 + $0xf80] sm:$0xff] }
  0x60   :  { %v520_v18 = vld [vmem:[%s11747_s1 + $0xfc0] sm:$0xff] }
  0x61   :  { %v7979_v30 = vcombine.low %v512_v17, %v520_v18 }
  0x62   :  { %6073 = vmatpush1.bf16.msra.mxu0 %v7851_v24  ;;  %6237 = vmatpush1.bf16.msra.mxu1 %v7853_v25  ;;  %v7965_v24 = vcombine.low %v497_v11, %v505_v12  ;;  %v7980_v25 = vcombine.high %v512_v17, %v520_v18  ;;  %v608_v11 = vld [vmem:[%s11747_s1 + $0x1280] sm:$0xff] }
  0x63   :  { %6074 = vmatprep.subr.bf16.mxu0 %v7868_v26  ;;  %6238 = vmatprep.subr.bf16.mxu1 %v7870_v27  ;;  %v7982_v26 = vcombine.high %v513_v20, %v521_v21  ;;  %v536_v27 = vld [vmem:[%s11747_s1 + $0x1040] sm:$0xff] }
  0x64   :  { %v616_v12 = vld [vmem:[%s11747_s1 + $0x12c0] sm:$0xff] }
  0x65   :  { %v8076_v17 = vcombine.high %v608_v11, %v616_v12 }
  0x66   :  { %6075 = vmatpush1.bf16.msra.mxu0 %v7867_v32  ;;  %6239 = vmatpush1.bf16.msra.mxu1 %v7869_v33  ;;  %v7981_v32 = vcombine.low %v513_v20, %v521_v21  ;;  %v7996_v33 = vcombine.high %v528_v59, %v536_v27  ;;  %v632_v20 = vld [vmem:[%s11747_s1 + $0x1340] sm:$0xff]  ;;  %v625_v21 = vld [vmem:[%s11747_s1 + $0x1308] sm:$0xff] }
  0x67   :  { %6076 = vmatprep.subr.bf16.mxu0 %v7884_v34  ;;  %6240 = vmatprep.subr.bf16.mxu1 %v7886_v35  ;;  %v7998_v34 = vcombine.high %v529_v29, %v537_v63  ;;  %v544_v35 = vld [vmem:[%s11747_s1 + $0x1080] sm:$0xff] }
  0x6a   :  { %6077 = vmatpush1.bf16.msra.mxu0 %v7883_v40  ;;  %6241 = vmatpush1.bf16.msra.mxu1 %v7885_v41  ;;  %v553_v40 = vld [vmem:[%s11747_s1 + $0x10c8] sm:$0xff]  ;;  %v7995_v41 = vcombine.low %v528_v59, %v536_v27  ;;  %v640_v27 = vld [vmem:[%s11747_s1 + $0x1380] sm:$0xff] }
  0x6b   :  { %6078 = vmatprep.subr.bf16.mxu0 %v7900_v42  ;;  %6242 = vmatprep.subr.bf16.mxu1 %v7902_v44  ;;  %v7997_v42 = vcombine.low %v529_v29, %v537_v63  ;;  %v8012_v44 = vcombine.high %v544_v35, %v552_v36  ;;  %v8014_v45 = vcombine.high %v545_v39, %v553_v40  ;;  %v648_v29 = vld [vmem:[%s11747_s1 + $0x13c0] sm:$0xff]  ;;  %v641_v63 = vld [vmem:[%s11747_s1 + $0x1388] sm:$0xff] }
  0x6e   :  { %6079 = vmatpush1.bf16.msra.mxu0 %v7899_v49  ;;  %6243 = vmatpush1.bf16.msra.mxu1 %v7901_v50  ;;  %v561_v49 = vld [vmem:[%s11747_s1 + $0x1108] sm:$0xff] }
  0x6f   :  { %6080 = vmatprep.subr.bf16.mxu0 %v7916_v51  ;;  %6244 = vmatprep.subr.bf16.mxu1 %v7918_v52  ;;  %v569_v50 = vld [vmem:[%s11747_s1 + $0x1148] sm:$0xff]  ;;  %v8011_v51 = vcombine.low %v544_v35, %v552_v36  ;;  %v8013_v52 = vcombine.low %v545_v39, %v553_v40  ;;  %v656_v36 = vld [vmem:[%s11747_s1 + $0x1400] sm:$0xff] }
  0x70   :  { %v8030_v55 = vcombine.high %v561_v49, %v569_v50  ;;  %v657_v39 = vld [vmem:[%s11747_s1 + $0x1408] sm:$0xff] }
  0x71   :  { %v665_v40 = vld [vmem:[%s11747_s1 + $0x1448] sm:$0xff] }
  0x72   :  { %6081 = vmatpush1.bf16.msra.mxu0 %v7915_v58  ;;  %6245 = vmatpush1.bf16.msra.mxu1 %v7917_v60  ;;  %v577_v58 = vld [vmem:[%s11747_s1 + $0x1188] sm:$0xff] }
  0x73   :  { %6082 = vmatprep.subr.bf16.mxu0 %v7932_v61  ;;  %6246 = vmatprep.subr.bf16.mxu1 %v7934_v62  ;;  %v585_v60 = vld [vmem:[%s11747_s1 + $0x11c8] sm:$0xff]  ;;  %v8027_v61 = vcombine.low %v560_v46, %v568_v47  ;;  %v8029_v62 = vcombine.low %v561_v49, %v569_v50  ;;  %v672_v46 = vld [vmem:[%s11747_s1 + $0x1480] sm:$0xff] }
  0x74   :  { %v8046_v1 = vcombine.high %v577_v58, %v585_v60  ;;  %v680_v47 = vld [vmem:[%s11747_s1 + $0x14c0] sm:$0xff]  ;;  %v673_v49 = vld [vmem:[%s11747_s1 + $0x1488] sm:$0xff] }
  0x75   :  { %v681_v50 = vld [vmem:[%s11747_s1 + $0x14c8] sm:$0xff] }
  0x76   :  { %6083 = vmatpush1.bf16.msra.mxu0 %v7931_v4  ;;  %6247 = vmatpush1.bf16.msra.mxu1 %v7933_v5  ;;  %v593_v4 = vld [vmem:[%s11747_s1 + $0x1208] sm:$0xff] }
  0x77   :  { %6084 = vmatprep.subr.bf16.mxu0 %v7948_v6  ;;  %6248 = vmatprep.subr.bf16.mxu1 %v7950_v7  ;;  %v601_v5 = vld [vmem:[%s11747_s1 + $0x1248] sm:$0xff]  ;;  %v8043_v6 = vcombine.low %v576_v56, %v584_v57  ;;  %v8045_v7 = vcombine.low %v577_v58, %v585_v60  ;;  %v688_v56 = vld [vmem:[%s11747_s1 + $0x1500] sm:$0xff] }
  0x78   :  { %v8062_v10 = vcombine.high %v593_v4, %v601_v5  ;;  %v696_v57 = vld [vmem:[%s11747_s1 + $0x1540] sm:$0xff]  ;;  %v689_v58 = vld [vmem:[%s11747_s1 + $0x1508] sm:$0xff] }
  0x79   :  { %v697_v60 = vld [vmem:[%s11747_s1 + $0x1548] sm:$0xff] }
  0x7a   :  { %6085 = vmatpush1.bf16.msra.mxu0 %v7947_v13  ;;  %6249 = vmatpush1.bf16.msra.mxu1 %v7949_v14  ;;  %v609_v13 = vld [vmem:[%s11747_s1 + $0x1288] sm:$0xff] }
  0x7b   :  { %6086 = vmatprep.subr.bf16.mxu0 %v7964_v15  ;;  %6250 = vmatprep.subr.bf16.mxu1 %v7966_v16  ;;  %v617_v14 = vld [vmem:[%s11747_s1 + $0x12c8] sm:$0xff]  ;;  %v8059_v15 = vcombine.low %v592_v2, %v600_v3  ;;  %v8061_v16 = vcombine.low %v593_v4, %v601_v5  ;;  %v704_v2 = vld [vmem:[%s11747_s1 + $0x1580] sm:$0xff] }
  0x7c   :  { %v8078_v18 = vcombine.high %v609_v13, %v617_v14  ;;  %v712_v3 = vld [vmem:[%s11747_s1 + $0x15c0] sm:$0xff]  ;;  %v705_v4 = vld [vmem:[%s11747_s1 + $0x1588] sm:$0xff] }
  0x7d   :  { %v713_v5 = vld [vmem:[%s11747_s1 + $0x15c8] sm:$0xff] }
  0x7e   :  { %6087 = vmatpush1.bf16.msra.mxu0 %v7963_v22  ;;  %6251 = vmatpush1.bf16.msra.mxu1 %v7965_v24  ;;  %v633_v22 = vld [vmem:[%s11747_s1 + $0x1348] sm:$0xff]  ;;  %v8075_v24 = vcombine.low %v608_v11, %v616_v12  ;;  %v720_v11 = vld [vmem:[%s11747_s1 + $0x1600] sm:$0xff] }
  0x7f   :  { %6088 = vmatprep.subr.bf16.mxu0 %v7980_v25  ;;  %6252 = vmatprep.subr.bf16.mxu1 %v7982_v26  ;;  %v8077_v25 = vcombine.low %v609_v13, %v617_v14  ;;  %v8092_v26 = vcombine.high %v624_v19, %v632_v20  ;;  %v8094_v59 = vcombine.high %v625_v21, %v633_v22  ;;  %v728_v12 = vld [vmem:[%s11747_s1 + $0x1640] sm:$0xff]  ;;  %v721_v13 = vld [vmem:[%s11747_s1 + $0x1608] sm:$0xff] }
  0x80   :  { %v729_v14 = vld [vmem:[%s11747_s1 + $0x1648] sm:$0xff] }
  0x82   :  { %6089 = vmatpush1.bf16.msra.mxu0 %v7979_v30  ;;  %6253 = vmatpush1.bf16.msra.mxu1 %v7981_v32  ;;  %v649_v30 = vld [vmem:[%s11747_s1 + $0x13c8] sm:$0xff]  ;;  %v8091_v32 = vcombine.low %v624_v19, %v632_v20  ;;  %v736_v19 = vld [vmem:[%s11747_s1 + $0x1680] sm:$0xff] }
  0x83   :  { %6099 = vmatprep.subr.bf16.mxu0 %v7996_v33  ;;  %6263 = vmatprep.subr.bf16.mxu1 %v7998_v34  ;;  %v8093_v33 = vcombine.low %v625_v21, %v633_v22  ;;  %v8108_v34 = vcombine.high %v640_v27, %v648_v29  ;;  %v8110_v35 = vcombine.high %v641_v63, %v649_v30  ;;  %v744_v20 = vld [vmem:[%s11747_s1 + $0x16c0] sm:$0xff]  ;;  %v737_v21 = vld [vmem:[%s11747_s1 + $0x1688] sm:$0xff] }
  0x84   :  { %v745_v22 = vld [vmem:[%s11747_s1 + $0x16c8] sm:$0xff] }
  0x85   :  { %6091 = vmatmul.mubr.bf16.vlgmr.msra.gmra.mrb[0].mxu0 %v9055_v38  ;;  %6255 = vmatmul.mubr.bf16.vlgmr.msra.gmra.mrb[0].mxu1 %v9055_v38 }
  0x86   :  { %6100 = vmatpush1.bf16.msra.mxu0 %v7995_v41  ;;  %6264 = vmatpush1.bf16.msra.mxu1 %v7997_v42  ;;  %v8107_v41 = vcombine.low %v640_v27, %v648_v29  ;;  %v8109_v42 = vcombine.low %v641_v63, %v649_v30  ;;  %v752_v27 = vld [vmem:[%s11747_s1 + $0x1700] sm:$0xff]  ;;  %v753_v63 = vld [vmem:[%s11747_s1 + $0x1708] sm:$0xff] }
  0x87   :  { %6101 = vmatprep.subr.bf16.mxu0 %v8012_v44  ;;  %6265 = vmatprep.subr.bf16.mxu1 %v8014_v45  ;;  %v8124_v44 = vcombine.high %v656_v36, %v664_v37  ;;  %v8126_v45 = vcombine.high %v657_v39, %v665_v40  ;;  %v760_v29 = vld [vmem:[%s11747_s1 + $0x1740] sm:$0xff]  ;;  %v761_v30 = vld [vmem:[%s11747_s1 + $0x1748] sm:$0xff] }
  0x88   :  { %6131 = vmatprep.mubr.bf16.mxu0 %v9070_v48  ;;  %6295 = vmatprep.mubr.bf16.mxu1 %v9070_v48 }
  0x8a   :  { %6102 = vmatpush1.bf16.msra.mxu0 %v8011_v51  ;;  %6266 = vmatpush1.bf16.msra.mxu1 %v8013_v52  ;;  %v8123_v51 = vcombine.low %v656_v36, %v664_v37  ;;  %v8125_v52 = vcombine.low %v657_v39, %v665_v40  ;;  %v768_v36 = vld [vmem:[%s11747_s1 + $0x1780] sm:$0xff]  ;;  %v769_v39 = vld [vmem:[%s11747_s1 + $0x1788] sm:$0xff] }
  0x8b   :  { %6103 = vmatprep.subr.bf16.mxu0 %v8028_v54  ;;  %6267 = vmatprep.subr.bf16.mxu1 %v8030_v55  ;;  %v8140_v54 = vcombine.high %v672_v46, %v680_v47  ;;  %v8142_v55 = vcombine.high %v673_v49, %v681_v50  ;;  %v776_v37 = vld [vmem:[%s11747_s1 + $0x17c0] sm:$0xff]  ;;  %v777_v40 = vld [vmem:[%s11747_s1 + $0x17c8] sm:$0xff] }
  0x8e   :  { %6104 = vmatpush1.bf16.msra.mxu0 %v8027_v61  ;;  %6268 = vmatpush1.bf16.msra.mxu1 %v8029_v62  ;;  %v8139_v61 = vcombine.low %v672_v46, %v680_v47  ;;  %v8141_v62 = vcombine.low %v673_v49, %v681_v50  ;;  %v784_v46 = vld [vmem:[%s11747_s1 + $0x1800] sm:$0xff]  ;;  %v785_v49 = vld [vmem:[%s11747_s1 + $0x1808] sm:$0xff] }
  0x8f   :  { %6105 = vmatprep.subr.bf16.mxu0 %v8044_v0  ;;  %6269 = vmatprep.subr.bf16.mxu1 %v8046_v1  ;;  %v8156_v0 = vcombine.high %v688_v56, %v696_v57  ;;  %v8158_v1 = vcombine.high %v689_v58, %v697_v60  ;;  %v792_v47 = vld [vmem:[%s11747_s1 + $0x1840] sm:$0xff]  ;;  %v793_v50 = vld [vmem:[%s11747_s1 + $0x1848] sm:$0xff] }
  0x92   :  { %6106 = vmatpush1.bf16.msra.mxu0 %v8043_v6  ;;  %6270 = vmatpush1.bf16.msra.mxu1 %v8045_v7  ;;  %v8155_v6 = vcombine.low %v688_v56, %v696_v57  ;;  %v8157_v7 = vcombine.low %v689_v58, %v697_v60  ;;  %v800_v56 = vld [vmem:[%s11747_s1 + $0x1880] sm:$0xff]  ;;  %v9258_v58 = vrot.slane %v9037_v28, %v8692_v53  ;;  %v801_v60 = vld [vmem:[%s11747_s1 + $0x1888] sm:$0xff] }
  0x93   :  { %6107 = vmatprep.subr.bf16.mxu0 %v8060_v8  ;;  %6271 = vmatprep.subr.bf16.mxu1 %v8062_v10  ;;  %v8172_v8 = vcombine.high %v704_v2, %v712_v3  ;;  %v8174_v10 = vcombine.high %v705_v4, %v713_v5  ;;  %v808_v57 = vld [vmem:[%s11747_s1 + $0x18c0] sm:$0xff] }
  0x94   :  { %v816_v28 = vld [vmem:[%s11747_s1 + $0x1900] sm:$0xff] }
  0x96   :  { %6108 = vmatpush1.bf16.msra.mxu0 %v8059_v15  ;;  %6272 = vmatpush1.bf16.msra.mxu1 %v8061_v16  ;;  %v8171_v15 = vcombine.low %v704_v2, %v712_v3  ;;  %v8173_v16 = vcombine.low %v705_v4, %v713_v5  ;;  %v824_v3 = vld [vmem:[%s11747_s1 + $0x1940] sm:$0xff]  ;;  %v9274_v4 = vcombine.high %v9070_v48, %v9070_v48  ;;  %v817_v5 = vld [vmem:[%s11747_s1 + $0x1908] sm:$0xff] }
  0x97   :  { %6109 = vmatprep.subr.bf16.mxu0 %v8076_v17  ;;  %6273 = vmatprep.subr.bf16.mxu1 %v8078_v18  ;;  %v8188_v17 = vcombine.high %v720_v11, %v728_v12  ;;  %v8190_v18 = vcombine.high %v721_v13, %v729_v14 }
  0x9a   :  { %6110 = vmatpush1.bf16.msra.mxu0 %v8075_v24  ;;  %6274 = vmatpush1.bf16.msra.mxu1 %v8077_v25  ;;  %v8187_v24 = vcombine.low %v720_v11, %v728_v12  ;;  %v8189_v25 = vcombine.low %v721_v13, %v729_v14  ;;  %v832_v12 = vld [vmem:[%s11747_s1 + $0x1980] sm:$0xff]  ;;  %v833_v14 = vld [vmem:[%s11747_s1 + $0x1988] sm:$0xff] }
  0x9b   :  { %6111 = vmatprep.subr.bf16.mxu0 %v8092_v26  ;;  %6275 = vmatprep.subr.bf16.mxu1 %v8094_v59  ;;  %v8204_v26 = vcombine.high %v736_v19, %v744_v20  ;;  %v8206_v59 = vcombine.high %v737_v21, %v745_v22  ;;  %v840_v13 = vld [vmem:[%s11747_s1 + $0x19c0] sm:$0xff] }
  0x9e   :  { %6112 = vmatpush1.bf16.msra.mxu0 %v8091_v32  ;;  %6276 = vmatpush1.bf16.msra.mxu1 %v8093_v33  ;;  %v8203_v32 = vcombine.low %v736_v19, %v744_v20  ;;  %v8205_v33 = vcombine.low %v737_v21, %v745_v22  ;;  %v848_v20 = vld [vmem:[%s11747_s1 + $0x1a00] sm:$0xff]  ;;  %v849_v22 = vld [vmem:[%s11747_s1 + $0x1a08] sm:$0xff] }
  0x9f   :  { %6113 = vmatprep.subr.bf16.mxu0 %v8108_v34  ;;  %6277 = vmatprep.subr.bf16.mxu1 %v8110_v35  ;;  %v8220_v34 = vcombine.high %v752_v27, %v760_v29  ;;  %v8222_v35 = vcombine.high %v753_v63, %v761_v30  ;;  %v856_v21 = vld [vmem:[%s11747_s1 + $0x1a40] sm:$0xff] }
  0xa2   :  { %6114 = vmatpush1.bf16.msra.mxu0 %v8107_v41  ;;  %6278 = vmatpush1.bf16.msra.mxu1 %v8109_v42  ;;  %v8219_v41 = vcombine.low %v752_v27, %v760_v29  ;;  %v8221_v42 = vcombine.low %v753_v63, %v761_v30  ;;  %v864_v29 = vld [vmem:[%s11747_s1 + $0x1a80] sm:$0xff]  ;;  %v865_v30 = vld [vmem:[%s11747_s1 + $0x1a88] sm:$0xff] }
  0xa3   :  { %6115 = vmatprep.subr.bf16.mxu0 %v8124_v44  ;;  %6279 = vmatprep.subr.bf16.mxu1 %v8126_v45  ;;  %v8236_v44 = vcombine.high %v768_v36, %v776_v37  ;;  %v8238_v45 = vcombine.high %v769_v39, %v777_v40  ;;  %v872_v63 = vld [vmem:[%s11747_s1 + $0x1ac0] sm:$0xff] }
  0xa6   :  { %6116 = vmatpush1.bf16.msra.mxu0 %v8123_v51  ;;  %6280 = vmatpush1.bf16.msra.mxu1 %v8125_v52  ;;  %v8235_v51 = vcombine.low %v768_v36, %v776_v37  ;;  %v8237_v52 = vcombine.low %v769_v39, %v777_v40  ;;  %v880_v37 = vld [vmem:[%s11747_s1 + $0x1b00] sm:$0xff]  ;;  %v881_v40 = vld [vmem:[%s11747_s1 + $0x1b08] sm:$0xff] }
  0xa7   :  { %6117 = vmatprep.subr.bf16.mxu0 %v8140_v54  ;;  %6281 = vmatprep.subr.bf16.mxu1 %v8142_v55  ;;  %v8252_v54 = vcombine.high %v784_v46, %v792_v47  ;;  %v8254_v55 = vcombine.high %v785_v49, %v793_v50  ;;  %v888_v39 = vld [vmem:[%s11747_s1 + $0x1b40] sm:$0xff] }
  0xaa   :  { %6118 = vmatpush1.bf16.msra.mxu0 %v8139_v61  ;;  %6282 = vmatpush1.bf16.msra.mxu1 %v8141_v62  ;;  %v809_v61 = vld [vmem:[%s11747_s1 + $0x18c8] sm:$0xff]  ;;  %v8251_v62 = vcombine.low %v784_v46, %v792_v47  ;;  %v896_v47 = vld [vmem:[%s11747_s1 + $0x1b80] sm:$0xff] }
  0xab   :  { %6119 = vmatprep.subr.bf16.mxu0 %v8156_v0  ;;  %6283 = vmatprep.subr.bf16.mxu1 %v8158_v1  ;;  %v8253_v0 = vcombine.low %v785_v49, %v793_v50  ;;  %v8268_v1 = vcombine.high %v800_v56, %v808_v57  ;;  %v8270_v2 = vcombine.high %v801_v60, %v809_v61  ;;  %v904_v49 = vld [vmem:[%s11747_s1 + $0x1bc0] sm:$0xff]  ;;  %v897_v50 = vld [vmem:[%s11747_s1 + $0x1b88] sm:$0xff] }
  0xae   :  { %6120 = vmatpush1.bf16.msra.mxu0 %v8155_v6  ;;  %6284 = vmatpush1.bf16.msra.mxu1 %v8157_v7  ;;  %v825_v6 = vld [vmem:[%s11747_s1 + $0x1948] sm:$0xff]  ;;  %v8267_v7 = vcombine.low %v800_v56, %v808_v57  ;;  %v912_v57 = vld [vmem:[%s11747_s1 + $0x1c00] sm:$0xff] }
  0xaf   :  { %6121 = vmatprep.subr.bf16.mxu0 %v8172_v8  ;;  %6285 = vmatprep.subr.bf16.mxu1 %v8174_v10  ;;  %v8269_v8 = vcombine.low %v801_v60, %v809_v61  ;;  %v8284_v10 = vcombine.high %v816_v28, %v824_v3  ;;  %v8286_v11 = vcombine.high %v817_v5, %v825_v6  ;;  %v920_v60 = vld [vmem:[%s11747_s1 + $0x1c40] sm:$0xff]  ;;  %v913_v61 = vld [vmem:[%s11747_s1 + $0x1c08] sm:$0xff] }
  0xb2   :  { %6122 = vmatpush1.bf16.msra.mxu0 %v8171_v15  ;;  %6286 = vmatpush1.bf16.msra.mxu1 %v8173_v16  ;;  %v841_v15 = vld [vmem:[%s11747_s1 + $0x19c8] sm:$0xff]  ;;  %v8283_v16 = vcombine.low %v816_v28, %v824_v3  ;;  %v928_v3 = vld [vmem:[%s11747_s1 + $0x1c80] sm:$0xff] }
  0xb3   :  { %6123 = vmatprep.subr.bf16.mxu0 %v8188_v17  ;;  %6287 = vmatprep.subr.bf16.mxu1 %v8190_v18  ;;  %v8285_v17 = vcombine.low %v817_v5, %v825_v6  ;;  %v8300_v18 = vcombine.high %v832_v12, %v840_v13  ;;  %v8302_v19 = vcombine.high %v833_v14, %v841_v15  ;;  %v936_v5 = vld [vmem:[%s11747_s1 + $0x1cc0] sm:$0xff]  ;;  %v929_v6 = vld [vmem:[%s11747_s1 + $0x1c88] sm:$0xff] }
  0xb6   :  { %6124 = vmatpush1.bf16.msra.mxu0 %v8187_v24  ;;  %6288 = vmatpush1.bf16.msra.mxu1 %v8189_v25  ;;  %v857_v24 = vld [vmem:[%s11747_s1 + $0x1a48] sm:$0xff]  ;;  %v8299_v25 = vcombine.low %v832_v12, %v840_v13  ;;  %v944_v13 = vld [vmem:[%s11747_s1 + $0x1d00] sm:$0xff] }
  0xb7   :  { %6125 = vmatprep.subr.bf16.mxu0 %v8204_v26  ;;  %6289 = vmatprep.subr.bf16.mxu1 %v8206_v59  ;;  %v8301_v26 = vcombine.low %v833_v14, %v841_v15  ;;  %v8316_v59 = vcombine.high %v848_v20, %v856_v21  ;;  %v8318_v27 = vcombine.high %v849_v22, %v857_v24  ;;  %v952_v14 = vld [vmem:[%s11747_s1 + $0x1d40] sm:$0xff]  ;;  %v945_v15 = vld [vmem:[%s11747_s1 + $0x1d08] sm:$0xff] }
  0xba   :  { %6126 = vmatpush1.bf16.msra.mxu0 %v8203_v32  ;;  %6290 = vmatpush1.bf16.msra.mxu1 %v8205_v33  ;;  %v873_v32 = vld [vmem:[%s11747_s1 + $0x1ac8] sm:$0xff]  ;;  %v8315_v33 = vcombine.low %v848_v20, %v856_v21  ;;  %v960_v21 = vld [vmem:[%s11747_s1 + $0x1d80] sm:$0xff] }
  0xbb   :  { %6127 = vmatprep.subr.bf16.mxu0 %v8220_v34  ;;  %6291 = vmatprep.subr.bf16.mxu1 %v8222_v35  ;;  %v8317_v34 = vcombine.low %v849_v22, %v857_v24  ;;  %v8332_v35 = vcombine.high %v864_v29, %v872_v63  ;;  %v8334_v36 = vcombine.high %v865_v30, %v873_v32  ;;  %v968_v22 = vld [vmem:[%s11747_s1 + $0x1dc0] sm:$0xff]  ;;  %v961_v24 = vld [vmem:[%s11747_s1 + $0x1d88] sm:$0xff] }
  0xbe   :  { %6128 = vmatpush1.bf16.msra.mxu0 %v8219_v41  ;;  %6292 = vmatpush1.bf16.msra.mxu1 %v8221_v42  ;;  %v889_v41 = vld [vmem:[%s11747_s1 + $0x1b48] sm:$0xff]  ;;  %v8331_v42 = vcombine.low %v864_v29, %v872_v63  ;;  %v976_v63 = vld [vmem:[%s11747_s1 + $0x1e00] sm:$0xff] }
  0xbf   :  { %6129 = vmatprep.subr.bf16.mxu0 %v8236_v44  ;;  %6293 = vmatprep.subr.bf16.mxu1 %v8238_v45  ;;  %v8333_v44 = vcombine.low %v865_v30, %v873_v32  ;;  %v8348_v45 = vcombine.high %v880_v37, %v888_v39  ;;  %v8350_v46 = vcombine.high %v881_v40, %v889_v41  ;;  %v984_v30 = vld [vmem:[%s11747_s1 + $0x1e40] sm:$0xff]  ;;  %v977_v32 = vld [vmem:[%s11747_s1 + $0x1e08] sm:$0xff] }
  0xc2   :  { %6130 = vmatpush1.bf16.msra.mxu0 %v8235_v51  ;;  %6294 = vmatpush1.bf16.msra.mxu1 %v8237_v52  ;;  %v905_v51 = vld [vmem:[%s11747_s1 + $0x1bc8] sm:$0xff]  ;;  %v8347_v52 = vcombine.low %v880_v37, %v888_v39  ;;  %v18_v39 = vld [vmem:[%s11747_s1 + $0x10] sm:$0xff] }
  0xc3   :  { %6140 = vmatprep.subr.bf16.mxu0 %v8252_v54  ;;  %6304 = vmatprep.subr.bf16.mxu1 %v8254_v55  ;;  %v8349_v54 = vcombine.low %v881_v40, %v889_v41  ;;  %v8364_v55 = vcombine.high %v896_v47, %v904_v49  ;;  %v8366_v56 = vcombine.high %v897_v50, %v905_v51  ;;  %v26_v40 = vld [vmem:[%s11747_s1 + $0x50] sm:$0xff]  ;;  %v19_v41 = vld [vmem:[%s11747_s1 + $0x18] sm:$0xff] }
  0xc5   :  { %6132 = vmatmul.mubr.bf16.vlgmr.msra.gmra.mrb[0].mxu0 %v9258_v58  ;;  %6296 = vmatmul.mubr.bf16.vlgmr.msra.gmra.mrb[0].mxu1 %v9258_v58 }
  0xc6   :  { %6141 = vmatpush1.bf16.msra.mxu0 %v8251_v62  ;;  %6305 = vmatpush1.bf16.msra.mxu1 %v8253_v0  ;;  %v921_v62 = vld [vmem:[%s11747_s1 + $0x1c48] sm:$0xff]  ;;  %v8363_v0 = vcombine.low %v896_v47, %v904_v49  ;;  %v34_v49 = vld [vmem:[%s11747_s1 + $0x90] sm:$0xff] }
  0xc7   :  { %6142 = vmatprep.subr.bf16.mxu0 %v8268_v1  ;;  %6306 = vmatprep.subr.bf16.mxu1 %v8270_v2  ;;  %v8365_v1 = vcombine.low %v897_v50, %v905_v51  ;;  %v8380_v2 = vcombine.high %v912_v57, %v920_v60  ;;  %v8382_v28 = vcombine.high %v913_v61, %v921_v62  ;;  %v42_v50 = vld [vmem:[%s11747_s1 + $0xd0] sm:$0xff] }
  0xc8   :  { %8459 = vmatprep.mubr.msk.bf16.mxu0 %vm6013_vm0, %v9274_v4  ;;  %8460 = vmatprep.mubr.msk.bf16.mxu1 %vm6013_vm0, %v9274_v4  ;;  %v9428_v51 = vcombine.high %v9258_v58, %v9258_v58 }
  0xca   :  { %6143 = vmatpush1.bf16.msra.mxu0 %v8267_v7  ;;  %6307 = vmatpush1.bf16.msra.mxu1 %v8269_v8  ;;  %v937_v7 = vld [vmem:[%s11747_s1 + $0x1cc8] sm:$0xff]  ;;  %v8379_v8 = vcombine.low %v912_v57, %v920_v60  ;;  %v7504_v57 = vcombine.high %v34_v49, %v42_v50 }
  0xcb   :  { %6144 = vmatprep.subr.bf16.mxu0 %v8284_v10  ;;  %6308 = vmatprep.subr.bf16.mxu1 %v8286_v11  ;;  %v8381_v10 = vcombine.low %v913_v61, %v921_v62  ;;  %v8396_v11 = vcombine.high %v928_v3, %v936_v5  ;;  %v8398_v12 = vcombine.high %v929_v6, %v937_v7  ;;  %v50_v61 = vld [vmem:[%s11747_s1 + $0x110] sm:$0xff] }
  0xcc   :  { %v58_v62 = vld [vmem:[%s11747_s1 + $0x150] sm:$0xff] }
  0xce   :  { %6145 = vmatpush1.bf16.msra.mxu0 %v8283_v16  ;;  %6309 = vmatpush1.bf16.msra.mxu1 %v8285_v17  ;;  %v953_v16 = vld [vmem:[%s11747_s1 + $0x1d48] sm:$0xff]  ;;  %v8395_v17 = vcombine.low %v928_v3, %v936_v5  ;;  %v7520_v3 = vcombine.high %v50_v61, %v58_v62 }
  0xcf   :  { %6146 = vmatprep.subr.bf16.mxu0 %v8300_v18  ;;  %6310 = vmatprep.subr.bf16.mxu1 %v8302_v19  ;;  %v8397_v18 = vcombine.low %v929_v6, %v937_v7  ;;  %v8412_v19 = vcombine.high %v944_v13, %v952_v14  ;;  %v8414_v20 = vcombine.high %v945_v15, %v953_v16  ;;  %v66_v6 = vld [vmem:[%s11747_s1 + $0x190] sm:$0xff] }
  0xd0   :  { %v74_v7 = vld [vmem:[%s11747_s1 + $0x1d0] sm:$0xff] }
  0xd2   :  { %6147 = vmatpush1.bf16.msra.mxu0 %v8299_v25  ;;  %6311 = vmatpush1.bf16.msra.mxu1 %v8301_v26  ;;  %v969_v25 = vld [vmem:[%s11747_s1 + $0x1dc8] sm:$0xff]  ;;  %v8411_v26 = vcombine.low %v944_v13, %v952_v14  ;;  %v7536_v13 = vcombine.high %v66_v6, %v74_v7 }
  0xd3   :  { %6148 = vmatprep.subr.bf16.mxu0 %v8316_v59  ;;  %6312 = vmatprep.subr.bf16.mxu1 %v8318_v27  ;;  %v8413_v59 = vcombine.low %v945_v15, %v953_v16  ;;  %v8428_v27 = vcombine.high %v960_v21, %v968_v22  ;;  %v8430_v29 = vcombine.high %v961_v24, %v969_v25  ;;  %v82_v15 = vld [vmem:[%s11747_s1 + $0x210] sm:$0xff] }
  0xd4   :  { %v90_v16 = vld [vmem:[%s11747_s1 + $0x250] sm:$0xff] }
  0xd6   :  { %6149 = vmatpush1.bf16.msra.mxu0 %v8315_v33  ;;  %6313 = vmatpush1.bf16.msra.mxu1 %v8317_v34  ;;  %v985_v33 = vld [vmem:[%s11747_s1 + $0x1e48] sm:$0xff]  ;;  %v8427_v34 = vcombine.low %v960_v21, %v968_v22  ;;  %v7552_v21 = vcombine.high %v82_v15, %v90_v16 }
  0xd7   :  { %6150 = vmatprep.subr.bf16.mxu0 %v8332_v35  ;;  %6314 = vmatprep.subr.bf16.mxu1 %v8334_v36  ;;  %v8429_v35 = vcombine.low %v961_v24, %v969_v25  ;;  %v8444_v36 = vcombine.high %v976_v63, %v984_v30  ;;  %v8446_v37 = vcombine.high %v977_v32, %v985_v33  ;;  %v98_v24 = vld [vmem:[%s11747_s1 + $0x290] sm:$0xff] }
  0xd8   :  { %v106_v25 = vld [vmem:[%s11747_s1 + $0x2d0] sm:$0xff] }
  0xda   :  { %6151 = vmatpush1.bf16.msra.mxu0 %v8331_v42  ;;  %6315 = vmatpush1.bf16.msra.mxu1 %v8333_v44  ;;  %v27_v42 = vld [vmem:[%s11747_s1 + $0x58] sm:$0xff]  ;;  %v8443_v44 = vcombine.low %v976_v63, %v984_v30  ;;  %v7568_v63 = vcombine.high %v98_v24, %v106_v25 }
  0xdb   :  { %6152 = vmatprep.subr.bf16.mxu0 %v8348_v45  ;;  %6316 = vmatprep.subr.bf16.mxu1 %v8350_v46  ;;  %v8445_v45 = vcombine.low %v977_v32, %v985_v33  ;;  %v7488_v46 = vcombine.high %v18_v39, %v26_v40  ;;  %v7490_v47 = vcombine.high %v19_v41, %v27_v42  ;;  %v114_v32 = vld [vmem:[%s11747_s1 + $0x310] sm:$0xff] }
  0xdc   :  { %v122_v33 = vld [vmem:[%s11747_s1 + $0x350] sm:$0xff] }
  0xde   :  { %6153 = vmatpush1.bf16.msra.mxu0 %v8347_v52  ;;  %6317 = vmatpush1.bf16.msra.mxu1 %v8349_v54  ;;  %v35_v52 = vld [vmem:[%s11747_s1 + $0x98] sm:$0xff] }
  0xdf   :  { %6154 = vmatprep.subr.bf16.mxu0 %v8364_v55  ;;  %6318 = vmatprep.subr.bf16.mxu1 %v8366_v56  ;;  %v43_v54 = vld [vmem:[%s11747_s1 + $0xd8] sm:$0xff]  ;;  %v7487_v55 = vcombine.low %v18_v39, %v26_v40  ;;  %v7489_v56 = vcombine.low %v19_v41, %v27_v42  ;;  %v7584_v39 = vcombine.high %v114_v32, %v122_v33  ;;  %v130_v41 = vld [vmem:[%s11747_s1 + $0x390] sm:$0xff] }
  0xe0   :  { %v7506_v60 = vcombine.high %v35_v52, %v43_v54  ;;  %v138_v42 = vld [vmem:[%s11747_s1 + $0x3d0] sm:$0xff] }
  0xe2   :  { %6155 = vmatpush1.bf16.msra.mxu0 %v8363_v0  ;;  %6319 = vmatpush1.bf16.msra.mxu1 %v8365_v1  ;;  %v51_v0 = vld [vmem:[%s11747_s1 + $0x118] sm:$0xff] }
  0xe3   :  { %6156 = vmatprep.subr.bf16.mxu0 %v8380_v2  ;;  %6320 = vmatprep.subr.bf16.mxu1 %v8382_v28  ;;  %v59_v1 = vld [vmem:[%s11747_s1 + $0x158] sm:$0xff]  ;;  %v7503_v2 = vcombine.low %v34_v49, %v42_v50  ;;  %v7505_v28 = vcombine.low %v35_v52, %v43_v54  ;;  %v7600_v49 = vcombine.high %v130_v41, %v138_v42  ;;  %v146_v52 = vld [vmem:[%s11747_s1 + $0x410] sm:$0xff] }
  0xe4   :  { %v7522_v5 = vcombine.high %v51_v0, %v59_v1  ;;  %v154_v54 = vld [vmem:[%s11747_s1 + $0x450] sm:$0xff] }
  0xe6   :  { %6157 = vmatpush1.bf16.msra.mxu0 %v8379_v8  ;;  %6321 = vmatpush1.bf16.msra.mxu1 %v8381_v10  ;;  %v67_v8 = vld [vmem:[%s11747_s1 + $0x198] sm:$0xff] }
  0xe7   :  { %6158 = vmatprep.subr.bf16.mxu0 %v8396_v11  ;;  %6322 = vmatprep.subr.bf16.mxu1 %v8398_v12  ;;  %v75_v10 = vld [vmem:[%s11747_s1 + $0x1d8] sm:$0xff]  ;;  %v7519_v11 = vcombine.low %v50_v61, %v58_v62  ;;  %v7521_v12 = vcombine.low %v51_v0, %v59_v1  ;;  %v7616_v61 = vcombine.high %v146_v52, %v154_v54  ;;  %v162_v0 = vld [vmem:[%s11747_s1 + $0x490] sm:$0xff] }
  0xe8   :  { %v7538_v14 = vcombine.high %v67_v8, %v75_v10  ;;  %v170_v1 = vld [vmem:[%s11747_s1 + $0x4d0] sm:$0xff] }
  0xea   :  { %6159 = vmatpush1.bf16.msra.mxu0 %v8395_v17  ;;  %6323 = vmatpush1.bf16.msra.mxu1 %v8397_v18  ;;  %v83_v17 = vld [vmem:[%s11747_s1 + $0x218] sm:$0xff] }
  0xeb   :  { %6160 = vmatprep.subr.bf16.mxu0 %v8412_v19  ;;  %6324 = vmatprep.subr.bf16.mxu1 %v8414_v20  ;;  %v91_v18 = vld [vmem:[%s11747_s1 + $0x258] sm:$0xff]  ;;  %v7535_v19 = vcombine.low %v66_v6, %v74_v7  ;;  %v7537_v20 = vcombine.low %v67_v8, %v75_v10  ;;  %v7632_v6 = vcombine.high %v162_v0, %v170_v1  ;;  %v178_v8 = vld [vmem:[%s11747_s1 + $0x510] sm:$0xff] }
  0xec   :  { %v7554_v22 = vcombine.high %v83_v17, %v91_v18  ;;  %v186_v10 = vld [vmem:[%s11747_s1 + $0x550] sm:$0xff] }
  0xee   :  { %6161 = vmatpush1.bf16.msra.mxu0 %v8411_v26  ;;  %6325 = vmatpush1.bf16.msra.mxu1 %v8413_v59  ;;  %v99_v26 = vld [vmem:[%s11747_s1 + $0x298] sm:$0xff] }
  0xef   :  { %6162 = vmatprep.subr.bf16.mxu0 %v8428_v27  ;;  %6326 = vmatprep.subr.bf16.mxu1 %v8430_v29  ;;  %v107_v59 = vld [vmem:[%s11747_s1 + $0x2d8] sm:$0xff]  ;;  %v7551_v27 = vcombine.low %v82_v15, %v90_v16  ;;  %v7553_v29 = vcombine.low %v83_v17, %v91_v18  ;;  %v7648_v15 = vcombine.high %v178_v8, %v186_v10  ;;  %v194_v17 = vld [vmem:[%s11747_s1 + $0x590] sm:$0xff] }
  0xf0   :  { %v7570_v30 = vcombine.high %v99_v26, %v107_v59  ;;  %v202_v18 = vld [vmem:[%s11747_s1 + $0x5d0] sm:$0xff] }
  0xf2   :  { %6163 = vmatpush1.bf16.msra.mxu0 %v8427_v34  ;;  %6327 = vmatpush1.bf16.msra.mxu1 %v8429_v35  ;;  %v115_v34 = vld [vmem:[%s11747_s1 + $0x318] sm:$0xff] }
  0xf3   :  { %6164 = vmatprep.subr.bf16.mxu0 %v8444_v36  ;;  %6328 = vmatprep.subr.bf16.mxu1 %v8446_v37  ;;  %v123_v35 = vld [vmem:[%s11747_s1 + $0x358] sm:$0xff]  ;;  %v7567_v36 = vcombine.low %v98_v24, %v106_v25  ;;  %v7569_v37 = vcombine.low %v99_v26, %v107_v59  ;;  %v7664_v24 = vcombine.high %v194_v17, %v202_v18  ;;  %v210_v26 = vld [vmem:[%s11747_s1 + $0x610] sm:$0xff] }
  0xf4   :  { %v7586_v40 = vcombine.high %v115_v34, %v123_v35  ;;  %v218_v59 = vld [vmem:[%s11747_s1 + $0x650] sm:$0xff] }
  0xf6   :  { %6165 = vmatpush1.bf16.msra.mxu0 %v8443_v44  ;;  %6329 = vmatpush1.bf16.msra.mxu1 %v8445_v45  ;;  %v131_v44 = vld [vmem:[%s11747_s1 + $0x398] sm:$0xff] }
  0xf7   :  { %6345 = vmatprep.subr.bf16.mxu0 %v7488_v46  ;;  %6509 = vmatprep.subr.bf16.mxu1 %v7490_v47  ;;  %v139_v45 = vld [vmem:[%s11747_s1 + $0x3d8] sm:$0xff]  ;;  %v7583_v46 = vcombine.low %v114_v32, %v122_v33  ;;  %v7585_v47 = vcombine.low %v115_v34, %v123_v35  ;;  %v7680_v32 = vcombine.high %v210_v26, %v218_v59  ;;  %v226_v34 = vld [vmem:[%s11747_s1 + $0x690] sm:$0xff] }
  0xf8   :  { %v7602_v50 = vcombine.high %v131_v44, %v139_v45  ;;  %v234_v35 = vld [vmem:[%s11747_s1 + $0x6d0] sm:$0xff] }
  0xf9   :  { %6173 = vmatmul.mubr.bf16.vlgmr.msra.gmra.mrb[0].mxu0 %v9428_v51  ;;  %6337 = vmatmul.mubr.bf16.vlgmr.msra.gmra.mrb[0].mxu1 %v9428_v51 }
  0xfa   :  { %6346 = vmatpush1.bf16.msra.mxu0 %v7487_v55  ;;  %6510 = vmatpush1.bf16.msra.mxu1 %v7489_v56  ;;  %v147_v55 = vld [vmem:[%s11747_s1 + $0x418] sm:$0xff] }
  0xfb   :  { %6347 = vmatprep.subr.bf16.mxu0 %v7504_v57  ;;  %6511 = vmatprep.subr.bf16.mxu1 %v7506_v60  ;;  %v155_v56 = vld [vmem:[%s11747_s1 + $0x458] sm:$0xff]  ;;  %v7599_v57 = vcombine.low %v130_v41, %v138_v42  ;;  %v7601_v60 = vcombine.low %v131_v44, %v139_v45  ;;  %v7696_v41 = vcombine.high %v226_v34, %v234_v35  ;;  %v242_v44 = vld [vmem:[%s11747_s1 + $0x710] sm:$0xff] }
  0xfc   :  { %6377 = vmatprep.mubr.bf16.mxu0 %v8730_v9  ;;  %6541 = vmatprep.mubr.bf16.mxu1 %v8730_v9  ;;  %v7618_v62 = vcombine.high %v147_v55, %v155_v56  ;;  %v250_v45 = vld [vmem:[%s11747_s1 + $0x750] sm:$0xff] }
  0xfe   :  { %6348 = vmatpush1.bf16.msra.mxu0 %v7503_v2  ;;  %6512 = vmatpush1.bf16.msra.mxu1 %v7505_v28  ;;  %v163_v2 = vld [vmem:[%s11747_s1 + $0x498] sm:$0xff] }
  0xff   :  { %6349 = vmatprep.subr.bf16.mxu0 %v7520_v3  ;;  %6513 = vmatprep.subr.bf16.mxu1 %v7522_v5  ;;  %v171_v28 = vld [vmem:[%s11747_s1 + $0x4d8] sm:$0xff]  ;;  %v7615_v3 = vcombine.low %v146_v52, %v154_v54  ;;  %v7617_v5 = vcombine.low %v147_v55, %v155_v56  ;;  %v7712_v52 = vcombine.high %v242_v44, %v250_v45  ;;  %v258_v55 = vld [vmem:[%s11747_s1 + $0x790] sm:$0xff] }
 0x100   :  { %v7634_v7 = vcombine.high %v163_v2, %v171_v28  ;;  %v266_v56 = vld [vmem:[%s11747_s1 + $0x7d0] sm:$0xff] }
 0x102   :  { %6350 = vmatpush1.bf16.msra.mxu0 %v7519_v11  ;;  %6514 = vmatpush1.bf16.msra.mxu1 %v7521_v12  ;;  %v179_v11 = vld [vmem:[%s11747_s1 + $0x518] sm:$0xff] }
 0x103   :  { %6351 = vmatprep.subr.bf16.mxu0 %v7536_v13  ;;  %6515 = vmatprep.subr.bf16.mxu1 %v7538_v14  ;;  %v187_v12 = vld [vmem:[%s11747_s1 + $0x558] sm:$0xff]  ;;  %v7631_v13 = vcombine.low %v162_v0, %v170_v1  ;;  %v7633_v14 = vcombine.low %v163_v2, %v171_v28  ;;  %v7728_v0 = vcombine.high %v258_v55, %v266_v56  ;;  %v274_v2 = vld [vmem:[%s11747_s1 + $0x810] sm:$0xff] }
 0x104   :  { %v7650_v16 = vcombine.high %v179_v11, %v187_v12  ;;  %v282_v28 = vld [vmem:[%s11747_s1 + $0x850] sm:$0xff] }
 0x106   :  { %6352 = vmatpush1.bf16.msra.mxu0 %v7535_v19  ;;  %6516 = vmatpush1.bf16.msra.mxu1 %v7537_v20  ;;  %v195_v19 = vld [vmem:[%s11747_s1 + $0x598] sm:$0xff] }
 0x107   :  { %6353 = vmatprep.subr.bf16.mxu0 %v7552_v21  ;;  %6517 = vmatprep.subr.bf16.mxu1 %v7554_v22  ;;  %v203_v20 = vld [vmem:[%s11747_s1 + $0x5d8] sm:$0xff]  ;;  %v7647_v21 = vcombine.low %v178_v8, %v186_v10  ;;  %v7649_v22 = vcombine.low %v179_v11, %v187_v12  ;;  %v7744_v8 = vcombine.high %v274_v2, %v282_v28  ;;  %v290_v11 = vld [vmem:[%s11747_s1 + $0x890] sm:$0xff] }
 0x108   :  { %v7666_v25 = vcombine.high %v195_v19, %v203_v20  ;;  %v298_v12 = vld [vmem:[%s11747_s1 + $0x8d0] sm:$0xff] }
 0x10a   :  { %6354 = vmatpush1.bf16.msra.mxu0 %v7551_v27  ;;  %6518 = vmatpush1.bf16.msra.mxu1 %v7553_v29  ;;  %v211_v27 = vld [vmem:[%s11747_s1 + $0x618] sm:$0xff] }
 0x10b   :  { %6355 = vmatprep.subr.bf16.mxu0 %v7568_v63  ;;  %6519 = vmatprep.subr.bf16.mxu1 %v7570_v30  ;;  %v219_v29 = vld [vmem:[%s11747_s1 + $0x658] sm:$0xff]  ;;  %v7663_v63 = vcombine.low %v194_v17, %v202_v18  ;;  %v7665_v30 = vcombine.low %v195_v19, %v203_v20  ;;  %v7760_v17 = vcombine.high %v290_v11, %v298_v12  ;;  %v306_v19 = vld [vmem:[%s11747_s1 + $0x910] sm:$0xff] }
 0x10c   :  { %v7682_v33 = vcombine.high %v211_v27, %v219_v29  ;;  %v314_v20 = vld [vmem:[%s11747_s1 + $0x950] sm:$0xff] }
 0x10e   :  { %6356 = vmatpush1.bf16.msra.mxu0 %v7567_v36  ;;  %6520 = vmatpush1.bf16.msra.mxu1 %v7569_v37  ;;  %v227_v36 = vld [vmem:[%s11747_s1 + $0x698] sm:$0xff] }
 0x10f   :  { %6357 = vmatprep.subr.bf16.mxu0 %v7584_v39  ;;  %6521 = vmatprep.subr.bf16.mxu1 %v7586_v40  ;;  %v235_v37 = vld [vmem:[%s11747_s1 + $0x6d8] sm:$0xff]  ;;  %v7679_v39 = vcombine.low %v210_v26, %v218_v59  ;;  %v7681_v40 = vcombine.low %v211_v27, %v219_v29  ;;  %v7776_v26 = vcombine.high %v306_v19, %v314_v20  ;;  %v322_v27 = vld [vmem:[%s11747_s1 + $0x990] sm:$0xff] }
 0x110   :  { %v7698_v42 = vcombine.high %v227_v36, %v235_v37  ;;  %v330_v29 = vld [vmem:[%s11747_s1 + $0x9d0] sm:$0xff] }
 0x112   :  { %6358 = vmatpush1.bf16.msra.mxu0 %v7583_v46  ;;  %6522 = vmatpush1.bf16.msra.mxu1 %v7585_v47  ;;  %v243_v46 = vld [vmem:[%s11747_s1 + $0x718] sm:$0xff] }
 0x113   :  { %6359 = vmatprep.subr.bf16.mxu0 %v7600_v49  ;;  %6523 = vmatprep.subr.bf16.mxu1 %v7602_v50  ;;  %v251_v47 = vld [vmem:[%s11747_s1 + $0x758] sm:$0xff]  ;;  %v7695_v49 = vcombine.low %v226_v34, %v234_v35  ;;  %v7697_v50 = vcombine.low %v227_v36, %v235_v37  ;;  %v7792_v34 = vcombine.high %v322_v27, %v330_v29  ;;  %v338_v36 = vld [vmem:[%s11747_s1 + $0xa10] sm:$0xff] }
 0x114   :  { %v7714_v54 = vcombine.high %v243_v46, %v251_v47  ;;  %v346_v37 = vld [vmem:[%s11747_s1 + $0xa50] sm:$0xff] }
 0x116   :  { %6360 = vmatpush1.bf16.msra.mxu0 %v7599_v57  ;;  %6524 = vmatpush1.bf16.msra.mxu1 %v7601_v60  ;;  %v259_v57 = vld [vmem:[%s11747_s1 + $0x798] sm:$0xff] }
 0x117   :  { %6361 = vmatprep.subr.bf16.mxu0 %v7616_v61  ;;  %6525 = vmatprep.subr.bf16.mxu1 %v7618_v62  ;;  %v267_v60 = vld [vmem:[%s11747_s1 + $0x7d8] sm:$0xff]  ;;  %v7711_v61 = vcombine.low %v242_v44, %v250_v45  ;;  %v7713_v62 = vcombine.low %v243_v46, %v251_v47  ;;  %v7808_v44 = vcombine.high %v338_v36, %v346_v37  ;;  %v354_v46 = vld [vmem:[%s11747_s1 + $0xa90] sm:$0xff] }
 0x118   :  { %v7730_v1 = vcombine.high %v259_v57, %v267_v60  ;;  %v362_v47 = vld [vmem:[%s11747_s1 + $0xad0] sm:$0xff] }
 0x11a   :  { %6362 = vmatpush1.bf16.msra.mxu0 %v7615_v3  ;;  %6526 = vmatpush1.bf16.msra.mxu1 %v7617_v5  ;;  %v275_v3 = vld [vmem:[%s11747_s1 + $0x818] sm:$0xff] }
 0x11b   :  { %6363 = vmatprep.subr.bf16.mxu0 %v7632_v6  ;;  %6527 = vmatprep.subr.bf16.mxu1 %v7634_v7  ;;  %v283_v5 = vld [vmem:[%s11747_s1 + $0x858] sm:$0xff]  ;;  %v7727_v6 = vcombine.low %v258_v55, %v266_v56  ;;  %v7729_v7 = vcombine.low %v259_v57, %v267_v60  ;;  %v7824_v55 = vcombine.high %v354_v46, %v362_v47  ;;  %v370_v57 = vld [vmem:[%s11747_s1 + $0xb10] sm:$0xff] }
 0x11c   :  { %v7746_v10 = vcombine.high %v275_v3, %v283_v5  ;;  %v378_v60 = vld [vmem:[%s11747_s1 + $0xb50] sm:$0xff] }
 0x11e   :  { %6364 = vmatpush1.bf16.msra.mxu0 %v7631_v13  ;;  %6528 = vmatpush1.bf16.msra.mxu1 %v7633_v14  ;;  %v291_v13 = vld [vmem:[%s11747_s1 + $0x898] sm:$0xff] }
 0x11f   :  { %6365 = vmatprep.subr.bf16.mxu0 %v7648_v15  ;;  %6529 = vmatprep.subr.bf16.mxu1 %v7650_v16  ;;  %v299_v14 = vld [vmem:[%s11747_s1 + $0x8d8] sm:$0xff]  ;;  %v7743_v15 = vcombine.low %v274_v2, %v282_v28  ;;  %v7745_v16 = vcombine.low %v275_v3, %v283_v5  ;;  %v7840_v2 = vcombine.high %v370_v57, %v378_v60  ;;  %v386_v3 = vld [vmem:[%s11747_s1 + $0xb90] sm:$0xff] }
 0x120   :  { %v7762_v18 = vcombine.high %v291_v13, %v299_v14  ;;  %v394_v5 = vld [vmem:[%s11747_s1 + $0xbd0] sm:$0xff] }
 0x122   :  { %6366 = vmatpush1.bf16.msra.mxu0 %v7647_v21  ;;  %6530 = vmatpush1.bf16.msra.mxu1 %v7649_v22  ;;  %v307_v21 = vld [vmem:[%s11747_s1 + $0x918] sm:$0xff] }
 0x123   :  { %6367 = vmatprep.subr.bf16.mxu0 %v7664_v24  ;;  %6531 = vmatprep.subr.bf16.mxu1 %v7666_v25  ;;  %v315_v22 = vld [vmem:[%s11747_s1 + $0x958] sm:$0xff]  ;;  %v7759_v24 = vcombine.low %v290_v11, %v298_v12  ;;  %v7761_v25 = vcombine.low %v291_v13, %v299_v14  ;;  %v7856_v11 = vcombine.high %v386_v3, %v394_v5  ;;  %v402_v13 = vld [vmem:[%s11747_s1 + $0xc10] sm:$0xff] }
 0x124   :  { %v7778_v59 = vcombine.high %v307_v21, %v315_v22  ;;  %v410_v14 = vld [vmem:[%s11747_s1 + $0xc50] sm:$0xff] }
 0x126   :  { %6368 = vmatpush1.bf16.msra.mxu0 %v7663_v63  ;;  %6532 = vmatpush1.bf16.msra.mxu1 %v7665_v30  ;;  %v323_v63 = vld [vmem:[%s11747_s1 + $0x998] sm:$0xff] }
 0x127   :  { %6369 = vmatprep.subr.bf16.mxu0 %v7680_v32  ;;  %6533 = vmatprep.subr.bf16.mxu1 %v7682_v33  ;;  %v331_v30 = vld [vmem:[%s11747_s1 + $0x9d8] sm:$0xff]  ;;  %v7775_v32 = vcombine.low %v306_v19, %v314_v20  ;;  %v7777_v33 = vcombine.low %v307_v21, %v315_v22  ;;  %v7872_v19 = vcombine.high %v402_v13, %v410_v14  ;;  %v418_v21 = vld [vmem:[%s11747_s1 + $0xc90] sm:$0xff] }
 0x128   :  { %v7794_v35 = vcombine.high %v323_v63, %v331_v30  ;;  %v426_v22 = vld [vmem:[%s11747_s1 + $0xcd0] sm:$0xff] }
 0x12a   :  { %6370 = vmatpush1.bf16.msra.mxu0 %v7679_v39  ;;  %6534 = vmatpush1.bf16.msra.mxu1 %v7681_v40  ;;  %v339_v39 = vld [vmem:[%s11747_s1 + $0xa18] sm:$0xff] }
 0x12b   :  { %6371 = vmatprep.subr.bf16.mxu0 %v7696_v41  ;;  %6535 = vmatprep.subr.bf16.mxu1 %v7698_v42  ;;  %v347_v40 = vld [vmem:[%s11747_s1 + $0xa58] sm:$0xff]  ;;  %v7791_v41 = vcombine.low %v322_v27, %v330_v29  ;;  %v7793_v42 = vcombine.low %v323_v63, %v331_v30  ;;  %v7888_v27 = vcombine.high %v418_v21, %v426_v22  ;;  %v434_v63 = vld [vmem:[%s11747_s1 + $0xd10] sm:$0xff] }
 0x12c   :  { %v7810_v45 = vcombine.high %v339_v39, %v347_v40  ;;  %v442_v30 = vld [vmem:[%s11747_s1 + $0xd50] sm:$0xff] }
 0x12e   :  { %6372 = vmatpush1.bf16.msra.mxu0 %v7695_v49  ;;  %6536 = vmatpush1.bf16.msra.mxu1 %v7697_v50  ;;  %v355_v49 = vld [vmem:[%s11747_s1 + $0xa98] sm:$0xff] }
 0x12f   :  { %6373 = vmatprep.subr.bf16.mxu0 %v7712_v52  ;;  %6537 = vmatprep.subr.bf16.mxu1 %v7714_v54  ;;  %v363_v50 = vld [vmem:[%s11747_s1 + $0xad8] sm:$0xff]  ;;  %v7807_v52 = vcombine.low %v338_v36, %v346_v37  ;;  %v7809_v54 = vcombine.low %v339_v39, %v347_v40  ;;  %v7904_v36 = vcombine.high %v434_v63, %v442_v30  ;;  %v450_v39 = vld [vmem:[%s11747_s1 + $0xd90] sm:$0xff] }
 0x130   :  { %v7826_v56 = vcombine.high %v355_v49, %v363_v50  ;;  %v458_v40 = vld [vmem:[%s11747_s1 + $0xdd0] sm:$0xff] }
 0x132   :  { %6374 = vmatpush1.bf16.msra.mxu0 %v7711_v61  ;;  %6538 = vmatpush1.bf16.msra.mxu1 %v7713_v62  ;;  %v371_v61 = vld [vmem:[%s11747_s1 + $0xb18] sm:$0xff] }
 0x133   :  { %6375 = vmatprep.subr.bf16.mxu0 %v7728_v0  ;;  %6539 = vmatprep.subr.bf16.mxu1 %v7730_v1  ;;  %v379_v62 = vld [vmem:[%s11747_s1 + $0xb58] sm:$0xff]  ;;  %v7823_v0 = vcombine.low %v354_v46, %v362_v47  ;;  %v7825_v1 = vcombine.low %v355_v49, %v363_v50  ;;  %v7920_v46 = vcombine.high %v450_v39, %v458_v40  ;;  %v466_v49 = vld [vmem:[%s11747_s1 + $0xe10] sm:$0xff] }
 0x134   :  { %v7842_v28 = vcombine.high %v371_v61, %v379_v62  ;;  %v474_v50 = vld [vmem:[%s11747_s1 + $0xe50] sm:$0xff] }
 0x136   :  { %6376 = vmatpush1.bf16.msra.mxu0 %v7727_v6  ;;  %6540 = vmatpush1.bf16.msra.mxu1 %v7729_v7  ;;  %v387_v6 = vld [vmem:[%s11747_s1 + $0xb98] sm:$0xff] }
 0x137   :  { %6386 = vmatprep.subr.bf16.mxu0 %v7744_v8  ;;  %6550 = vmatprep.subr.bf16.mxu1 %v7746_v10  ;;  %v395_v7 = vld [vmem:[%s11747_s1 + $0xbd8] sm:$0xff]  ;;  %v7839_v8 = vcombine.low %v370_v57, %v378_v60  ;;  %v7841_v10 = vcombine.low %v371_v61, %v379_v62  ;;  %v7936_v57 = vcombine.high %v466_v49, %v474_v50  ;;  %v482_v61 = vld [vmem:[%s11747_s1 + $0xe90] sm:$0xff] }
 0x138   :  { %v7858_v12 = vcombine.high %v387_v6, %v395_v7  ;;  %v490_v62 = vld [vmem:[%s11747_s1 + $0xed0] sm:$0xff] }
 0x139   :  { %6378 = vmatmul.mubr.bf16.vlgmr.msra.gmra.mrb[4].mxu0 %v8844_v23  ;;  %6542 = vmatmul.mubr.bf16.vlgmr.msra.gmra.mrb[4].mxu1 %v8844_v23 }
 0x13a   :  { %6387 = vmatpush1.bf16.msra.mxu0 %v7743_v15  ;;  %6551 = vmatpush1.bf16.msra.mxu1 %v7745_v16  ;;  %v403_v15 = vld [vmem:[%s11747_s1 + $0xc18] sm:$0xff] }
 0x13b   :  { %6388 = vmatprep.subr.bf16.mxu0 %v7760_v17  ;;  %6552 = vmatprep.subr.bf16.mxu1 %v7762_v18  ;;  %v411_v16 = vld [vmem:[%s11747_s1 + $0xc58] sm:$0xff]  ;;  %v7855_v17 = vcombine.low %v386_v3, %v394_v5  ;;  %v7857_v18 = vcombine.low %v387_v6, %v395_v7  ;;  %v7952_v3 = vcombine.high %v482_v61, %v490_v62  ;;  %v498_v6 = vld [vmem:[%s11747_s1 + $0xf10] sm:$0xff] }
 0x13c   :  { %6418 = vmatprep.mubr.bf16.mxu0 %v8860_v31  ;;  %6582 = vmatprep.mubr.bf16.mxu1 %v8860_v31  ;;  %v7874_v20 = vcombine.high %v403_v15, %v411_v16  ;;  %v506_v7 = vld [vmem:[%s11747_s1 + $0xf50] sm:$0xff] }
 0x13e   :  { %6389 = vmatpush1.bf16.msra.mxu0 %v7759_v24  ;;  %6553 = vmatpush1.bf16.msra.mxu1 %v7761_v25  ;;  %v419_v24 = vld [vmem:[%s11747_s1 + $0xc98] sm:$0xff] }
 0x13f   :  { %6390 = vmatprep.subr.bf16.mxu0 %v7776_v26  ;;  %6554 = vmatprep.subr.bf16.mxu1 %v7778_v59  ;;  %v427_v25 = vld [vmem:[%s11747_s1 + $0xcd8] sm:$0xff]  ;;  %v7871_v26 = vcombine.low %v402_v13, %v410_v14  ;;  %v7873_v59 = vcombine.low %v403_v15, %v411_v16  ;;  %v7968_v13 = vcombine.high %v498_v6, %v506_v7  ;;  %v514_v15 = vld [vmem:[%s11747_s1 + $0xf90] sm:$0xff] }
 0x140   :  { %v7890_v29 = vcombine.high %v419_v24, %v427_v25  ;;  %v522_v16 = vld [vmem:[%s11747_s1 + $0xfd0] sm:$0xff] }
 0x142   :  { %6391 = vmatpush1.bf16.msra.mxu0 %v7775_v32  ;;  %6555 = vmatpush1.bf16.msra.mxu1 %v7777_v33  ;;  %v435_v32 = vld [vmem:[%s11747_s1 + $0xd18] sm:$0xff] }
 0x143   :  { %6392 = vmatprep.subr.bf16.mxu0 %v7792_v34  ;;  %6556 = vmatprep.subr.bf16.mxu1 %v7794_v35  ;;  %v443_v33 = vld [vmem:[%s11747_s1 + $0xd58] sm:$0xff]  ;;  %v7887_v34 = vcombine.low %v418_v21, %v426_v22  ;;  %v7889_v35 = vcombine.low %v419_v24, %v427_v25  ;;  %v7984_v21 = vcombine.high %v514_v15, %v522_v16  ;;  %v530_v24 = vld [vmem:[%s11747_s1 + $0x1010] sm:$0xff] }
 0x144   :  { %v7906_v37 = vcombine.high %v435_v32, %v443_v33  ;;  %v538_v25 = vld [vmem:[%s11747_s1 + $0x1050] sm:$0xff] }
 0x146   :  { %6393 = vmatpush1.bf16.msra.mxu0 %v7791_v41  ;;  %6557 = vmatpush1.bf16.msra.mxu1 %v7793_v42  ;;  %v451_v41 = vld [vmem:[%s11747_s1 + $0xd98] sm:$0xff] }
 0x147   :  { %6394 = vmatprep.subr.bf16.mxu0 %v7808_v44  ;;  %6558 = vmatprep.subr.bf16.mxu1 %v7810_v45  ;;  %v459_v42 = vld [vmem:[%s11747_s1 + $0xdd8] sm:$0xff]  ;;  %v7903_v44 = vcombine.low %v434_v63, %v442_v30  ;;  %v7905_v45 = vcombine.low %v435_v32, %v443_v33  ;;  %v8000_v63 = vcombine.high %v530_v24, %v538_v25  ;;  %v546_v32 = vld [vmem:[%s11747_s1 + $0x1090] sm:$0xff] }
 0x148   :  { %v7922_v47 = vcombine.high %v451_v41, %v459_v42  ;;  %v554_v33 = vld [vmem:[%s11747_s1 + $0x10d0] sm:$0xff] }
 0x14a   :  { %6395 = vmatpush1.bf16.msra.mxu0 %v7807_v52  ;;  %6559 = vmatpush1.bf16.msra.mxu1 %v7809_v54  ;;  %v467_v52 = vld [vmem:[%s11747_s1 + $0xe18] sm:$0xff] }
 0x14b   :  { %6396 = vmatprep.subr.bf16.mxu0 %v7824_v55  ;;  %6560 = vmatprep.subr.bf16.mxu1 %v7826_v56  ;;  %v475_v54 = vld [vmem:[%s11747_s1 + $0xe58] sm:$0xff]  ;;  %v7919_v55 = vcombine.low %v450_v39, %v458_v40  ;;  %v7921_v56 = vcombine.low %v451_v41, %v459_v42  ;;  %v8016_v39 = vcombine.high %v546_v32, %v554_v33  ;;  %v562_v41 = vld [vmem:[%s11747_s1 + $0x1110] sm:$0xff] }
 0x14c   :  { %v7938_v60 = vcombine.high %v467_v52, %v475_v54  ;;  %v570_v42 = vld [vmem:[%s11747_s1 + $0x1150] sm:$0xff] }
 0x14e   :  { %6397 = vmatpush1.bf16.msra.mxu0 %v7823_v0  ;;  %6561 = vmatpush1.bf16.msra.mxu1 %v7825_v1  ;;  %v483_v0 = vld [vmem:[%s11747_s1 + $0xe98] sm:$0xff] }
 0x14f   :  { %6398 = vmatprep.subr.bf16.mxu0 %v7840_v2  ;;  %6562 = vmatprep.subr.bf16.mxu1 %v7842_v28  ;;  %v491_v1 = vld [vmem:[%s11747_s1 + $0xed8] sm:$0xff]  ;;  %v7935_v2 = vcombine.low %v466_v49, %v474_v50  ;;  %v7937_v28 = vcombine.low %v467_v52, %v475_v54  ;;  %v8032_v49 = vcombine.high %v562_v41, %v570_v42  ;;  %v578_v52 = vld [vmem:[%s11747_s1 + $0x1190] sm:$0xff] }
 0x150   :  { %v7954_v5 = vcombine.high %v483_v0, %v491_v1  ;;  %v586_v54 = vld [vmem:[%s11747_s1 + $0x11d0] sm:$0xff] }
 0x152   :  { %6399 = vmatpush1.bf16.msra.mxu0 %v7839_v8  ;;  %6563 = vmatpush1.bf16.msra.mxu1 %v7841_v10  ;;  %v499_v8 = vld [vmem:[%s11747_s1 + $0xf18] sm:$0xff] }
 0x153   :  { %6400 = vmatprep.subr.bf16.mxu0 %v7856_v11  ;;  %6564 = vmatprep.subr.bf16.mxu1 %v7858_v12  ;;  %v507_v10 = vld [vmem:[%s11747_s1 + $0xf58] sm:$0xff]  ;;  %v7951_v11 = vcombine.low %v482_v61, %v490_v62  ;;  %v7953_v12 = vcombine.low %v483_v0, %v491_v1  ;;  %v8048_v61 = vcombine.high %v578_v52, %v586_v54  ;;  %v594_v0 = vld [vmem:[%s11747_s1 + $0x1210] sm:$0xff] }
 0x154   :  { %v7970_v14 = vcombine.high %v499_v8, %v507_v10  ;;  %v602_v1 = vld [vmem:[%s11747_s1 + $0x1250] sm:$0xff] }
 0x156   :  { %6401 = vmatpush1.bf16.msra.mxu0 %v7855_v17  ;;  %6565 = vmatpush1.bf16.msra.mxu1 %v7857_v18  ;;  %v515_v17 = vld [vmem:[%s11747_s1 + $0xf98] sm:$0xff] }
 0x157   :  { %6402 = vmatprep.subr.bf16.mxu0 %v7872_v19  ;;  %6566 = vmatprep.subr.bf16.mxu1 %v7874_v20  ;;  %v523_v18 = vld [vmem:[%s11747_s1 + $0xfd8] sm:$0xff]  ;;  %v7967_v19 = vcombine.low %v498_v6, %v506_v7  ;;  %v7969_v20 = vcombine.low %v499_v8, %v507_v10  ;;  %v8064_v6 = vcombine.high %v594_v0, %v602_v1  ;;  %v610_v8 = vld [vmem:[%s11747_s1 + $0x1290] sm:$0xff] }
 0x158   :  { %v7986_v22 = vcombine.high %v515_v17, %v523_v18  ;;  %v618_v10 = vld [vmem:[%s11747_s1 + $0x12d0] sm:$0xff] }
 0x15a   :  { %6403 = vmatpush1.bf16.msra.mxu0 %v7871_v26  ;;  %6567 = vmatpush1.bf16.msra.mxu1 %v7873_v59  ;;  %v531_v26 = vld [vmem:[%s11747_s1 + $0x1018] sm:$0xff] }
 0x15b   :  { %6404 = vmatprep.subr.bf16.mxu0 %v7888_v27  ;;  %6568 = vmatprep.subr.bf16.mxu1 %v7890_v29  ;;  %v539_v59 = vld [vmem:[%s11747_s1 + $0x1058] sm:$0xff]  ;;  %v7983_v27 = vcombine.low %v514_v15, %v522_v16  ;;  %v7985_v29 = vcombine.low %v515_v17, %v523_v18  ;;  %v8080_v15 = vcombine.high %v610_v8, %v618_v10  ;;  %v626_v17 = vld [vmem:[%s11747_s1 + $0x1310] sm:$0xff] }
 0x15c   :  { %v8002_v30 = vcombine.high %v531_v26, %v539_v59  ;;  %v634_v18 = vld [vmem:[%s11747_s1 + $0x1350] sm:$0xff] }
 0x15e   :  { %6405 = vmatpush1.bf16.msra.mxu0 %v7887_v34  ;;  %6569 = vmatpush1.bf16.msra.mxu1 %v7889_v35  ;;  %v547_v34 = vld [vmem:[%s11747_s1 + $0x1098] sm:$0xff] }
 0x15f   :  { %6406 = vmatprep.subr.bf16.mxu0 %v7904_v36  ;;  %6570 = vmatprep.subr.bf16.mxu1 %v7906_v37  ;;  %v555_v35 = vld [vmem:[%s11747_s1 + $0x10d8] sm:$0xff]  ;;  %v7999_v36 = vcombine.low %v530_v24, %v538_v25  ;;  %v8001_v37 = vcombine.low %v531_v26, %v539_v59  ;;  %v8096_v24 = vcombine.high %v626_v17, %v634_v18  ;;  %v642_v26 = vld [vmem:[%s11747_s1 + $0x1390] sm:$0xff] }
 0x160   :  { %v8018_v40 = vcombine.high %v547_v34, %v555_v35  ;;  %v650_v59 = vld [vmem:[%s11747_s1 + $0x13d0] sm:$0xff] }
 0x162   :  { %6407 = vmatpush1.bf16.msra.mxu0 %v7903_v44  ;;  %6571 = vmatpush1.bf16.msra.mxu1 %v7905_v45  ;;  %v563_v44 = vld [vmem:[%s11747_s1 + $0x1118] sm:$0xff] }
 0x163   :  { %6408 = vmatprep.subr.bf16.mxu0 %v7920_v46  ;;  %6572 = vmatprep.subr.bf16.mxu1 %v7922_v47  ;;  %v571_v45 = vld [vmem:[%s11747_s1 + $0x1158] sm:$0xff]  ;;  %v8015_v46 = vcombine.low %v546_v32, %v554_v33  ;;  %v8017_v47 = vcombine.low %v547_v34, %v555_v35  ;;  %v8112_v32 = vcombine.high %v642_v26, %v650_v59  ;;  %v658_v34 = vld [vmem:[%s11747_s1 + $0x1410] sm:$0xff] }
 0x164   :  { %v8034_v50 = vcombine.high %v563_v44, %v571_v45  ;;  %v666_v35 = vld [vmem:[%s11747_s1 + $0x1450] sm:$0xff] }
 0x166   :  { %6409 = vmatpush1.bf16.msra.mxu0 %v7919_v55  ;;  %6573 = vmatpush1.bf16.msra.mxu1 %v7921_v56  ;;  %v579_v55 = vld [vmem:[%s11747_s1 + $0x1198] sm:$0xff] }
 0x167   :  { %6410 = vmatprep.subr.bf16.mxu0 %v7936_v57  ;;  %6574 = vmatprep.subr.bf16.mxu1 %v7938_v60  ;;  %v587_v56 = vld [vmem:[%s11747_s1 + $0x11d8] sm:$0xff]  ;;  %v8031_v57 = vcombine.low %v562_v41, %v570_v42  ;;  %v8033_v60 = vcombine.low %v563_v44, %v571_v45  ;;  %v8128_v41 = vcombine.high %v658_v34, %v666_v35  ;;  %v674_v44 = vld [vmem:[%s11747_s1 + $0x1490] sm:$0xff] }
 0x168   :  { %v8050_v62 = vcombine.high %v579_v55, %v587_v56  ;;  %v682_v45 = vld [vmem:[%s11747_s1 + $0x14d0] sm:$0xff] }
 0x16a   :  { %6411 = vmatpush1.bf16.msra.mxu0 %v7935_v2  ;;  %6575 = vmatpush1.bf16.msra.mxu1 %v7937_v28  ;;  %v595_v2 = vld [vmem:[%s11747_s1 + $0x1218] sm:$0xff] }
 0x16b   :  { %6412 = vmatprep.subr.bf16.mxu0 %v7952_v3  ;;  %6576 = vmatprep.subr.bf16.mxu1 %v7954_v5  ;;  %v603_v28 = vld [vmem:[%s11747_s1 + $0x1258] sm:$0xff]  ;;  %v8047_v3 = vcombine.low %v578_v52, %v586_v54  ;;  %v8049_v5 = vcombine.low %v579_v55, %v587_v56  ;;  %v8144_v52 = vcombine.high %v674_v44, %v682_v45  ;;  %v690_v55 = vld [vmem:[%s11747_s1 + $0x1510] sm:$0xff] }
 0x16c   :  { %v8066_v7 = vcombine.high %v595_v2, %v603_v28  ;;  %v698_v56 = vld [vmem:[%s11747_s1 + $0x1550] sm:$0xff] }
 0x16e   :  { %6413 = vmatpush1.bf16.msra.mxu0 %v7951_v11  ;;  %6577 = vmatpush1.bf16.msra.mxu1 %v7953_v12  ;;  %v611_v11 = vld [vmem:[%s11747_s1 + $0x1298] sm:$0xff] }
 0x16f   :  { %6414 = vmatprep.subr.bf16.mxu0 %v7968_v13  ;;  %6578 = vmatprep.subr.bf16.mxu1 %v7970_v14  ;;  %v619_v12 = vld [vmem:[%s11747_s1 + $0x12d8] sm:$0xff]  ;;  %v8063_v13 = vcombine.low %v594_v0, %v602_v1  ;;  %v8065_v14 = vcombine.low %v595_v2, %v603_v28  ;;  %v8160_v0 = vcombine.high %v690_v55, %v698_v56  ;;  %v706_v2 = vld [vmem:[%s11747_s1 + $0x1590] sm:$0xff] }
 0x170   :  { %v8082_v16 = vcombine.high %v611_v11, %v619_v12  ;;  %v714_v28 = vld [vmem:[%s11747_s1 + $0x15d0] sm:$0xff] }
 0x172   :  { %6415 = vmatpush1.bf16.msra.mxu0 %v7967_v19  ;;  %6579 = vmatpush1.bf16.msra.mxu1 %v7969_v20  ;;  %v627_v19 = vld [vmem:[%s11747_s1 + $0x1318] sm:$0xff] }
 0x173   :  { %6416 = vmatprep.subr.bf16.mxu0 %v7984_v21  ;;  %6580 = vmatprep.subr.bf16.mxu1 %v7986_v22  ;;  %v635_v20 = vld [vmem:[%s11747_s1 + $0x1358] sm:$0xff]  ;;  %v8079_v21 = vcombine.low %v610_v8, %v618_v10  ;;  %v8081_v22 = vcombine.low %v611_v11, %v619_v12  ;;  %v8176_v8 = vcombine.high %v706_v2, %v714_v28  ;;  %v722_v11 = vld [vmem:[%s11747_s1 + $0x1610] sm:$0xff] }
 0x174   :  { %v8098_v25 = vcombine.high %v627_v19, %v635_v20  ;;  %v730_v12 = vld [vmem:[%s11747_s1 + $0x1650] sm:$0xff] }
 0x176   :  { %6417 = vmatpush1.bf16.msra.mxu0 %v7983_v27  ;;  %6581 = vmatpush1.bf16.msra.mxu1 %v7985_v29  ;;  %v643_v27 = vld [vmem:[%s11747_s1 + $0x1398] sm:$0xff] }
 0x177   :  { %6427 = vmatprep.subr.bf16.mxu0 %v8000_v63  ;;  %6591 = vmatprep.subr.bf16.mxu1 %v8002_v30  ;;  %v651_v29 = vld [vmem:[%s11747_s1 + $0x13d8] sm:$0xff]  ;;  %v8095_v63 = vcombine.low %v626_v17, %v634_v18  ;;  %v8097_v30 = vcombine.low %v627_v19, %v635_v20  ;;  %v8192_v17 = vcombine.high %v722_v11, %v730_v12  ;;  %v738_v19 = vld [vmem:[%s11747_s1 + $0x1690] sm:$0xff] }
 0x178   :  { %v8114_v33 = vcombine.high %v643_v27, %v651_v29  ;;  %v746_v20 = vld [vmem:[%s11747_s1 + $0x16d0] sm:$0xff] }
 0x179   :  { %6419 = vmatmul.mubr.bf16.vlgmr.msra.gmra.mrb[4].mxu0 %v9055_v38  ;;  %6583 = vmatmul.mubr.bf16.vlgmr.msra.gmra.mrb[4].mxu1 %v9055_v38 }
 0x17a   :  { %6428 = vmatpush1.bf16.msra.mxu0 %v7999_v36  ;;  %6592 = vmatpush1.bf16.msra.mxu1 %v8001_v37  ;;  %v659_v36 = vld [vmem:[%s11747_s1 + $0x1418] sm:$0xff] }
 0x17b   :  { %6429 = vmatprep.subr.bf16.mxu0 %v8016_v39  ;;  %6593 = vmatprep.subr.bf16.mxu1 %v8018_v40  ;;  %v667_v37 = vld [vmem:[%s11747_s1 + $0x1458] sm:$0xff]  ;;  %v8111_v39 = vcombine.low %v642_v26, %v650_v59  ;;  %v8113_v40 = vcombine.low %v643_v27, %v651_v29  ;;  %v8208_v26 = vcombine.high %v738_v19, %v746_v20  ;;  %v754_v27 = vld [vmem:[%s11747_s1 + $0x1710] sm:$0xff] }
 0x17c   :  { %6459 = vmatprep.mubr.bf16.mxu0 %v9070_v48  ;;  %6623 = vmatprep.mubr.bf16.mxu1 %v9070_v48  ;;  %v8130_v42 = vcombine.high %v659_v36, %v667_v37  ;;  %v762_v29 = vld [vmem:[%s11747_s1 + $0x1750] sm:$0xff] }
 0x17e   :  { %6430 = vmatpush1.bf16.msra.mxu0 %v8015_v46  ;;  %6594 = vmatpush1.bf16.msra.mxu1 %v8017_v47  ;;  %v675_v46 = vld [vmem:[%s11747_s1 + $0x1498] sm:$0xff] }
 0x17f   :  { %6431 = vmatprep.subr.bf16.mxu0 %v8032_v49  ;;  %6595 = vmatprep.subr.bf16.mxu1 %v8034_v50  ;;  %v683_v47 = vld [vmem:[%s11747_s1 + $0x14d8] sm:$0xff]  ;;  %v8127_v49 = vcombine.low %v658_v34, %v666_v35  ;;  %v8129_v50 = vcombine.low %v659_v36, %v667_v37  ;;  %v8224_v34 = vcombine.high %v754_v27, %v762_v29  ;;  %v770_v36 = vld [vmem:[%s11747_s1 + $0x1790] sm:$0xff] }
 0x180   :  { %v8146_v54 = vcombine.high %v675_v46, %v683_v47  ;;  %v778_v37 = vld [vmem:[%s11747_s1 + $0x17d0] sm:$0xff] }
 0x182   :  { %6432 = vmatpush1.bf16.msra.mxu0 %v8031_v57  ;;  %6596 = vmatpush1.bf16.msra.mxu1 %v8033_v60  ;;  %v691_v57 = vld [vmem:[%s11747_s1 + $0x1518] sm:$0xff] }
 0x183   :  { %6433 = vmatprep.subr.bf16.mxu0 %v8048_v61  ;;  %6597 = vmatprep.subr.bf16.mxu1 %v8050_v62  ;;  %v699_v60 = vld [vmem:[%s11747_s1 + $0x1558] sm:$0xff]  ;;  %v8143_v61 = vcombine.low %v674_v44, %v682_v45  ;;  %v8145_v62 = vcombine.low %v675_v46, %v683_v47  ;;  %v8240_v44 = vcombine.high %v770_v36, %v778_v37  ;;  %v786_v46 = vld [vmem:[%s11747_s1 + $0x1810] sm:$0xff] }
 0x184   :  { %v8162_v1 = vcombine.high %v691_v57, %v699_v60  ;;  %v794_v47 = vld [vmem:[%s11747_s1 + $0x1850] sm:$0xff] }
 0x186   :  { %6434 = vmatpush1.bf16.msra.mxu0 %v8047_v3  ;;  %6598 = vmatpush1.bf16.msra.mxu1 %v8049_v5  ;;  %v707_v3 = vld [vmem:[%s11747_s1 + $0x1598] sm:$0xff] }
 0x187   :  { %6435 = vmatprep.subr.bf16.mxu0 %v8064_v6  ;;  %6599 = vmatprep.subr.bf16.mxu1 %v8066_v7  ;;  %v715_v5 = vld [vmem:[%s11747_s1 + $0x15d8] sm:$0xff]  ;;  %v8159_v6 = vcombine.low %v690_v55, %v698_v56  ;;  %v8161_v7 = vcombine.low %v691_v57, %v699_v60  ;;  %v8256_v55 = vcombine.high %v786_v46, %v794_v47  ;;  %v802_v57 = vld [vmem:[%s11747_s1 + $0x1890] sm:$0xff] }
 0x188   :  { %v8178_v10 = vcombine.high %v707_v3, %v715_v5  ;;  %v810_v60 = vld [vmem:[%s11747_s1 + $0x18d0] sm:$0xff] }
 0x18a   :  { %6436 = vmatpush1.bf16.msra.mxu0 %v8063_v13  ;;  %6600 = vmatpush1.bf16.msra.mxu1 %v8065_v14  ;;  %v723_v13 = vld [vmem:[%s11747_s1 + $0x1618] sm:$0xff] }
 0x18b   :  { %6437 = vmatprep.subr.bf16.mxu0 %v8080_v15  ;;  %6601 = vmatprep.subr.bf16.mxu1 %v8082_v16  ;;  %v731_v14 = vld [vmem:[%s11747_s1 + $0x1658] sm:$0xff]  ;;  %v8175_v15 = vcombine.low %v706_v2, %v714_v28  ;;  %v8177_v16 = vcombine.low %v707_v3, %v715_v5  ;;  %v8272_v2 = vcombine.high %v802_v57, %v810_v60  ;;  %v818_v3 = vld [vmem:[%s11747_s1 + $0x1910] sm:$0xff] }
 0x18c   :  { %v8194_v18 = vcombine.high %v723_v13, %v731_v14  ;;  %v826_v5 = vld [vmem:[%s11747_s1 + $0x1950] sm:$0xff] }
 0x18e   :  { %6438 = vmatpush1.bf16.msra.mxu0 %v8079_v21  ;;  %6602 = vmatpush1.bf16.msra.mxu1 %v8081_v22  ;;  %v739_v21 = vld [vmem:[%s11747_s1 + $0x1698] sm:$0xff] }
 0x18f   :  { %6439 = vmatprep.subr.bf16.mxu0 %v8096_v24  ;;  %6603 = vmatprep.subr.bf16.mxu1 %v8098_v25  ;;  %v747_v22 = vld [vmem:[%s11747_s1 + $0x16d8] sm:$0xff]  ;;  %v8191_v24 = vcombine.low %v722_v11, %v730_v12  ;;  %v8193_v25 = vcombine.low %v723_v13, %v731_v14  ;;  %v8288_v11 = vcombine.high %v818_v3, %v826_v5  ;;  %v834_v13 = vld [vmem:[%s11747_s1 + $0x1990] sm:$0xff] }
 0x190   :  { %v8210_v59 = vcombine.high %v739_v21, %v747_v22  ;;  %v842_v14 = vld [vmem:[%s11747_s1 + $0x19d0] sm:$0xff] }
 0x192   :  { %6440 = vmatpush1.bf16.msra.mxu0 %v8095_v63  ;;  %6604 = vmatpush1.bf16.msra.mxu1 %v8097_v30  ;;  %v755_v63 = vld [vmem:[%s11747_s1 + $0x1718] sm:$0xff] }
 0x193   :  { %6441 = vmatprep.subr.bf16.mxu0 %v8112_v32  ;;  %6605 = vmatprep.subr.bf16.mxu1 %v8114_v33  ;;  %v763_v30 = vld [vmem:[%s11747_s1 + $0x1758] sm:$0xff]  ;;  %v8207_v32 = vcombine.low %v738_v19, %v746_v20  ;;  %v8209_v33 = vcombine.low %v739_v21, %v747_v22  ;;  %v8304_v19 = vcombine.high %v834_v13, %v842_v14  ;;  %v850_v21 = vld [vmem:[%s11747_s1 + $0x1a10] sm:$0xff] }
 0x194   :  { %v8226_v35 = vcombine.high %v755_v63, %v763_v30  ;;  %v858_v22 = vld [vmem:[%s11747_s1 + $0x1a50] sm:$0xff] }
 0x196   :  { %6442 = vmatpush1.bf16.msra.mxu0 %v8111_v39  ;;  %6606 = vmatpush1.bf16.msra.mxu1 %v8113_v40  ;;  %v771_v39 = vld [vmem:[%s11747_s1 + $0x1798] sm:$0xff] }
 0x197   :  { %6443 = vmatprep.subr.bf16.mxu0 %v8128_v41  ;;  %6607 = vmatprep.subr.bf16.mxu1 %v8130_v42  ;;  %v779_v40 = vld [vmem:[%s11747_s1 + $0x17d8] sm:$0xff]  ;;  %v8223_v41 = vcombine.low %v754_v27, %v762_v29  ;;  %v8225_v42 = vcombine.low %v755_v63, %v763_v30  ;;  %v8320_v27 = vcombine.high %v850_v21, %v858_v22  ;;  %v866_v63 = vld [vmem:[%s11747_s1 + $0x1a90] sm:$0xff] }
 0x198   :  { %v8242_v45 = vcombine.high %v771_v39, %v779_v40  ;;  %v874_v30 = vld [vmem:[%s11747_s1 + $0x1ad0] sm:$0xff] }
 0x19a   :  { %6444 = vmatpush1.bf16.msra.mxu0 %v8127_v49  ;;  %6608 = vmatpush1.bf16.msra.mxu1 %v8129_v50  ;;  %v787_v49 = vld [vmem:[%s11747_s1 + $0x1818] sm:$0xff] }
 0x19b   :  { %6445 = vmatprep.subr.bf16.mxu0 %v8144_v52  ;;  %6609 = vmatprep.subr.bf16.mxu1 %v8146_v54  ;;  %v795_v50 = vld [vmem:[%s11747_s1 + $0x1858] sm:$0xff]  ;;  %v8239_v52 = vcombine.low %v770_v36, %v778_v37  ;;  %v8241_v54 = vcombine.low %v771_v39, %v779_v40  ;;  %v992_v36 = vld [vmem:[%s11749_s2] sm:$0xff]  ;;  %v1006_v37 = vsub.s32 2, %v8677_v43  ;;  %v1002_v39 = vsub.s32 1, %v8677_v43 }
 0x19c   :  { %v8258_v56 = vcombine.high %v787_v49, %v795_v50 }
 0x19e   :  { %6446 = vmatpush1.bf16.msra.mxu0 %v8143_v61  ;;  %6610 = vmatpush1.bf16.msra.mxu1 %v8145_v62  ;;  %v803_v61 = vld [vmem:[%s11747_s1 + $0x1898] sm:$0xff] }
 0x19f   :  { %6447 = vmatprep.subr.bf16.mxu0 %v8160_v0  ;;  %6611 = vmatprep.subr.bf16.mxu1 %v8162_v1  ;;  %v811_v62 = vld [vmem:[%s11747_s1 + $0x18d8] sm:$0xff]  ;;  %v8255_v0 = vcombine.low %v786_v46, %v794_v47  ;;  %v8257_v1 = vcombine.low %v787_v49, %v795_v50  ;;  %v890_v46 = vld [vmem:[%s11747_s1 + $0x1b50] sm:$0xff] }
 0x1a0   :  { %v8274_v28 = vcombine.high %v803_v61, %v811_v62  ;;  %v883_v49 = vld [vmem:[%s11747_s1 + $0x1b18] sm:$0xff] }
 0x1a1   :  { %v891_v50 = vld [vmem:[%s11747_s1 + $0x1b58] sm:$0xff] }
 0x1a2   :  { %6448 = vmatpush1.bf16.msra.mxu0 %v8159_v6  ;;  %6612 = vmatpush1.bf16.msra.mxu1 %v8161_v7  ;;  %v819_v6 = vld [vmem:[%s11747_s1 + $0x1918] sm:$0xff] }
 0x1a3   :  { %6449 = vmatprep.subr.bf16.mxu0 %v8176_v8  ;;  %6613 = vmatprep.subr.bf16.mxu1 %v8178_v10  ;;  %v827_v7 = vld [vmem:[%s11747_s1 + $0x1958] sm:$0xff]  ;;  %v8271_v8 = vcombine.low %v802_v57, %v810_v60  ;;  %v8273_v10 = vcombine.low %v803_v61, %v811_v62  ;;  %v8354_v62 = vcombine.high %v883_v49, %v891_v50 }
 0x1a4   :  { %v8290_v12 = vcombine.high %v819_v6, %v827_v7 }
 0x1a6   :  { %6450 = vmatpush1.bf16.msra.mxu0 %v8175_v15  ;;  %6614 = vmatpush1.bf16.msra.mxu1 %v8177_v16  ;;  %v835_v15 = vld [vmem:[%s11747_s1 + $0x1998] sm:$0xff] }
 0x1a7   :  { %6451 = vmatprep.subr.bf16.mxu0 %v8192_v17  ;;  %6615 = vmatprep.subr.bf16.mxu1 %v8194_v18  ;;  %v843_v16 = vld [vmem:[%s11747_s1 + $0x19d8] sm:$0xff]  ;;  %v8287_v17 = vcombine.low %v818_v3, %v826_v5  ;;  %v8289_v18 = vcombine.low %v819_v6, %v827_v7 }
 0x1a8   :  { %v8306_v20 = vcombine.high %v835_v15, %v843_v16  ;;  %v899_v5 = vld [vmem:[%s11747_s1 + $0x1b98] sm:$0xff] }
 0x1a9   :  { %v907_v6 = vld [vmem:[%s11747_s1 + $0x1bd8] sm:$0xff] }
 0x1aa   :  { %6452 = vmatpush1.bf16.msra.mxu0 %v8191_v24  ;;  %6616 = vmatpush1.bf16.msra.mxu1 %v8193_v25  ;;  %v851_v24 = vld [vmem:[%s11747_s1 + $0x1a18] sm:$0xff] }
 0x1ab   :  { %6453 = vmatprep.subr.bf16.mxu0 %v8208_v26  ;;  %6617 = vmatprep.subr.bf16.mxu1 %v8210_v59  ;;  %v859_v25 = vld [vmem:[%s11747_s1 + $0x1a58] sm:$0xff]  ;;  %v8303_v26 = vcombine.low %v834_v13, %v842_v14  ;;  %v8305_v59 = vcombine.low %v835_v15, %v843_v16 }
 0x1ac   :  { %v8322_v29 = vcombine.high %v851_v24, %v859_v25  ;;  %v8321_v40 = vcombine.low %v851_v24, %v859_v25  ;;  %v914_v24 = vld [vmem:[%s11747_s1 + $0x1c10] sm:$0xff] }
 0x1ad   :  { %v922_v25 = vld [vmem:[%s11747_s1 + $0x1c50] sm:$0xff] }
 0x1ae   :  { %6454 = vmatpush1.bf16.msra.mxu0 %v8207_v32  ;;  %6618 = vmatpush1.bf16.msra.mxu1 %v8209_v33  ;;  %v998_v32 = vsub.s32 0, %v8677_v43  ;;  %v867_v33 = vld [vmem:[%s11747_s1 + $0x1a98] sm:$0xff] }
 0x1af   :  { %6455 = vmatprep.subr.bf16.mxu0 %v8224_v34  ;;  %6619 = vmatprep.subr.bf16.mxu1 %v8226_v35  ;;  %v875_v34 = vld [vmem:[%s11747_s1 + $0x1ad8] sm:$0xff]  ;;  %v8319_v35 = vcombine.low %v850_v21, %v858_v22  ;;  %v8370_v22 = vcombine.high %v899_v5, %v907_v6 }
 0x1b0   :  { %v999_v47 = vrot.slane %v992_v36, %v998_v32  ;;  %v8337_v57 = vcombine.low %v867_v33, %v875_v34 }
 0x1b2   :  { %6456 = vmatpush1.bf16.msra.mxu0 %v8223_v41  ;;  %6620 = vmatpush1.bf16.msra.mxu1 %v8225_v42  ;;  %v1010_v41 = vsub.s32 3, %v8677_v43  ;;  %v8336_v42 = vcombine.high %v866_v63, %v874_v30 }
 0x1b3   :  { %6457 = vmatprep.subr.bf16.mxu0 %v8240_v44  ;;  %6621 = vmatprep.subr.bf16.mxu1 %v8242_v45  ;;  %v8338_v44 = vcombine.high %v867_v33, %v875_v34  ;;  %v882_v45 = vld [vmem:[%s11747_s1 + $0x1b10] sm:$0xff]  ;;  %v8369_v33 = vcombine.low %v899_v5, %v907_v6  ;;  %v8384_v34 = vcombine.high %v914_v24, %v922_v25  ;;  %v971_v5 = vld [vmem:[%s11747_s1 + $0x1dd8] sm:$0xff] }
 0x1b4   :  { %v8352_v60 = vcombine.high %v882_v45, %v890_v46 }
 0x1b6   :  { %6458 = vmatpush1.bf16.msra.mxu0 %v8239_v52  ;;  %6622 = vmatpush1.bf16.msra.mxu1 %v8241_v54  ;;  %v1007_v52 = vrot.slane %v992_v36, %v1006_v37  ;;  %v1003_v54 = vrot.slane %v992_v36, %v1002_v39 }
 0x1b7   :  { %6468 = vmatprep.subr.bf16.mxu0 %v8256_v55  ;;  %6632 = vmatprep.subr.bf16.mxu1 %v8258_v56  ;;  %v8335_v55 = vcombine.low %v866_v63, %v874_v30  ;;  %v1011_v56 = vrot.slane %v992_v36, %v1010_v41 }
 0x1b9   :  { %6460 = vmatmul.mubr.bf16.vlgmr.msra.gmra.mrb[4].mxu0 %v9258_v58  ;;  %6624 = vmatmul.mubr.bf16.vlgmr.msra.gmra.mrb[4].mxu1 %v9258_v58 }
 0x1ba   :  { %6469 = vmatpush1.bf16.msra.mxu0 %v8255_v0  ;;  %6633 = vmatpush1.bf16.msra.mxu1 %v8257_v1  ;;  %v898_v0 = vld [vmem:[%s11747_s1 + $0x1b90] sm:$0xff] }
 0x1bb   :  { %6470 = vmatprep.subr.bf16.mxu0 %v8272_v2  ;;  %6634 = vmatprep.subr.bf16.mxu1 %v8274_v28  ;;  %v906_v1 = vld [vmem:[%s11747_s1 + $0x1bd0] sm:$0xff] }
 0x1bc   :  { %8461 = vmatprep.mubr.msk.bf16.mxu0 %vm6013_vm0, %v9274_v4  ;;  %8462 = vmatprep.mubr.msk.bf16.mxu1 %vm6013_vm0, %v9274_v4  ;;  %v8367_v63 = vcombine.low %v898_v0, %v906_v1 }
 0x1be   :  { %6471 = vmatpush1.bf16.msra.mxu0 %v8271_v8  ;;  %6635 = vmatpush1.bf16.msra.mxu1 %v8273_v10 }
 0x1bf   :  { %6472 = vmatprep.subr.bf16.mxu0 %v8288_v11  ;;  %6636 = vmatprep.subr.bf16.mxu1 %v8290_v12  ;;  %v8351_v12 = vcombine.low %v882_v45, %v890_v46  ;;  %v931_v45 = vld [vmem:[%s11747_s1 + $0x1c98] sm:$0xff] }
 0x1c0   :  { %v939_v46 = vld [vmem:[%s11747_s1 + $0x1cd8] sm:$0xff] }
 0x1c2   :  { %6473 = vmatpush1.bf16.msra.mxu0 %v8287_v17  ;;  %6637 = vmatpush1.bf16.msra.mxu1 %v8289_v18  ;;  %v8353_v17 = vcombine.low %v883_v49, %v891_v50  ;;  %v8368_v18 = vcombine.high %v898_v0, %v906_v1 }
 0x1c3   :  { %6474 = vmatprep.subr.bf16.mxu0 %v8304_v19  ;;  %6638 = vmatprep.subr.bf16.mxu1 %v8306_v20 }
 0x1c6   :  { %6475 = vmatpush1.bf16.msra.mxu0 %v8303_v26  ;;  %6639 = vmatpush1.bf16.msra.mxu1 %v8305_v59  ;;  %v915_v59 = vld [vmem:[%s11747_s1 + $0x1c18] sm:$0xff] }
 0x1c7   :  { %6476 = vmatprep.subr.bf16.mxu0 %v8320_v27  ;;  %6640 = vmatprep.subr.bf16.mxu1 %v8322_v29  ;;  %v923_v27 = vld [vmem:[%s11747_s1 + $0x1c58] sm:$0xff] }
 0x1c8   :  { %v8386_v36 = vcombine.high %v915_v59, %v923_v27  ;;  %v8385_v50 = vcombine.low %v915_v59, %v923_v27  ;;  %v36_v27 = vld [vmem:[%s11747_s1 + $0xa0] sm:$0xff] }
 0x1ca   :  { %6477 = vmatpush1.bf16.msra.mxu0 %v8319_v35  ;;  %6641 = vmatpush1.bf16.msra.mxu1 %v8321_v40  ;;  %v930_v40 = vld [vmem:[%s11747_s1 + $0x1c90] sm:$0xff] }
 0x1cb   :  { %6478 = vmatprep.subr.bf16.mxu0 %v8336_v42  ;;  %6642 = vmatprep.subr.bf16.mxu1 %v8338_v44  ;;  %v938_v42 = vld [vmem:[%s11747_s1 + $0x1cd0] sm:$0xff] }
 0x1cc   :  { %v6174_v61 = vpop.f32.mrb[0].mxu0  ;;  %v6338_v28 = vpop.f32.mrb[0].mxu1 }
 0x1cd   :  { %v8475_v2 = vadd.f32 %v6174_v61, %v999_v47  ;;  %v6176_v3 = vpop.f32.mrb[1].mxu0  ;;  %v8477_v7 = vadd.f32 %v6338_v28, %v1007_v52  ;;  %v6340_v10 = vpop.f32.mrb[1].mxu1  ;;  %v8383_v47 = vcombine.low %v914_v24, %v922_v25  ;;  %v8400_v52 = vcombine.high %v930_v40, %v938_v42  ;;  %v970_v28 = vld [vmem:[%s11747_s1 + $0x1dd0] sm:$0xff] }
 0x1ce   :  { %v8476_v8 = vadd.f32 %v6176_v3, %v1003_v54  ;;  %v6178_v11 = vpop.f32.mrb[2].mxu0  ;;  %6479 = vmatpush1.bf16.msra.mxu0 %v8335_v55  ;;  %v8478_v14 = vadd.f32 %v6340_v10, %v1011_v56  ;;  %v6342_v15 = vpop.f32.mrb[2].mxu1  ;;  %6643 = vmatpush1.bf16.msra.mxu1 %v8337_v57  ;;  %v8402_v54 = vcombine.high %v931_v45, %v939_v46  ;;  %v946_v55 = vld [vmem:[%s11747_s1 + $0x1d10] sm:$0xff]  ;;  %v947_v57 = vld [vmem:[%s11747_s1 + $0x1d18] sm:$0xff] }
 0x1cf   :  { %v7329_v13 = vmax.f32 %v8475_v2, 0.0  ;;  %v6179_v16 = vpop.f32.mrb[3].mxu0  ;;  %6480 = vmatprep.subr.bf16.mxu0 %v8352_v60  ;;  %v7331_v19 = vmax.f32 %v8477_v7, 0.0  ;;  %v6343_v21 = vpop.f32.mrb[3].mxu1  ;;  %6644 = vmatprep.subr.bf16.mxu1 %v8354_v62  ;;  %v954_v56 = vld [vmem:[%s11747_s1 + $0x1d50] sm:$0xff]  ;;  %v955_v60 = vld [vmem:[%s11747_s1 + $0x1d58] sm:$0xff]  ;;  %v8399_v61 = vcombine.low %v930_v40, %v938_v42  ;;  %v8401_v62 = vcombine.low %v931_v45, %v939_v46 }
 0x1d0   :  { %v7330_v20 = vmax.f32 %v8476_v8, 0.0  ;;  %v7332_v26 = vmax.f32 %v8478_v14, 0.0  ;;  %v8416_v0 = vcombine.high %v946_v55, %v954_v56  ;;  %v8418_v1 = vcombine.high %v947_v57, %v955_v60  ;;  %v962_v2 = vld [vmem:[%s11747_s1 + $0x1d90] sm:$0xff]  ;;  %v963_v3 = vld [vmem:[%s11747_s1 + $0x1d98] sm:$0xff]  ;;  %v21_v21 = vld [vmem:[%s11747_s1 + $0x28] sm:$0xff] }
 0x1d1   :  { %v8415_v6 = vcombine.low %v946_v55, %v954_v56  ;;  %v8417_v7 = vcombine.low %v947_v57, %v955_v60  ;;  %v8432_v8 = vcombine.high %v962_v2, %v970_v28  ;;  %v8434_v10 = vcombine.high %v963_v3, %v971_v5  ;;  %v978_v11 = vld [vmem:[%s11747_s1 + $0x1e10] sm:$0xff]  ;;  %v987_v14 = vld [vmem:[%s11747_s1 + $0x1e58] sm:$0xff]  ;;  %v52_v40 = vld [vmem:[%s11747_s1 + $0x120] sm:$0xff] }
 0x1d2   :  { %v8467_v29 = vpack.c.bf16 %v7330_v20, %v7329_v13  ;;  %6481 = vmatpush1.bf16.msra.mxu0 %v8351_v12  ;;  %v8468_v30 = vpack.c.bf16 %v7332_v26, %v7331_v19  ;;  %6645 = vmatpush1.bf16.msra.mxu1 %v8353_v17  ;;  %v986_v12 = vld [vmem:[%s11747_s1 + $0x1e50] sm:$0xff]  ;;  %v979_v13 = vld [vmem:[%s11747_s1 + $0x1e18] sm:$0xff]  ;;  %v8431_v15 = vcombine.low %v962_v2, %v970_v28  ;;  %v20_v19 = vld [vmem:[%s11747_s1 + $0x20] sm:$0xff] }
 0x1d3   :  { %6482 = vmatprep.subr.bf16.mxu0 %v8368_v18  ;;  %6646 = vmatprep.subr.bf16.mxu1 %v8370_v22  ;;  %v8433_v16 = vcombine.low %v963_v3, %v971_v5  ;;  %v8448_v17 = vcombine.high %v978_v11, %v986_v12  ;;  %v8450_v18 = vcombine.high %v979_v13, %v987_v14  ;;  %v28_v20 = vld [vmem:[%s11747_s1 + $0x60] sm:$0xff]  ;;  %v29_v22 = vld [vmem:[%s11747_s1 + $0x68] sm:$0xff] }
 0x1d4   :  { %v7387_v35 = vrot.slane %v8467_v29, %v8692_v53  ;;  %v7394_v44 = vrot.slane %v8468_v30, %v8692_v53  ;;  %v8447_v24 = vcombine.low %v978_v11, %v986_v12  ;;  %v8449_v25 = vcombine.low %v979_v13, %v987_v14  ;;  %v44_v29 = vld [vmem:[%s11747_s1 + $0xe0] sm:$0xff]  ;;  %v45_v30 = vld [vmem:[%s11747_s1 + $0xe8] sm:$0xff] }
 0x1d5   :  { %v7492_v26 = vcombine.high %v20_v19, %v28_v20  ;;  %v7494_v59 = vcombine.high %v21_v21, %v29_v22  ;;  %v60_v42 = vld [vmem:[%s11747_s1 + $0x160] sm:$0xff]  ;;  %v61_v45 = vld [vmem:[%s11747_s1 + $0x168] sm:$0xff]  ;;  %v7507_v46 = vcombine.low %v36_v27, %v44_v29 }
 0x1d6   :  { %6483 = vmatpush1.bf16.msra.mxu0 %v8367_v63  ;;  %v10143_v49 = vcombine.low %v7387_v35, %v7394_v44  ;;  %6647 = vmatpush1.bf16.msra.mxu1 %v8369_v33  ;;  %v37_v63 = vld [vmem:[%s11747_s1 + $0xa8] sm:$0xff]  ;;  %v7491_v33 = vcombine.low %v20_v19, %v28_v20  ;;  %v7508_v35 = vcombine.high %v36_v27, %v44_v29  ;;  %v76_v55 = vld [vmem:[%s11747_s1 + $0x1e0] sm:$0xff] }
 0x1d7   :  { %6484 = vmatprep.subr.bf16.mxu0 %v8384_v34  ;;  %6648 = vmatprep.subr.bf16.mxu1 %v8386_v36  ;;  %v7493_v34 = vcombine.low %v21_v21, %v29_v22  ;;  %v7510_v36 = vcombine.high %v37_v63, %v45_v30  ;;  %v53_v44 = vld [vmem:[%s11747_s1 + $0x128] sm:$0xff]  ;;  %v7523_v60 = vcombine.low %v52_v40, %v60_v42  ;;  %v92_v2 = vld [vmem:[%s11747_s1 + $0x260] sm:$0xff] }
 0x1d8   :  { %v69_v56 = vld [vmem:[%s11747_s1 + $0x1a8] sm:$0xff]  ;;  %v108_v11 = vld [vmem:[%s11747_s1 + $0x2e0] sm:$0xff] }
 0x1d9   :  { %v77_v57 = vld [vmem:[%s11747_s1 + $0x1e8] sm:$0xff]  ;;  %v124_v19 = vld [vmem:[%s11747_s1 + $0x360] sm:$0xff] }
 0x1da   :  { %6485 = vmatpush1.bf16.msra.mxu0 %v8383_v47  ;;  %6649 = vmatpush1.bf16.msra.mxu1 %v8385_v50  ;;  %v7509_v47 = vcombine.low %v37_v63, %v45_v30  ;;  %v7524_v50 = vcombine.high %v52_v40, %v60_v42  ;;  %v85_v28 = vld [vmem:[%s11747_s1 + $0x228] sm:$0xff]  ;;  %v140_v27 = vld [vmem:[%s11747_s1 + $0x3e0] sm:$0xff] }
 0x1db   :  { %6486 = vmatprep.subr.bf16.mxu0 %v8400_v52  ;;  %6650 = vmatprep.subr.bf16.mxu1 %v8402_v54  ;;  %v7526_v52 = vcombine.high %v53_v44, %v61_v45  ;;  %v68_v54 = vld [vmem:[%s11747_s1 + $0x1a0] sm:$0xff]  ;;  %v93_v3 = vld [vmem:[%s11747_s1 + $0x268] sm:$0xff] }
 0x1dc   :  { %v7539_v5 = vcombine.low %v68_v54, %v76_v55  ;;  %v101_v12 = vld [vmem:[%s11747_s1 + $0x2a8] sm:$0xff]  ;;  %v156_v40 = vld [vmem:[%s11747_s1 + $0x460] sm:$0xff] }
 0x1dd   :  { %v109_v13 = vld [vmem:[%s11747_s1 + $0x2e8] sm:$0xff] }
 0x1de   :  { %6487 = vmatpush1.bf16.msra.mxu0 %v8399_v61  ;;  %6651 = vmatpush1.bf16.msra.mxu1 %v8401_v62  ;;  %v7525_v61 = vcombine.low %v53_v44, %v61_v45  ;;  %v7540_v62 = vcombine.high %v68_v54, %v76_v55  ;;  %v117_v20 = vld [vmem:[%s11747_s1 + $0x328] sm:$0xff]  ;;  %v172_v54 = vld [vmem:[%s11747_s1 + $0x4e0] sm:$0xff] }
 0x1df   :  { %6488 = vmatprep.subr.bf16.mxu0 %v8416_v0  ;;  %6652 = vmatprep.subr.bf16.mxu1 %v8418_v1  ;;  %v7542_v0 = vcombine.high %v69_v56, %v77_v57  ;;  %v84_v1 = vld [vmem:[%s11747_s1 + $0x220] sm:$0xff]  ;;  %v125_v21 = vld [vmem:[%s11747_s1 + $0x368] sm:$0xff] }
 0x1e0   :  { %v7555_v14 = vcombine.low %v84_v1, %v92_v2  ;;  %v133_v29 = vld [vmem:[%s11747_s1 + $0x3a8] sm:$0xff] }
 0x1e1   :  { %v141_v63 = vld [vmem:[%s11747_s1 + $0x3e8] sm:$0xff] }
 0x1e2   :  { %6489 = vmatpush1.bf16.msra.mxu0 %v8415_v6  ;;  %6653 = vmatpush1.bf16.msra.mxu1 %v8417_v7  ;;  %v7541_v6 = vcombine.low %v69_v56, %v77_v57  ;;  %v7556_v7 = vcombine.high %v84_v1, %v92_v2  ;;  %v149_v42 = vld [vmem:[%s11747_s1 + $0x428] sm:$0xff]  ;;  %v188_v1 = vld [vmem:[%s11747_s1 + $0x560] sm:$0xff] }
 0x1e3   :  { %6490 = vmatprep.subr.bf16.mxu0 %v8432_v8  ;;  %6654 = vmatprep.subr.bf16.mxu1 %v8434_v10  ;;  %v7558_v8 = vcombine.high %v85_v28, %v93_v3  ;;  %v100_v10 = vld [vmem:[%s11747_s1 + $0x2a0] sm:$0xff]  ;;  %v157_v44 = vld [vmem:[%s11747_s1 + $0x468] sm:$0xff] }
 0x1e4   :  { %v7571_v22 = vcombine.low %v100_v10, %v108_v11  ;;  %v165_v55 = vld [vmem:[%s11747_s1 + $0x4a8] sm:$0xff] }
 0x1e5   :  { %v173_v56 = vld [vmem:[%s11747_s1 + $0x4e8] sm:$0xff] }
 0x1e6   :  { %6491 = vmatpush1.bf16.msra.mxu0 %v8431_v15  ;;  %6655 = vmatpush1.bf16.msra.mxu1 %v8433_v16  ;;  %v7557_v15 = vcombine.low %v85_v28, %v93_v3  ;;  %v7572_v16 = vcombine.high %v100_v10, %v108_v11  ;;  %v181_v2 = vld [vmem:[%s11747_s1 + $0x528] sm:$0xff]  ;;  %v204_v10 = vld [vmem:[%s11747_s1 + $0x5e0] sm:$0xff] }
 0x1e7   :  { %6492 = vmatprep.subr.bf16.mxu0 %v8448_v17  ;;  %6656 = vmatprep.subr.bf16.mxu1 %v8450_v18  ;;  %v7574_v17 = vcombine.high %v101_v12, %v109_v13  ;;  %v116_v18 = vld [vmem:[%s11747_s1 + $0x320] sm:$0xff]  ;;  %v189_v28 = vld [vmem:[%s11747_s1 + $0x568] sm:$0xff] }
 0x1e8   :  { %v7587_v30 = vcombine.low %v116_v18, %v124_v19  ;;  %v197_v11 = vld [vmem:[%s11747_s1 + $0x5a8] sm:$0xff] }
 0x1ea   :  { %6493 = vmatpush1.bf16.msra.mxu0 %v8447_v24  ;;  %6657 = vmatpush1.bf16.msra.mxu1 %v8449_v25  ;;  %v7573_v24 = vcombine.low %v101_v12, %v109_v13  ;;  %v7588_v25 = vcombine.high %v116_v18, %v124_v19  ;;  %v205_v12 = vld [vmem:[%s11747_s1 + $0x5e8] sm:$0xff]  ;;  %v220_v18 = vld [vmem:[%s11747_s1 + $0x660] sm:$0xff] }
 0x1eb   :  { %6673 = vmatprep.subr.bf16.mxu0 %v7492_v26  ;;  %6837 = vmatprep.subr.bf16.mxu1 %v7494_v59  ;;  %v7590_v26 = vcombine.high %v117_v20, %v125_v21  ;;  %v132_v59 = vld [vmem:[%s11747_s1 + $0x3a0] sm:$0xff]  ;;  %v213_v19 = vld [vmem:[%s11747_s1 + $0x628] sm:$0xff] }
 0x1ec   :  { %v7603_v45 = vcombine.low %v132_v59, %v140_v27 }
 0x1ed   :  { %6501 = vmatmul.mubr.bf16.vlgmr.msra.gmra.mrb[4].mxu0 %v9428_v51  ;;  %6665 = vmatmul.mubr.bf16.vlgmr.msra.gmra.mrb[4].mxu1 %v9428_v51 }
 0x1ee   :  { %6674 = vmatpush1.bf16.msra.mxu0 %v7491_v33  ;;  %6838 = vmatpush1.bf16.msra.mxu1 %v7493_v34  ;;  %v7589_v33 = vcombine.low %v117_v20, %v125_v21  ;;  %v7604_v34 = vcombine.high %v132_v59, %v140_v27  ;;  %v221_v20 = vld [vmem:[%s11747_s1 + $0x668] sm:$0xff]  ;;  %v236_v59 = vld [vmem:[%s11747_s1 + $0x6e0] sm:$0xff] }
 0x1ef   :  { %6675 = vmatprep.subr.bf16.mxu0 %v7508_v35  ;;  %6839 = vmatprep.subr.bf16.mxu1 %v7510_v36  ;;  %v7606_v35 = vcombine.high %v133_v29, %v141_v63  ;;  %v148_v36 = vld [vmem:[%s11747_s1 + $0x420] sm:$0xff]  ;;  %v229_v27 = vld [vmem:[%s11747_s1 + $0x6a8] sm:$0xff] }
 0x1f0   :  { %6705 = vmatprep.mubr.bf16.mxu0 %v8730_v9  ;;  %6869 = vmatprep.mubr.bf16.mxu1 %v8730_v9  ;;  %v7619_v57 = vcombine.low %v148_v36, %v156_v40 }
 0x1f2   :  { %6676 = vmatpush1.bf16.msra.mxu0 %v7507_v46  ;;  %6840 = vmatpush1.bf16.msra.mxu1 %v7509_v47  ;;  %v7605_v46 = vcombine.low %v133_v29, %v141_v63  ;;  %v7620_v47 = vcombine.high %v148_v36, %v156_v40  ;;  %v237_v29 = vld [vmem:[%s11747_s1 + $0x6e8] sm:$0xff]  ;;  %v252_v36 = vld [vmem:[%s11747_s1 + $0x760] sm:$0xff] }
 0x1f3   :  { %6677 = vmatprep.subr.bf16.mxu0 %v7524_v50  ;;  %6841 = vmatprep.subr.bf16.mxu1 %v7526_v52  ;;  %v7622_v50 = vcombine.high %v149_v42, %v157_v44  ;;  %v164_v52 = vld [vmem:[%s11747_s1 + $0x4a0] sm:$0xff]  ;;  %v245_v40 = vld [vmem:[%s11747_s1 + $0x728] sm:$0xff] }
 0x1f4   :  { %v7635_v3 = vcombine.low %v164_v52, %v172_v54 }
 0x1f6   :  { %6678 = vmatpush1.bf16.msra.mxu0 %v7523_v60  ;;  %6842 = vmatpush1.bf16.msra.mxu1 %v7525_v61  ;;  %v7621_v60 = vcombine.low %v149_v42, %v157_v44  ;;  %v7636_v61 = vcombine.high %v164_v52, %v172_v54  ;;  %v253_v42 = vld [vmem:[%s11747_s1 + $0x768] sm:$0xff]  ;;  %v268_v52 = vld [vmem:[%s11747_s1 + $0x7e0] sm:$0xff] }
 0x1f7   :  { %6679 = vmatprep.subr.bf16.mxu0 %v7540_v62  ;;  %6843 = vmatprep.subr.bf16.mxu1 %v7542_v0  ;;  %v7638_v62 = vcombine.high %v165_v55, %v173_v56  ;;  %v180_v0 = vld [vmem:[%s11747_s1 + $0x520] sm:$0xff]  ;;  %v261_v54 = vld [vmem:[%s11747_s1 + $0x7a8] sm:$0xff] }
 0x1f8   :  { %v7651_v13 = vcombine.low %v180_v0, %v188_v1 }
 0x1fa   :  { %6680 = vmatpush1.bf16.msra.mxu0 %v7539_v5  ;;  %6844 = vmatpush1.bf16.msra.mxu1 %v7541_v6  ;;  %v7637_v5 = vcombine.low %v165_v55, %v173_v56  ;;  %v7652_v6 = vcombine.high %v180_v0, %v188_v1  ;;  %v269_v55 = vld [vmem:[%s11747_s1 + $0x7e8] sm:$0xff]  ;;  %v284_v0 = vld [vmem:[%s11747_s1 + $0x860] sm:$0xff] }
 0x1fb   :  { %6681 = vmatprep.subr.bf16.mxu0 %v7556_v7  ;;  %6845 = vmatprep.subr.bf16.mxu1 %v7558_v8  ;;  %v7654_v7 = vcombine.high %v181_v2, %v189_v28  ;;  %v196_v8 = vld [vmem:[%s11747_s1 + $0x5a0] sm:$0xff]  ;;  %v277_v1 = vld [vmem:[%s11747_s1 + $0x828] sm:$0xff] }
 0x1fc   :  { %v7667_v21 = vcombine.low %v196_v8, %v204_v10 }
 0x1fe   :  { %6682 = vmatpush1.bf16.msra.mxu0 %v7555_v14  ;;  %6846 = vmatpush1.bf16.msra.mxu1 %v7557_v15  ;;  %v7653_v14 = vcombine.low %v181_v2, %v189_v28  ;;  %v7668_v15 = vcombine.high %v196_v8, %v204_v10  ;;  %v285_v2 = vld [vmem:[%s11747_s1 + $0x868] sm:$0xff]  ;;  %v300_v8 = vld [vmem:[%s11747_s1 + $0x8e0] sm:$0xff] }
 0x1ff   :  { %6683 = vmatprep.subr.bf16.mxu0 %v7572_v16  ;;  %6847 = vmatprep.subr.bf16.mxu1 %v7574_v17  ;;  %v7670_v16 = vcombine.high %v197_v11, %v205_v12  ;;  %v212_v17 = vld [vmem:[%s11747_s1 + $0x620] sm:$0xff]  ;;  %v293_v10 = vld [vmem:[%s11747_s1 + $0x8a8] sm:$0xff] }
 0x200   :  { %v7683_v63 = vcombine.low %v212_v17, %v220_v18 }
 0x202   :  { %6684 = vmatpush1.bf16.msra.mxu0 %v7571_v22  ;;  %6848 = vmatpush1.bf16.msra.mxu1 %v7573_v24  ;;  %v7669_v22 = vcombine.low %v197_v11, %v205_v12  ;;  %v7684_v24 = vcombine.high %v212_v17, %v220_v18  ;;  %v301_v11 = vld [vmem:[%s11747_s1 + $0x8e8] sm:$0xff]  ;;  %v316_v17 = vld [vmem:[%s11747_s1 + $0x960] sm:$0xff] }
 0x203   :  { %6685 = vmatprep.subr.bf16.mxu0 %v7588_v25  ;;  %6849 = vmatprep.subr.bf16.mxu1 %v7590_v26  ;;  %v7686_v25 = vcombine.high %v213_v19, %v221_v20  ;;  %v228_v26 = vld [vmem:[%s11747_s1 + $0x6a0] sm:$0xff]  ;;  %v309_v18 = vld [vmem:[%s11747_s1 + $0x928] sm:$0xff] }
 0x204   :  { %v7699_v44 = vcombine.low %v228_v26, %v236_v59 }
 0x206   :  { %6686 = vmatpush1.bf16.msra.mxu0 %v7587_v30  ;;  %6850 = vmatpush1.bf16.msra.mxu1 %v7589_v33  ;;  %v7685_v30 = vcombine.low %v213_v19, %v221_v20  ;;  %v7700_v33 = vcombine.high %v228_v26, %v236_v59  ;;  %v317_v19 = vld [vmem:[%s11747_s1 + $0x968] sm:$0xff]  ;;  %v332_v26 = vld [vmem:[%s11747_s1 + $0x9e0] sm:$0xff] }
 0x207   :  { %6687 = vmatprep.subr.bf16.mxu0 %v7604_v34  ;;  %6851 = vmatprep.subr.bf16.mxu1 %v7606_v35  ;;  %v7702_v34 = vcombine.high %v229_v27, %v237_v29  ;;  %v244_v35 = vld [vmem:[%s11747_s1 + $0x720] sm:$0xff]  ;;  %v325_v59 = vld [vmem:[%s11747_s1 + $0x9a8] sm:$0xff] }
 0x208   :  { %v7715_v56 = vcombine.low %v244_v35, %v252_v36 }
 0x20a   :  { %6688 = vmatpush1.bf16.msra.mxu0 %v7603_v45  ;;  %6852 = vmatpush1.bf16.msra.mxu1 %v7605_v46  ;;  %v7701_v45 = vcombine.low %v229_v27, %v237_v29  ;;  %v7716_v46 = vcombine.high %v244_v35, %v252_v36  ;;  %v333_v27 = vld [vmem:[%s11747_s1 + $0x9e8] sm:$0xff]  ;;  %v348_v35 = vld [vmem:[%s11747_s1 + $0xa60] sm:$0xff] }
 0x20b   :  { %6689 = vmatprep.subr.bf16.mxu0 %v7620_v47  ;;  %6853 = vmatprep.subr.bf16.mxu1 %v7622_v50  ;;  %v7718_v47 = vcombine.high %v245_v40, %v253_v42  ;;  %v260_v50 = vld [vmem:[%s11747_s1 + $0x7a0] sm:$0xff]  ;;  %v341_v36 = vld [vmem:[%s11747_s1 + $0xa28] sm:$0xff] }
 0x20c   :  { %v7731_v28 = vcombine.low %v260_v50, %v268_v52 }
 0x20e   :  { %6690 = vmatpush1.bf16.msra.mxu0 %v7619_v57  ;;  %6854 = vmatpush1.bf16.msra.mxu1 %v7621_v60  ;;  %v7717_v57 = vcombine.low %v245_v40, %v253_v42  ;;  %v7732_v60 = vcombine.high %v260_v50, %v268_v52  ;;  %v349_v40 = vld [vmem:[%s11747_s1 + $0xa68] sm:$0xff]  ;;  %v364_v50 = vld [vmem:[%s11747_s1 + $0xae0] sm:$0xff] }
 0x20f   :  { %6691 = vmatprep.subr.bf16.mxu0 %v7636_v61  ;;  %6855 = vmatprep.subr.bf16.mxu1 %v7638_v62  ;;  %v7734_v61 = vcombine.high %v261_v54, %v269_v55  ;;  %v276_v62 = vld [vmem:[%s11747_s1 + $0x820] sm:$0xff]  ;;  %v357_v52 = vld [vmem:[%s11747_s1 + $0xaa8] sm:$0xff] }
 0x210   :  { %v7747_v12 = vcombine.low %v276_v62, %v284_v0 }
 0x212   :  { %6692 = vmatpush1.bf16.msra.mxu0 %v7635_v3  ;;  %6856 = vmatpush1.bf16.msra.mxu1 %v7637_v5  ;;  %v7733_v3 = vcombine.low %v261_v54, %v269_v55  ;;  %v7748_v5 = vcombine.high %v276_v62, %v284_v0  ;;  %v365_v54 = vld [vmem:[%s11747_s1 + $0xae8] sm:$0xff]  ;;  %v380_v62 = vld [vmem:[%s11747_s1 + $0xb60] sm:$0xff] }
 0x213   :  { %6693 = vmatprep.subr.bf16.mxu0 %v7652_v6  ;;  %6857 = vmatprep.subr.bf16.mxu1 %v7654_v7  ;;  %v7750_v6 = vcombine.high %v277_v1, %v285_v2  ;;  %v292_v7 = vld [vmem:[%s11747_s1 + $0x8a0] sm:$0xff]  ;;  %v373_v0 = vld [vmem:[%s11747_s1 + $0xb28] sm:$0xff] }
 0x214   :  { %v7763_v20 = vcombine.low %v292_v7, %v300_v8 }
 0x216   :  { %6694 = vmatpush1.bf16.msra.mxu0 %v7651_v13  ;;  %6858 = vmatpush1.bf16.msra.mxu1 %v7653_v14  ;;  %v7749_v13 = vcombine.low %v277_v1, %v285_v2  ;;  %v7764_v14 = vcombine.high %v292_v7, %v300_v8  ;;  %v381_v1 = vld [vmem:[%s11747_s1 + $0xb68] sm:$0xff]  ;;  %v396_v7 = vld [vmem:[%s11747_s1 + $0xbe0] sm:$0xff] }
 0x217   :  { %6695 = vmatprep.subr.bf16.mxu0 %v7668_v15  ;;  %6859 = vmatprep.subr.bf16.mxu1 %v7670_v16  ;;  %v7766_v15 = vcombine.high %v293_v10, %v301_v11  ;;  %v308_v16 = vld [vmem:[%s11747_s1 + $0x920] sm:$0xff]  ;;  %v389_v8 = vld [vmem:[%s11747_s1 + $0xba8] sm:$0xff] }
 0x218   :  { %v7779_v29 = vcombine.low %v308_v16, %v316_v17 }
 0x21a   :  { %6696 = vmatpush1.bf16.msra.mxu0 %v7667_v21  ;;  %6860 = vmatpush1.bf16.msra.mxu1 %v7669_v22  ;;  %v7765_v21 = vcombine.low %v293_v10, %v301_v11  ;;  %v7780_v22 = vcombine.high %v308_v16, %v316_v17  ;;  %v397_v10 = vld [vmem:[%s11747_s1 + $0xbe8] sm:$0xff]  ;;  %v412_v16 = vld [vmem:[%s11747_s1 + $0xc60] sm:$0xff] }
 0x21b   :  { %6697 = vmatprep.subr.bf16.mxu0 %v7684_v24  ;;  %6861 = vmatprep.subr.bf16.mxu1 %v7686_v25  ;;  %v7782_v24 = vcombine.high %v309_v18, %v317_v19  ;;  %v324_v25 = vld [vmem:[%s11747_s1 + $0x9a0] sm:$0xff]  ;;  %v405_v17 = vld [vmem:[%s11747_s1 + $0xc28] sm:$0xff] }
 0x21c   :  { %v7795_v42 = vcombine.low %v324_v25, %v332_v26 }
 0x21e   :  { %6698 = vmatpush1.bf16.msra.mxu0 %v7683_v63  ;;  %6862 = vmatpush1.bf16.msra.mxu1 %v7685_v30  ;;  %v7781_v63 = vcombine.low %v309_v18, %v317_v19  ;;  %v7796_v30 = vcombine.high %v324_v25, %v332_v26  ;;  %v413_v18 = vld [vmem:[%s11747_s1 + $0xc68] sm:$0xff]  ;;  %v428_v25 = vld [vmem:[%s11747_s1 + $0xce0] sm:$0xff] }
 0x21f   :  { %6699 = vmatprep.subr.bf16.mxu0 %v7700_v33  ;;  %6863 = vmatprep.subr.bf16.mxu1 %v7702_v34  ;;  %v7798_v33 = vcombine.high %v325_v59, %v333_v27  ;;  %v340_v34 = vld [vmem:[%s11747_s1 + $0xa20] sm:$0xff]  ;;  %v421_v26 = vld [vmem:[%s11747_s1 + $0xca8] sm:$0xff] }
 0x220   :  { %v7811_v55 = vcombine.low %v340_v34, %v348_v35 }
 0x222   :  { %6700 = vmatpush1.bf16.msra.mxu0 %v7699_v44  ;;  %6864 = vmatpush1.bf16.msra.mxu1 %v7701_v45  ;;  %v7797_v44 = vcombine.low %v325_v59, %v333_v27  ;;  %v7812_v45 = vcombine.high %v340_v34, %v348_v35  ;;  %v429_v59 = vld [vmem:[%s11747_s1 + $0xce8] sm:$0xff]  ;;  %v444_v34 = vld [vmem:[%s11747_s1 + $0xd60] sm:$0xff] }
 0x223   :  { %6701 = vmatprep.subr.bf16.mxu0 %v7716_v46  ;;  %6865 = vmatprep.subr.bf16.mxu1 %v7718_v47  ;;  %v7814_v46 = vcombine.high %v341_v36, %v349_v40  ;;  %v356_v47 = vld [vmem:[%s11747_s1 + $0xaa0] sm:$0xff]  ;;  %v437_v35 = vld [vmem:[%s11747_s1 + $0xd28] sm:$0xff] }
 0x224   :  { %v7827_v2 = vcombine.low %v356_v47, %v364_v50 }
 0x226   :  { %6702 = vmatpush1.bf16.msra.mxu0 %v7715_v56  ;;  %6866 = vmatpush1.bf16.msra.mxu1 %v7717_v57  ;;  %v7813_v56 = vcombine.low %v341_v36, %v349_v40  ;;  %v7828_v57 = vcombine.high %v356_v47, %v364_v50  ;;  %v445_v36 = vld [vmem:[%s11747_s1 + $0xd68] sm:$0xff]  ;;  %v460_v47 = vld [vmem:[%s11747_s1 + $0xde0] sm:$0xff] }
 0x227   :  { %6703 = vmatprep.subr.bf16.mxu0 %v7732_v60  ;;  %6867 = vmatprep.subr.bf16.mxu1 %v7734_v61  ;;  %v7830_v60 = vcombine.high %v357_v52, %v365_v54  ;;  %v372_v61 = vld [vmem:[%s11747_s1 + $0xb20] sm:$0xff]  ;;  %v453_v50 = vld [vmem:[%s11747_s1 + $0xda8] sm:$0xff] }
 0x228   :  { %v7843_v11 = vcombine.low %v372_v61, %v380_v62 }
 0x22a   :  { %6704 = vmatpush1.bf16.msra.mxu0 %v7731_v28  ;;  %6868 = vmatpush1.bf16.msra.mxu1 %v7733_v3  ;;  %v7829_v28 = vcombine.low %v357_v52, %v365_v54  ;;  %v7844_v3 = vcombine.high %v372_v61, %v380_v62  ;;  %v461_v52 = vld [vmem:[%s11747_s1 + $0xde8] sm:$0xff]  ;;  %v476_v61 = vld [vmem:[%s11747_s1 + $0xe60] sm:$0xff] }
 0x22b   :  { %6714 = vmatprep.subr.bf16.mxu0 %v7748_v5  ;;  %6878 = vmatprep.subr.bf16.mxu1 %v7750_v6  ;;  %v7846_v5 = vcombine.high %v373_v0, %v381_v1  ;;  %v388_v6 = vld [vmem:[%s11747_s1 + $0xba0] sm:$0xff]  ;;  %v469_v62 = vld [vmem:[%s11747_s1 + $0xe28] sm:$0xff] }
 0x22c   :  { %v7859_v19 = vcombine.low %v388_v6, %v396_v7 }
 0x22d   :  { %6706 = vmatmul.mubr.bf16.vlgmr.msra.gmra.mrb[8].mxu0 %v8844_v23  ;;  %6870 = vmatmul.mubr.bf16.vlgmr.msra.gmra.mrb[8].mxu1 %v8844_v23 }
 0x22e   :  { %6715 = vmatpush1.bf16.msra.mxu0 %v7747_v12  ;;  %6879 = vmatpush1.bf16.msra.mxu1 %v7749_v13  ;;  %v7845_v12 = vcombine.low %v373_v0, %v381_v1  ;;  %v7860_v13 = vcombine.high %v388_v6, %v396_v7  ;;  %v477_v0 = vld [vmem:[%s11747_s1 + $0xe68] sm:$0xff]  ;;  %v492_v6 = vld [vmem:[%s11747_s1 + $0xee0] sm:$0xff] }
 0x22f   :  { %6716 = vmatprep.subr.bf16.mxu0 %v7764_v14  ;;  %6880 = vmatprep.subr.bf16.mxu1 %v7766_v15  ;;  %v7862_v14 = vcombine.high %v389_v8, %v397_v10  ;;  %v404_v15 = vld [vmem:[%s11747_s1 + $0xc20] sm:$0xff]  ;;  %v485_v7 = vld [vmem:[%s11747_s1 + $0xea8] sm:$0xff] }
 0x230   :  { %6746 = vmatprep.mubr.bf16.mxu0 %v8860_v31  ;;  %6910 = vmatprep.mubr.bf16.mxu1 %v8860_v31  ;;  %v7875_v27 = vcombine.low %v404_v15, %v412_v16 }
 0x232   :  { %6717 = vmatpush1.bf16.msra.mxu0 %v7763_v20  ;;  %6881 = vmatpush1.bf16.msra.mxu1 %v7765_v21  ;;  %v7861_v20 = vcombine.low %v389_v8, %v397_v10  ;;  %v7876_v21 = vcombine.high %v404_v15, %v412_v16  ;;  %v493_v8 = vld [vmem:[%s11747_s1 + $0xee8] sm:$0xff]  ;;  %v508_v15 = vld [vmem:[%s11747_s1 + $0xf60] sm:$0xff] }
 0x233   :  { %6718 = vmatprep.subr.bf16.mxu0 %v7780_v22  ;;  %6882 = vmatprep.subr.bf16.mxu1 %v7782_v24  ;;  %v7878_v22 = vcombine.high %v405_v17, %v413_v18  ;;  %v420_v24 = vld [vmem:[%s11747_s1 + $0xca0] sm:$0xff]  ;;  %v501_v16 = vld [vmem:[%s11747_s1 + $0xf28] sm:$0xff] }
 0x234   :  { %v7891_v40 = vcombine.low %v420_v24, %v428_v25 }
 0x236   :  { %6719 = vmatpush1.bf16.msra.mxu0 %v7779_v29  ;;  %6883 = vmatpush1.bf16.msra.mxu1 %v7781_v63  ;;  %v7877_v29 = vcombine.low %v405_v17, %v413_v18  ;;  %v7892_v63 = vcombine.high %v420_v24, %v428_v25  ;;  %v509_v17 = vld [vmem:[%s11747_s1 + $0xf68] sm:$0xff]  ;;  %v524_v24 = vld [vmem:[%s11747_s1 + $0xfe0] sm:$0xff] }
 0x237   :  { %6720 = vmatprep.subr.bf16.mxu0 %v7796_v30  ;;  %6884 = vmatprep.subr.bf16.mxu1 %v7798_v33  ;;  %v7894_v30 = vcombine.high %v421_v26, %v429_v59  ;;  %v436_v33 = vld [vmem:[%s11747_s1 + $0xd20] sm:$0xff]  ;;  %v517_v25 = vld [vmem:[%s11747_s1 + $0xfa8] sm:$0xff] }
 0x238   :  { %v7907_v54 = vcombine.low %v436_v33, %v444_v34 }
 0x23a   :  { %6721 = vmatpush1.bf16.msra.mxu0 %v7795_v42  ;;  %6885 = vmatpush1.bf16.msra.mxu1 %v7797_v44  ;;  %v7893_v42 = vcombine.low %v421_v26, %v429_v59  ;;  %v7908_v44 = vcombine.high %v436_v33, %v444_v34  ;;  %v525_v26 = vld [vmem:[%s11747_s1 + $0xfe8] sm:$0xff]  ;;  %v540_v33 = vld [vmem:[%s11747_s1 + $0x1060] sm:$0xff] }
 0x23b   :  { %6722 = vmatprep.subr.bf16.mxu0 %v7812_v45  ;;  %6886 = vmatprep.subr.bf16.mxu1 %v7814_v46  ;;  %v7910_v45 = vcombine.high %v437_v35, %v445_v36  ;;  %v452_v46 = vld [vmem:[%s11747_s1 + $0xda0] sm:$0xff]  ;;  %v533_v34 = vld [vmem:[%s11747_s1 + $0x1028] sm:$0xff] }
 0x23c   :  { %v7923_v1 = vcombine.low %v452_v46, %v460_v47 }
 0x23e   :  { %6723 = vmatpush1.bf16.msra.mxu0 %v7811_v55  ;;  %6887 = vmatpush1.bf16.msra.mxu1 %v7813_v56  ;;  %v7909_v55 = vcombine.low %v437_v35, %v445_v36  ;;  %v7924_v56 = vcombine.high %v452_v46, %v460_v47  ;;  %v541_v35 = vld [vmem:[%s11747_s1 + $0x1068] sm:$0xff]  ;;  %v556_v46 = vld [vmem:[%s11747_s1 + $0x10e0] sm:$0xff] }
 0x23f   :  { %6724 = vmatprep.subr.bf16.mxu0 %v7828_v57  ;;  %6888 = vmatprep.subr.bf16.mxu1 %v7830_v60  ;;  %v7926_v57 = vcombine.high %v453_v50, %v461_v52  ;;  %v468_v60 = vld [vmem:[%s11747_s1 + $0xe20] sm:$0xff]  ;;  %v549_v47 = vld [vmem:[%s11747_s1 + $0x10a8] sm:$0xff] }
 0x240   :  { %v7939_v10 = vcombine.low %v468_v60, %v476_v61 }
 0x242   :  { %6725 = vmatpush1.bf16.msra.mxu0 %v7827_v2  ;;  %6889 = vmatpush1.bf16.msra.mxu1 %v7829_v28  ;;  %v7925_v2 = vcombine.low %v453_v50, %v461_v52  ;;  %v7940_v28 = vcombine.high %v468_v60, %v476_v61  ;;  %v557_v50 = vld [vmem:[%s11747_s1 + $0x10e8] sm:$0xff]  ;;  %v572_v60 = vld [vmem:[%s11747_s1 + $0x1160] sm:$0xff] }
 0x243   :  { %6726 = vmatprep.subr.bf16.mxu0 %v7844_v3  ;;  %6890 = vmatprep.subr.bf16.mxu1 %v7846_v5  ;;  %v7942_v3 = vcombine.high %v469_v62, %v477_v0  ;;  %v484_v5 = vld [vmem:[%s11747_s1 + $0xea0] sm:$0xff]  ;;  %v565_v61 = vld [vmem:[%s11747_s1 + $0x1128] sm:$0xff] }
 0x244   :  { %v7955_v18 = vcombine.low %v484_v5, %v492_v6 }
 0x246   :  { %6727 = vmatpush1.bf16.msra.mxu0 %v7843_v11  ;;  %6891 = vmatpush1.bf16.msra.mxu1 %v7845_v12  ;;  %v7941_v11 = vcombine.low %v469_v62, %v477_v0  ;;  %v7956_v12 = vcombine.high %v484_v5, %v492_v6  ;;  %v573_v62 = vld [vmem:[%s11747_s1 + $0x1168] sm:$0xff]  ;;  %v588_v5 = vld [vmem:[%s11747_s1 + $0x11e0] sm:$0xff] }
 0x247   :  { %6728 = vmatprep.subr.bf16.mxu0 %v7860_v13  ;;  %6892 = vmatprep.subr.bf16.mxu1 %v7862_v14  ;;  %v7958_v13 = vcombine.high %v485_v7, %v493_v8  ;;  %v500_v14 = vld [vmem:[%s11747_s1 + $0xf20] sm:$0xff]  ;;  %v581_v6 = vld [vmem:[%s11747_s1 + $0x11a8] sm:$0xff] }
 0x248   :  { %v7971_v59 = vcombine.low %v500_v14, %v508_v15 }
 0x24a   :  { %6729 = vmatpush1.bf16.msra.mxu0 %v7859_v19  ;;  %6893 = vmatpush1.bf16.msra.mxu1 %v7861_v20  ;;  %v7957_v19 = vcombine.low %v485_v7, %v493_v8  ;;  %v7972_v20 = vcombine.high %v500_v14, %v508_v15  ;;  %v589_v7 = vld [vmem:[%s11747_s1 + $0x11e8] sm:$0xff]  ;;  %v604_v14 = vld [vmem:[%s11747_s1 + $0x1260] sm:$0xff] }
 0x24b   :  { %6730 = vmatprep.subr.bf16.mxu0 %v7876_v21  ;;  %6894 = vmatprep.subr.bf16.mxu1 %v7878_v22  ;;  %v7974_v21 = vcombine.high %v501_v16, %v509_v17  ;;  %v516_v22 = vld [vmem:[%s11747_s1 + $0xfa0] sm:$0xff]  ;;  %v597_v15 = vld [vmem:[%s11747_s1 + $0x1228] sm:$0xff] }
 0x24c   :  { %v7987_v36 = vcombine.low %v516_v22, %v524_v24 }
 0x24e   :  { %6731 = vmatpush1.bf16.msra.mxu0 %v7875_v27  ;;  %6895 = vmatpush1.bf16.msra.mxu1 %v7877_v29  ;;  %v7973_v27 = vcombine.low %v501_v16, %v509_v17  ;;  %v7988_v29 = vcombine.high %v516_v22, %v524_v24  ;;  %v605_v16 = vld [vmem:[%s11747_s1 + $0x1268] sm:$0xff]  ;;  %v620_v22 = vld [vmem:[%s11747_s1 + $0x12e0] sm:$0xff] }
 0x24f   :  { %6732 = vmatprep.subr.bf16.mxu0 %v7892_v63  ;;  %6896 = vmatprep.subr.bf16.mxu1 %v7894_v30  ;;  %v7990_v63 = vcombine.high %v517_v25, %v525_v26  ;;  %v532_v30 = vld [vmem:[%s11747_s1 + $0x1020] sm:$0xff]  ;;  %v613_v24 = vld [vmem:[%s11747_s1 + $0x12a8] sm:$0xff] }
 0x250   :  { %v8003_v52 = vcombine.low %v532_v30, %v540_v33 }
 0x252   :  { %6733 = vmatpush1.bf16.msra.mxu0 %v7891_v40  ;;  %6897 = vmatpush1.bf16.msra.mxu1 %v7893_v42  ;;  %v7989_v40 = vcombine.low %v517_v25, %v525_v26  ;;  %v8004_v42 = vcombine.high %v532_v30, %v540_v33  ;;  %v621_v25 = vld [vmem:[%s11747_s1 + $0x12e8] sm:$0xff]  ;;  %v636_v30 = vld [vmem:[%s11747_s1 + $0x1360] sm:$0xff] }
 0x253   :  { %6734 = vmatprep.subr.bf16.mxu0 %v7908_v44  ;;  %6898 = vmatprep.subr.bf16.mxu1 %v7910_v45  ;;  %v8006_v44 = vcombine.high %v533_v34, %v541_v35  ;;  %v548_v45 = vld [vmem:[%s11747_s1 + $0x10a0] sm:$0xff]  ;;  %v629_v33 = vld [vmem:[%s11747_s1 + $0x1328] sm:$0xff] }
 0x254   :  { %v8019_v0 = vcombine.low %v548_v45, %v556_v46 }
 0x256   :  { %6735 = vmatpush1.bf16.msra.mxu0 %v7907_v54  ;;  %6899 = vmatpush1.bf16.msra.mxu1 %v7909_v55  ;;  %v8005_v54 = vcombine.low %v533_v34, %v541_v35  ;;  %v8020_v55 = vcombine.high %v548_v45, %v556_v46  ;;  %v637_v34 = vld [vmem:[%s11747_s1 + $0x1368] sm:$0xff]  ;;  %v652_v45 = vld [vmem:[%s11747_s1 + $0x13e0] sm:$0xff] }
 0x257   :  { %6736 = vmatprep.subr.bf16.mxu0 %v7924_v56  ;;  %6900 = vmatprep.subr.bf16.mxu1 %v7926_v57  ;;  %v8022_v56 = vcombine.high %v549_v47, %v557_v50  ;;  %v564_v57 = vld [vmem:[%s11747_s1 + $0x1120] sm:$0xff]  ;;  %v645_v46 = vld [vmem:[%s11747_s1 + $0x13a8] sm:$0xff] }
 0x258   :  { %v8035_v8 = vcombine.low %v564_v57, %v572_v60 }
 0x25a   :  { %6737 = vmatpush1.bf16.msra.mxu0 %v7923_v1  ;;  %6901 = vmatpush1.bf16.msra.mxu1 %v7925_v2  ;;  %v8021_v1 = vcombine.low %v549_v47, %v557_v50  ;;  %v8036_v2 = vcombine.high %v564_v57, %v572_v60  ;;  %v653_v47 = vld [vmem:[%s11747_s1 + $0x13e8] sm:$0xff]  ;;  %v668_v57 = vld [vmem:[%s11747_s1 + $0x1460] sm:$0xff] }
 0x25b   :  { %6738 = vmatprep.subr.bf16.mxu0 %v7940_v28  ;;  %6902 = vmatprep.subr.bf16.mxu1 %v7942_v3  ;;  %v8038_v28 = vcombine.high %v565_v61, %v573_v62  ;;  %v580_v3 = vld [vmem:[%s11747_s1 + $0x11a0] sm:$0xff]  ;;  %v661_v60 = vld [vmem:[%s11747_s1 + $0x1428] sm:$0xff] }
 0x25c   :  { %v8051_v17 = vcombine.low %v580_v3, %v588_v5 }
 0x25e   :  { %6739 = vmatpush1.bf16.msra.mxu0 %v7939_v10  ;;  %6903 = vmatpush1.bf16.msra.mxu1 %v7941_v11  ;;  %v8037_v10 = vcombine.low %v565_v61, %v573_v62  ;;  %v8052_v11 = vcombine.high %v580_v3, %v588_v5  ;;  %v669_v61 = vld [vmem:[%s11747_s1 + $0x1468] sm:$0xff]  ;;  %v684_v3 = vld [vmem:[%s11747_s1 + $0x14e0] sm:$0xff] }
 0x25f   :  { %6740 = vmatprep.subr.bf16.mxu0 %v7956_v12  ;;  %6904 = vmatprep.subr.bf16.mxu1 %v7958_v13  ;;  %v8054_v12 = vcombine.high %v581_v6, %v589_v7  ;;  %v596_v13 = vld [vmem:[%s11747_s1 + $0x1220] sm:$0xff]  ;;  %v677_v5 = vld [vmem:[%s11747_s1 + $0x14a8] sm:$0xff] }
 0x260   :  { %v8067_v26 = vcombine.low %v596_v13, %v604_v14 }
 0x262   :  { %6741 = vmatpush1.bf16.msra.mxu0 %v7955_v18  ;;  %6905 = vmatpush1.bf16.msra.mxu1 %v7957_v19  ;;  %v8053_v18 = vcombine.low %v581_v6, %v589_v7  ;;  %v8068_v19 = vcombine.high %v596_v13, %v604_v14  ;;  %v685_v6 = vld [vmem:[%s11747_s1 + $0x14e8] sm:$0xff]  ;;  %v700_v13 = vld [vmem:[%s11747_s1 + $0x1560] sm:$0xff] }
 0x263   :  { %6742 = vmatprep.subr.bf16.mxu0 %v7972_v20  ;;  %6906 = vmatprep.subr.bf16.mxu1 %v7974_v21  ;;  %v8070_v20 = vcombine.high %v597_v15, %v605_v16  ;;  %v612_v21 = vld [vmem:[%s11747_s1 + $0x12a0] sm:$0xff]  ;;  %v693_v14 = vld [vmem:[%s11747_s1 + $0x1528] sm:$0xff] }
 0x264   :  { %v8083_v35 = vcombine.low %v612_v21, %v620_v22 }
 0x266   :  { %6743 = vmatpush1.bf16.msra.mxu0 %v7971_v59  ;;  %6907 = vmatpush1.bf16.msra.mxu1 %v7973_v27  ;;  %v8069_v59 = vcombine.low %v597_v15, %v605_v16  ;;  %v8084_v27 = vcombine.high %v612_v21, %v620_v22  ;;  %v701_v15 = vld [vmem:[%s11747_s1 + $0x1568] sm:$0xff]  ;;  %v716_v21 = vld [vmem:[%s11747_s1 + $0x15e0] sm:$0xff] }
 0x267   :  { %6744 = vmatprep.subr.bf16.mxu0 %v7988_v29  ;;  %6908 = vmatprep.subr.bf16.mxu1 %v7990_v63  ;;  %v8086_v29 = vcombine.high %v613_v24, %v621_v25  ;;  %v628_v63 = vld [vmem:[%s11747_s1 + $0x1320] sm:$0xff]  ;;  %v709_v22 = vld [vmem:[%s11747_s1 + $0x15a8] sm:$0xff] }
 0x268   :  { %v8099_v50 = vcombine.low %v628_v63, %v636_v30 }
 0x26a   :  { %6745 = vmatpush1.bf16.msra.mxu0 %v7987_v36  ;;  %6909 = vmatpush1.bf16.msra.mxu1 %v7989_v40  ;;  %v8085_v36 = vcombine.low %v613_v24, %v621_v25  ;;  %v8100_v40 = vcombine.high %v628_v63, %v636_v30  ;;  %v717_v24 = vld [vmem:[%s11747_s1 + $0x15e8] sm:$0xff]  ;;  %v732_v63 = vld [vmem:[%s11747_s1 + $0x1660] sm:$0xff] }
 0x26b   :  { %6755 = vmatprep.subr.bf16.mxu0 %v8004_v42  ;;  %6919 = vmatprep.subr.bf16.mxu1 %v8006_v44  ;;  %v8102_v42 = vcombine.high %v629_v33, %v637_v34  ;;  %v644_v44 = vld [vmem:[%s11747_s1 + $0x13a0] sm:$0xff]  ;;  %v725_v30 = vld [vmem:[%s11747_s1 + $0x1628] sm:$0xff] }
 0x26c   :  { %v8115_v62 = vcombine.low %v644_v44, %v652_v45 }
 0x26d   :  { %6747 = vmatmul.mubr.bf16.vlgmr.msra.gmra.mrb[8].mxu0 %v9055_v38  ;;  %6911 = vmatmul.mubr.bf16.vlgmr.msra.gmra.mrb[8].mxu1 %v9055_v38 }
 0x26e   :  { %6756 = vmatpush1.bf16.msra.mxu0 %v8003_v52  ;;  %6920 = vmatpush1.bf16.msra.mxu1 %v8005_v54  ;;  %v8101_v52 = vcombine.low %v629_v33, %v637_v34  ;;  %v8116_v54 = vcombine.high %v644_v44, %v652_v45  ;;  %v733_v33 = vld [vmem:[%s11747_s1 + $0x1668] sm:$0xff]  ;;  %v748_v44 = vld [vmem:[%s11747_s1 + $0x16e0] sm:$0xff] }
 0x26f   :  { %6757 = vmatprep.subr.bf16.mxu0 %v8020_v55  ;;  %6921 = vmatprep.subr.bf16.mxu1 %v8022_v56  ;;  %v8118_v55 = vcombine.high %v645_v46, %v653_v47  ;;  %v660_v56 = vld [vmem:[%s11747_s1 + $0x1420] sm:$0xff]  ;;  %v741_v45 = vld [vmem:[%s11747_s1 + $0x16a8] sm:$0xff] }
 0x270   :  { %6787 = vmatprep.mubr.bf16.mxu0 %v9070_v48  ;;  %6951 = vmatprep.mubr.bf16.mxu1 %v9070_v48  ;;  %v8131_v7 = vcombine.low %v660_v56, %v668_v57 }
 0x272   :  { %6758 = vmatpush1.bf16.msra.mxu0 %v8019_v0  ;;  %6922 = vmatpush1.bf16.msra.mxu1 %v8021_v1  ;;  %v8117_v0 = vcombine.low %v645_v46, %v653_v47  ;;  %v8132_v1 = vcombine.high %v660_v56, %v668_v57  ;;  %v749_v46 = vld [vmem:[%s11747_s1 + $0x16e8] sm:$0xff]  ;;  %v764_v56 = vld [vmem:[%s11747_s1 + $0x1760] sm:$0xff] }
 0x273   :  { %6759 = vmatprep.subr.bf16.mxu0 %v8036_v2  ;;  %6923 = vmatprep.subr.bf16.mxu1 %v8038_v28  ;;  %v8134_v2 = vcombine.high %v661_v60, %v669_v61  ;;  %v676_v28 = vld [vmem:[%s11747_s1 + $0x14a0] sm:$0xff]  ;;  %v757_v57 = vld [vmem:[%s11747_s1 + $0x1728] sm:$0xff] }
 0x274   :  { %v8147_v16 = vcombine.low %v676_v28, %v684_v3 }
 0x276   :  { %6760 = vmatpush1.bf16.msra.mxu0 %v8035_v8  ;;  %6924 = vmatpush1.bf16.msra.mxu1 %v8037_v10  ;;  %v8133_v8 = vcombine.low %v661_v60, %v669_v61  ;;  %v8148_v10 = vcombine.high %v676_v28, %v684_v3  ;;  %v765_v60 = vld [vmem:[%s11747_s1 + $0x1768] sm:$0xff]  ;;  %v780_v28 = vld [vmem:[%s11747_s1 + $0x17e0] sm:$0xff] }
 0x277   :  { %6761 = vmatprep.subr.bf16.mxu0 %v8052_v11  ;;  %6925 = vmatprep.subr.bf16.mxu1 %v8054_v12  ;;  %v8150_v11 = vcombine.high %v677_v5, %v685_v6  ;;  %v692_v12 = vld [vmem:[%s11747_s1 + $0x1520] sm:$0xff]  ;;  %v773_v3 = vld [vmem:[%s11747_s1 + $0x17a8] sm:$0xff] }
 0x278   :  { %v8163_v25 = vcombine.low %v692_v12, %v700_v13 }
 0x27a   :  { %6762 = vmatpush1.bf16.msra.mxu0 %v8051_v17  ;;  %6926 = vmatpush1.bf16.msra.mxu1 %v8053_v18  ;;  %v8149_v17 = vcombine.low %v677_v5, %v685_v6  ;;  %v8164_v18 = vcombine.high %v692_v12, %v700_v13  ;;  %v781_v5 = vld [vmem:[%s11747_s1 + $0x17e8] sm:$0xff]  ;;  %v796_v12 = vld [vmem:[%s11747_s1 + $0x1860] sm:$0xff] }
 0x27b   :  { %6763 = vmatprep.subr.bf16.mxu0 %v8068_v19  ;;  %6927 = vmatprep.subr.bf16.mxu1 %v8070_v20  ;;  %v8166_v19 = vcombine.high %v693_v14, %v701_v15  ;;  %v708_v20 = vld [vmem:[%s11747_s1 + $0x15a0] sm:$0xff]  ;;  %v789_v13 = vld [vmem:[%s11747_s1 + $0x1828] sm:$0xff] }
 0x27c   :  { %v8179_v34 = vcombine.low %v708_v20, %v716_v21 }
 0x27e   :  { %6764 = vmatpush1.bf16.msra.mxu0 %v8067_v26  ;;  %6928 = vmatpush1.bf16.msra.mxu1 %v8069_v59  ;;  %v8165_v26 = vcombine.low %v693_v14, %v701_v15  ;;  %v8180_v59 = vcombine.high %v708_v20, %v716_v21  ;;  %v797_v14 = vld [vmem:[%s11747_s1 + $0x1868] sm:$0xff]  ;;  %v812_v20 = vld [vmem:[%s11747_s1 + $0x18e0] sm:$0xff] }
 0x27f   :  { %6765 = vmatprep.subr.bf16.mxu0 %v8084_v27  ;;  %6929 = vmatprep.subr.bf16.mxu1 %v8086_v29  ;;  %v8182_v27 = vcombine.high %v709_v22, %v717_v24  ;;  %v724_v29 = vld [vmem:[%s11747_s1 + $0x1620] sm:$0xff]  ;;  %v805_v21 = vld [vmem:[%s11747_s1 + $0x18a8] sm:$0xff] }
 0x280   :  { %v8195_v47 = vcombine.low %v724_v29, %v732_v63 }
 0x282   :  { %6766 = vmatpush1.bf16.msra.mxu0 %v8083_v35  ;;  %6930 = vmatpush1.bf16.msra.mxu1 %v8085_v36  ;;  %v8181_v35 = vcombine.low %v709_v22, %v717_v24  ;;  %v8196_v36 = vcombine.high %v724_v29, %v732_v63  ;;  %v813_v22 = vld [vmem:[%s11747_s1 + $0x18e8] sm:$0xff]  ;;  %v828_v29 = vld [vmem:[%s11747_s1 + $0x1960] sm:$0xff] }
 0x283   :  { %6767 = vmatprep.subr.bf16.mxu0 %v8100_v40  ;;  %6931 = vmatprep.subr.bf16.mxu1 %v8102_v42  ;;  %v8198_v40 = vcombine.high %v725_v30, %v733_v33  ;;  %v740_v42 = vld [vmem:[%s11747_s1 + $0x16a0] sm:$0xff]  ;;  %v821_v63 = vld [vmem:[%s11747_s1 + $0x1928] sm:$0xff] }
 0x284   :  { %v8211_v61 = vcombine.low %v740_v42, %v748_v44 }
 0x286   :  { %6768 = vmatpush1.bf16.msra.mxu0 %v8099_v50  ;;  %6932 = vmatpush1.bf16.msra.mxu1 %v8101_v52  ;;  %v8197_v50 = vcombine.low %v725_v30, %v733_v33  ;;  %v8212_v52 = vcombine.high %v740_v42, %v748_v44  ;;  %v829_v30 = vld [vmem:[%s11747_s1 + $0x1968] sm:$0xff]  ;;  %v844_v42 = vld [vmem:[%s11747_s1 + $0x19e0] sm:$0xff] }
 0x287   :  { %6769 = vmatprep.subr.bf16.mxu0 %v8116_v54  ;;  %6933 = vmatprep.subr.bf16.mxu1 %v8118_v55  ;;  %v8214_v54 = vcombine.high %v741_v45, %v749_v46  ;;  %v756_v55 = vld [vmem:[%s11747_s1 + $0x1720] sm:$0xff]  ;;  %v837_v44 = vld [vmem:[%s11747_s1 + $0x19a8] sm:$0xff] }
 0x288   :  { %v8227_v6 = vcombine.low %v756_v55, %v764_v56 }
 0x28a   :  { %6770 = vmatpush1.bf16.msra.mxu0 %v8115_v62  ;;  %6934 = vmatpush1.bf16.msra.mxu1 %v8117_v0  ;;  %v8213_v62 = vcombine.low %v741_v45, %v749_v46  ;;  %v8228_v0 = vcombine.high %v756_v55, %v764_v56  ;;  %v845_v45 = vld [vmem:[%s11747_s1 + $0x19e8] sm:$0xff]  ;;  %v860_v55 = vld [vmem:[%s11747_s1 + $0x1a60] sm:$0xff] }
 0x28b   :  { %6771 = vmatprep.subr.bf16.mxu0 %v8132_v1  ;;  %6935 = vmatprep.subr.bf16.mxu1 %v8134_v2  ;;  %v8230_v1 = vcombine.high %v757_v57, %v765_v60  ;;  %v772_v2 = vld [vmem:[%s11747_s1 + $0x17a0] sm:$0xff]  ;;  %v853_v56 = vld [vmem:[%s11747_s1 + $0x1a28] sm:$0xff] }
 0x28c   :  { %v8243_v15 = vcombine.low %v772_v2, %v780_v28 }
 0x28e   :  { %6772 = vmatpush1.bf16.msra.mxu0 %v8131_v7  ;;  %6936 = vmatpush1.bf16.msra.mxu1 %v8133_v8  ;;  %v8229_v7 = vcombine.low %v757_v57, %v765_v60  ;;  %v8244_v8 = vcombine.high %v772_v2, %v780_v28  ;;  %v861_v57 = vld [vmem:[%s11747_s1 + $0x1a68] sm:$0xff]  ;;  %v876_v2 = vld [vmem:[%s11747_s1 + $0x1ae0] sm:$0xff]  ;;  %v1014_v28 = vsub.s32 4, %v8677_v43 }
 0x28f   :  { %6773 = vmatprep.subr.bf16.mxu0 %v8148_v10  ;;  %6937 = vmatprep.subr.bf16.mxu1 %v8150_v11  ;;  %v8246_v10 = vcombine.high %v773_v3, %v781_v5  ;;  %v788_v11 = vld [vmem:[%s11747_s1 + $0x1820] sm:$0xff] }
 0x290   :  { %v8259_v24 = vcombine.low %v788_v11, %v796_v12 }
 0x292   :  { %6774 = vmatpush1.bf16.msra.mxu0 %v8147_v16  ;;  %6938 = vmatpush1.bf16.msra.mxu1 %v8149_v17  ;;  %v8245_v16 = vcombine.low %v773_v3, %v781_v5  ;;  %v8260_v17 = vcombine.high %v788_v11, %v796_v12  ;;  %v869_v3 = vld [vmem:[%s11747_s1 + $0x1aa8] sm:$0xff]  ;;  %v1026_v11 = vsub.s32 7, %v8677_v43 }
 0x293   :  { %6775 = vmatprep.subr.bf16.mxu0 %v8164_v18  ;;  %6939 = vmatprep.subr.bf16.mxu1 %v8166_v19  ;;  %v8262_v18 = vcombine.high %v789_v13, %v797_v14  ;;  %v804_v19 = vld [vmem:[%s11747_s1 + $0x18a0] sm:$0xff]  ;;  %v877_v5 = vld [vmem:[%s11747_s1 + $0x1ae8] sm:$0xff] }
 0x294   :  { %v8275_v33 = vcombine.low %v804_v19, %v812_v20 }
 0x296   :  { %6776 = vmatpush1.bf16.msra.mxu0 %v8163_v25  ;;  %6940 = vmatpush1.bf16.msra.mxu1 %v8165_v26  ;;  %v8261_v25 = vcombine.low %v789_v13, %v797_v14  ;;  %v8276_v26 = vcombine.high %v804_v19, %v812_v20  ;;  %v8342_v13 = vcombine.high %v869_v3, %v877_v5  ;;  %v884_v14 = vld [vmem:[%s11747_s1 + $0x1b20] sm:$0xff]  ;;  %v893_v19 = vld [vmem:[%s11747_s1 + $0x1b68] sm:$0xff] }
 0x297   :  { %6777 = vmatprep.subr.bf16.mxu0 %v8180_v59  ;;  %6941 = vmatprep.subr.bf16.mxu1 %v8182_v27  ;;  %v8278_v59 = vcombine.high %v805_v21, %v813_v22  ;;  %v820_v27 = vld [vmem:[%s11747_s1 + $0x1920] sm:$0xff] }
 0x298   :  { %v8291_v46 = vcombine.low %v820_v27, %v828_v29 }
 0x29a   :  { %6778 = vmatpush1.bf16.msra.mxu0 %v8179_v34  ;;  %6942 = vmatpush1.bf16.msra.mxu1 %v8181_v35  ;;  %v8277_v34 = vcombine.low %v805_v21, %v813_v22  ;;  %v8292_v35 = vcombine.high %v820_v27, %v828_v29  ;;  %v900_v29 = vld [vmem:[%s11747_s1 + $0x1ba0] sm:$0xff] }
 0x29b   :  { %6779 = vmatprep.subr.bf16.mxu0 %v8196_v36  ;;  %6943 = vmatprep.subr.bf16.mxu1 %v8198_v40  ;;  %v8294_v36 = vcombine.high %v821_v63, %v829_v30  ;;  %v836_v40 = vld [vmem:[%s11747_s1 + $0x19a0] sm:$0xff] }
 0x29c   :  { %v8307_v60 = vcombine.low %v836_v40, %v844_v42 }
 0x29e   :  { %6780 = vmatpush1.bf16.msra.mxu0 %v8195_v47  ;;  %6944 = vmatpush1.bf16.msra.mxu1 %v8197_v50  ;;  %v8293_v47 = vcombine.low %v821_v63, %v829_v30  ;;  %v8308_v50 = vcombine.high %v836_v40, %v844_v42  ;;  %v908_v63 = vld [vmem:[%s11747_s1 + $0x1be0] sm:$0xff] }
 0x29f   :  { %6781 = vmatprep.subr.bf16.mxu0 %v8212_v52  ;;  %6945 = vmatprep.subr.bf16.mxu1 %v8214_v54  ;;  %v8310_v52 = vcombine.high %v837_v44, %v845_v45  ;;  %v852_v54 = vld [vmem:[%s11747_s1 + $0x1a20] sm:$0xff] }
 0x2a2   :  { %6782 = vmatpush1.bf16.msra.mxu0 %v8211_v61  ;;  %6946 = vmatpush1.bf16.msra.mxu1 %v8213_v62  ;;  %v8309_v61 = vcombine.low %v837_v44, %v845_v45  ;;  %v8324_v62 = vcombine.high %v852_v54, %v860_v55 }
 0x2a3   :  { %6783 = vmatprep.subr.bf16.mxu0 %v8228_v0  ;;  %6947 = vmatprep.subr.bf16.mxu1 %v8230_v1  ;;  %v8326_v0 = vcombine.high %v853_v56, %v861_v57  ;;  %v868_v1 = vld [vmem:[%s11747_s1 + $0x1aa0] sm:$0xff] }
 0x2a4   :  { %v8340_v12 = vcombine.high %v868_v1, %v876_v2  ;;  %v8339_v22 = vcombine.low %v868_v1, %v876_v2  ;;  %v924_v1 = vld [vmem:[%s11747_s1 + $0x1c60] sm:$0xff] }
 0x2a6   :  { %6784 = vmatpush1.bf16.msra.mxu0 %v8227_v6  ;;  %6948 = vmatpush1.bf16.msra.mxu1 %v8229_v7  ;;  %v8323_v6 = vcombine.low %v852_v54, %v860_v55  ;;  %v1022_v7 = vsub.s32 6, %v8677_v43 }
 0x2a7   :  { %6785 = vmatprep.subr.bf16.mxu0 %v8244_v8  ;;  %6949 = vmatprep.subr.bf16.mxu1 %v8246_v10  ;;  %v1018_v8 = vsub.s32 5, %v8677_v43  ;;  %v8325_v10 = vcombine.low %v853_v56, %v861_v57  ;;  %v8372_v56 = vcombine.high %v900_v29, %v908_v63 }
 0x2aa   :  { %6786 = vmatpush1.bf16.msra.mxu0 %v8243_v15  ;;  %6950 = vmatpush1.bf16.msra.mxu1 %v8245_v16  ;;  %v892_v15 = vld [vmem:[%s11747_s1 + $0x1b60] sm:$0xff] }
 0x2ab   :  { %6796 = vmatprep.subr.bf16.mxu0 %v8260_v17  ;;  %6960 = vmatprep.subr.bf16.mxu1 %v8262_v18  ;;  %v8589_v16 = vld [vmem:[%s11749_s2] sm:$0xff]  ;;  %v885_v18 = vld [vmem:[%s11747_s1 + $0x1b28] sm:$0xff] }
 0x2ac   :  { %v1015_v17 = vrot.slane %v8589_v16, %v1014_v28  ;;  %v1023_v20 = vrot.slane %v8589_v16, %v1022_v7  ;;  %v1019_v21 = vrot.slane %v8589_v16, %v1018_v8  ;;  %v8358_v27 = vcombine.high %v885_v18, %v893_v19 }
 0x2ad   :  { %6788 = vmatmul.mubr.bf16.vlgmr.msra.gmra.mrb[8].mxu0 %v9258_v58  ;;  %6952 = vmatmul.mubr.bf16.vlgmr.msra.gmra.mrb[8].mxu1 %v9258_v58  ;;  %v8357_v55 = vcombine.low %v885_v18, %v893_v19  ;;  %v940_v18 = vld [vmem:[%s11747_s1 + $0x1ce0] sm:$0xff] }
 0x2ae   :  { %6797 = vmatpush1.bf16.msra.mxu0 %v8259_v24  ;;  %6961 = vmatpush1.bf16.msra.mxu1 %v8261_v25  ;;  %v1027_v24 = vrot.slane %v8589_v16, %v1026_v11  ;;  %v8341_v25 = vcombine.low %v869_v3, %v877_v5  ;;  %v917_v3 = vld [vmem:[%s11747_s1 + $0x1c28] sm:$0xff] }
 0x2af   :  { %6798 = vmatprep.subr.bf16.mxu0 %v8276_v26  ;;  %6962 = vmatprep.subr.bf16.mxu1 %v8278_v59  ;;  %v8356_v26 = vcombine.high %v884_v14, %v892_v15  ;;  %v925_v5 = vld [vmem:[%s11747_s1 + $0x1c68] sm:$0xff] }
 0x2b0   :  { %8463 = vmatprep.mubr.msk.bf16.mxu0 %vm6013_vm0, %v9274_v4  ;;  %8464 = vmatprep.mubr.msk.bf16.mxu1 %vm6013_vm0, %v9274_v4  ;;  %v8390_v16 = vcombine.high %v917_v3, %v925_v5 }
 0x2b2   :  { %6799 = vmatpush1.bf16.msra.mxu0 %v8275_v33  ;;  %6963 = vmatpush1.bf16.msra.mxu1 %v8277_v34 }
 0x2b3   :  { %6800 = vmatprep.subr.bf16.mxu0 %v8292_v35  ;;  %6964 = vmatprep.subr.bf16.mxu1 %v8294_v36  ;;  %v901_v35 = vld [vmem:[%s11747_s1 + $0x1ba8] sm:$0xff] }
 0x2b4   :  { %v909_v36 = vld [vmem:[%s11747_s1 + $0x1be8] sm:$0xff] }
 0x2b6   :  { %6801 = vmatpush1.bf16.msra.mxu0 %v8291_v46  ;;  %6965 = vmatpush1.bf16.msra.mxu1 %v8293_v47  ;;  %v8355_v46 = vcombine.low %v884_v14, %v892_v15 }
 0x2b7   :  { %6802 = vmatprep.subr.bf16.mxu0 %v8308_v50  ;;  %6966 = vmatprep.subr.bf16.mxu1 %v8310_v52 }
 0x2ba   :  { %6803 = vmatpush1.bf16.msra.mxu0 %v8307_v60  ;;  %6967 = vmatpush1.bf16.msra.mxu1 %v8309_v61 }
 0x2bb   :  { %6804 = vmatprep.subr.bf16.mxu0 %v8324_v62  ;;  %6968 = vmatprep.subr.bf16.mxu1 %v8326_v0  ;;  %v8374_v62 = vcombine.high %v901_v35, %v909_v36  ;;  %v916_v0 = vld [vmem:[%s11747_s1 + $0x1c20] sm:$0xff] }
 0x2bc   :  { %v8388_v14 = vcombine.high %v916_v0, %v924_v1 }
 0x2be   :  { %6805 = vmatpush1.bf16.msra.mxu0 %v8323_v6  ;;  %6969 = vmatpush1.bf16.msra.mxu1 %v8325_v10  ;;  %v8371_v10 = vcombine.low %v900_v29, %v908_v63  ;;  %v956_v29 = vld [vmem:[%s11747_s1 + $0x1d60] sm:$0xff]  ;;  %v7417_v63 = vrot.slane %v10143_v49, %v8692_v53 }
 0x2bf   :  { %6806 = vmatprep.subr.bf16.mxu0 %v8340_v12  ;;  %6970 = vmatprep.subr.bf16.mxu1 %v8342_v13  ;;  %v8373_v13 = vcombine.low %v901_v35, %v909_v36  ;;  %v964_v49 = vld [vmem:[%s11747_s1 + $0x1da0] sm:$0xff] }
 0x2c0   :  { %v6502_v59 = vpop.f32.mrb[4].mxu0  ;;  %v6666_v33 = vpop.f32.mrb[4].mxu1 }
 0x2c1   :  { %v8479_v30 = vadd.f32 %v6502_v59, %v1015_v17  ;;  %v6504_v34 = vpop.f32.mrb[5].mxu0  ;;  %v8481_v40 = vadd.f32 %v6666_v33, %v1023_v20  ;;  %v6668_v44 = vpop.f32.mrb[5].mxu1  ;;  %v932_v17 = vld [vmem:[%s11747_s1 + $0x1ca0] sm:$0xff]  ;;  %v933_v20 = vld [vmem:[%s11747_s1 + $0x1ca8] sm:$0xff] }
 0x2c2   :  { %v8480_v42 = vadd.f32 %v6504_v34, %v1019_v21  ;;  %v6506_v45 = vpop.f32.mrb[6].mxu0  ;;  %6807 = vmatpush1.bf16.msra.mxu0 %v8339_v22  ;;  %v8482_v50 = vadd.f32 %v6668_v44, %v1027_v24  ;;  %v6670_v52 = vpop.f32.mrb[6].mxu1  ;;  %6971 = vmatpush1.bf16.msra.mxu1 %v8341_v25  ;;  %v941_v21 = vld [vmem:[%s11747_s1 + $0x1ce8] sm:$0xff]  ;;  %v8387_v22 = vcombine.low %v916_v0, %v924_v1 }
 0x2c3   :  { %v7333_v47 = vmax.f32 %v8479_v30, 0.0  ;;  %v6507_v54 = vpop.f32.mrb[7].mxu0  ;;  %6808 = vmatprep.subr.bf16.mxu0 %v8356_v26  ;;  %v7335_v57 = vmax.f32 %v8481_v40, 0.0  ;;  %v6671_v61 = vpop.f32.mrb[7].mxu1  ;;  %6972 = vmatprep.subr.bf16.mxu1 %v8358_v27  ;;  %v8389_v25 = vcombine.low %v917_v3, %v925_v5  ;;  %v8404_v26 = vcombine.high %v932_v17, %v940_v18  ;;  %v948_v27 = vld [vmem:[%s11747_s1 + $0x1d20] sm:$0xff]  ;;  %v949_v33 = vld [vmem:[%s11747_s1 + $0x1d28] sm:$0xff] }
 0x2c4   :  { %v7334_v60 = vmax.f32 %v8480_v42, 0.0  ;;  %v7336_v2 = vmax.f32 %v8482_v50, 0.0  ;;  %v8406_v59 = vcombine.high %v933_v20, %v941_v21  ;;  %v957_v34 = vld [vmem:[%s11747_s1 + $0x1d68] sm:$0xff]  ;;  %v8403_v35 = vcombine.low %v932_v17, %v940_v18  ;;  %v972_v45 = vld [vmem:[%s11747_s1 + $0x1de0] sm:$0xff]  ;;  %v22_v3 = vld [vmem:[%s11747_s1 + $0x30] sm:$0xff] }
 0x2c5   :  { %v8405_v40 = vcombine.low %v933_v20, %v941_v21  ;;  %v8420_v42 = vcombine.high %v948_v27, %v956_v29  ;;  %v8422_v44 = vcombine.high %v949_v33, %v957_v34  ;;  %v8419_v50 = vcombine.low %v948_v27, %v956_v29  ;;  %v989_v61 = vld [vmem:[%s11747_s1 + $0x1e68] sm:$0xff]  ;;  %v30_v5 = vld [vmem:[%s11747_s1 + $0x70] sm:$0xff]  ;;  %v39_v18 = vld [vmem:[%s11747_s1 + $0xb8] sm:$0xff] }
 0x2c6   :  { %v8469_v6 = vpack.c.bf16 %v7334_v60, %v7333_v47  ;;  %6809 = vmatpush1.bf16.msra.mxu0 %v8355_v46  ;;  %v8470_v12 = vpack.c.bf16 %v7336_v2, %v7335_v57  ;;  %6973 = vmatpush1.bf16.msra.mxu1 %v8357_v55  ;;  %v965_v46 = vld [vmem:[%s11747_s1 + $0x1da8] sm:$0xff]  ;;  %v8421_v52 = vcombine.low %v949_v33, %v957_v34  ;;  %v988_v57 = vld [vmem:[%s11747_s1 + $0x1e60] sm:$0xff]  ;;  %v46_v17 = vld [vmem:[%s11747_s1 + $0xf0] sm:$0xff] }
 0x2c7   :  { %6810 = vmatprep.subr.bf16.mxu0 %v8372_v56  ;;  %6974 = vmatprep.subr.bf16.mxu1 %v8374_v62  ;;  %v973_v47 = vld [vmem:[%s11747_s1 + $0x1de8] sm:$0xff]  ;;  %v8436_v54 = vcombine.high %v964_v49, %v972_v45  ;;  %v980_v56 = vld [vmem:[%s11747_s1 + $0x1e20] sm:$0xff]  ;;  %v8435_v62 = vcombine.low %v964_v49, %v972_v45  ;;  %v7495_v20 = vcombine.low %v22_v3, %v30_v5  ;;  %v63_v27 = vld [vmem:[%s11747_s1 + $0x178] sm:$0xff] }
 0x2c8   :  { %v7401_v15 = vrot.slane %v8469_v6, %v8692_v53  ;;  %v7408_v19 = vrot.slane %v8470_v12, %v8692_v53  ;;  %v8438_v55 = vcombine.high %v965_v46, %v973_v47  ;;  %v981_v60 = vld [vmem:[%s11747_s1 + $0x1e28] sm:$0xff]  ;;  %v8437_v0 = vcombine.low %v965_v46, %v973_v47  ;;  %v23_v6 = vld [vmem:[%s11747_s1 + $0x38] sm:$0xff]  ;;  %v70_v34 = vld [vmem:[%s11747_s1 + $0x1b0] sm:$0xff] }
 0x2c9   :  { %v8452_v1 = vcombine.high %v980_v56, %v988_v57  ;;  %v8454_v2 = vcombine.high %v981_v60, %v989_v61  ;;  %v8451_v12 = vcombine.low %v980_v56, %v988_v57  ;;  %v86_v46 = vld [vmem:[%s11747_s1 + $0x230] sm:$0xff] }
 0x2ca   :  { %6811 = vmatpush1.bf16.msra.mxu0 %v8371_v10  ;;  %v7410_v24 = vcombine.low %v7401_v15, %v7408_v19  ;;  %6975 = vmatpush1.bf16.msra.mxu1 %v8373_v13  ;;  %v31_v10 = vld [vmem:[%s11747_s1 + $0x78] sm:$0xff]  ;;  %v8453_v13 = vcombine.low %v981_v60, %v989_v61  ;;  %v94_v47 = vld [vmem:[%s11747_s1 + $0x270] sm:$0xff] }
 0x2cb   :  { %6812 = vmatprep.subr.bf16.mxu0 %v8388_v14  ;;  %6976 = vmatprep.subr.bf16.mxu1 %v8390_v16  ;;  %v7496_v14 = vcombine.high %v22_v3, %v30_v5  ;;  %v7498_v15 = vcombine.high %v23_v6, %v31_v10  ;;  %v38_v16 = vld [vmem:[%s11747_s1 + $0xb0] sm:$0xff]  ;;  %v47_v19 = vld [vmem:[%s11747_s1 + $0xf8] sm:$0xff]  ;;  %v7497_v21 = vcombine.low %v23_v6, %v31_v10 }
 0x2cc   :  { %v7424_v30 = vrot.slane %v7410_v24, %v8692_v53  ;;  %v7514_v24 = vcombine.high %v39_v18, %v47_v19  ;;  %v7511_v29 = vcombine.low %v38_v16, %v46_v17  ;;  %v102_v57 = vld [vmem:[%s11747_s1 + $0x2b0] sm:$0xff]  ;;  %v103_v61 = vld [vmem:[%s11747_s1 + $0x2b8] sm:$0xff] }
 0x2cd   :  { %v110_v60 = vld [vmem:[%s11747_s1 + $0x2f0] sm:$0xff]  ;;  %v119_v10 = vld [vmem:[%s11747_s1 + $0x338] sm:$0xff] }
 0x2ce   :  { %6813 = vmatpush1.bf16.msra.mxu0 %v8387_v22  ;;  %v7425_v36 = vcombine.low %v7417_v63, %v7424_v30  ;;  %6977 = vmatpush1.bf16.msra.mxu1 %v8389_v25  ;;  %v7512_v22 = vcombine.high %v38_v16, %v46_v17  ;;  %v54_v25 = vld [vmem:[%s11747_s1 + $0x130] sm:$0xff]  ;;  %v7513_v63 = vcombine.low %v39_v18, %v47_v19  ;;  %v135_v19 = vld [vmem:[%s11747_s1 + $0x3b8] sm:$0xff] }
 0x2cf   :  { %6814 = vmatprep.subr.bf16.mxu0 %v8404_v26  ;;  %6978 = vmatprep.subr.bf16.mxu1 %v8406_v59  ;;  %v62_v26 = vld [vmem:[%s11747_s1 + $0x170] sm:$0xff]  ;;  %v55_v59 = vld [vmem:[%s11747_s1 + $0x138] sm:$0xff] }
 0x2d0   :  { %7477 = vst [vmem:[%s11750_s3] sm:$0xff] %v7425_v36  ;;  %v7528_v30 = vcombine.high %v54_v25, %v62_v26  ;;  %v7530_v33 = vcombine.high %v55_v59, %v63_v27  ;;  %v71_v36 = vld [vmem:[%s11747_s1 + $0x1b8] sm:$0xff]  ;;  %v118_v5 = vld [vmem:[%s11747_s1 + $0x330] sm:$0xff] }
 0x2d1   :  { %v126_v6 = vld [vmem:[%s11747_s1 + $0x370] sm:$0xff] }
 0x2d2   :  { %6815 = vmatpush1.bf16.msra.mxu0 %v8403_v35  ;;  %6979 = vmatpush1.bf16.msra.mxu1 %v8405_v40  ;;  %v78_v35 = vld [vmem:[%s11747_s1 + $0x1f0] sm:$0xff]  ;;  %v79_v40 = vld [vmem:[%s11747_s1 + $0x1f8] sm:$0xff] }
 0x2d3   :  { %6816 = vmatprep.subr.bf16.mxu0 %v8420_v42  ;;  %6980 = vmatprep.subr.bf16.mxu1 %v8422_v44  ;;  %v7527_v42 = vcombine.low %v54_v25, %v62_v26  ;;  %v7529_v44 = vcombine.low %v55_v59, %v63_v27  ;;  %v7544_v49 = vcombine.high %v70_v34, %v78_v35  ;;  %v134_v17 = vld [vmem:[%s11747_s1 + $0x3b0] sm:$0xff]  ;;  %v151_v27 = vld [vmem:[%s11747_s1 + $0x438] sm:$0xff] }
 0x2d4   :  { %v7546_v45 = vcombine.high %v71_v36, %v79_v40  ;;  %v142_v18 = vld [vmem:[%s11747_s1 + $0x3f0] sm:$0xff] }
 0x2d5   :  { %v150_v26 = vld [vmem:[%s11747_s1 + $0x430] sm:$0xff] }
 0x2d6   :  { %6817 = vmatpush1.bf16.msra.mxu0 %v8419_v50  ;;  %6981 = vmatpush1.bf16.msra.mxu1 %v8421_v52  ;;  %v95_v50 = vld [vmem:[%s11747_s1 + $0x278] sm:$0xff]  ;;  %v7543_v52 = vcombine.low %v70_v34, %v78_v35  ;;  %v158_v59 = vld [vmem:[%s11747_s1 + $0x470] sm:$0xff] }
 0x2d7   :  { %6818 = vmatprep.subr.bf16.mxu0 %v8436_v54  ;;  %6982 = vmatprep.subr.bf16.mxu1 %v8438_v55  ;;  %v7545_v54 = vcombine.low %v71_v36, %v79_v40  ;;  %v7560_v55 = vcombine.high %v86_v46, %v94_v47  ;;  %v166_v35 = vld [vmem:[%s11747_s1 + $0x4b0] sm:$0xff]  ;;  %v167_v40 = vld [vmem:[%s11747_s1 + $0x4b8] sm:$0xff] }
 0x2d8   :  { %v174_v36 = vld [vmem:[%s11747_s1 + $0x4f0] sm:$0xff] }
 0x2da   :  { %6819 = vmatpush1.bf16.msra.mxu0 %v8435_v62  ;;  %6983 = vmatpush1.bf16.msra.mxu1 %v8437_v0  ;;  %v111_v62 = vld [vmem:[%s11747_s1 + $0x2f8] sm:$0xff]  ;;  %v7559_v0 = vcombine.low %v86_v46, %v94_v47  ;;  %v182_v47 = vld [vmem:[%s11747_s1 + $0x530] sm:$0xff] }
 0x2db   :  { %6820 = vmatprep.subr.bf16.mxu0 %v8452_v1  ;;  %6984 = vmatprep.subr.bf16.mxu1 %v8454_v2  ;;  %v7576_v2 = vcombine.high %v102_v57, %v110_v60  ;;  %v7578_v3 = vcombine.high %v103_v61, %v111_v62 }
 0x2de   :  { %6821 = vmatpush1.bf16.msra.mxu0 %v8451_v12  ;;  %6985 = vmatpush1.bf16.msra.mxu1 %v8453_v13  ;;  %v127_v12 = vld [vmem:[%s11747_s1 + $0x378] sm:$0xff]  ;;  %v7575_v13 = vcombine.low %v102_v57, %v110_v60  ;;  %v198_v60 = vld [vmem:[%s11747_s1 + $0x5b0] sm:$0xff] }
 0x2df   :  { %7001 = vmatprep.subr.bf16.mxu0 %v7496_v14  ;;  %7165 = vmatprep.subr.bf16.mxu1 %v7498_v15  ;;  %v7577_v14 = vcombine.low %v103_v61, %v111_v62  ;;  %v7592_v15 = vcombine.high %v118_v5, %v126_v6  ;;  %v7594_v16 = vcombine.high %v119_v10, %v127_v12  ;;  %v206_v61 = vld [vmem:[%s11747_s1 + $0x5f0] sm:$0xff]  ;;  %v199_v62 = vld [vmem:[%s11747_s1 + $0x5b8] sm:$0xff] }
 0x2e1   :  { %6829 = vmatmul.mubr.bf16.vlgmr.msra.gmra.mrb[8].mxu0 %v9428_v51  ;;  %6993 = vmatmul.mubr.bf16.vlgmr.msra.gmra.mrb[8].mxu1 %v9428_v51 }
 0x2e2   :  { %7002 = vmatpush1.bf16.msra.mxu0 %v7495_v20  ;;  %7166 = vmatpush1.bf16.msra.mxu1 %v7497_v21  ;;  %v143_v20 = vld [vmem:[%s11747_s1 + $0x3f8] sm:$0xff]  ;;  %v7591_v21 = vcombine.low %v118_v5, %v126_v6  ;;  %v214_v6 = vld [vmem:[%s11747_s1 + $0x630] sm:$0xff] }
 0x2e3   :  { %7003 = vmatprep.subr.bf16.mxu0 %v7512_v22  ;;  %7167 = vmatprep.subr.bf16.mxu1 %v7514_v24  ;;  %v7593_v22 = vcombine.low %v119_v10, %v127_v12  ;;  %v7608_v24 = vcombine.high %v134_v17, %v142_v18  ;;  %v7610_v25 = vcombine.high %v135_v19, %v143_v20  ;;  %v222_v10 = vld [vmem:[%s11747_s1 + $0x670] sm:$0xff]  ;;  %v215_v12 = vld [vmem:[%s11747_s1 + $0x638] sm:$0xff] }
 0x2e4   :  { %7033 = vmatprep.mubr.bf16.mxu0 %v8730_v9  ;;  %7197 = vmatprep.mubr.bf16.mxu1 %v8730_v9  ;;  %v87_v9 = vld [vmem:[%s11747_s1 + $0x238] sm:$0xff] }
 0x2e5   :  { %v7562_v56 = vcombine.high %v87_v9, %v95_v50  ;;  %v7561_v1 = vcombine.low %v87_v9, %v95_v50  ;;  %v190_v9 = vld [vmem:[%s11747_s1 + $0x570] sm:$0xff]  ;;  %v183_v50 = vld [vmem:[%s11747_s1 + $0x538] sm:$0xff] }
 0x2e6   :  { %7004 = vmatpush1.bf16.msra.mxu0 %v7511_v29  ;;  %7168 = vmatpush1.bf16.msra.mxu1 %v7513_v63  ;;  %v159_v29 = vld [vmem:[%s11747_s1 + $0x478] sm:$0xff]  ;;  %v7607_v63 = vcombine.low %v134_v17, %v142_v18  ;;  %v230_v18 = vld [vmem:[%s11747_s1 + $0x6b0] sm:$0xff] }
 0x2e7   :  { %7005 = vmatprep.subr.bf16.mxu0 %v7528_v30  ;;  %7169 = vmatprep.subr.bf16.mxu1 %v7530_v33  ;;  %v7609_v30 = vcombine.low %v135_v19, %v143_v20  ;;  %v7624_v33 = vcombine.high %v150_v26, %v158_v59  ;;  %v7626_v34 = vcombine.high %v151_v27, %v159_v29  ;;  %v238_v19 = vld [vmem:[%s11747_s1 + $0x6f0] sm:$0xff]  ;;  %v231_v20 = vld [vmem:[%s11747_s1 + $0x6b8] sm:$0xff] }
 0x2ea   :  { %7006 = vmatpush1.bf16.msra.mxu0 %v7527_v42  ;;  %7170 = vmatpush1.bf16.msra.mxu1 %v7529_v44  ;;  %v175_v42 = vld [vmem:[%s11747_s1 + $0x4f8] sm:$0xff]  ;;  %v7623_v44 = vcombine.low %v150_v26, %v158_v59  ;;  %v246_v59 = vld [vmem:[%s11747_s1 + $0x730] sm:$0xff] }
 0x2eb   :  { %7007 = vmatprep.subr.bf16.mxu0 %v7544_v49  ;;  %7171 = vmatprep.subr.bf16.mxu1 %v7546_v45  ;;  %v7625_v49 = vcombine.low %v151_v27, %v159_v29  ;;  %v7640_v45 = vcombine.high %v166_v35, %v174_v36  ;;  %v7642_v46 = vcombine.high %v167_v40, %v175_v42  ;;  %v254_v27 = vld [vmem:[%s11747_s1 + $0x770] sm:$0xff]  ;;  %v247_v29 = vld [vmem:[%s11747_s1 + $0x738] sm:$0xff] }
 0x2ee   :  { %7008 = vmatpush1.bf16.msra.mxu0 %v7543_v52  ;;  %7172 = vmatpush1.bf16.msra.mxu1 %v7545_v54  ;;  %v191_v52 = vld [vmem:[%s11747_s1 + $0x578] sm:$0xff]  ;;  %v7639_v54 = vcombine.low %v166_v35, %v174_v36  ;;  %v262_v36 = vld [vmem:[%s11747_s1 + $0x7b0] sm:$0xff] }
 0x2ef   :  { %7009 = vmatprep.subr.bf16.mxu0 %v7560_v55  ;;  %7173 = vmatprep.subr.bf16.mxu1 %v7562_v56  ;;  %v7641_v55 = vcombine.low %v167_v40, %v175_v42  ;;  %v7656_v56 = vcombine.high %v182_v47, %v190_v9  ;;  %v7658_v57 = vcombine.high %v183_v50, %v191_v52  ;;  %v270_v40 = vld [vmem:[%s11747_s1 + $0x7f0] sm:$0xff]  ;;  %v263_v42 = vld [vmem:[%s11747_s1 + $0x7b8] sm:$0xff] }
 0x2f2   :  { %7010 = vmatpush1.bf16.msra.mxu0 %v7559_v0  ;;  %7174 = vmatpush1.bf16.msra.mxu1 %v7561_v1  ;;  %v207_v0 = vld [vmem:[%s11747_s1 + $0x5f8] sm:$0xff]  ;;  %v7655_v1 = vcombine.low %v182_v47, %v190_v9  ;;  %v278_v9 = vld [vmem:[%s11747_s1 + $0x830] sm:$0xff] }
 0x2f3   :  { %7011 = vmatprep.subr.bf16.mxu0 %v7576_v2  ;;  %7175 = vmatprep.subr.bf16.mxu1 %v7578_v3  ;;  %v7657_v2 = vcombine.low %v183_v50, %v191_v52  ;;  %v7672_v3 = vcombine.high %v198_v60, %v206_v61  ;;  %v7674_v5 = vcombine.high %v199_v62, %v207_v0  ;;  %v286_v50 = vld [vmem:[%s11747_s1 + $0x870] sm:$0xff]  ;;  %v279_v52 = vld [vmem:[%s11747_s1 + $0x838] sm:$0xff] }
 0x2f6   :  { %7012 = vmatpush1.bf16.msra.mxu0 %v7575_v13  ;;  %7176 = vmatpush1.bf16.msra.mxu1 %v7577_v14  ;;  %v223_v13 = vld [vmem:[%s11747_s1 + $0x678] sm:$0xff]  ;;  %v7671_v14 = vcombine.low %v198_v60, %v206_v61  ;;  %v294_v61 = vld [vmem:[%s11747_s1 + $0x8b0] sm:$0xff] }
 0x2f7   :  { %7013 = vmatprep.subr.bf16.mxu0 %v7592_v15  ;;  %7177 = vmatprep.subr.bf16.mxu1 %v7594_v16  ;;  %v7673_v15 = vcombine.low %v199_v62, %v207_v0  ;;  %v7688_v16 = vcombine.high %v214_v6, %v222_v10  ;;  %v7690_v17 = vcombine.high %v215_v12, %v223_v13  ;;  %v302_v62 = vld [vmem:[%s11747_s1 + $0x8f0] sm:$0xff]  ;;  %v295_v0 = vld [vmem:[%s11747_s1 + $0x8b8] sm:$0xff] }
 0x2fa   :  { %7014 = vmatpush1.bf16.msra.mxu0 %v7591_v21  ;;  %7178 = vmatpush1.bf16.msra.mxu1 %v7593_v22  ;;  %v239_v21 = vld [vmem:[%s11747_s1 + $0x6f8] sm:$0xff]  ;;  %v7687_v22 = vcombine.low %v214_v6, %v222_v10  ;;  %v310_v10 = vld [vmem:[%s11747_s1 + $0x930] sm:$0xff] }
 0x2fb   :  { %7015 = vmatprep.subr.bf16.mxu0 %v7608_v24  ;;  %7179 = vmatprep.subr.bf16.mxu1 %v7610_v25  ;;  %v7689_v24 = vcombine.low %v215_v12, %v223_v13  ;;  %v7704_v25 = vcombine.high %v230_v18, %v238_v19  ;;  %v7706_v26 = vcombine.high %v231_v20, %v239_v21  ;;  %v318_v12 = vld [vmem:[%s11747_s1 + $0x970] sm:$0xff]  ;;  %v311_v13 = vld [vmem:[%s11747_s1 + $0x938] sm:$0xff] }
 0x2fe   :  { %7016 = vmatpush1.bf16.msra.mxu0 %v7607_v63  ;;  %7180 = vmatpush1.bf16.msra.mxu1 %v7609_v30  ;;  %v255_v63 = vld [vmem:[%s11747_s1 + $0x778] sm:$0xff]  ;;  %v7703_v30 = vcombine.low %v230_v18, %v238_v19  ;;  %v326_v19 = vld [vmem:[%s11747_s1 + $0x9b0] sm:$0xff] }
 0x2ff   :  { %7017 = vmatprep.subr.bf16.mxu0 %v7624_v33  ;;  %7181 = vmatprep.subr.bf16.mxu1 %v7626_v34  ;;  %v7705_v33 = vcombine.low %v231_v20, %v239_v21  ;;  %v7720_v34 = vcombine.high %v246_v59, %v254_v27  ;;  %v7722_v35 = vcombine.high %v247_v29, %v255_v63  ;;  %v334_v20 = vld [vmem:[%s11747_s1 + $0x9f0] sm:$0xff]  ;;  %v335_v21 = vld [vmem:[%s11747_s1 + $0x9f8] sm:$0xff] }
 0x302   :  { %7018 = vmatpush1.bf16.msra.mxu0 %v7623_v44  ;;  %7182 = vmatpush1.bf16.msra.mxu1 %v7625_v49  ;;  %v271_v44 = vld [vmem:[%s11747_s1 + $0x7f8] sm:$0xff]  ;;  %v7719_v49 = vcombine.low %v246_v59, %v254_v27  ;;  %v342_v59 = vld [vmem:[%s11747_s1 + $0xa30] sm:$0xff] }
 0x303   :  { %7019 = vmatprep.subr.bf16.mxu0 %v7640_v45  ;;  %7183 = vmatprep.subr.bf16.mxu1 %v7642_v46  ;;  %v7721_v45 = vcombine.low %v247_v29, %v255_v63  ;;  %v7736_v46 = vcombine.high %v262_v36, %v270_v40  ;;  %v7738_v47 = vcombine.high %v263_v42, %v271_v44  ;;  %v350_v27 = vld [vmem:[%s11747_s1 + $0xa70] sm:$0xff]  ;;  %v351_v29 = vld [vmem:[%s11747_s1 + $0xa78] sm:$0xff] }
 0x304   :  { %v7799_v63 = vcombine.low %v326_v19, %v334_v20 }
 0x306   :  { %7020 = vmatpush1.bf16.msra.mxu0 %v7639_v54  ;;  %7184 = vmatpush1.bf16.msra.mxu1 %v7641_v55  ;;  %v287_v54 = vld [vmem:[%s11747_s1 + $0x878] sm:$0xff]  ;;  %v7735_v55 = vcombine.low %v262_v36, %v270_v40  ;;  %v366_v36 = vld [vmem:[%s11747_s1 + $0xaf0] sm:$0xff] }
 0x307   :  { %7021 = vmatprep.subr.bf16.mxu0 %v7656_v56  ;;  %7185 = vmatprep.subr.bf16.mxu1 %v7658_v57  ;;  %v7737_v56 = vcombine.low %v263_v42, %v271_v44  ;;  %v7752_v57 = vcombine.high %v278_v9, %v286_v50  ;;  %v7754_v60 = vcombine.high %v279_v52, %v287_v54  ;;  %v359_v40 = vld [vmem:[%s11747_s1 + $0xab8] sm:$0xff] }
 0x308   :  { %v367_v42 = vld [vmem:[%s11747_s1 + $0xaf8] sm:$0xff]  ;;  %v7815_v44 = vcombine.low %v342_v59, %v350_v27 }
 0x30a   :  { %7022 = vmatpush1.bf16.msra.mxu0 %v7655_v1  ;;  %7186 = vmatpush1.bf16.msra.mxu1 %v7657_v2  ;;  %v303_v1 = vld [vmem:[%s11747_s1 + $0x8f8] sm:$0xff]  ;;  %v7751_v2 = vcombine.low %v278_v9, %v286_v50  ;;  %v382_v9 = vld [vmem:[%s11747_s1 + $0xb70] sm:$0xff] }
 0x30b   :  { %7023 = vmatprep.subr.bf16.mxu0 %v7672_v3  ;;  %7187 = vmatprep.subr.bf16.mxu1 %v7674_v5  ;;  %v7753_v3 = vcombine.low %v279_v52, %v287_v54  ;;  %v7768_v5 = vcombine.high %v294_v61, %v302_v62  ;;  %v7770_v6 = vcombine.high %v295_v0, %v303_v1  ;;  %v375_v50 = vld [vmem:[%s11747_s1 + $0xb38] sm:$0xff] }
 0x30c   :  { %v383_v52 = vld [vmem:[%s11747_s1 + $0xb78] sm:$0xff] }
 0x30e   :  { %7024 = vmatpush1.bf16.msra.mxu0 %v7671_v14  ;;  %7188 = vmatpush1.bf16.msra.mxu1 %v7673_v15  ;;  %v319_v14 = vld [vmem:[%s11747_s1 + $0x978] sm:$0xff]  ;;  %v7767_v15 = vcombine.low %v294_v61, %v302_v62  ;;  %v398_v61 = vld [vmem:[%s11747_s1 + $0xbf0] sm:$0xff] }
 0x30f   :  { %7025 = vmatprep.subr.bf16.mxu0 %v7688_v16  ;;  %7189 = vmatprep.subr.bf16.mxu1 %v7690_v17  ;;  %v7769_v16 = vcombine.low %v295_v0, %v303_v1  ;;  %v7784_v17 = vcombine.high %v310_v10, %v318_v12  ;;  %v7786_v18 = vcombine.high %v311_v13, %v319_v14  ;;  %v391_v62 = vld [vmem:[%s11747_s1 + $0xbb8] sm:$0xff] }
 0x310   :  { %v399_v0 = vld [vmem:[%s11747_s1 + $0xbf8] sm:$0xff] }
 0x312   :  { %7026 = vmatpush1.bf16.msra.mxu0 %v7687_v22  ;;  %7190 = vmatpush1.bf16.msra.mxu1 %v7689_v24  ;;  %v7783_v22 = vcombine.low %v310_v10, %v318_v12  ;;  %v7785_v24 = vcombine.low %v311_v13, %v319_v14  ;;  %v414_v10 = vld [vmem:[%s11747_s1 + $0xc70] sm:$0xff]  ;;  %v407_v12 = vld [vmem:[%s11747_s1 + $0xc38] sm:$0xff] }
 0x313   :  { %7027 = vmatprep.subr.bf16.mxu0 %v7704_v25  ;;  %7191 = vmatprep.subr.bf16.mxu1 %v7706_v26  ;;  %v7800_v25 = vcombine.high %v326_v19, %v334_v20  ;;  %v415_v13 = vld [vmem:[%s11747_s1 + $0xc78] sm:$0xff]  ;;  %v430_v19 = vld [vmem:[%s11747_s1 + $0xcf0] sm:$0xff] }
 0x314   :  { %v423_v20 = vld [vmem:[%s11747_s1 + $0xcb8] sm:$0xff] }
 0x316   :  { %7028 = vmatpush1.bf16.msra.mxu0 %v7703_v30  ;;  %7192 = vmatpush1.bf16.msra.mxu1 %v7705_v33  ;;  %v7816_v33 = vcombine.high %v342_v59, %v350_v27  ;;  %v446_v59 = vld [vmem:[%s11747_s1 + $0xd70] sm:$0xff]  ;;  %v439_v27 = vld [vmem:[%s11747_s1 + $0xd38] sm:$0xff] }
 0x317   :  { %7029 = vmatprep.subr.bf16.mxu0 %v7720_v34  ;;  %7193 = vmatprep.subr.bf16.mxu1 %v7722_v35  ;;  %v358_v35 = vld [vmem:[%s11747_s1 + $0xab0] sm:$0xff] }
 0x318   :  { %v7831_v54 = vcombine.low %v358_v35, %v366_v36 }
 0x31a   :  { %7030 = vmatpush1.bf16.msra.mxu0 %v7719_v49  ;;  %7194 = vmatpush1.bf16.msra.mxu1 %v7721_v45  ;;  %v7832_v45 = vcombine.high %v358_v35, %v366_v36  ;;  %v462_v35 = vld [vmem:[%s11747_s1 + $0xdf0] sm:$0xff]  ;;  %v455_v36 = vld [vmem:[%s11747_s1 + $0xdb8] sm:$0xff] }
 0x31b   :  { %7031 = vmatprep.subr.bf16.mxu0 %v7736_v46  ;;  %7195 = vmatprep.subr.bf16.mxu1 %v7738_v47  ;;  %v7834_v46 = vcombine.high %v359_v40, %v367_v42  ;;  %v374_v47 = vld [vmem:[%s11747_s1 + $0xb30] sm:$0xff] }
 0x31c   :  { %v7847_v1 = vcombine.low %v374_v47, %v382_v9 }
 0x31e   :  { %7032 = vmatpush1.bf16.msra.mxu0 %v7735_v55  ;;  %7196 = vmatpush1.bf16.msra.mxu1 %v7737_v56  ;;  %v7833_v55 = vcombine.low %v359_v40, %v367_v42  ;;  %v7848_v56 = vcombine.high %v374_v47, %v382_v9  ;;  %v463_v40 = vld [vmem:[%s11747_s1 + $0xdf8] sm:$0xff]  ;;  %v478_v47 = vld [vmem:[%s11747_s1 + $0xe70] sm:$0xff] }
 0x31f   :  { %7042 = vmatprep.subr.bf16.mxu0 %v7752_v57  ;;  %7206 = vmatprep.subr.bf16.mxu1 %v7754_v60  ;;  %v7850_v57 = vcombine.high %v375_v50, %v383_v52  ;;  %v390_v60 = vld [vmem:[%s11747_s1 + $0xbb0] sm:$0xff]  ;;  %v471_v9 = vld [vmem:[%s11747_s1 + $0xe38] sm:$0xff] }
 0x320   :  { %v7863_v14 = vcombine.low %v390_v60, %v398_v61 }
 0x321   :  { %7034 = vmatmul.mubr.bf16.vlgmr.msra.gmra.mrb[12].mxu0 %v8844_v23  ;;  %7198 = vmatmul.mubr.bf16.vlgmr.msra.gmra.mrb[12].mxu1 %v8844_v23  ;;  %v327_v23 = vld [vmem:[%s11747_s1 + $0x9b8] sm:$0xff] }
 0x322   :  { %7043 = vmatpush1.bf16.msra.mxu0 %v7751_v2  ;;  %7207 = vmatpush1.bf16.msra.mxu1 %v7753_v3  ;;  %v7802_v26 = vcombine.high %v327_v23, %v335_v21  ;;  %v7801_v30 = vcombine.low %v327_v23, %v335_v21  ;;  %v7849_v2 = vcombine.low %v375_v50, %v383_v52  ;;  %v431_v23 = vld [vmem:[%s11747_s1 + $0xcf8] sm:$0xff] }
 0x323   :  { %7044 = vmatprep.subr.bf16.mxu0 %v7768_v5  ;;  %7208 = vmatprep.subr.bf16.mxu1 %v7770_v6  ;;  %v7864_v3 = vcombine.high %v390_v60, %v398_v61  ;;  %v7866_v5 = vcombine.high %v391_v62, %v399_v0  ;;  %v406_v6 = vld [vmem:[%s11747_s1 + $0xc30] sm:$0xff]  ;;  %v479_v50 = vld [vmem:[%s11747_s1 + $0xe78] sm:$0xff] }
 0x324   :  { %7074 = vmatprep.mubr.bf16.mxu0 %v8860_v31  ;;  %7238 = vmatprep.mubr.bf16.mxu1 %v8860_v31  ;;  %v343_v31 = vld [vmem:[%s11747_s1 + $0xa38] sm:$0xff]  ;;  %v7879_v21 = vcombine.low %v406_v6, %v414_v10  ;;  %v494_v60 = vld [vmem:[%s11747_s1 + $0xef0] sm:$0xff] }
 0x325   :  { %v7818_v34 = vcombine.high %v343_v31, %v351_v29  ;;  %v7817_v49 = vcombine.low %v343_v31, %v351_v29  ;;  %v447_v31 = vld [vmem:[%s11747_s1 + $0xd78] sm:$0xff] }
 0x326   :  { %7045 = vmatpush1.bf16.msra.mxu0 %v7767_v15  ;;  %7209 = vmatpush1.bf16.msra.mxu1 %v7769_v16  ;;  %v7865_v15 = vcombine.low %v391_v62, %v399_v0  ;;  %v7880_v16 = vcombine.high %v406_v6, %v414_v10  ;;  %v487_v61 = vld [vmem:[%s11747_s1 + $0xeb8] sm:$0xff]  ;;  %v510_v6 = vld [vmem:[%s11747_s1 + $0xf70] sm:$0xff] }
 0x327   :  { %7046 = vmatprep.subr.bf16.mxu0 %v7784_v17  ;;  %7210 = vmatprep.subr.bf16.mxu1 %v7786_v18  ;;  %v7882_v17 = vcombine.high %v407_v12, %v415_v13  ;;  %v422_v18 = vld [vmem:[%s11747_s1 + $0xcb0] sm:$0xff]  ;;  %v495_v62 = vld [vmem:[%s11747_s1 + $0xef8] sm:$0xff] }
 0x328   :  { %v7895_v29 = vcombine.low %v422_v18, %v430_v19  ;;  %v503_v10 = vld [vmem:[%s11747_s1 + $0xf38] sm:$0xff] }
 0x32a   :  { %7047 = vmatpush1.bf16.msra.mxu0 %v7783_v22  ;;  %7211 = vmatpush1.bf16.msra.mxu1 %v7785_v24  ;;  %v7881_v22 = vcombine.low %v407_v12, %v415_v13  ;;  %v7896_v24 = vcombine.high %v422_v18, %v430_v19  ;;  %v511_v12 = vld [vmem:[%s11747_s1 + $0xf78] sm:$0xff]  ;;  %v526_v18 = vld [vmem:[%s11747_s1 + $0xff0] sm:$0xff] }
 0x32b   :  { %7048 = vmatprep.subr.bf16.mxu0 %v7800_v25  ;;  %7212 = vmatprep.subr.bf16.mxu1 %v7802_v26  ;;  %v7898_v25 = vcombine.high %v423_v20, %v431_v23  ;;  %v438_v26 = vld [vmem:[%s11747_s1 + $0xd30] sm:$0xff]  ;;  %v519_v19 = vld [vmem:[%s11747_s1 + $0xfb8] sm:$0xff] }
 0x32c   :  { %v7911_v42 = vcombine.low %v438_v26, %v446_v59 }
 0x32e   :  { %7049 = vmatpush1.bf16.msra.mxu0 %v7799_v63  ;;  %7213 = vmatpush1.bf16.msra.mxu1 %v7801_v30  ;;  %v7897_v63 = vcombine.low %v423_v20, %v431_v23  ;;  %v7912_v30 = vcombine.high %v438_v26, %v446_v59  ;;  %v527_v20 = vld [vmem:[%s11747_s1 + $0xff8] sm:$0xff]  ;;  %v542_v26 = vld [vmem:[%s11747_s1 + $0x1070] sm:$0xff] }
 0x32f   :  { %7050 = vmatprep.subr.bf16.mxu0 %v7816_v33  ;;  %7214 = vmatprep.subr.bf16.mxu1 %v7818_v34  ;;  %v7914_v33 = vcombine.high %v439_v27, %v447_v31  ;;  %v454_v34 = vld [vmem:[%s11747_s1 + $0xdb0] sm:$0xff]  ;;  %v535_v59 = vld [vmem:[%s11747_s1 + $0x1038] sm:$0xff] }
 0x330   :  { %v7927_v52 = vcombine.low %v454_v34, %v462_v35 }
 0x332   :  { %7051 = vmatpush1.bf16.msra.mxu0 %v7815_v44  ;;  %7215 = vmatpush1.bf16.msra.mxu1 %v7817_v49  ;;  %v7913_v44 = vcombine.low %v439_v27, %v447_v31  ;;  %v7928_v49 = vcombine.high %v454_v34, %v462_v35  ;;  %v543_v27 = vld [vmem:[%s11747_s1 + $0x1078] sm:$0xff]  ;;  %v558_v34 = vld [vmem:[%s11747_s1 + $0x10f0] sm:$0xff] }
 0x333   :  { %7052 = vmatprep.subr.bf16.mxu0 %v7832_v45  ;;  %7216 = vmatprep.subr.bf16.mxu1 %v7834_v46  ;;  %v7930_v45 = vcombine.high %v455_v36, %v463_v40  ;;  %v470_v46 = vld [vmem:[%s11747_s1 + $0xe30] sm:$0xff]  ;;  %v551_v35 = vld [vmem:[%s11747_s1 + $0x10b8] sm:$0xff] }
 0x334   :  { %v7943_v0 = vcombine.low %v470_v46, %v478_v47 }
 0x336   :  { %7053 = vmatpush1.bf16.msra.mxu0 %v7831_v54  ;;  %7217 = vmatpush1.bf16.msra.mxu1 %v7833_v55  ;;  %v7929_v54 = vcombine.low %v455_v36, %v463_v40  ;;  %v7944_v55 = vcombine.high %v470_v46, %v478_v47  ;;  %v559_v36 = vld [vmem:[%s11747_s1 + $0x10f8] sm:$0xff]  ;;  %v574_v46 = vld [vmem:[%s11747_s1 + $0x1170] sm:$0xff] }
 0x337   :  { %7054 = vmatprep.subr.bf16.mxu0 %v7848_v56  ;;  %7218 = vmatprep.subr.bf16.mxu1 %v7850_v57  ;;  %v7946_v56 = vcombine.high %v471_v9, %v479_v50  ;;  %v486_v57 = vld [vmem:[%s11747_s1 + $0xeb0] sm:$0xff]  ;;  %v567_v47 = vld [vmem:[%s11747_s1 + $0x1138] sm:$0xff] }
 0x338   :  { %v7959_v13 = vcombine.low %v486_v57, %v494_v60 }
 0x33a   :  { %7055 = vmatpush1.bf16.msra.mxu0 %v7847_v1  ;;  %7219 = vmatpush1.bf16.msra.mxu1 %v7849_v2  ;;  %v7945_v1 = vcombine.low %v471_v9, %v479_v50  ;;  %v7960_v2 = vcombine.high %v486_v57, %v494_v60  ;;  %v575_v9 = vld [vmem:[%s11747_s1 + $0x1178] sm:$0xff]  ;;  %v590_v57 = vld [vmem:[%s11747_s1 + $0x11f0] sm:$0xff] }
 0x33b   :  { %7056 = vmatprep.subr.bf16.mxu0 %v7864_v3  ;;  %7220 = vmatprep.subr.bf16.mxu1 %v7866_v5  ;;  %v7962_v3 = vcombine.high %v487_v61, %v495_v62  ;;  %v502_v5 = vld [vmem:[%s11747_s1 + $0xf30] sm:$0xff]  ;;  %v591_v60 = vld [vmem:[%s11747_s1 + $0x11f8] sm:$0xff] }
 0x33c   :  { %v7975_v23 = vcombine.low %v502_v5, %v510_v6 }
 0x33e   :  { %7057 = vmatpush1.bf16.msra.mxu0 %v7863_v14  ;;  %7221 = vmatpush1.bf16.msra.mxu1 %v7865_v15  ;;  %v7961_v14 = vcombine.low %v487_v61, %v495_v62  ;;  %v7976_v15 = vcombine.high %v502_v5, %v510_v6  ;;  %v8041_v62 = vcombine.low %v567_v47, %v575_v9  ;;  %v607_v5 = vld [vmem:[%s11747_s1 + $0x1278] sm:$0xff] }
 0x33f   :  { %7058 = vmatprep.subr.bf16.mxu0 %v7880_v16  ;;  %7222 = vmatprep.subr.bf16.mxu1 %v7882_v17  ;;  %v7978_v16 = vcombine.high %v503_v10, %v511_v12  ;;  %v518_v17 = vld [vmem:[%s11747_s1 + $0xfb0] sm:$0xff] }
 0x340   :  { %v7991_v31 = vcombine.low %v518_v17, %v526_v18 }
 0x342   :  { %7059 = vmatpush1.bf16.msra.mxu0 %v7879_v21  ;;  %7223 = vmatpush1.bf16.msra.mxu1 %v7881_v22  ;;  %v7977_v21 = vcombine.low %v503_v10, %v511_v12  ;;  %v7992_v22 = vcombine.high %v518_v17, %v526_v18  ;;  %v623_v17 = vld [vmem:[%s11747_s1 + $0x12f8] sm:$0xff] }
 0x343   :  { %7060 = vmatprep.subr.bf16.mxu0 %v7896_v24  ;;  %7224 = vmatprep.subr.bf16.mxu1 %v7898_v25  ;;  %v7994_v24 = vcombine.high %v519_v19, %v527_v20  ;;  %v534_v25 = vld [vmem:[%s11747_s1 + $0x1030] sm:$0xff] }
 0x344   :  { %v8007_v40 = vcombine.low %v534_v25, %v542_v26 }
 0x346   :  { %7061 = vmatpush1.bf16.msra.mxu0 %v7895_v29  ;;  %7225 = vmatpush1.bf16.msra.mxu1 %v7897_v63  ;;  %v7993_v29 = vcombine.low %v519_v19, %v527_v20  ;;  %v8008_v63 = vcombine.high %v534_v25, %v542_v26  ;;  %v639_v25 = vld [vmem:[%s11747_s1 + $0x1378] sm:$0xff] }
 0x347   :  { %7062 = vmatprep.subr.bf16.mxu0 %v7912_v30  ;;  %7226 = vmatprep.subr.bf16.mxu1 %v7914_v33  ;;  %v8010_v30 = vcombine.high %v535_v59, %v543_v27  ;;  %v550_v33 = vld [vmem:[%s11747_s1 + $0x10b0] sm:$0xff] }
 0x348   :  { %v8023_v50 = vcombine.low %v550_v33, %v558_v34 }
 0x34a   :  { %7063 = vmatpush1.bf16.msra.mxu0 %v7911_v42  ;;  %7227 = vmatpush1.bf16.msra.mxu1 %v7913_v44  ;;  %v8009_v42 = vcombine.low %v535_v59, %v543_v27  ;;  %v8024_v44 = vcombine.high %v550_v33, %v558_v34  ;;  %v655_v33 = vld [vmem:[%s11747_s1 + $0x13f8] sm:$0xff] }
 0x34b   :  { %7064 = vmatprep.subr.bf16.mxu0 %v7928_v49  ;;  %7228 = vmatprep.subr.bf16.mxu1 %v7930_v45  ;;  %v8026_v49 = vcombine.high %v551_v35, %v559_v36  ;;  %v566_v45 = vld [vmem:[%s11747_s1 + $0x1130] sm:$0xff] }
 0x34c   :  { %v8039_v61 = vcombine.low %v566_v45, %v574_v46 }
 0x34e   :  { %7065 = vmatpush1.bf16.msra.mxu0 %v7927_v52  ;;  %7229 = vmatpush1.bf16.msra.mxu1 %v7929_v54  ;;  %v8025_v52 = vcombine.low %v551_v35, %v559_v36  ;;  %v8040_v54 = vcombine.high %v566_v45, %v574_v46  ;;  %v671_v45 = vld [vmem:[%s11747_s1 + $0x1478] sm:$0xff] }
 0x34f   :  { %7066 = vmatprep.subr.bf16.mxu0 %v7944_v55  ;;  %7230 = vmatprep.subr.bf16.mxu1 %v7946_v56  ;;  %v8042_v55 = vcombine.high %v567_v47, %v575_v9  ;;  %v582_v56 = vld [vmem:[%s11747_s1 + $0x11b0] sm:$0xff] }
 0x350   :  { %v8055_v6 = vcombine.low %v582_v56, %v590_v57 }
 0x352   :  { %7067 = vmatpush1.bf16.msra.mxu0 %v7943_v0  ;;  %7231 = vmatpush1.bf16.msra.mxu1 %v7945_v1  ;;  %v8056_v0 = vcombine.high %v582_v56, %v590_v57  ;;  %v687_v56 = vld [vmem:[%s11747_s1 + $0x14f8] sm:$0xff] }
 0x353   :  { %7068 = vmatprep.subr.bf16.mxu0 %v7960_v2  ;;  %7232 = vmatprep.subr.bf16.mxu1 %v7962_v3  ;;  %v598_v2 = vld [vmem:[%s11747_s1 + $0x1230] sm:$0xff] }
 0x354   :  { %v606_v3 = vld [vmem:[%s11747_s1 + $0x1270] sm:$0xff] }
 0x355   :  { %v8072_v12 = vcombine.high %v598_v2, %v606_v3  ;;  %v8071_v18 = vcombine.low %v598_v2, %v606_v3  ;;  %v703_v2 = vld [vmem:[%s11747_s1 + $0x1578] sm:$0xff] }
 0x356   :  { %7069 = vmatpush1.bf16.msra.mxu0 %v7959_v13  ;;  %7233 = vmatpush1.bf16.msra.mxu1 %v7961_v14  ;;  %v614_v14 = vld [vmem:[%s11747_s1 + $0x12b0] sm:$0xff] }
 0x357   :  { %7070 = vmatprep.subr.bf16.mxu0 %v7976_v15  ;;  %7234 = vmatprep.subr.bf16.mxu1 %v7978_v16  ;;  %v622_v15 = vld [vmem:[%s11747_s1 + $0x12f0] sm:$0xff]  ;;  %v615_v16 = vld [vmem:[%s11747_s1 + $0x12b8] sm:$0xff] }
 0x358   :  { %v8088_v20 = vcombine.high %v614_v14, %v622_v15  ;;  %v8087_v26 = vcombine.low %v614_v14, %v622_v15  ;;  %v8089_v59 = vcombine.low %v615_v16, %v623_v17  ;;  %v719_v14 = vld [vmem:[%s11747_s1 + $0x15f8] sm:$0xff] }
 0x35a   :  { %7071 = vmatpush1.bf16.msra.mxu0 %v7975_v23  ;;  %7235 = vmatpush1.bf16.msra.mxu1 %v7977_v21  ;;  %v8090_v23 = vcombine.high %v615_v16, %v623_v17  ;;  %v630_v21 = vld [vmem:[%s11747_s1 + $0x1330] sm:$0xff] }
 0x35b   :  { %7072 = vmatprep.subr.bf16.mxu0 %v7992_v22  ;;  %7236 = vmatprep.subr.bf16.mxu1 %v7994_v24  ;;  %v638_v22 = vld [vmem:[%s11747_s1 + $0x1370] sm:$0xff]  ;;  %v631_v24 = vld [vmem:[%s11747_s1 + $0x1338] sm:$0xff] }
 0x35c   :  { %v8104_v27 = vcombine.high %v630_v21, %v638_v22  ;;  %v8103_v34 = vcombine.low %v630_v21, %v638_v22  ;;  %v8105_v35 = vcombine.low %v631_v24, %v639_v25  ;;  %v735_v21 = vld [vmem:[%s11747_s1 + $0x1678] sm:$0xff] }
 0x35e   :  { %7073 = vmatpush1.bf16.msra.mxu0 %v7991_v31  ;;  %7237 = vmatpush1.bf16.msra.mxu1 %v7993_v29  ;;  %v8106_v31 = vcombine.high %v631_v24, %v639_v25  ;;  %v646_v29 = vld [vmem:[%s11747_s1 + $0x13b0] sm:$0xff] }
 0x35f   :  { %7083 = vmatprep.subr.bf16.mxu0 %v8008_v63  ;;  %7247 = vmatprep.subr.bf16.mxu1 %v8010_v30  ;;  %v654_v63 = vld [vmem:[%s11747_s1 + $0x13f0] sm:$0xff]  ;;  %v647_v30 = vld [vmem:[%s11747_s1 + $0x13b8] sm:$0xff] }
 0x360   :  { %v8120_v36 = vcombine.high %v646_v29, %v654_v63  ;;  %v8119_v46 = vcombine.low %v646_v29, %v654_v63  ;;  %v8121_v47 = vcombine.low %v647_v30, %v655_v33  ;;  %v751_v29 = vld [vmem:[%s11747_s1 + $0x16f8] sm:$0xff] }
 0x361   :  { %7075 = vmatmul.mubr.bf16.vlgmr.msra.gmra.mrb[12].mxu0 %v9055_v38  ;;  %7239 = vmatmul.mubr.bf16.vlgmr.msra.gmra.mrb[12].mxu1 %v9055_v38  ;;  %v583_v38 = vld [vmem:[%s11747_s1 + $0x11b8] sm:$0xff] }
 0x362   :  { %7084 = vmatpush1.bf16.msra.mxu0 %v8007_v40  ;;  %7248 = vmatpush1.bf16.msra.mxu1 %v8009_v42  ;;  %v8058_v1 = vcombine.high %v583_v38, %v591_v60  ;;  %v8057_v10 = vcombine.low %v583_v38, %v591_v60  ;;  %v8122_v40 = vcombine.high %v647_v30, %v655_v33  ;;  %v662_v42 = vld [vmem:[%s11747_s1 + $0x1430] sm:$0xff] }
 0x363   :  { %7085 = vmatprep.subr.bf16.mxu0 %v8024_v44  ;;  %7249 = vmatprep.subr.bf16.mxu1 %v8026_v49  ;;  %v670_v44 = vld [vmem:[%s11747_s1 + $0x1470] sm:$0xff]  ;;  %v663_v49 = vld [vmem:[%s11747_s1 + $0x1438] sm:$0xff] }
 0x364   :  { %7115 = vmatprep.mubr.bf16.mxu0 %v9070_v48  ;;  %7279 = vmatprep.mubr.bf16.mxu1 %v9070_v48  ;;  %v599_v48 = vld [vmem:[%s11747_s1 + $0x1238] sm:$0xff]  ;;  %v8136_v9 = vcombine.high %v662_v42, %v670_v44  ;;  %v8135_v57 = vcombine.low %v662_v42, %v670_v44  ;;  %v8137_v38 = vcombine.low %v663_v49, %v671_v45 }
 0x365   :  { %v8074_v13 = vcombine.high %v599_v48, %v607_v5  ;;  %v8073_v19 = vcombine.low %v599_v48, %v607_v5  ;;  %v767_v42 = vld [vmem:[%s11747_s1 + $0x1778] sm:$0xff] }
 0x366   :  { %7086 = vmatpush1.bf16.msra.mxu0 %v8023_v50  ;;  %7250 = vmatpush1.bf16.msra.mxu1 %v8025_v52  ;;  %v8138_v50 = vcombine.high %v663_v49, %v671_v45  ;;  %v678_v52 = vld [vmem:[%s11747_s1 + $0x14b0] sm:$0xff] }
 0x367   :  { %7087 = vmatprep.subr.bf16.mxu0 %v8040_v54  ;;  %7251 = vmatprep.subr.bf16.mxu1 %v8042_v55  ;;  %v686_v54 = vld [vmem:[%s11747_s1 + $0x14f0] sm:$0xff]  ;;  %v679_v55 = vld [vmem:[%s11747_s1 + $0x14b8] sm:$0xff] }
 0x368   :  { %v8152_v60 = vcombine.high %v678_v52, %v686_v54  ;;  %v8151_v3 = vcombine.low %v678_v52, %v686_v54  ;;  %v8153_v48 = vcombine.low %v679_v55, %v687_v56  ;;  %v783_v52 = vld [vmem:[%s11747_s1 + $0x17f8] sm:$0xff] }
 0x36a   :  { %7088 = vmatpush1.bf16.msra.mxu0 %v8039_v61  ;;  %7252 = vmatpush1.bf16.msra.mxu1 %v8041_v62  ;;  %v8154_v61 = vcombine.high %v679_v55, %v687_v56  ;;  %v694_v62 = vld [vmem:[%s11747_s1 + $0x1530] sm:$0xff] }
 0x36b   :  { %7089 = vmatprep.subr.bf16.mxu0 %v8056_v0  ;;  %7253 = vmatprep.subr.bf16.mxu1 %v8058_v1  ;;  %v702_v0 = vld [vmem:[%s11747_s1 + $0x1570] sm:$0xff]  ;;  %v695_v1 = vld [vmem:[%s11747_s1 + $0x1538] sm:$0xff] }
 0x36c   :  { %v8168_v5 = vcombine.high %v694_v62, %v702_v0  ;;  %v8167_v15 = vcombine.low %v694_v62, %v702_v0  ;;  %v8169_v16 = vcombine.low %v695_v1, %v703_v2  ;;  %v799_v62 = vld [vmem:[%s11747_s1 + $0x1878] sm:$0xff] }
 0x36e   :  { %7090 = vmatpush1.bf16.msra.mxu0 %v8055_v6  ;;  %7254 = vmatpush1.bf16.msra.mxu1 %v8057_v10  ;;  %v8170_v6 = vcombine.high %v695_v1, %v703_v2  ;;  %v710_v10 = vld [vmem:[%s11747_s1 + $0x15b0] sm:$0xff] }
 0x36f   :  { %7091 = vmatprep.subr.bf16.mxu0 %v8072_v12  ;;  %7255 = vmatprep.subr.bf16.mxu1 %v8074_v13  ;;  %v718_v12 = vld [vmem:[%s11747_s1 + $0x15f0] sm:$0xff]  ;;  %v711_v13 = vld [vmem:[%s11747_s1 + $0x15b8] sm:$0xff] }
 0x370   :  { %v8184_v17 = vcombine.high %v710_v10, %v718_v12  ;;  %v8183_v22 = vcombine.low %v710_v10, %v718_v12  ;;  %v8185_v24 = vcombine.low %v711_v13, %v719_v14  ;;  %v815_v10 = vld [vmem:[%s11747_s1 + $0x18f8] sm:$0xff] }
 0x372   :  { %7092 = vmatpush1.bf16.msra.mxu0 %v8071_v18  ;;  %7256 = vmatpush1.bf16.msra.mxu1 %v8073_v19  ;;  %v8186_v18 = vcombine.high %v711_v13, %v719_v14  ;;  %v726_v19 = vld [vmem:[%s11747_s1 + $0x1630] sm:$0xff] }
 0x373   :  { %7093 = vmatprep.subr.bf16.mxu0 %v8088_v20  ;;  %7257 = vmatprep.subr.bf16.mxu1 %v8090_v23  ;;  %v734_v20 = vld [vmem:[%s11747_s1 + $0x1670] sm:$0xff]  ;;  %v727_v23 = vld [vmem:[%s11747_s1 + $0x1638] sm:$0xff] }
 0x374   :  { %v8200_v25 = vcombine.high %v726_v19, %v734_v20  ;;  %v8199_v63 = vcombine.low %v726_v19, %v734_v20  ;;  %v8201_v30 = vcombine.low %v727_v23, %v735_v21  ;;  %v831_v19 = vld [vmem:[%s11747_s1 + $0x1978] sm:$0xff] }
 0x376   :  { %7094 = vmatpush1.bf16.msra.mxu0 %v8087_v26  ;;  %7258 = vmatpush1.bf16.msra.mxu1 %v8089_v59  ;;  %v8202_v26 = vcombine.high %v727_v23, %v735_v21  ;;  %v742_v59 = vld [vmem:[%s11747_s1 + $0x16b0] sm:$0xff] }
 0x377   :  { %7095 = vmatprep.subr.bf16.mxu0 %v8104_v27  ;;  %7259 = vmatprep.subr.bf16.mxu1 %v8106_v31  ;;  %v750_v27 = vld [vmem:[%s11747_s1 + $0x16f0] sm:$0xff]  ;;  %v743_v31 = vld [vmem:[%s11747_s1 + $0x16b8] sm:$0xff] }
 0x378   :  { %v8216_v33 = vcombine.high %v742_v59, %v750_v27  ;;  %v8215_v44 = vcombine.low %v742_v59, %v750_v27  ;;  %v8217_v49 = vcombine.low %v743_v31, %v751_v29 }
 0x37a   :  { %7096 = vmatpush1.bf16.msra.mxu0 %v8103_v34  ;;  %7260 = vmatpush1.bf16.msra.mxu1 %v8105_v35  ;;  %v8218_v34 = vcombine.high %v743_v31, %v751_v29  ;;  %v758_v35 = vld [vmem:[%s11747_s1 + $0x1730] sm:$0xff] }
 0x37b   :  { %7097 = vmatprep.subr.bf16.mxu0 %v8120_v36  ;;  %7261 = vmatprep.subr.bf16.mxu1 %v8122_v40  ;;  %v766_v36 = vld [vmem:[%s11747_s1 + $0x1770] sm:$0xff]  ;;  %v759_v40 = vld [vmem:[%s11747_s1 + $0x1738] sm:$0xff] }
 0x37c   :  { %v8232_v45 = vcombine.high %v758_v35, %v766_v36  ;;  %v8231_v54 = vcombine.low %v758_v35, %v766_v36  ;;  %v8233_v55 = vcombine.low %v759_v40, %v767_v42 }
 0x37e   :  { %7098 = vmatpush1.bf16.msra.mxu0 %v8119_v46  ;;  %7262 = vmatpush1.bf16.msra.mxu1 %v8121_v47  ;;  %v8234_v46 = vcombine.high %v759_v40, %v767_v42  ;;  %v774_v47 = vld [vmem:[%s11747_s1 + $0x17b0] sm:$0xff] }
 0x37f   :  { %7099 = vmatprep.subr.bf16.mxu0 %v8136_v9  ;;  %7263 = vmatprep.subr.bf16.mxu1 %v8138_v50  ;;  %v782_v9 = vld [vmem:[%s11747_s1 + $0x17f0] sm:$0xff]  ;;  %v775_v50 = vld [vmem:[%s11747_s1 + $0x17b8] sm:$0xff] }
 0x380   :  { %v8248_v56 = vcombine.high %v774_v47, %v782_v9  ;;  %v8247_v0 = vcombine.low %v774_v47, %v782_v9  ;;  %v8249_v1 = vcombine.low %v775_v50, %v783_v52  ;;  %v870_v42 = vld [vmem:[%s11747_s1 + $0x1ab0] sm:$0xff]  ;;  %v11623_v47 = vld [vmem:[%s11749_s2 + $0x8] sm:$0xff] }
 0x382   :  { %7100 = vmatpush1.bf16.msra.mxu0 %v8135_v57  ;;  %7264 = vmatpush1.bf16.msra.mxu1 %v8137_v38  ;;  %v8250_v57 = vcombine.high %v775_v50, %v783_v52  ;;  %v790_v38 = vld [vmem:[%s11747_s1 + $0x1830] sm:$0xff] }
 0x383   :  { %7101 = vmatprep.subr.bf16.mxu0 %v8152_v60  ;;  %7265 = vmatprep.subr.bf16.mxu1 %v8154_v61  ;;  %v798_v60 = vld [vmem:[%s11747_s1 + $0x1870] sm:$0xff]  ;;  %v791_v61 = vld [vmem:[%s11747_s1 + $0x1838] sm:$0xff] }
 0x384   :  { %v8264_v2 = vcombine.high %v790_v38, %v798_v60  ;;  %v8263_v12 = vcombine.low %v790_v38, %v798_v60  ;;  %v8265_v13 = vcombine.low %v791_v61, %v799_v62  ;;  %v895_v38 = vld [vmem:[%s11747_s1 + $0x1b78] sm:$0xff]  ;;  %v1039_v60 = vrot.slane %v11623_v47, %v1006_v37  ;;  %v902_v37 = vld [vmem:[%s11747_s1 + $0x1bb0] sm:$0xff] }
 0x386   :  { %7102 = vmatpush1.bf16.msra.mxu0 %v8151_v3  ;;  %7266 = vmatpush1.bf16.msra.mxu1 %v8153_v48  ;;  %v8266_v3 = vcombine.high %v791_v61, %v799_v62  ;;  %v806_v48 = vld [vmem:[%s11747_s1 + $0x18b0] sm:$0xff]  ;;  %v1035_v61 = vrot.slane %v11623_v47, %v1002_v39 }
 0x387   :  { %7103 = vmatprep.subr.bf16.mxu0 %v8168_v5  ;;  %7267 = vmatprep.subr.bf16.mxu1 %v8170_v6  ;;  %v814_v5 = vld [vmem:[%s11747_s1 + $0x18f0] sm:$0xff]  ;;  %v807_v6 = vld [vmem:[%s11747_s1 + $0x18b8] sm:$0xff] }
 0x388   :  { %v8280_v14 = vcombine.high %v806_v48, %v814_v5  ;;  %v8279_v20 = vcombine.low %v806_v48, %v814_v5  ;;  %v8281_v23 = vcombine.low %v807_v6, %v815_v10  ;;  %v910_v39 = vld [vmem:[%s11747_s1 + $0x1bf0] sm:$0xff] }
 0x38a   :  { %7104 = vmatpush1.bf16.msra.mxu0 %v8167_v15  ;;  %7268 = vmatpush1.bf16.msra.mxu1 %v8169_v16  ;;  %v8282_v15 = vcombine.high %v807_v6, %v815_v10  ;;  %v822_v16 = vld [vmem:[%s11747_s1 + $0x1930] sm:$0xff]  ;;  %v911_v10 = vld [vmem:[%s11747_s1 + $0x1bf8] sm:$0xff] }
 0x38b   :  { %7105 = vmatprep.subr.bf16.mxu0 %v8184_v17  ;;  %7269 = vmatprep.subr.bf16.mxu1 %v8186_v18  ;;  %v830_v17 = vld [vmem:[%s11747_s1 + $0x1970] sm:$0xff]  ;;  %v823_v18 = vld [vmem:[%s11747_s1 + $0x1938] sm:$0xff] }
 0x38c   :  { %v8296_v21 = vcombine.high %v822_v16, %v830_v17  ;;  %v8295_v59 = vcombine.low %v822_v16, %v830_v17  ;;  %v8297_v27 = vcombine.low %v823_v18, %v831_v19 }
 0x38e   :  { %7106 = vmatpush1.bf16.msra.mxu0 %v8183_v22  ;;  %7270 = vmatpush1.bf16.msra.mxu1 %v8185_v24  ;;  %v8298_v22 = vcombine.high %v823_v18, %v831_v19  ;;  %v838_v24 = vld [vmem:[%s11747_s1 + $0x19b0] sm:$0xff] }
 0x38f   :  { %7107 = vmatprep.subr.bf16.mxu0 %v8200_v25  ;;  %7271 = vmatprep.subr.bf16.mxu1 %v8202_v26  ;;  %v846_v25 = vld [vmem:[%s11747_s1 + $0x19f0] sm:$0xff]  ;;  %v847_v26 = vld [vmem:[%s11747_s1 + $0x19f8] sm:$0xff] }
 0x390   :  { %v8312_v31 = vcombine.high %v838_v24, %v846_v25 }
 0x392   :  { %7108 = vmatpush1.bf16.msra.mxu0 %v8199_v63  ;;  %7272 = vmatpush1.bf16.msra.mxu1 %v8201_v30  ;;  %v854_v63 = vld [vmem:[%s11747_s1 + $0x1a30] sm:$0xff] }
 0x393   :  { %7109 = vmatprep.subr.bf16.mxu0 %v8216_v33  ;;  %7273 = vmatprep.subr.bf16.mxu1 %v8218_v34  ;;  %v862_v30 = vld [vmem:[%s11747_s1 + $0x1a70] sm:$0xff]  ;;  %v863_v33 = vld [vmem:[%s11747_s1 + $0x1a78] sm:$0xff]  ;;  %v8311_v34 = vcombine.low %v838_v24, %v846_v25 }
 0x394   :  { %v8328_v36 = vcombine.high %v854_v63, %v862_v30 }
 0x396   :  { %7110 = vmatpush1.bf16.msra.mxu0 %v8215_v44  ;;  %7274 = vmatpush1.bf16.msra.mxu1 %v8217_v49  ;;  %v878_v44 = vld [vmem:[%s11747_s1 + $0x1af0] sm:$0xff]  ;;  %v871_v49 = vld [vmem:[%s11747_s1 + $0x1ab8] sm:$0xff] }
 0x397   :  { %7111 = vmatprep.subr.bf16.mxu0 %v8232_v45  ;;  %7275 = vmatprep.subr.bf16.mxu1 %v8234_v46  ;;  %v879_v45 = vld [vmem:[%s11747_s1 + $0x1af8] sm:$0xff]  ;;  %v8327_v46 = vcombine.low %v854_v63, %v862_v30  ;;  %v8344_v50 = vcombine.high %v870_v42, %v878_v44  ;;  %v8343_v62 = vcombine.low %v870_v42, %v878_v44  ;;  %v942_v42 = vld [vmem:[%s11747_s1 + $0x1cf0] sm:$0xff] }
 0x398   :  { %v8346_v52 = vcombine.high %v871_v49, %v879_v45  ;;  %v8375_v30 = vcombine.low %v902_v37, %v910_v39 }
 0x39a   :  { %7112 = vmatpush1.bf16.msra.mxu0 %v8231_v54  ;;  %7276 = vmatpush1.bf16.msra.mxu1 %v8233_v55  ;;  %v886_v54 = vld [vmem:[%s11747_s1 + $0x1b30] sm:$0xff] }
 0x39b   :  { %7113 = vmatprep.subr.bf16.mxu0 %v8248_v56  ;;  %7277 = vmatprep.subr.bf16.mxu1 %v8250_v57  ;;  %v894_v55 = vld [vmem:[%s11747_s1 + $0x1b70] sm:$0xff]  ;;  %v1031_v56 = vrot.slane %v11623_v47, %v998_v32  ;;  %v887_v57 = vld [vmem:[%s11747_s1 + $0x1b38] sm:$0xff]  ;;  %v1043_v32 = vrot.slane %v11623_v47, %v1010_v41 }
 0x39c   :  { %v903_v41 = vld [vmem:[%s11747_s1 + $0x1bb8] sm:$0xff]  ;;  %v8359_v16 = vcombine.low %v886_v54, %v894_v55 }
 0x39e   :  { %7114 = vmatpush1.bf16.msra.mxu0 %v8247_v0  ;;  %7278 = vmatpush1.bf16.msra.mxu1 %v8249_v1  ;;  %v8345_v0 = vcombine.low %v871_v49, %v879_v45  ;;  %v8360_v1 = vcombine.high %v886_v54, %v894_v55  ;;  %v935_v49 = vld [vmem:[%s11747_s1 + $0x1cb8] sm:$0xff]  ;;  %v950_v55 = vld [vmem:[%s11747_s1 + $0x1d30] sm:$0xff] }
 0x39f   :  { %7124 = vmatprep.subr.bf16.mxu0 %v8264_v2  ;;  %7288 = vmatprep.subr.bf16.mxu1 %v8266_v3  ;;  %v8362_v3 = vcombine.high %v887_v57, %v895_v38  ;;  %v943_v45 = vld [vmem:[%s11747_s1 + $0x1cf8] sm:$0xff] }
 0x3a0   :  { %v8410_v54 = vcombine.high %v935_v49, %v943_v45 }
 0x3a1   :  { %7116 = vmatmul.mubr.bf16.vlgmr.msra.gmra.mrb[12].mxu0 %v9258_v58  ;;  %7280 = vmatmul.mubr.bf16.vlgmr.msra.gmra.mrb[12].mxu1 %v9258_v58  ;;  %v839_v58 = vld [vmem:[%s11747_s1 + $0x19b8] sm:$0xff] }
 0x3a2   :  { %7125 = vmatpush1.bf16.msra.mxu0 %v8263_v12  ;;  %7289 = vmatpush1.bf16.msra.mxu1 %v8265_v13  ;;  %v8314_v29 = vcombine.high %v839_v58, %v847_v26  ;;  %v8313_v35 = vcombine.low %v839_v58, %v847_v26  ;;  %v8378_v58 = vcombine.high %v903_v41, %v911_v10  ;;  %v918_v26 = vld [vmem:[%s11747_s1 + $0x1c30] sm:$0xff] }
 0x3a3   :  { %7126 = vmatprep.subr.bf16.mxu0 %v8280_v14  ;;  %7290 = vmatprep.subr.bf16.mxu1 %v8282_v15 }
 0x3a4   :  { %8465 = vmatprep.mubr.msk.bf16.mxu0 %vm6013_vm0, %v9274_v4  ;;  %8466 = vmatprep.mubr.msk.bf16.mxu1 %vm6013_vm0, %v9274_v4  ;;  %v855_v4 = vld [vmem:[%s11747_s1 + $0x1a38] sm:$0xff] }
 0x3a5   :  { %v8330_v40 = vcombine.high %v855_v4, %v863_v33  ;;  %v8329_v9 = vcombine.low %v855_v4, %v863_v33  ;;  %v8377_v33 = vcombine.low %v903_v41, %v911_v10  ;;  %v990_v41 = vld [vmem:[%s11747_s1 + $0x1e70] sm:$0xff]  ;;  %v983_v10 = vld [vmem:[%s11747_s1 + $0x1e38] sm:$0xff] }
 0x3a6   :  { %7127 = vmatpush1.bf16.msra.mxu0 %v8279_v20  ;;  %7291 = vmatpush1.bf16.msra.mxu1 %v8281_v23  ;;  %v8361_v23 = vcombine.low %v887_v57, %v895_v38  ;;  %v951_v57 = vld [vmem:[%s11747_s1 + $0x1d38] sm:$0xff] }
 0x3a7   :  { %7128 = vmatprep.subr.bf16.mxu0 %v8296_v21  ;;  %7292 = vmatprep.subr.bf16.mxu1 %v8298_v22  ;;  %v8376_v21 = vcombine.high %v902_v37, %v910_v39  ;;  %v959_v38 = vld [vmem:[%s11747_s1 + $0x1d78] sm:$0xff] }
 0x3a8   :  { %v8425_v39 = vcombine.low %v951_v57, %v959_v38 }
 0x3aa   :  { %7129 = vmatpush1.bf16.msra.mxu0 %v8295_v59  ;;  %7293 = vmatpush1.bf16.msra.mxu1 %v8297_v27  ;;  %v926_v59 = vld [vmem:[%s11747_s1 + $0x1c70] sm:$0xff] }
 0x3ab   :  { %7130 = vmatprep.subr.bf16.mxu0 %v8312_v31  ;;  %7294 = vmatprep.subr.bf16.mxu1 %v8314_v29  ;;  %v919_v31 = vld [vmem:[%s11747_s1 + $0x1c38] sm:$0xff] }
 0x3ac   :  { %v927_v29 = vld [vmem:[%s11747_s1 + $0x1c78] sm:$0xff] }
 0x3ae   :  { %7131 = vmatpush1.bf16.msra.mxu0 %v8311_v34  ;;  %7295 = vmatpush1.bf16.msra.mxu1 %v8313_v35  ;;  %v8392_v34 = vcombine.high %v918_v26, %v926_v59 }
 0x3af   :  { %7132 = vmatprep.subr.bf16.mxu0 %v8328_v36  ;;  %7296 = vmatprep.subr.bf16.mxu1 %v8330_v40  ;;  %v8394_v36 = vcombine.high %v919_v31, %v927_v29  ;;  %v934_v40 = vld [vmem:[%s11747_s1 + $0x1cb0] sm:$0xff] }
 0x3b2   :  { %7133 = vmatpush1.bf16.msra.mxu0 %v8327_v46  ;;  %7297 = vmatpush1.bf16.msra.mxu1 %v8329_v9  ;;  %v8391_v46 = vcombine.low %v918_v26, %v926_v59 }
 0x3b3   :  { %7134 = vmatprep.subr.bf16.mxu0 %v8344_v50  ;;  %7298 = vmatprep.subr.bf16.mxu1 %v8346_v52  ;;  %v8393_v50 = vcombine.low %v919_v31, %v927_v29  ;;  %v8408_v52 = vcombine.high %v934_v40, %v942_v42 }
 0x3b4   :  { %v6830_v2 = vpop.f32.mrb[8].mxu0  ;;  %v6994_v5 = vpop.f32.mrb[8].mxu1 }
 0x3b5   :  { %v8483_v48 = vadd.f32 %v6830_v2, %v1031_v56  ;;  %v6832_v6 = vpop.f32.mrb[9].mxu0  ;;  %v8485_v12 = vadd.f32 %v6994_v5, %v1039_v60  ;;  %v6996_v14 = vpop.f32.mrb[9].mxu1  ;;  %v958_v56 = vld [vmem:[%s11747_s1 + $0x1d70] sm:$0xff]  ;;  %v8407_v60 = vcombine.low %v934_v40, %v942_v42  ;;  %v967_v2 = vld [vmem:[%s11747_s1 + $0x1db8] sm:$0xff] }
 0x3b6   :  { %v8484_v13 = vadd.f32 %v6832_v6, %v1035_v61  ;;  %v6834_v15 = vpop.f32.mrb[10].mxu0  ;;  %7135 = vmatpush1.bf16.msra.mxu0 %v8343_v62  ;;  %v8486_v18 = vadd.f32 %v6996_v14, %v1043_v32  ;;  %v6998_v19 = vpop.f32.mrb[10].mxu1  ;;  %7299 = vmatpush1.bf16.msra.mxu1 %v8345_v0  ;;  %v8409_v61 = vcombine.low %v935_v49, %v943_v45  ;;  %v966_v0 = vld [vmem:[%s11747_s1 + $0x1db0] sm:$0xff] }
 0x3b7   :  { %v7337_v17 = vmax.f32 %v8483_v48, 0.0  ;;  %v6835_v20 = vpop.f32.mrb[11].mxu0  ;;  %7136 = vmatprep.subr.bf16.mxu0 %v8360_v1  ;;  %v7339_v22 = vmax.f32 %v8485_v12, 0.0  ;;  %v6999_v25 = vpop.f32.mrb[11].mxu1  ;;  %7300 = vmatprep.subr.bf16.mxu1 %v8362_v3  ;;  %v8424_v62 = vcombine.high %v950_v55, %v958_v56  ;;  %v8426_v32 = vcombine.high %v951_v57, %v959_v38  ;;  %v974_v1 = vld [vmem:[%s11747_s1 + $0x1df0] sm:$0xff]  ;;  %v975_v3 = vld [vmem:[%s11747_s1 + $0x1df8] sm:$0xff] }
 0x3b8   :  { %v7338_v24 = vmax.f32 %v8484_v13, 0.0  ;;  %v7340_v27 = vmax.f32 %v8486_v18, 0.0  ;;  %v8423_v37 = vcombine.low %v950_v55, %v958_v56  ;;  %v8440_v48 = vcombine.high %v966_v0, %v974_v1  ;;  %v982_v6 = vld [vmem:[%s11747_s1 + $0x1e30] sm:$0xff]  ;;  %v991_v12 = vld [vmem:[%s11747_s1 + $0x1e78] sm:$0xff] }
 0x3b9   :  { %v8442_v5 = vcombine.high %v967_v2, %v975_v3  ;;  %v8439_v13 = vcombine.low %v966_v0, %v974_v1  ;;  %v8441_v14 = vcombine.low %v967_v2, %v975_v3  ;;  %v8456_v15 = vcombine.high %v982_v6, %v990_v41 }
 0x3ba   :  { %v8471_v63 = vpack.c.bf16 %v7338_v24, %v7337_v17  ;;  %7137 = vmatpush1.bf16.msra.mxu0 %v8359_v16  ;;  %v8472_v4 = vpack.c.bf16 %v7340_v27, %v7339_v22  ;;  %7301 = vmatpush1.bf16.msra.mxu1 %v8361_v23  ;;  %v8458_v16 = vcombine.high %v983_v10, %v991_v12 }
 0x3bb   :  { %7138 = vmatprep.subr.bf16.mxu0 %v8376_v21  ;;  %7302 = vmatprep.subr.bf16.mxu1 %v8378_v58  ;;  %v8455_v17 = vcombine.low %v982_v6, %v990_v41  ;;  %v8457_v18 = vcombine.low %v983_v10, %v991_v12  ;;  %v1047_v19 = vrot.slane %v11623_v47, %v1014_v28 }
 0x3bc   :  { %v7436_v35 = vrot.slane %v8471_v63, %v8692_v53  ;;  %v7443_v44 = vrot.slane %v8472_v4, %v8692_v53  ;;  %v1055_v20 = vrot.slane %v11623_v47, %v1022_v7  ;;  %v1051_v23 = vrot.slane %v11623_v47, %v1018_v8 }
 0x3bd   :  { %v1059_v21 = vrot.slane %v11623_v47, %v1026_v11 }
 0x3be   :  { %7139 = vmatpush1.bf16.msra.mxu0 %v8375_v30  ;;  %v11687_v9 = vcombine.low %v7436_v35, %v7443_v44  ;;  %7303 = vmatpush1.bf16.msra.mxu1 %v8377_v33 }
 0x3bf   :  { %7140 = vmatprep.subr.bf16.mxu0 %v8392_v34  ;;  %7304 = vmatprep.subr.bf16.mxu1 %v8394_v36 }
 0x3c0   :  { %v7466_v35 = vrot.slane %v11687_v9, %v8692_v53 }
 0x3c2   :  { %7141 = vmatpush1.bf16.msra.mxu0 %v8391_v46  ;;  %7305 = vmatpush1.bf16.msra.mxu1 %v8393_v50 }
 0x3c3   :  { %7142 = vmatprep.subr.bf16.mxu0 %v8408_v52  ;;  %7306 = vmatprep.subr.bf16.mxu1 %v8410_v54 }
 0x3c6   :  { %7143 = vmatpush1.bf16.msra.mxu0 %v8407_v60  ;;  %7307 = vmatpush1.bf16.msra.mxu1 %v8409_v61 }
 0x3c7   :  { %7144 = vmatprep.subr.bf16.mxu0 %v8424_v62  ;;  %7308 = vmatprep.subr.bf16.mxu1 %v8426_v32 }
 0x3ca   :  { %7145 = vmatpush1.bf16.msra.mxu0 %v8423_v37  ;;  %7309 = vmatpush1.bf16.msra.mxu1 %v8425_v39 }
 0x3cb   :  { %7146 = vmatprep.subr.bf16.mxu0 %v8440_v48  ;;  %7310 = vmatprep.subr.bf16.mxu1 %v8442_v5 }
 0x3ce   :  { %7147 = vmatpush1.bf16.msra.mxu0 %v8439_v13  ;;  %7311 = vmatpush1.bf16.msra.mxu1 %v8441_v14 }
 0x3cf   :  { %7148 = vmatprep.subr.bf16.mxu0 %v8456_v15  ;;  %7312 = vmatprep.subr.bf16.mxu1 %v8458_v16 }
 0x3d2   :  { %7149 = vmatpush1.bf16.msra.mxu0 %v8455_v17  ;;  %7313 = vmatpush1.bf16.msra.mxu1 %v8457_v18 }
 0x3d5   :  { %7157 = vmatmul.mubr.bf16.vlgmr.msra.gmra.mrb[12].mxu0 %v9428_v51  ;;  %7321 = vmatmul.mubr.bf16.vlgmr.msra.gmra.mrb[12].mxu1 %v9428_v51 }
 0x4a8   :  { %v7158_v22 = vpop.f32.mrb[12].mxu0  ;;  %v7322_v25 = vpop.f32.mrb[12].mxu1 }
 0x4a9   :  { %v8487_v24 = vadd.f32 %v7158_v22, %v1047_v19  ;;  %v7160_v51 = vpop.f32.mrb[13].mxu0  ;;  %v8489_v58 = vadd.f32 %v7322_v25, %v1055_v20  ;;  %v7324_v59 = vpop.f32.mrb[13].mxu1 }
 0x4aa   :  { %v8488_v26 = vadd.f32 %v7160_v51, %v1051_v23  ;;  %v7162_v28 = vpop.f32.mrb[14].mxu0  ;;  %v8490_v31 = vadd.f32 %v7324_v59, %v1059_v21  ;;  %v7326_v29 = vpop.f32.mrb[14].mxu1 }
 0x4ab   :  { %v7341_v27 = vmax.f32 %v8487_v24, 0.0  ;;  %v7163_v7 = vpop.f32.mrb[15].mxu0  ;;  %v7343_v63 = vmax.f32 %v8489_v58, 0.0  ;;  %v7327_v4 = vpop.f32.mrb[15].mxu1 }
 0x4ac   :  { %v7342_v30 = vmax.f32 %v8488_v26, 0.0  ;;  %v7344_v8 = vmax.f32 %v8490_v31, 0.0 }
 0x4ae   :  { %v8473_v33 = vpack.c.bf16 %v7342_v30, %v7341_v27  ;;  %v8474_v43 = vpack.c.bf16 %v7344_v8, %v7343_v63 }
 0x4b0   :  { %v7450_v11 = vrot.slane %v8473_v33, %v8692_v53  ;;  %v7457_v47 = vrot.slane %v8474_v43, %v8692_v53 }
 0x4b2   :  { %v7459_v34 = vcombine.low %v7450_v11, %v7457_v47 }
 0x4b4   :  { %v7473_v36 = vrot.slane %v7459_v34, %v8692_v53 }
 0x4b6   :  { %v7474_v40 = vcombine.low %v7466_v35, %v7473_v36 }
 0x4b8   :  { %7478 = vst [vmem:[%s11750_s3 + $0x8] sm:$0xff] %v7474_v40 }

</bundles_post_ra>
